<compile_context>
chip_gen: v7x
topology: tpu7x:2x2x1
jax: 0.10.0
libtpu: 0.0.40
codegen_flags: <defaults>
</compile_context>

<pallas_src>
import math

import jax
import jax.numpy as jnp
from jax.experimental import pallas as pl
from jax.experimental.pallas import tpu as pltpu

LRELU_SLOPE = 0.2
FLRELU_SCALE = math.sqrt(2.0)  # FusedLeakyReLU gain (folded into consumers)


# ----------------------------- style MLP kernel -----------------------------

def _make_style_mlp_kernel(n_mlp):
    def kernel(z_ref, w_ref, b_ref, o_ref):
        z = z_ref[...]
        # PixelNorm
        z = z * jax.lax.rsqrt(jnp.mean(z * z, axis=1, keepdims=True) + 1e-8)
        for k in range(n_mlp):  # static unroll
            h = jnp.dot(z.astype(w_ref.dtype), w_ref[k],
                        preferred_element_type=jnp.float32) + b_ref[k]
            z = jnp.maximum(h, LRELU_SLOPE * h) * FLRELU_SCALE
        o_ref[...] = z.astype(o_ref.dtype)
    return kernel


def style_mlp_apply(z, w_stack, b_stack, compute_dtype=jnp.bfloat16):
    n_mlp = w_stack.shape[0]
    return pl.pallas_call(
        _make_style_mlp_kernel(n_mlp),
        out_shape=jax.ShapeDtypeStruct(z.shape, z.dtype),
    )(z, w_stack.astype(compute_dtype), b_stack)


# ------------------------------ fused generator ------------------------------

def _make_fused_kernel(n_intermediate, to_rgb_stride, compute_dtype):
    """Whole per-pixel network for one (batch, spatial-tile) grid point."""
    def kernel(coords_ref, lffw_ref, lffb_ref, w1_ref, b1_ref,
               wl_ref, bl_ref, wr_ref, brgb_ref, o_ref):
        f32 = jnp.float32

        # --- LFF: 1x1 conv over (x, y) + sin.  K == 2 -> two VPU broadcasts.
        c = coords_ref[...].astype(f32)
        pre = (c[:, 0:1] * lffw_ref[0:1, :]
               + c[:, 1:2] * lffw_ref[1:2, :]
               + lffb_ref[...])
        x = jnp.sin(pre)                                   # (tn, hidden)

        def styled(x, w, b):
            h = jnp.dot(x.astype(compute_dtype), w,
                        preferred_element_type=f32) + b
            # NoiseInjection(weight==0) is identity.  Leaky ReLU; the sqrt(2)
            # FusedLeakyReLU gain is folded into the consumer's weights.
            return jnp.maximum(h, LRELU_SLOPE * h)

        x = styled(x, w1_ref[...], b1_ref[...])            # conv1

        tn = x.shape[0]
        racc = jnp.zeros((tn, 1), f32)
        gacc = jnp.zeros((tn, 1), f32)
        bacc = jnp.zeros((tn, 1), f32)

        l = 0
        for i in range(n_intermediate):                    # static unroll
            for _ in range(to_rgb_stride):
                x = styled(x, wl_ref[l], bl_ref[l])
                l += 1
            # ToRGB (demodulate=False) off the MXU: Cout == 3 would waste a
            # full MXU N-tile, so do broadcast-mul (VPU) + lane-reduce (XLU).
            wr = wr_ref[i]                                 # (3, cmax) f32
            racc = racc + jnp.sum(x * wr[0:1, :], axis=-1, keepdims=True)
            gacc = gacc + jnp.sum(x * wr[1:2, :], axis=-1, keepdims=True)
            bacc = bacc + jnp.sum(x * wr[2:3, :], axis=-1, keepdims=True)

        # Combine the three accumulators into the (tn, 3) output tile.
        lane3 = jax.lax.broadcasted_iota(jnp.int32, (1, 3), 1)
        rgb = (jnp.where(lane3 == 0, racc, 0.0)
               + jnp.where(lane3 == 1, gacc, 0.0)
               + jnp.where(lane3 == 2, bacc, 0.0))
        o_ref[...] = (rgb + brgb_ref[...]).astype(o_ref.dtype)
    return kernel


def probe_single_buffer_support():
    """Check on-device whether pl.Buffered(1) BlockSpecs compile and run."""
    def _k(a_ref, b_ref, o_ref):
        o_ref[...] = a_ref[...] + b_ref[...]
    try:
        f = pl.pallas_call(
            _k,
            out_shape=jax.ShapeDtypeStruct((16, 128), jnp.float32),
            grid=(2,),
            in_specs=[
                pl.BlockSpec((8, 128), lambda i: (i, 0),
                             pipeline_mode=pl.Buffered(1)),
                pl.BlockSpec((8, 128), lambda i: (0, 0),
                             pipeline_mode=pl.Buffered(1)),
            ],
            out_specs=pl.BlockSpec((8, 128), lambda i: (i, 0)))
        out = jax.block_until_ready(
            f(jnp.ones((16, 128), jnp.float32), jnp.ones((8, 128), jnp.float32)))
        return bool(jnp.all(out == 2.0))
    except Exception:
        return False


def _derive_tiling(B, N, hidden, cmax, n_lin, n_rgb, compute_dtype, single_buf):
    """Pick tile_n and vmem_limit_bytes per chip (v5e/v6e: 128 MiB, v7x: 64 MiB)."""
    wbytes = jnp.dtype(compute_dtype).itemsize
    weight_bytes = ((hidden * cmax + n_lin * cmax * cmax) * wbytes
                    + (n_rgb * 3 * cmax + n_lin * cmax + cmax + 3
                       + 3 * hidden) * 4)
    if not single_buf:
        weight_bytes *= 2                                  # default double-buffer
    try:
        cap = int(getattr(pltpu.get_tpu_info(), "vmem_capacity_bytes", 0) or 0)
    except Exception:
        cap = 0
    if cap <= 0:
        cap = 64 * 1024 * 1024                             # worst case: v7x per-core
    budget = int(cap * 0.7)

    def vmem_need(tn):
        act = 8 * tn * max(cmax, hidden) * 4               # x/h/cast intermediates
        io = 2 * (tn * 2 * 4) + 2 * (tn * 3 * 4)           # coords + rgb, 2 buffers
        return weight_bytes + act + io

    tile_n = None
    for cand in (4096, 2048, 1024, 512, 256, 128):
        if N % cand != 0 or vmem_need(cand) > budget:
            continue
        if B == 1 and N // cand < 2 and N // 128 >= 2:
            continue                                       # keep >=2 units for v7x's 2 TCs
        tile_n = cand
        break
    if tile_n is None:
        tile_n = N                                         # whole row in one tile
    vmem_limit = int(min(max(2 * vmem_need(tile_n), 32 * 1024 * 1024), budget))
    return tile_n, vmem_limit


def fused_generator_apply(coords_flat, latent, params, cfg):
    """One pallas_call for the whole per-pixel network."""
    B, N, _ = coords_flat.shape
    hidden = cfg["hidden_size"]
    n_int = cfg["n_intermediate"]
    stride = cfg["to_rgb_stride"]
    compute_dtype = cfg.get("compute_dtype", jnp.bfloat16)
    single_buf = bool(cfg.get("single_buffer_weights", False))

    conv_layers = [params["conv1"]] + list(params["linears"])
    rgb_layers = list(params["to_rgbs"])
    all_layers = conv_layers + rgb_layers
    n_lin = len(conv_layers) - 1
    n_rgb = len(rgb_layers)
    assert n_lin == n_int * stride and n_rgb == n_int

    # ---- one batched matmul for every layer's EqualLinear modulation --------
    mod_w_cat = jnp.concatenate([p["mod_w_t"] for p in all_layers], axis=1)
    mod_b_cat = jnp.concatenate([p["mod_b"] for p in all_layers], axis=0)
    styles_cat = latent @ mod_w_cat + mod_b_cat                     # (B, sum Cin)
    styles, off = [], 0
    for p in all_layers:
        cin = p["weight"].shape[0]
        styles.append(styles_cat[:, off:off + cin])
        off += cin
    conv_styles = styles[:len(conv_layers)]
    rgb_styles = styles[len(conv_layers):]

    # ---- per-batch effective weights, stacked into a few padded arrays ------
    cmax = max([conv_layers[0]["weight"].shape[1]]
               + [p["weight"].shape[0] for p in conv_layers[1:]]
               + [p["weight"].shape[1] for p in conv_layers[1:]]
               + [p["weight"].shape[0] for p in rgb_layers])
    # TODO(synk): for configs whose channel counts are not MXU-lane aligned,
    #             padding cmax up to 128/256 would raise MXU utilization.

    def fold_conv(p, s, gain):
        w = p["weight"]                                             # (cin, cout)
        demod = jax.lax.rsqrt(jnp.dot(s * s, w * w) + 1e-8)         # (B, cout)
        return (s[:, :, None] * w[None, :, :]) * demod[:, None, :] * gain

    # conv1 consumes the LFF sin output -> no folded leaky-ReLU gain.
    we1 = fold_conv(conv_layers[0], conv_styles[0], 1.0)            # (B, hid, c0)
    c0 = we1.shape[2]
    w1 = jnp.zeros((B, hidden, cmax), jnp.float32).at[:, :, :c0].set(we1)
    b1 = jnp.zeros((1, cmax), jnp.float32).at[:, :c0].set(conv_layers[0]["bias"])

    # Styled convs: fold the producer's FusedLeakyReLU sqrt(2) gain here.
    wl = jnp.zeros((B, n_lin, cmax, cmax), jnp.float32)
    bl = jnp.zeros((n_lin, 1, cmax), jnp.float32)
    for l, p in enumerate(conv_layers[1:]):
        we = fold_conv(p, conv_styles[l + 1], FLRELU_SCALE)         # (B, ci, co)
        ci, co = we.shape[1], we.shape[2]
        wl = wl.at[:, l, :ci, :co].set(we)
        bl = bl.at[l, :, :co].set(p["bias"])

    # ToRGB (demodulate=False), stored (3, cmax) per stage for VPU broadcast.
    wr = jnp.zeros((B, n_rgb, 3, cmax), jnp.float32)
    brgb = jnp.zeros((1, 3), jnp.float32)
    for i, p in enumerate(rgb_layers):
        we = (rgb_styles[i][:, :, None] * p["weight"][None, :, :]) * FLRELU_SCALE
        ci = we.shape[1]
        wr = wr.at[:, i, :, :ci].set(jnp.transpose(we, (0, 2, 1)))
        brgb = brgb + p["bias"]

    w1 = w1.astype(compute_dtype)
    wl = wl.astype(compute_dtype)
    # wr / biases stay f32: used on the VPU / added to f32 accumulators.
    # TODO(synk): for large B, fold modulation in-kernel (guarded by t == 0)
    #             instead of materializing (B, L, C, C) effective weights in HBM.

    tile_n, vmem_limit = _derive_tiling(B, N, hidden, cmax, n_lin, n_rgb,
                                        compute_dtype, single_buf)
    assert N % tile_n == 0, (N, tile_n)

    def wspec(block_shape, index_map):
        # Weights/biases never change along the inner spatial grid axis, so
        # double-buffering buys zero overlap -> single-buffer when available.
        if single_buf:
            return pl.BlockSpec(block_shape, index_map,
                                pipeline_mode=pl.Buffered(1))
        return pl.BlockSpec(block_shape, index_map)

    in_specs = [
        pl.BlockSpec((None, tile_n, 2), lambda b, t: (b, t, 0)),       # coords
        wspec((2, hidden), lambda b, t: (0, 0)),                       # lff w
        wspec((1, hidden), lambda b, t: (0, 0)),                       # lff b
        wspec((None, hidden, cmax), lambda b, t: (b, 0, 0)),           # conv1 w
        wspec((1, cmax), lambda b, t: (0, 0)),                         # conv1 b
        wspec((None, n_lin, cmax, cmax), lambda b, t: (b, 0, 0, 0)),   # linears w
        wspec((n_lin, 1, cmax), lambda b, t: (0, 0, 0)),               # linears b
        wspec((None, n_rgb, 3, cmax), lambda b, t: (b, 0, 0, 0)),      # to_rgb w
        wspec((1, 3), lambda b, t: (0, 0)),                            # sum rgb bias
    ]

    return pl.pallas_call(
        _make_fused_kernel(n_int, stride, compute_dtype),
        out_shape=jax.ShapeDtypeStruct((B, N, 3), jnp.float32),
        grid=(B, N // tile_n),
        in_specs=in_specs,
        out_specs=pl.BlockSpec((None, tile_n, 3), lambda b, t: (b, t, 0)),
        compiler_params=pltpu.CompilerParams(
            dimension_semantics=("parallel", "parallel"),
            vmem_limit_bytes=int(vmem_limit)),
    )(coords_flat, params["lff_w"], params["lff_b"], w1, b1, wl, bl, wr, brgb)


# ------------------------------ full forward --------------------------------

def cips_skip_forward(coords, latent_list, params, cfg,
                      return_latents=False, truncation=1, truncation_latent=None,
                      input_is_latent=False, progressive_pe_activation=False):
    # TODO(synk): progressive_pe_activation / pe_activation_mask path not implemented.
    del progressive_pe_activation

    latent = latent_list[0]
    if truncation < 1:
        # NOTE: the reference module truncates z BEFORE the style MLP.
        latent = truncation_latent + truncation * (latent - truncation_latent)
    if not input_is_latent:
        latent = style_mlp_apply(latent, params["style_w"], params["style_b"],
                                 cfg.get("compute_dtype", jnp.bfloat16))

    B, _, H, W = coords.shape
    N = H * W
    coords_flat = jnp.transpose(coords, (0, 2, 3, 1)).reshape(B, N, 2)

    rgb = fused_generator_apply(coords_flat, latent, params, cfg)   # (B, N, 3)
    # TODO(synk): lane-dense (B, 3, N) kernel output skipped; NHWC->NCHW left
    #             to this single cheap XLA transpose.
    rgb_nchw = jnp.transpose(rgb.reshape(B, H, W, 3), (0, 3, 1, 2))

    if return_latents:
        return rgb_nchw, latent
    return rgb_nchw, None


# ---------------------------- parameter creation -----------------------------

def init_params(key, cfg):
    hidden = cfg["hidden_size"]
    style_dim, n_mlp, lr_mlp = cfg["style_dim"], cfg["n_mlp"], cfg["lr_mlp"]
    channels = cfg["channels"]

    keys = iter(jax.random.split(key, 256))
    nk = lambda: next(keys)
    params = {}

    # LFF: Conv2d(2, hidden, 1); weight ~ U(-sqrt(9/2), sqrt(9/2)).
    lim = math.sqrt(9.0 / 2.0)
    params["lff_w"] = jax.random.uniform(nk(), (2, hidden), jnp.float32, -lim, lim)
    blim = 1.0 / math.sqrt(2.0)
    params["lff_b"] = jax.random.uniform(nk(), (1, hidden), jnp.float32, -blim, blim)

    # Style MLP: n_mlp x EqualLinear(style_dim, style_dim, lr_mul, fused_lrelu)
    scale = (1.0 / math.sqrt(style_dim)) * lr_mlp
    ws, bs = [], []
    for _ in range(n_mlp):
        w = jax.random.normal(nk(), (style_dim, style_dim), jnp.float32) / lr_mlp
        ws.append((w * scale).T)                           # (D_in, D_out), pre-scaled
        bs.append(jnp.zeros((1, style_dim), jnp.float32))
    params["style_w"] = jnp.stack(ws)
    params["style_b"] = jnp.stack(bs)

    def styled_conv_params(cin, cout):
        conv_scale = 1.0 / math.sqrt(cin)                  # fan_in = cin * 1 * 1
        w = jax.random.normal(nk(), (cout, cin), jnp.float32)
        mod_w = jax.random.normal(nk(), (cin, style_dim), jnp.float32)
        return {
            "weight": (conv_scale * w).T,                         # (Cin, Cout)
            "mod_w_t": (mod_w * (1.0 / math.sqrt(style_dim))).T,  # (D, Cin)
            "mod_b": jnp.ones((cin,), jnp.float32),               # bias_init=1
            "bias": jnp.zeros((1, cout), jnp.float32),            # FusedLeakyReLU bias
        }

    def to_rgb_params(cin):
        conv_scale = 1.0 / math.sqrt(cin)
        w = jax.random.normal(nk(), (3, cin), jnp.float32)
        mod_w = jax.random.normal(nk(), (cin, style_dim), jnp.float32)
        return {
            "weight": (conv_scale * w).T,                         # (Cin, 3)
            "mod_w_t": (mod_w * (1.0 / math.sqrt(style_dim))).T,
            "mod_b": jnp.ones((cin,), jnp.float32),
            "bias": jnp.zeros((1, 3), jnp.float32),
        }

    in_ch = channels[0]
    params["conv1"] = styled_conv_params(hidden, in_ch)
    linears, torgbs = [], []
    for i in range(cfg["n_intermediate"]):
        out_ch = channels[i]
        linears.append(styled_conv_params(in_ch, out_ch))
        linears.append(styled_conv_params(out_ch, out_ch))
        torgbs.append(to_rgb_params(out_ch))
        in_ch = out_ch
    params["linears"] = linears
    params["to_rgbs"] = torgbs
    return params


# ----------------------------------- main ------------------------------------

if __name__ == "__main__":
    size = 16
    cfg = dict(
        size=size,
        hidden_size=32,
        style_dim=32,
        n_mlp=2,
        lr_mlp=0.01,
        channel_multiplier=2,
        to_rgb_stride=2,
        compute_dtype=jnp.bfloat16,    # MXU-native; f32 accumulation in-kernel
    )
    # Scaled-down channel dict (512-base -> 64-base) so the demo runs small;
    # per-level structure of the original module is unchanged.
    cm = cfg["channel_multiplier"]
    cfg["channels"] = {0: 64, 1: 64, 2: 64, 3: 64,
                       4: 32 * cm, 5: 16 * cm, 6: 8 * cm, 7: 8 * cm, 8: 8 * cm}
    cfg["log_size"] = int(math.log(size, 2))
    cfg["n_intermediate"] = cfg["log_size"] - 1
    # Probe once (outside jit, on the real device) whether single-buffered
    # weight BlockSpecs are supported; fall back to default double-buffering.
    cfg["single_buffer_weights"] = probe_single_buffer_support()

    key = jax.random.PRNGKey(0)
    kp, kl = jax.random.split(key, 2)
    params = init_params(kp, cfg)

    B = 2
    # coordinate grid in [-1, 1], PyTorch layout (B, 2, H, W)
    lin = jnp.linspace(-1.0, 1.0, size, dtype=jnp.float32)
    xx, yy = jnp.meshgrid(lin, lin, indexing="xy")
    coords = jnp.broadcast_to(jnp.stack([xx, yy])[None],
                              (B, 2, size, size)).astype(jnp.float32)

    latent0 = jax.random.normal(kl, (B, cfg["style_dim"]), jnp.float32)

    @jax.jit
    def run(coords_, z_):
        return cips_skip_forward(coords_, [z_], params, cfg)[0]

    rgb = jax.block_until_ready(run(coords, latent0))

    assert rgb.shape == (B, 3, size, size), rgb.shape
    assert bool(jnp.all(jnp.isfinite(rgb)))
    print("KERNEL_OK")
</pallas_src>

<mosaic_0001>
module attributes {stable_mosaic.version = 11 : i64} {
  func.func @_k(%arg0: i32, %arg1: memref<8x128xf32, #tpu.memory_space<vmem>>, %arg2: memref<8x128xf32, #tpu.memory_space<vmem>>, %arg3: memref<8x128xf32, #tpu.memory_space<vmem>>) attributes {dimension_semantics = [#tpu.dimension_semantics<arbitrary>], iteration_bounds = array<i64: 2>, scalar_prefetch = 0 : i64, scratch_operands = 0 : i64, tpu.core_type = #tpu.core_type<tc>, window_params = [{pipeline_mode = #tpu.pipeline_mode<synchronous>, transform_indices = @transform_0, window_bounds = array<i64: 8, 128>}, {pipeline_mode = #tpu.pipeline_mode<synchronous>, transform_indices = @transform_1, window_bounds = array<i64: 8, 128>}, {transform_indices = @transform_2, window_bounds = array<i64: 8, 128>}]} {
    %c0 = arith.constant 0 : index
    %c0_0 = arith.constant 0 : index
    %0 = vector.load %arg1[%c0, %c0_0] : memref<8x128xf32, #tpu.memory_space<vmem>>, vector<8x128xf32>
    %c0_1 = arith.constant 0 : index
    %c0_2 = arith.constant 0 : index
    %1 = vector.load %arg2[%c0_1, %c0_2] : memref<8x128xf32, #tpu.memory_space<vmem>>, vector<8x128xf32>
    %2 = arith.addf %0, %1 : vector<8x128xf32>
    %c0_3 = arith.constant 0 : index
    %c0_4 = arith.constant 0 : index
    %3 = vector.load %arg3[%c0_3, %c0_4] : memref<8x128xf32, #tpu.memory_space<vmem>>, vector<8x128xf32>
    tpu.vector_store %arg3[%c0_3, %c0_4], %2 {strides = array<i32>} : memref<8x128xf32, #tpu.memory_space<vmem>>, vector<8x128xf32>,
    return
  }
  func.func @transform_0(%arg0: i32) -> (i32, i32) {
    %c0_i32 = arith.constant 0 : i32
    %c0_i32_0 = arith.constant 0 : i32
    return %arg0, %c0_i32 : i32, i32
  }
  func.func @transform_1(%arg0: i32) -> (i32, i32) {
    %c0_i32 = arith.constant 0 : i32
    %c0_i32_0 = arith.constant 0 : i32
    %c0_i32_1 = arith.constant 0 : i32
    return %c0_i32, %c0_i32_0 : i32, i32
  }
  func.func @transform_2(%arg0: i32) -> (i32, i32) {
    %c0_i32 = arith.constant 0 : i32
    %c0_i32_0 = arith.constant 0 : i32
    return %arg0, %c0_i32 : i32, i32
  }
}

module attributes {stable_mosaic.version = 11 : i64} {
  func.func @kernel(%arg0: memref<2x32xf32, #tpu.memory_space<vmem>>, %arg1: memref<2x32x32xbf16, #tpu.memory_space<vmem>>, %arg2: memref<2x1x32xf32, #tpu.memory_space<vmem>>, %arg3: memref<2x32xf32, #tpu.memory_space<vmem>>) attributes {dimension_semantics = [], scalar_prefetch = 0 : i64, scratch_operands = 0 : i64, tpu.core_type = #tpu.core_type<tc>} {
    %c0 = arith.constant 0 : index
    %c0_0 = arith.constant 0 : index
    %0 = vector.load %arg0[%c0, %c0_0] : memref<2x32xf32, #tpu.memory_space<vmem>>, vector<2x32xf32>
    %1 = arith.mulf %0, %0 : vector<2x32xf32>
    %cst = arith.constant dense<0.000000e+00> : vector<2xf32>
    %2 = vector.multi_reduction <add>, %1, %cst [1] : vector<2x32xf32> to vector<2xf32>
    %3 = vector.shape_cast %2 : vector<2xf32> to vector<2x1xf32>
    %cst_1 = arith.constant 3.200000e+01 : f32
    %4 = vector.broadcast %cst_1 : f32 to vector<2x1xf32>
    %5 = arith.divf %3, %4 : vector<2x1xf32>
    %cst_2 = arith.constant 9.99999993E-9 : f32
    %6 = vector.broadcast %cst_2 : f32 to vector<2x1xf32>
    %7 = arith.addf %5, %6 : vector<2x1xf32>
    %8 = math.rsqrt %7 : vector<2x1xf32>
    %9 = vector.broadcast %8 : vector<2x1xf32> to vector<2x32xf32>
    %10 = arith.mulf %0, %9 : vector<2x32xf32>
    %11 = arith.truncf %10 : vector<2x32xf32> to vector<2x32xbf16>
    %c0_3 = arith.constant 0 : index
    %c0_4 = arith.constant 0 : index
    %c0_5 = arith.constant 0 : index
    %12 = vector.load %arg1[%c0_3, %c0_4, %c0_5] : memref<2x32x32xbf16, #tpu.memory_space<vmem>>, vector<1x32x32xbf16>
    %13 = vector.shape_cast %12 : vector<1x32x32xbf16> to vector<32x32xbf16>
    %cst_6 = arith.constant dense<0.000000e+00> : vector<2x32xf32>
    %14 = tpu.matmul %11, %13, %cst_6 {dimension_numbers = #tpu.dot_dimension_numbers<[1], [0], [0], [1], [0, 0, 1, 1], [], []>} : vector<2x32xbf16>, vector<32x32xbf16>, vector<2x32xf32> -> vector<2x32xf32>
    %c0_7 = arith.constant 0 : index
    %c0_8 = arith.constant 0 : index
    %c0_9 = arith.constant 0 : index
    %15 = vector.load %arg2[%c0_7, %c0_8, %c0_9] : memref<2x1x32xf32, #tpu.memory_space<vmem>>, vector<1x1x32xf32>
    %16 = vector.shape_cast %15 : vector<1x1x32xf32> to vector<1x32xf32>
    %17 = vector.broadcast %16 : vector<1x32xf32> to vector<2x32xf32>
    %18 = arith.addf %14, %17 : vector<2x32xf32>
    %cst_10 = arith.constant 2.000000e-01 : f32
    %19 = vector.broadcast %cst_10 : f32 to vector<2x32xf32>
    %20 = arith.mulf %19, %18 : vector<2x32xf32>
    %21 = arith.maximumf %18, %20 : vector<2x32xf32>
    %cst_11 = arith.constant 1.41421354 : f32
    %22 = vector.broadcast %cst_11 : f32 to vector<2x32xf32>
    %23 = arith.mulf %21, %22 : vector<2x32xf32>
    %24 = arith.truncf %23 : vector<2x32xf32> to vector<2x32xbf16>
    %c1 = arith.constant 1 : index
    %c0_12 = arith.constant 0 : index
    %c0_13 = arith.constant 0 : index
    %25 = vector.load %arg1[%c1, %c0_12, %c0_13] : memref<2x32x32xbf16, #tpu.memory_space<vmem>>, vector<1x32x32xbf16>
    %26 = vector.shape_cast %25 : vector<1x32x32xbf16> to vector<32x32xbf16>
    %cst_14 = arith.constant dense<0.000000e+00> : vector<2x32xf32>
    %27 = tpu.matmul %24, %26, %cst_14 {dimension_numbers = #tpu.dot_dimension_numbers<[1], [0], [0], [1], [0, 0, 1, 1], [], []>} : vector<2x32xbf16>, vector<32x32xbf16>, vector<2x32xf32> -> vector<2x32xf32>
    %c1_15 = arith.constant 1 : index
    %c0_16 = arith.constant 0 : index
    %c0_17 = arith.constant 0 : index
    %28 = vector.load %arg2[%c1_15, %c0_16, %c0_17] : memref<2x1x32xf32, #tpu.memory_space<vmem>>, vector<1x1x32xf32>
    %29 = vector.shape_cast %28 : vector<1x1x32xf32> to vector<1x32xf32>
    %30 = vector.broadcast %29 : vector<1x32xf32> to vector<2x32xf32>
    %31 = arith.addf %27, %30 : vector<2x32xf32>
    %cst_18 = arith.constant 2.000000e-01 : f32
    %32 = vector.broadcast %cst_18 : f32 to vector<2x32xf32>
    %33 = arith.mulf %32, %31 : vector<2x32xf32>
    %34 = arith.maximumf %31, %33 : vector<2x32xf32>
    %cst_19 = arith.constant 1.41421354 : f32
    %35 = vector.broadcast %cst_19 : f32 to vector<2x32xf32>
    %36 = arith.mulf %34, %35 : vector<2x32xf32>
    %c0_20 = arith.constant 0 : index
    %c0_21 = arith.constant 0 : index
    %37 = vector.load %arg3[%c0_20, %c0_21] : memref<2x32xf32, #tpu.memory_space<vmem>>, vector<2x32xf32>
    tpu.vector_store %arg3[%c0_20, %c0_21], %36 {strides = array<i32>} : memref<2x32xf32, #tpu.memory_space<vmem>>, vector<2x32xf32>,
    return
  }
}

module attributes {stable_mosaic.version = 11 : i64} {
  func.func @kernel(%arg0: i32, %arg1: i32, %arg2: memref<1x256x2xf32, #tpu.memory_space<vmem>>, %arg3: memref<2x32xf32, #tpu.memory_space<vmem>>, %arg4: memref<1x32xf32, #tpu.memory_space<vmem>>, %arg5: memref<1x32x64xbf16, #tpu.memory_space<vmem>>, %arg6: memref<1x64xf32, #tpu.memory_space<vmem>>, %arg7: memref<1x6x64x64xbf16, #tpu.memory_space<vmem>>, %arg8: memref<6x1x64xf32, #tpu.memory_space<vmem>>, %arg9: memref<1x3x3x64xf32, #tpu.memory_space<vmem>>, %arg10: memref<1x3xf32, #tpu.memory_space<vmem>>, %arg11: memref<1x256x3xf32, #tpu.memory_space<vmem>>) attributes {dimension_semantics = [#tpu.dimension_semantics<parallel>, #tpu.dimension_semantics<parallel>], iteration_bounds = array<i64: 2, 1>, scalar_prefetch = 0 : i64, scratch_operands = 0 : i64, tpu.core_type = #tpu.core_type<tc>, window_params = [{transform_indices = @transform_0, window_bounds = array<i64: 1, 256, 2>}, {pipeline_mode = #tpu.pipeline_mode<synchronous>, transform_indices = @transform_1, window_bounds = array<i64: 2, 32>}, {pipeline_mode = #tpu.pipeline_mode<synchronous>, transform_indices = @transform_2, window_bounds = array<i64: 1, 32>}, {transform_indices = @transform_3, window_bounds = array<i64: 1, 32, 64>}, {pipeline_mode = #tpu.pipeline_mode<synchronous>, transform_indices = @transform_4, window_bounds = array<i64: 1, 64>}, {transform_indices = @transform_5, window_bounds = array<i64: 1, 6, 64, 64>}, {pipeline_mode = #tpu.pipeline_mode<synchronous>, transform_indices = @transform_6, window_bounds = array<i64: 6, 1, 64>}, {transform_indices = @transform_7, window_bounds = array<i64: 1, 3, 3, 64>}, {pipeline_mode = #tpu.pipeline_mode<synchronous>, transform_indices = @transform_8, window_bounds = array<i64: 1, 3>}, {transform_indices = @transform_9, window_bounds = array<i64: 1, 256, 3>}]} {
    %c0 = arith.constant 0 : index
    %c0_0 = arith.constant 0 : index
    %c0_1 = arith.constant 0 : index
    %0 = vector.load %arg2[%c0, %c0_0, %c0_1] : memref<1x256x2xf32, #tpu.memory_space<vmem>>, vector<1x256x2xf32>
    %1 = vector.shape_cast %0 : vector<1x256x2xf32> to vector<256x2xf32>
    %2 = vector.extract_strided_slice %1 {offsets = [0, 0], sizes = [256, 1], strides = [1, 1]} : vector<256x2xf32> to vector<256x1xf32>
    %c0_2 = arith.constant 0 : index
    %c0_3 = arith.constant 0 : index
    %3 = vector.load %arg3[%c0_2, %c0_3] : memref<2x32xf32, #tpu.memory_space<vmem>>, vector<1x32xf32>
    %4 = vector.broadcast %2 : vector<256x1xf32> to vector<256x32xf32>
    %5 = vector.broadcast %3 : vector<1x32xf32> to vector<256x32xf32>
    %6 = arith.mulf %4, %5 : vector<256x32xf32>
    %7 = vector.extract_strided_slice %1 {offsets = [0, 1], sizes = [256, 1], strides = [1, 1]} : vector<256x2xf32> to vector<256x1xf32>
    %c1 = arith.constant 1 : index
    %c0_4 = arith.constant 0 : index
    %8 = vector.load %arg3[%c1, %c0_4] : memref<2x32xf32, #tpu.memory_space<vmem>>, vector<1x32xf32>
    %9 = vector.broadcast %7 : vector<256x1xf32> to vector<256x32xf32>
    %10 = vector.broadcast %8 : vector<1x32xf32> to vector<256x32xf32>
    %11 = arith.mulf %9, %10 : vector<256x32xf32>
    %12 = arith.addf %6, %11 : vector<256x32xf32>
    %c0_5 = arith.constant 0 : index
    %c0_6 = arith.constant 0 : index
    %13 = vector.load %arg4[%c0_5, %c0_6] : memref<1x32xf32, #tpu.memory_space<vmem>>, vector<1x32xf32>
    %14 = vector.broadcast %13 : vector<1x32xf32> to vector<256x32xf32>
    %15 = arith.addf %12, %14 : vector<256x32xf32>
    %16 = math.sin %15 : vector<256x32xf32>
    %c0_7 = arith.constant 0 : index
    %c0_8 = arith.constant 0 : index
    %c0_9 = arith.constant 0 : index
    %17 = vector.load %arg5[%c0_7, %c0_8, %c0_9] : memref<1x32x64xbf16, #tpu.memory_space<vmem>>, vector<1x32x64xbf16>
    %18 = vector.shape_cast %17 : vector<1x32x64xbf16> to vector<32x64xbf16>
    %c0_10 = arith.constant 0 : index
    %c0_11 = arith.constant 0 : index
    %19 = vector.load %arg6[%c0_10, %c0_11] : memref<1x64xf32, #tpu.memory_space<vmem>>, vector<1x64xf32>
    %20 = arith.truncf %16 : vector<256x32xf32> to vector<256x32xbf16>
    %cst = arith.constant dense<0.000000e+00> : vector<256x64xf32>
    %21 = tpu.matmul %20, %18, %cst {dimension_numbers = #tpu.dot_dimension_numbers<[1], [0], [0], [1], [0, 0, 1, 1], [], []>} : vector<256x32xbf16>, vector<32x64xbf16>, vector<256x64xf32> -> vector<256x64xf32>
    %22 = vector.broadcast %19 : vector<1x64xf32> to vector<256x64xf32>
    %23 = arith.addf %21, %22 : vector<256x64xf32>
    %cst_12 = arith.constant 2.000000e-01 : f32
    %24 = vector.broadcast %cst_12 : f32 to vector<256x64xf32>
    %25 = arith.mulf %24, %23 : vector<256x64xf32>
    %26 = arith.maximumf %23, %25 : vector<256x64xf32>
    %cst_13 = arith.constant 0.000000e+00 : f32
    %27 = vector.broadcast %cst_13 : f32 to vector<256x1xf32>
    %cst_14 = arith.constant 0.000000e+00 : f32
    %28 = vector.broadcast %cst_14 : f32 to vector<256x1xf32>
    %cst_15 = arith.constant 0.000000e+00 : f32
    %29 = vector.broadcast %cst_15 : f32 to vector<256x1xf32>
    %c0_16 = arith.constant 0 : index
    %c0_17 = arith.constant 0 : index
    %c0_18 = arith.constant 0 : index
    %c0_19 = arith.constant 0 : index
    %30 = vector.load %arg7[%c0_16, %c0_17, %c0_18, %c0_19] : memref<1x6x64x64xbf16, #tpu.memory_space<vmem>>, vector<1x1x64x64xbf16>
    %31 = vector.shape_cast %30 : vector<1x1x64x64xbf16> to vector<64x64xbf16>
    %c0_20 = arith.constant 0 : index
    %c0_21 = arith.constant 0 : index
    %c0_22 = arith.constant 0 : index
    %32 = vector.load %arg8[%c0_20, %c0_21, %c0_22] : memref<6x1x64xf32, #tpu.memory_space<vmem>>, vector<1x1x64xf32>
    %33 = vector.shape_cast %32 : vector<1x1x64xf32> to vector<1x64xf32>
    %34 = arith.truncf %26 : vector<256x64xf32> to vector<256x64xbf16>
    %cst_23 = arith.constant dense<0.000000e+00> : vector<256x64xf32>
    %35 = tpu.matmul %34, %31, %cst_23 {dimension_numbers = #tpu.dot_dimension_numbers<[1], [0], [0], [1], [0, 0, 1, 1], [], []>} : vector<256x64xbf16>, vector<64x64xbf16>, vector<256x64xf32> -> vector<256x64xf32>
    %36 = vector.broadcast %33 : vector<1x64xf32> to vector<256x64xf32>
    %37 = arith.addf %35, %36 : vector<256x64xf32>
    %cst_24 = arith.constant 2.000000e-01 : f32
    %38 = vector.broadcast %cst_24 : f32 to vector<256x64xf32>
    %39 = arith.mulf %38, %37 : vector<256x64xf32>
    %40 = arith.maximumf %37, %39 : vector<256x64xf32>
    %c0_25 = arith.constant 0 : index
    %c1_26 = arith.constant 1 : index
    %c0_27 = arith.constant 0 : index
    %c0_28 = arith.constant 0 : index
    %41 = vector.load %arg7[%c0_25, %c1_26, %c0_27, %c0_28] : memref<1x6x64x64xbf16, #tpu.memory_space<vmem>>, vector<1x1x64x64xbf16>
    %42 = vector.shape_cast %41 : vector<1x1x64x64xbf16> to vector<64x64xbf16>
    %c1_29 = arith.constant 1 : index
    %c0_30 = arith.constant 0 : index
    %c0_31 = arith.constant 0 : index
    %43 = vector.load %arg8[%c1_29, %c0_30, %c0_31] : memref<6x1x64xf32, #tpu.memory_space<vmem>>, vector<1x1x64xf32>
    %44 = vector.shape_cast %43 : vector<1x1x64xf32> to vector<1x64xf32>
    %45 = arith.truncf %40 : vector<256x64xf32> to vector<256x64xbf16>
    %cst_32 = arith.constant dense<0.000000e+00> : vector<256x64xf32>
    %46 = tpu.matmul %45, %42, %cst_32 {dimension_numbers = #tpu.dot_dimension_numbers<[1], [0], [0], [1], [0, 0, 1, 1], [], []>} : vector<256x64xbf16>, vector<64x64xbf16>, vector<256x64xf32> -> vector<256x64xf32>
    %47 = vector.broadcast %44 : vector<1x64xf32> to vector<256x64xf32>
    %48 = arith.addf %46, %47 : vector<256x64xf32>
    %cst_33 = arith.constant 2.000000e-01 : f32
    %49 = vector.broadcast %cst_33 : f32 to vector<256x64xf32>
    %50 = arith.mulf %49, %48 : vector<256x64xf32>
    %51 = arith.maximumf %48, %50 : vector<256x64xf32>
    %c0_34 = arith.constant 0 : index
    %c0_35 = arith.constant 0 : index
    %c0_36 = arith.constant 0 : index
    %c0_37 = arith.constant 0 : index
    %52 = vector.load %arg9[%c0_34, %c0_35, %c0_36, %c0_37] : memref<1x3x3x64xf32, #tpu.memory_space<vmem>>, vector<1x1x3x64xf32>
    %53 = vector.shape_cast %52 : vector<1x1x3x64xf32> to vector<3x64xf32>
    %54 = vector.extract_strided_slice %53 {offsets = [0, 0], sizes = [1, 64], strides = [1, 1]} : vector<3x64xf32> to vector<1x64xf32>
    %55 = vector.broadcast %54 : vector<1x64xf32> to vector<256x64xf32>
    %56 = arith.mulf %51, %55 : vector<256x64xf32>
    %cst_38 = arith.constant dense<0.000000e+00> : vector<256xf32>
    %57 = vector.multi_reduction <add>, %56, %cst_38 [1] : vector<256x64xf32> to vector<256xf32>
    %58 = vector.shape_cast %57 : vector<256xf32> to vector<256x1xf32>
    %59 = arith.addf %27, %58 : vector<256x1xf32>
    %60 = vector.extract_strided_slice %53 {offsets = [1, 0], sizes = [1, 64], strides = [1, 1]} : vector<3x64xf32> to vector<1x64xf32>
    %61 = vector.broadcast %60 : vector<1x64xf32> to vector<256x64xf32>
    %62 = arith.mulf %51, %61 : vector<256x64xf32>
    %cst_39 = arith.constant dense<0.000000e+00> : vector<256xf32>
    %63 = vector.multi_reduction <add>, %62, %cst_39 [1] : vector<256x64xf32> to vector<256xf32>
    %64 = vector.shape_cast %63 : vector<256xf32> to vector<256x1xf32>
    %65 = arith.addf %28, %64 : vector<256x1xf32>
    %66 = vector.extract_strided_slice %53 {offsets = [2, 0], sizes = [1, 64], strides = [1, 1]} : vector<3x64xf32> to vector<1x64xf32>
    %67 = vector.broadcast %66 : vector<1x64xf32> to vector<256x64xf32>
    %68 = arith.mulf %51, %67 : vector<256x64xf32>
    %cst_40 = arith.constant dense<0.000000e+00> : vector<256xf32>
    %69 = vector.multi_reduction <add>, %68, %cst_40 [1] : vector<256x64xf32> to vector<256xf32>
    %70 = vector.shape_cast %69 : vector<256xf32> to vector<256x1xf32>
    %71 = arith.addf %29, %70 : vector<256x1xf32>
    %c0_41 = arith.constant 0 : index
    %c2 = arith.constant 2 : index
    %c0_42 = arith.constant 0 : index
    %c0_43 = arith.constant 0 : index
    %72 = vector.load %arg7[%c0_41, %c2, %c0_42, %c0_43] : memref<1x6x64x64xbf16, #tpu.memory_space<vmem>>, vector<1x1x64x64xbf16>
    %73 = vector.shape_cast %72 : vector<1x1x64x64xbf16> to vector<64x64xbf16>
    %c2_44 = arith.constant 2 : index
    %c0_45 = arith.constant 0 : index
    %c0_46 = arith.constant 0 : index
    %74 = vector.load %arg8[%c2_44, %c0_45, %c0_46] : memref<6x1x64xf32, #tpu.memory_space<vmem>>, vector<1x1x64xf32>
    %75 = vector.shape_cast %74 : vector<1x1x64xf32> to vector<1x64xf32>
    %76 = arith.truncf %51 : vector<256x64xf32> to vector<256x64xbf16>
    %cst_47 = arith.constant dense<0.000000e+00> : vector<256x64xf32>
    %77 = tpu.matmul %76, %73, %cst_47 {dimension_numbers = #tpu.dot_dimension_numbers<[1], [0], [0], [1], [0, 0, 1, 1], [], []>} : vector<256x64xbf16>, vector<64x64xbf16>, vector<256x64xf32> -> vector<256x64xf32>
    %78 = vector.broadcast %75 : vector<1x64xf32> to vector<256x64xf32>
    %79 = arith.addf %77, %78 : vector<256x64xf32>
    %cst_48 = arith.constant 2.000000e-01 : f32
    %80 = vector.broadcast %cst_48 : f32 to vector<256x64xf32>
    %81 = arith.mulf %80, %79 : vector<256x64xf32>
    %82 = arith.maximumf %79, %81 : vector<256x64xf32>
    %c0_49 = arith.constant 0 : index
    %c3 = arith.constant 3 : index
    %c0_50 = arith.constant 0 : index
    %c0_51 = arith.constant 0 : index
    %83 = vector.load %arg7[%c0_49, %c3, %c0_50, %c0_51] : memref<1x6x64x64xbf16, #tpu.memory_space<vmem>>, vector<1x1x64x64xbf16>
    %84 = vector.shape_cast %83 : vector<1x1x64x64xbf16> to vector<64x64xbf16>
    %c3_52 = arith.constant 3 : index
    %c0_53 = arith.constant 0 : index
    %c0_54 = arith.constant 0 : index
    %85 = vector.load %arg8[%c3_52, %c0_53, %c0_54] : memref<6x1x64xf32, #tpu.memory_space<vmem>>, vector<1x1x64xf32>
    %86 = vector.shape_cast %85 : vector<1x1x64xf32> to vector<1x64xf32>
    %87 = arith.truncf %82 : vector<256x64xf32> to vector<256x64xbf16>
    %cst_55 = arith.constant dense<0.000000e+00> : vector<256x64xf32>
    %88 = tpu.matmul %87, %84, %cst_55 {dimension_numbers = #tpu.dot_dimension_numbers<[1], [0], [0], [1], [0, 0, 1, 1], [], []>} : vector<256x64xbf16>, vector<64x64xbf16>, vector<256x64xf32> -> vector<256x64xf32>
    %89 = vector.broadcast %86 : vector<1x64xf32> to vector<256x64xf32>
    %90 = arith.addf %88, %89 : vector<256x64xf32>
    %cst_56 = arith.constant 2.000000e-01 : f32
    %91 = vector.broadcast %cst_56 : f32 to vector<256x64xf32>
    %92 = arith.mulf %91, %90 : vector<256x64xf32>
    %93 = arith.maximumf %90, %92 : vector<256x64xf32>
    %c0_57 = arith.constant 0 : index
    %c1_58 = arith.constant 1 : index
    %c0_59 = arith.constant 0 : index
    %c0_60 = arith.constant 0 : index
    %94 = vector.load %arg9[%c0_57, %c1_58, %c0_59, %c0_60] : memref<1x3x3x64xf32, #tpu.memory_space<vmem>>, vector<1x1x3x64xf32>
    %95 = vector.shape_cast %94 : vector<1x1x3x64xf32> to vector<3x64xf32>
    %96 = vector.extract_strided_slice %95 {offsets = [0, 0], sizes = [1, 64], strides = [1, 1]} : vector<3x64xf32> to vector<1x64xf32>
    %97 = vector.broadcast %96 : vector<1x64xf32> to vector<256x64xf32>
    %98 = arith.mulf %93, %97 : vector<256x64xf32>
    %cst_61 = arith.constant dense<0.000000e+00> : vector<256xf32>
    %99 = vector.multi_reduction <add>, %98, %cst_61 [1] : vector<256x64xf32> to vector<256xf32>
    %100 = vector.shape_cast %99 : vector<256xf32> to vector<256x1xf32>
    %101 = arith.addf %59, %100 : vector<256x1xf32>
    %102 = vector.extract_strided_slice %95 {offsets = [1, 0], sizes = [1, 64], strides = [1, 1]} : vector<3x64xf32> to vector<1x64xf32>
    %103 = vector.broadcast %102 : vector<1x64xf32> to vector<256x64xf32>
    %104 = arith.mulf %93, %103 : vector<256x64xf32>
    %cst_62 = arith.constant dense<0.000000e+00> : vector<256xf32>
    %105 = vector.multi_reduction <add>, %104, %cst_62 [1] : vector<256x64xf32> to vector<256xf32>
    %106 = vector.shape_cast %105 : vector<256xf32> to vector<256x1xf32>
    %107 = arith.addf %65, %106 : vector<256x1xf32>
    %108 = vector.extract_strided_slice %95 {offsets = [2, 0], sizes = [1, 64], strides = [1, 1]} : vector<3x64xf32> to vector<1x64xf32>
    %109 = vector.broadcast %108 : vector<1x64xf32> to vector<256x64xf32>
    %110 = arith.mulf %93, %109 : vector<256x64xf32>
    %cst_63 = arith.constant dense<0.000000e+00> : vector<256xf32>
    %111 = vector.multi_reduction <add>, %110, %cst_63 [1] : vector<256x64xf32> to vector<256xf32>
    %112 = vector.shape_cast %111 : vector<256xf32> to vector<256x1xf32>
    %113 = arith.addf %71, %112 : vector<256x1xf32>
    %c0_64 = arith.constant 0 : index
    %c4 = arith.constant 4 : index
    %c0_65 = arith.constant 0 : index
    %c0_66 = arith.constant 0 : index
    %114 = vector.load %arg7[%c0_64, %c4, %c0_65, %c0_66] : memref<1x6x64x64xbf16, #tpu.memory_space<vmem>>, vector<1x1x64x64xbf16>
    %115 = vector.shape_cast %114 : vector<1x1x64x64xbf16> to vector<64x64xbf16>
    %c4_67 = arith.constant 4 : index
    %c0_68 = arith.constant 0 : index
    %c0_69 = arith.constant 0 : index
    %116 = vector.load %arg8[%c4_67, %c0_68, %c0_69] : memref<6x1x64xf32, #tpu.memory_space<vmem>>, vector<1x1x64xf32>
    %117 = vector.shape_cast %116 : vector<1x1x64xf32> to vector<1x64xf32>
    %118 = arith.truncf %93 : vector<256x64xf32> to vector<256x64xbf16>
    %cst_70 = arith.constant dense<0.000000e+00> : vector<256x64xf32>
    %119 = tpu.matmul %118, %115, %cst_70 {dimension_numbers = #tpu.dot_dimension_numbers<[1], [0], [0], [1], [0, 0, 1, 1], [], []>} : vector<256x64xbf16>, vector<64x64xbf16>, vector<256x64xf32> -> vector<256x64xf32>
    %120 = vector.broadcast %117 : vector<1x64xf32> to vector<256x64xf32>
    %121 = arith.addf %119, %120 : vector<256x64xf32>
    %cst_71 = arith.constant 2.000000e-01 : f32
    %122 = vector.broadcast %cst_71 : f32 to vector<256x64xf32>
    %123 = arith.mulf %122, %121 : vector<256x64xf32>
    %124 = arith.maximumf %121, %123 : vector<256x64xf32>
    %c0_72 = arith.constant 0 : index
    %c5 = arith.constant 5 : index
    %c0_73 = arith.constant 0 : index
    %c0_74 = arith.constant 0 : index
    %125 = vector.load %arg7[%c0_72, %c5, %c0_73, %c0_74] : memref<1x6x64x64xbf16, #tpu.memory_space<vmem>>, vector<1x1x64x64xbf16>
    %126 = vector.shape_cast %125 : vector<1x1x64x64xbf16> to vector<64x64xbf16>
    %c5_75 = arith.constant 5 : index
    %c0_76 = arith.constant 0 : index
    %c0_77 = arith.constant 0 : index
    %127 = vector.load %arg8[%c5_75, %c0_76, %c0_77] : memref<6x1x64xf32, #tpu.memory_space<vmem>>, vector<1x1x64xf32>
    %128 = vector.shape_cast %127 : vector<1x1x64xf32> to vector<1x64xf32>
    %129 = arith.truncf %124 : vector<256x64xf32> to vector<256x64xbf16>
    %cst_78 = arith.constant dense<0.000000e+00> : vector<256x64xf32>
    %130 = tpu.matmul %129, %126, %cst_78 {dimension_numbers = #tpu.dot_dimension_numbers<[1], [0], [0], [1], [0, 0, 1, 1], [], []>} : vector<256x64xbf16>, vector<64x64xbf16>, vector<256x64xf32> -> vector<256x64xf32>
    %131 = vector.broadcast %128 : vector<1x64xf32> to vector<256x64xf32>
    %132 = arith.addf %130, %131 : vector<256x64xf32>
    %cst_79 = arith.constant 2.000000e-01 : f32
    %133 = vector.broadcast %cst_79 : f32 to vector<256x64xf32>
    %134 = arith.mulf %133, %132 : vector<256x64xf32>
    %135 = arith.maximumf %132, %134 : vector<256x64xf32>
    %c0_80 = arith.constant 0 : index
    %c2_81 = arith.constant 2 : index
    %c0_82 = arith.constant 0 : index
    %c0_83 = arith.constant 0 : index
    %136 = vector.load %arg9[%c0_80, %c2_81, %c0_82, %c0_83] : memref<1x3x3x64xf32, #tpu.memory_space<vmem>>, vector<1x1x3x64xf32>
    %137 = vector.shape_cast %136 : vector<1x1x3x64xf32> to vector<3x64xf32>
    %138 = vector.extract_strided_slice %137 {offsets = [0, 0], sizes = [1, 64], strides = [1, 1]} : vector<3x64xf32> to vector<1x64xf32>
    %139 = vector.broadcast %138 : vector<1x64xf32> to vector<256x64xf32>
    %140 = arith.mulf %135, %139 : vector<256x64xf32>
    %cst_84 = arith.constant dense<0.000000e+00> : vector<256xf32>
    %141 = vector.multi_reduction <add>, %140, %cst_84 [1] : vector<256x64xf32> to vector<256xf32>
    %142 = vector.shape_cast %141 : vector<256xf32> to vector<256x1xf32>
    %143 = arith.addf %101, %142 : vector<256x1xf32>
    %144 = vector.extract_strided_slice %137 {offsets = [1, 0], sizes = [1, 64], strides = [1, 1]} : vector<3x64xf32> to vector<1x64xf32>
    %145 = vector.broadcast %144 : vector<1x64xf32> to vector<256x64xf32>
    %146 = arith.mulf %135, %145 : vector<256x64xf32>
    %cst_85 = arith.constant dense<0.000000e+00> : vector<256xf32>
    %147 = vector.multi_reduction <add>, %146, %cst_85 [1] : vector<256x64xf32> to vector<256xf32>
    %148 = vector.shape_cast %147 : vector<256xf32> to vector<256x1xf32>
    %149 = arith.addf %107, %148 : vector<256x1xf32>
    %150 = vector.extract_strided_slice %137 {offsets = [2, 0], sizes = [1, 64], strides = [1, 1]} : vector<3x64xf32> to vector<1x64xf32>
    %151 = vector.broadcast %150 : vector<1x64xf32> to vector<256x64xf32>
    %152 = arith.mulf %135, %151 : vector<256x64xf32>
    %cst_86 = arith.constant dense<0.000000e+00> : vector<256xf32>
    %153 = vector.multi_reduction <add>, %152, %cst_86 [1] : vector<256x64xf32> to vector<256xf32>
    %154 = vector.shape_cast %153 : vector<256xf32> to vector<256x1xf32>
    %155 = arith.addf %113, %154 : vector<256x1xf32>
    %156 = tpu.iota {dimensions = array<i32: 1>} : vector<1x3xi32>
    %c0_i32 = arith.constant 0 : i32
    %157 = vector.broadcast %c0_i32 : i32 to vector<1x3xi32>
    %158 = arith.cmpi eq, %156, %157 : vector<1x3xi32>
    %cst_87 = arith.constant 0.000000e+00 : f32
    %159 = vector.shape_cast %158 : vector<1x3xi1> to vector<1x3xi1>
    %160 = vector.broadcast %159 : vector<1x3xi1> to vector<256x3xi1>
    %161 = vector.shape_cast %143 : vector<256x1xf32> to vector<256x1xf32>
    %162 = vector.broadcast %161 : vector<256x1xf32> to vector<256x3xf32>
    %163 = vector.broadcast %cst_87 : f32 to vector<256x3xf32>
    %164 = arith.select %160, %162, %163 : vector<256x3xi1>, vector<256x3xf32>
    %c1_i32 = arith.constant 1 : i32
    %165 = vector.broadcast %c1_i32 : i32 to vector<1x3xi32>
    %166 = arith.cmpi eq, %156, %165 : vector<1x3xi32>
    %cst_88 = arith.constant 0.000000e+00 : f32
    %167 = vector.shape_cast %166 : vector<1x3xi1> to vector<1x3xi1>
    %168 = vector.broadcast %167 : vector<1x3xi1> to vector<256x3xi1>
    %169 = vector.shape_cast %149 : vector<256x1xf32> to vector<256x1xf32>
    %170 = vector.broadcast %169 : vector<256x1xf32> to vector<256x3xf32>
    %171 = vector.broadcast %cst_88 : f32 to vector<256x3xf32>
    %172 = arith.select %168, %170, %171 : vector<256x3xi1>, vector<256x3xf32>
    %173 = arith.addf %164, %172 : vector<256x3xf32>
    %c2_i32 = arith.constant 2 : i32
    %174 = vector.broadcast %c2_i32 : i32 to vector<1x3xi32>
    %175 = arith.cmpi eq, %156, %174 : vector<1x3xi32>
    %cst_89 = arith.constant 0.000000e+00 : f32
    %176 = vector.shape_cast %175 : vector<1x3xi1> to vector<1x3xi1>
    %177 = vector.broadcast %176 : vector<1x3xi1> to vector<256x3xi1>
    %178 = vector.shape_cast %155 : vector<256x1xf32> to vector<256x1xf32>
    %179 = vector.broadcast %178 : vector<256x1xf32> to vector<256x3xf32>
    %180 = vector.broadcast %cst_89 : f32 to vector<256x3xf32>
    %181 = arith.select %177, %179, %180 : vector<256x3xi1>, vector<256x3xf32>
    %182 = arith.addf %173, %181 : vector<256x3xf32>
    %c0_90 = arith.constant 0 : index
    %c0_91 = arith.constant 0 : index
    %183 = vector.load %arg10[%c0_90, %c0_91] : memref<1x3xf32, #tpu.memory_space<vmem>>, vector<1x3xf32>
    %184 = vector.broadcast %183 : vector<1x3xf32> to vector<256x3xf32>
    %185 = arith.addf %182, %184 : vector<256x3xf32>
    %c0_92 = arith.constant 0 : index
    %c0_93 = arith.constant 0 : index
    %c0_94 = arith.constant 0 : index
    %186 = vector.load %arg11[%c0_92, %c0_93, %c0_94] : memref<1x256x3xf32, #tpu.memory_space<vmem>>, vector<1x256x3xf32>
    %187 = vector.shape_cast %186 : vector<1x256x3xf32> to vector<256x3xf32>
    %188 = vector.shape_cast %185 : vector<256x3xf32> to vector<1x256x3xf32>
    tpu.vector_store %arg11[%c0_92, %c0_93, %c0_94], %188 {strides = array<i32>} : memref<1x256x3xf32, #tpu.memory_space<vmem>>, vector<1x256x3xf32>,
    return
  }
  func.func @transform_0(%arg0: i32, %arg1: i32) -> (i32, i32, i32) {
    %c0_i32 = arith.constant 0 : i32
    %c0_i32_0 = arith.constant 0 : i32
    return %arg0, %arg1, %c0_i32 : i32, i32, i32
  }
  func.func @transform_1(%arg0: i32, %arg1: i32) -> (i32, i32) {
    %c0_i32 = arith.constant 0 : i32
    %c0_i32_0 = arith.constant 0 : i32
    %c0_i32_1 = arith.constant 0 : i32
    return %c0_i32, %c0_i32_0 : i32, i32
  }
  func.func @transform_2(%arg0: i32, %arg1: i32) -> (i32, i32) {
    %c0_i32 = arith.constant 0 : i32
    %c0_i32_0 = arith.constant 0 : i32
    %c0_i32_1 = arith.constant 0 : i32
    return %c0_i32, %c0_i32_0 : i32, i32
  }
  func.func @transform_3(%arg0: i32, %arg1: i32) -> (i32, i32, i32) {
    %c0_i32 = arith.constant 0 : i32
    %c0_i32_0 = arith.constant 0 : i32
    %c0_i32_1 = arith.constant 0 : i32
    return %arg0, %c0_i32, %c0_i32_0 : i32, i32, i32
  }
  func.func @transform_4(%arg0: i32, %arg1: i32) -> (i32, i32) {
    %c0_i32 = arith.constant 0 : i32
    %c0_i32_0 = arith.constant 0 : i32
    %c0_i32_1 = arith.constant 0 : i32
    return %c0_i32, %c0_i32_0 : i32, i32
  }
  func.func @transform_5(%arg0: i32, %arg1: i32) -> (i32, i32, i32, i32) {
    %c0_i32 = arith.constant 0 : i32
    %c0_i32_0 = arith.constant 0 : i32
    %c0_i32_1 = arith.constant 0 : i32
    %c0_i32_2 = arith.constant 0 : i32
    return %arg0, %c0_i32, %c0_i32_0, %c0_i32_1 : i32, i32, i32, i32
  }
  func.func @transform_6(%arg0: i32, %arg1: i32) -> (i32, i32, i32) {
    %c0_i32 = arith.constant 0 : i32
    %c0_i32_0 = arith.constant 0 : i32
    %c0_i32_1 = arith.constant 0 : i32
    %c0_i32_2 = arith.constant 0 : i32
    return %c0_i32, %c0_i32_0, %c0_i32_1 : i32, i32, i32
  }
  func.func @transform_7(%arg0: i32, %arg1: i32) -> (i32, i32, i32, i32) {
    %c0_i32 = arith.constant 0 : i32
    %c0_i32_0 = arith.constant 0 : i32
    %c0_i32_1 = arith.constant 0 : i32
    %c0_i32_2 = arith.constant 0 : i32
    return %arg0, %c0_i32, %c0_i32_0, %c0_i32_1 : i32, i32, i32, i32
  }
  func.func @transform_8(%arg0: i32, %arg1: i32) -> (i32, i32) {
    %c0_i32 = arith.constant 0 : i32
    %c0_i32_0 = arith.constant 0 : i32
    %c0_i32_1 = arith.constant 0 : i32
    return %c0_i32, %c0_i32_0 : i32, i32
  }
  func.func @transform_9(%arg0: i32, %arg1: i32) -> (i32, i32, i32) {
    %c0_i32 = arith.constant 0 : i32
    %c0_i32_0 = arith.constant 0 : i32
    return %arg0, %arg1, %c0_i32 : i32, i32, i32
  }
}

</mosaic_0001>

<bundles_post_ra>
// kernel: tpu_custom_call.1
= control target key start
LH: loop header
LB: loop body
LE: loop exit
PB: predicated region body
PF: predicated region fallthrough
CT: control target
= control target key end

     0   :  { %7 = vsyncpa [#allocation3], 0  ;;  %s642_s0 = inlined_call_operand.hbm [shape: f32[16,128], index: 0, kind: input, shape index: {}]   ;;  %s643_s1 = inlined_call_operand.hbm [shape: f32[8,128], index: 1, kind: input, shape index: {}]   ;;  %s644_s2 = inlined_call_operand.hbm [shape: f32[16,128], index: 2, kind: output, shape index: {}]  }
   0x1   :  { %8 = vsyncpa [#allocation6], 0 }
   0x2   :  { %9 = vsyncpa [#allocation4], 0 }
   0x3   :  { %11 = vsyncpa [#allocation4 + $0x1], 0  ;;  %s459_s9 = smov 0   ;;  %s461_s10 = smov 0  }
   0x4   :  { %s463_s11 = smov 0   ;;  %s465_s12 = smov 0  }
   0x5 LB: > { %s480_s13 = sadd.s32 4294967295, %s439_s12   ;;  %s244_s14 = sadd.s32 4294967294, %s439_s12   ;;  %s439_s12 = sphi %s465_s12, %s667_s12   ;;  %s435_s11 = sphi %s463_s11, %s666_s11   ;;  %s431_s10 = sphi %s461_s10, %s665_s10   ;;  %s427_s9 = sphi %s459_s9, %s664_s9  }
   0x6   : > { %s484_s15 = sadd.s32 1, %s439_s12   ;;  %s24_s16 = sadd.s32 1, %s435_s11 }
   0x7   : > { %s21_s17 = ssub.s32 %s439_s12, %s484_s15  ;;  %p37_p0 = scmp.ne.s32.totalorder %s431_s10, %s427_s9 }
   0x8   : > { %p22_p1 = scmp.eq.s32.totalorder %s21_s17, 0  ;;  %p645_p2 = scmp.eq.s32.totalorder %s480_s13, 0 }
   0x9   : > { %p81_p3 = scmp.ne.s32.totalorder %s435_s11, %s431_s10  ;;  %p82_p4 = scmp.eq.s32.totalorder %s480_s13, 1 }
   0xa   : > { %s496_s18 = scalar_select %p22_p1, %s435_s11, %s24_s16  }
   0xb   : > { %p498_p5 = por %p82_p4, %p81_p3  ;;  %p88_p6 = scmp.eq.s32.totalorder %s244_s14, 1 }
   0xc   : > { %p245_p7 = scmp.ge.s32.totalorder %s439_s12, 1  ;;  %p505_p8 = por %p645_p2, %p37_p0 }
   0xd   : > { %s651_s19 = scalar_select %p498_p5, 1, 0 }
   0xe   : > { %s652_s20 = scalar_select %p505_p8, 1, 0 }
   0xf   : > { %p95_p9 = scmp.lt.s32.totalorder %s439_s12, 3  ;;  %p510_p10 = por %p88_p6, %p37_p0 }
  0x10   : > { %s246_s22 = sshll.u32 %s480_s13, 7  ;;  %s441_s24 = smov [#allocation2]  }
  0x11   : > { %s653_s21 = scalar_select %p510_p10, 1, 0 }
  0x12   : > { %p515_p11 = pnand %p245_p7, %p95_p9  ;;  %s110_s25 = sshll.u32 %s441_s24, 4  ;;  %s111_s25 = int_to_ptr.vmem [resolvable:$true] %s110_s25 }
  0x13   : > { %s526_s28 = scalar_lea.hbm %s642_s0, %s246_s22  ;;  %s442_s30 = smov [#allocation5]  }
  0x14   : > { %s654_s23 = scalar_select %p515_p11, 1, 0 }
  0x15   : > { %p263_p12 = pneg %p515_p11  ;;  %s121_s3 = sshll.u32 %s442_s30, 4  ;;  %s540_s3 = int_to_ptr.vmem [resolvable:$true] %s121_s3 }
  0x16   : > { %s311_s5 = scalar_lea.hbm %s526_s28, 128  ;;  %s316_s8 = scalar_lea.hbm %s642_s0, 256 }
  0x17   : > { %p530_p13 = pnand %p263_p12, %p505_p8  ;;  %p536_p0 = pnand %p263_p12, %p645_p2 }
  0x18   : > { %p312_p1 = scmp.ne.s32.totalorder %s526_s28, %s311_s5  ;;  %p317_p7 = scmp.lt.u32.totalorder %s526_s28, %s642_s0 }
  0x19   : > { %s656_s4 = scalar_select %p536_p0, 1, 0 }
  0x1a   : > { %p313_p3 = pneg %p530_p13  ;;  %p318_p9 = scmp.lt.u32.totalorder %s316_s8, %s311_s5 }
  0x1b   : > { %p320_p2 = scmp.lt.u32.totalorder %s311_s5, %s526_s28 }
  0x1c   : > { %p314_p4 = pnand %p313_p3, %p312_p1  ;;  %p319_p12 = por %p318_p9, %p317_p7 }
  0x1e   : > { %p315_p6 = pneg %p314_p4  ;;  %p321_p10 = por %p320_p2, %p319_p12 }
  0x20   : > { %p322_p5 = pnand %p321_p10, %p315_p6 }
  0x22   : > { %325 = shalt.err (!%p322_p5)
}
  0x23   : > { %s326_s17 = scalar_lea.vmem %s111_s25, 128  ;;  %p334_p11 = scmp.lt.s32.totalorder %s111_s25, %s111_s25 }
  0x24   : > { %p327_p8 = scmp.ne.s32.totalorder %s111_s25, %s326_s17  ;;  %p335_p0 = scmp.lt.s32.totalorder %s326_s17, %s326_s17 }
  0x26   : > { %p329_p1 = pnand %p327_p8, %p313_p3  ;;  %p336_p7 = por %p335_p0, %p334_p11 }
  0x28   : > { %p330_p4 = pneg %p329_p1 }
  0x2a   : > { %p337_p9 = pnand %p336_p7, %p330_p4 }
  0x2c   : > { %340 = shalt.err (!%p337_p9)
}
  0x2d   : > { %266 = dma.hbm_to_vmem [thread:$0]  (!%p530_p13), %s526_s28, 128, %s111_s25, [#allocation3]  }
  0x2e   : > { %s341_s27 = scalar_lea.hbm %s643_s1, 128  ;;  %p657_p5 = scmp.ne.s32.totalorder %s656_s4, 0 }
  0x2f   : > { %p342_p2 = scmp.ne.s32.totalorder %s643_s1, %s341_s27  ;;  %p348_p11 = scmp.lt.u32.totalorder %s341_s27, %s643_s1 }
  0x30   : > { %p343_p8 = pneg %p657_p5 }
  0x32   : > { %p344_p10 = pnand %p343_p8, %p342_p2 }
  0x34   : > { %p345_p3 = pneg %p344_p10 }
  0x36   : > { %p350_p0 = pnand %p348_p11, %p345_p3 }
  0x38   : > { %353 = shalt.err (!%p350_p0)
}
  0x39   : > { %s354_s25 = scalar_lea.vmem %s540_s3, 128  ;;  %p362_p1 = scmp.lt.s32.totalorder %s540_s3, %s540_s3 }
  0x3a   : > { %p355_p13 = scmp.ne.s32.totalorder %s540_s3, %s354_s25  ;;  %p363_p4 = scmp.lt.s32.totalorder %s354_s25, %s354_s25 }
  0x3c   : > { %p357_p6 = pnand %p355_p13, %p343_p8  ;;  %p364_p7 = por %p363_p4, %p362_p1 }
  0x3e   : > { %p358_p12 = pneg %p357_p6 }
  0x40   : > { %p365_p9 = pnand %p364_p7, %p358_p12 }
  0x42   : > { %368 = shalt.err (!%p365_p9)
}
  0x43   : > { %269 = dma.hbm_to_vmem [thread:$0]  (!%p657_p5), %s643_s1, 128, %s540_s3, [#allocation6]  }
  0x44   : > { %p658_p2 = scmp.ne.s32.totalorder %s654_s23, 0 }
  0x45   : > { %p659_p10 = scmp.ne.s32.totalorder (!%p658_p2), %s652_s20, 0 }
  0x46   : > { %134 = sbr.rel (%p658_p2) target bundleno = 107 (0x6b), region = 28 }
  0x4d   : > { %414 = dma.done.wait (%p659_p10), [#allocation3], 128  }
  0x4e   : > { %416 = vsyncadd (%p659_p10), [#allocation3], 4294967168  ;;  %p660_p8 = scmp.eq.s32.totalorder %s480_s13, 0 }
  0x50   : > { %418 = dma.done.wait (%p660_p8), [#allocation6], 128   ;;  %p661_p3 = pmov %p660_p8 }
  0x51   : > { %s152_s4 = sand.u32 1, %s431_s10   ;;  %v155_v0 = vld [vmem:[#allocation2] sm:$0xff]  ;;  %v156_v1 = vld [vmem:[#allocation5] sm:$0xff]  ;;  %s600_s20 = scalar_lea.hbm %s644_s2, %s246_s22 }
  0x52   : > { %420 = vsyncadd (%p661_p3), [#allocation6], 4294967168  ;;  %s250_s3 = sshll.u32 %s152_s4, 3  ;;  %v157_v2 = vadd.f32 %v156_v1, %v155_v0  ;;  %s160_s17 = scalar_lea.sflag [#allocation4], %s152_s4 }
  0x53   : > { %s154_s8 = scalar_lea.vmem [#allocation7], %s250_s3  ;;  %p662_p11 = scmp.ne.s32.totalorder %s651_s19, 0 }
  0x54   : > { %s173_s23 = sshll.u32 %s154_s8, 4  ;;  %158 = vst [vmem:[%s154_s8] sm:$0xff] %v157_v2  ;;  %s443_s26 = smov [#allocation7]   ;;  %s602_s23 = int_to_ptr.vmem [resolvable:$true] %s173_s23 }
  0x55   : > { %s369_s24 = scalar_lea.vmem %s602_s23, 128  ;;  %s373_s13 = sshll.u32 %s443_s26, 4  ;;  %s374_s13 = int_to_ptr.vmem [resolvable:$false] %s373_s13 }
  0x56   : > { %p370_p5 = scmp.ne.s32.totalorder %s602_s23, %s369_s24  ;;  %s375_s27 = scalar_lea.vmem %s374_s13, 256 }
  0x57   : > { %p376_p6 = scmp.lt.s32.totalorder %s602_s23, %s374_s13  ;;  %p377_p12 = scmp.lt.s32.totalorder %s375_s27, %s369_s24 }
  0x58   : > { %p371_p0 = pnand %p370_p5, %p662_p11 }
  0x59   : > { %p378_p1 = por %p377_p12, %p376_p6 }
  0x5a   : > { %p372_p13 = pneg %p371_p0 }
  0x5c   : > { %p379_p4 = pnand %p378_p1, %p372_p13 }
  0x5e   : > { %382 = shalt.err (!%p379_p4)
}
  0x5f   : > { %s383_s22 = scalar_lea.hbm %s600_s20, 128  ;;  %s387_s6 = scalar_lea.hbm %s644_s2, 256 }
  0x60   : > { %p384_p7 = scmp.ne.s32.totalorder %s600_s20, %s383_s22  ;;  %p388_p10 = scmp.lt.u32.totalorder %s600_s20, %s644_s2 }
  0x61   : > { %p389_p8 = scmp.lt.u32.totalorder %s387_s6, %s383_s22  ;;  %p391_p5 = scmp.lt.u32.totalorder %s383_s22, %s600_s20 }
  0x62   : > { %p385_p9 = pnand %p384_p7, %p662_p11 }
  0x63   : > { %p390_p3 = por %p389_p8, %p388_p10 }
  0x64   : > { %p386_p2 = pneg %p385_p9 }
  0x65   : > { %p392_p0 = por %p391_p5, %p390_p3 }
  0x67   : > { %p393_p13 = pnand %p392_p0, %p386_p2 }
  0x69   : > { %396 = shalt.err (!%p393_p13)
}
  0x6a   : > { %261 = dma.vmem_to_hbm [thread:$0]  (%p662_p11), %s602_s23, 128, %s600_s20, %s160_s17  }
  0x6b PF: > { %p276_p6 = scmp.ge.s32.totalorder %s439_s12, 2  ;;  %s185_s28 = sand.u32 1, %s427_s9  }
  0x6c   : > { %p663_p12 = scmp.ne.s32.totalorder %s653_s21, 0  ;;  %s186_s29 = scalar_lea.sflag [#allocation4], %s185_s28 }
  0x6e   : > { %p271_p1 = pnand %p276_p6, %p663_p12 }
  0x70   : > { %422 = dma.done.wait (!%p271_p1), %s186_s29, 128  }
  0x71   : > { %424 = vsyncadd (!%p271_p1), %s186_s29, 4294967168  ;;  %p14_p4 = scmp.ge.s32.totalorder %s484_s15, 4   ;;  %s664_s9 = smov %s431_s10 }
  0x72   : > { %s665_s10 = smov %s435_s11  ;;  %s666_s11 = smov %s496_s18 }
  0x73   : > { %s667_s12 = smov %s484_s15  ;;  %16 = sbr.rel (!%p14_p4) target bundleno = 5 (0x5), region = 70 }
  0x7a   :  { %191 = vsyncpa [#allocation3], 1 }
  0x7b   :  { %193 = vsyncpa [#allocation3 + $0x1], 1 }
  0x7c   :  { %194 = vsyncpa [#allocation6], 1 }
  0x7d   :  { %195 = vsyncpa [#allocation4], 1 }
  0x7e   :  { %197 = vsyncpa [#allocation4 + $0x1], 1 }

// kernel: run.2
= control target key start
LH: loop header
LB: loop body
LE: loop exit
PB: predicated region body
PF: predicated region fallthrough
CT: control target
= control target key end

     0   :  { %8 = vsyncpa [#allocation3], 0  ;;  %s255_s12 = smov [#allocation2]   ;;  %s315_s0 = inlined_call_operand.hbm [shape: f32[2,32], index: 0, kind: input, shape index: {}]   ;;  %s316_s1 = inlined_call_operand.vmem [shape: bf16[2,32,32], index: 1, kind: input, shape index: {}]   ;;  %s317_s2 = inlined_call_operand.vmem [shape: f32[2,1,32], index: 2, kind: input, shape index: {}]   ;;  %s318_s3 = inlined_call_operand.vmem [shape: f32[2,32], index: 3, kind: output, shape index: {}]  }
   0x1   :  { %s15_s13 = sshll.u32 %s255_s12, 4  ;;  %s231_s16 = scalar_lea.hbm %s315_s0, 32  ;;  %s16_s13 = int_to_ptr.vmem [resolvable:$true] %s15_s13 }
   0x2   :  { %p232_p0 = scmp.ne.s32.totalorder %s315_s0, %s231_s16  ;;  %p235_p1 = scmp.lt.u32.totalorder %s231_s16, %s315_s0 }
   0x4   :  { %p237_p2 = pnand %p235_p1, %p232_p0 }
   0x6   :  { %240 = shalt.err (!%p237_p2)
}
   0x7   :  { %s241_s21 = scalar_lea.vmem %s16_s13, 32  ;;  %p246_p4 = scmp.lt.s32.totalorder %s16_s13, %s16_s13 }
   0x8   :  { %p242_p3 = scmp.ne.s32.totalorder %s16_s13, %s241_s21  ;;  %p247_p5 = scmp.lt.s32.totalorder %s241_s21, %s241_s21 }
   0xa   :  { %p248_p6 = por %p247_p5, %p246_p4 }
   0xc   :  { %p249_p7 = pnand %p248_p6, %p242_p3 }
   0xe   :  { %252 = shalt.err (!%p249_p7)
}
   0xf   :  { %18 = dma.hbm_to_vmem [thread:$0]  %s315_s0, 32, %s16_s13, [#allocation3]  }
  0x10   :  { %253 = dma.done.wait [#allocation3], 32  }
  0x11   :  { %254 = vsyncadd [#allocation3], 4294967264  ;;  %vm29_vm0 = vcmask 254976   ;;  %v27_v0 = vld [vmem:[#allocation2] sm:$0x3]  ;;  %v256_v4 = vmov 0.0  }
  0x12   :  { %v28_v1 = vmul.f32 %v27_v0, %v27_v0  ;;  %v225_v3 = vld [vmem:[%s316_s1] sm:$0xff]   ;;  %206 = vmatprep.subr.bf16.mxu0 %v256_v4  ;;  %vm257_vm1 = vmmov 0   ;;  %v226_v5 = vld [vmem:[%s316_s1 + $0x8] sm:$0xff]   ;;  %214 = vmatprep.subr.bf16.mxu1 %v256_v4  ;;  %vm62_vm2 = vcmask 261120   ;;  %v227_v12 = vld [vmem:[%s316_s1 + $0x10] sm:$0xff]  }
  0x13   :  { %210 = vmatprep.mubr.msk.bf16.mxu0 %vm257_vm1, %v256_v4  ;;  %207 = vmatpush3.bf16.msra.mxu0 %v225_v3  ;;  %v228_v13 = vld [vmem:[%s316_s1 + $0x18] sm:$0xff]   ;;  %v187_v14 = vld [vmem:[%s317_s2] ss:$0 sm:$0xff]  ;;  %v196_v24 = vld [vmem:[%s317_s2 + $0x1] ss:$0 sm:$0xff] }
  0x14   :  { %v30_v2 = vsel %vm29_vm0, %v28_v1, 0.0  ;;  %208 = vmatprep.subr.bf16.mxu0 %v256_v4  ;;  %218 = vmatprep.mubr.msk.bf16.mxu1 %vm257_vm1, %v256_v4 }
  0x15   :  { %31 = vadd.xlane.f32.xlu0 %v30_v2  ;;  %215 = vmatpush3.bf16.msra.mxu1 %v227_v12 }
  0x16   :  { %216 = vmatprep.subr.bf16.mxu1 %v256_v4 }
  0x17   :  { %209 = vmatpush3.bf16.msra.mxu0 %v226_v5 }
  0x19   :  { %217 = vmatpush3.bf16.msra.mxu1 %v228_v13 }
  0xa2   :  { %v32_v6 = vpop.xlane.xlu0 %31 }
  0xa3   :  { %v34_v7 = vmul.f32 0.03125, %v32_v6 }
  0xa5   :  { %v35_v8 = vadd.f32 1e-08, %v34_v7 }
  0xa7   :  { %229 = vrsqrt.f32 %v35_v8 }
  0xb1   :  { %v230_v9 = vpop.eup %229 }
  0xb2   :  { %v37_v10 = vmul.f32 %v230_v9, %v27_v0 }
  0xb4   :  { %v38_v11 = vpack.c.bf16 %v37_v10, %v37_v10 }
  0xb6   :  { %211 = vmatmul.mubr.msk.bf16.vlgmr.msra.gmra.mrb[0].mxu0 %vm62_vm2, %v38_v11 }
 0x189   :  { %v100_v15 = vpop.f32.mrb[0].mxu0 }
 0x18a   :  { %v101_v16 = vadd.f32 %v187_v14, %v100_v15  ;;  %v212_v17 = vpop.f32.mrb[1].mxu0 }
 0x18b   :  { %v103_v18 = vpop.f32.mrb[2].mxu0 }
 0x18c   :  { %v106_v19 = vmul.f32 0.2, %v101_v16  ;;  %v213_v20 = vpop.f32.mrb[3].mxu0 }
 0x18e   :  { %v107_v21 = vmax.f32 %v101_v16, %v106_v19 }
 0x190   :  { %v108_v22 = vmul.f32 1.4142135, %v107_v21 }
 0x192   :  { %v109_v23 = vpack.c.bf16 %v108_v22, %v108_v22 }
 0x194   :  { %219 = vmatmul.mubr.msk.bf16.vlgmr.msra.gmra.mrb[0].mxu1 %vm62_vm2, %v109_v23 }
 0x267   :  { %v172_v25 = vpop.f32.mrb[0].mxu1 }
 0x268   :  { %v173_v26 = vadd.f32 %v196_v24, %v172_v25  ;;  %v220_v27 = vpop.f32.mrb[1].mxu1 }
 0x269   :  { %v175_v28 = vpop.f32.mrb[2].mxu1 }
 0x26a   :  { %v178_v29 = vmul.f32 0.2, %v173_v26  ;;  %v221_v30 = vpop.f32.mrb[3].mxu1 }
 0x26c   :  { %v179_v31 = vmax.f32 %v173_v26, %v178_v29 }
 0x26e   :  { %v180_v32 = vmul.f32 1.4142135, %v179_v31 }
 0x270   :  { %181 = vst.msk [vmem:[%s318_s3] sm:$0x3] %vm29_vm0, %v180_v32 }
 0x271   :  { %186 = vsyncpa [#allocation3], 1 }

// kernel: run.3
= control target key start
LH: loop header
LB: loop body
LE: loop exit
PB: predicated region body
PF: predicated region fallthrough
CT: control target
= control target key end

     0   :  { %s9571_s30 = smov 0   ;;  %s9573_s10 = smov 0   ;;  %s15512_s0 = inlined_call_operand.vmem [shape: f32[2,256,2], index: 0, kind: input, shape index: {}]   ;;  %s15513_s1 = inlined_call_operand.vmem [shape: f32[2,32], index: 1, kind: input, shape index: {}]   ;;  %s15514_s2 = inlined_call_operand.vmem [shape: f32[1,32], index: 2, kind: input, shape index: {}]   ;;  %s15515_s3 = inlined_call_operand.vmem [shape: bf16[2,32,64], index: 3, kind: input, shape index: {}]   ;;  %s15516_s4 = inlined_call_operand.vmem [shape: f32[1,64], index: 4, kind: input, shape index: {}]   ;;  %s15517_s5 = inlined_call_operand.vmem [shape: bf16[2,6,64,64], index: 5, kind: input, shape index: {}]   ;;  %s15518_s6 = inlined_call_operand.vmem [shape: f32[6,1,64], index: 6, kind: input, shape index: {}]   ;;  %s15519_s7 = inlined_call_operand.vmem [shape: f32[2,3,3,64], index: 7, kind: input, shape index: {}]   ;;  %s15520_s8 = inlined_call_operand.vmem [shape: f32[1,3], index: 8, kind: input, shape index: {}]   ;;  %s15521_s9 = inlined_call_operand.vmem [shape: f32[2,256,3], index: 9, kind: output, shape index: {}]  }
   0x1   :  { %s9575_s11 = smov 0  }
   0x2 LB: > { %s31_s12 = sadd.s32 1, %s9507_s10  ;;  %p8369_p0 = scmp.ge.s32.totalorder %s9511_s11, 1  ;;  %s9511_s11 = sphi %s9575_s11, %s19_s11   ;;  %s9507_s10 = sphi %s9573_s10, %s16359_s10   ;;  %s9503_s30 = sphi %s9571_s30, %s16358_s30  }
   0x3   : > { %p33_p1 = scmp.ge.s32.totalorder %s31_s12, 2  ;;  %p338_p2 = scmp.lt.s32.totalorder %s9511_s11, 3 }
   0x5   : > { %s16361_s12 = smov (%p33_p1, %s31_s12), 0  ;;  %p339_p3 = pnand %p8369_p0, %p338_p2 }
   0x7   : > { %342 = sbr.rel (%p339_p3) target bundleno = 2788 (0xae4), region = 56 }
   0xe   : > { %p398_p4 = scmp.lt.s32.totalorder %s9503_s30, 1  ;;  %v15522_v0 = vlaneseq  ;;  %v9513_v1 = vmov 1   ;;  %v9514_v20 = vmov 0   ;;  %v9709_v50 = vld [vmem:[%s15513_s1] ss:$0 sm:$0xff] }
   0xf   : > { %9289 = vset.pattern.permute.xlu0 %v9513_v1  ;;  %9287 = vset.pattern.permute.xlu1 %v9513_v1  ;;  %v9718_v53 = vld [vmem:[%s15513_s1 + $0x1] ss:$0 sm:$0xff]  ;;  %v9724_v56 = vld [vmem:[%s15514_s2] ss:$0 sm:$0xff] }
  0x10   : > { %s16363_s30 = smov (!%p398_p4, %s9503_s30), 1  ;;  %v5200_v2 = vshrl.u32 %v15522_v0, 7 }
  0x11   : > { %s8704_s13 = sshll.u32 %s16363_s30, 8  ;;  %s9126_s17 = smul.u32 12, %s16363_s30 }
  0x12   : > { %s9600_s16 = scalar_lea.vmem %s15512_s0, %s8704_s13  ;;  %v9610_v5 = vsub.s32 0, %v5200_v2  ;;  %v9612_v6 = vsub.s32 1, %v5200_v2  ;;  %v9615_v8 = vsub.s32 2, %v5200_v2  ;;  %s9125_s21 = smul.u32 192, %s16363_s30 }
  0x13   : > { %v435_v3 = vld [vmem:[%s9600_s16 + $0x10] sm:$0xff]  ;;  %v433_v4 = vld [vmem:[%s9600_s16] sm:$0xff]  ;;  %s9608_s20 = scalar_lea.vmem %s15519_s7, %s9126_s17  ;;  %v434_v11 = vld [vmem:[%s9600_s16 + $0x8] sm:$0xff]  ;;  %s8705_s22 = sshll.u32 %s16363_s30, 4 }
  0x14   : > { %15698 = vst [vmem:[#allocation2_spill] sm:$0xff] %v9610_v5  ;;  %15699 = vst [vmem:[#allocation3_spill] sm:$0xff] %v9612_v6  ;;  %672 = vperm.xlu0 %9289, %v435_v3   ;;  %664 = vperm.xlu1 %9287, %v433_v4   ;;  %v439_v7 = vld [vmem:[%s9600_s16 + $0x30] sm:$0xff]  ;;  %v8639_v9 = vld [vmem:[%s9608_s20 + $0x4] sm:$0x7]  ;;  %s9644_s24 = scalar_lea.vmem %s15517_s5, %s9125_s21  ;;  %s10685_s26 = scalar_lea.vmem %s15515_s3, %s8705_s22 }
  0x15   : > { %15700 = vst [vmem:[#allocation4_spill] sm:$0xff] %v9615_v8  ;;  %v8700_v10 = vld [vmem:[%s9608_s20 + $0x8] sm:$0x7]  ;;  %v9621_v12 = vrot.slane %v8639_v9, %v9610_v5  ;;  %v9624_v13 = vrot.slane %v8639_v9, %v9612_v6  ;;  %v9627_v14 = vrot.slane %v8639_v9, %v9615_v8  ;;  %v443_v18 = vld [vmem:[%s9600_s16 + $0x50] sm:$0xff]  ;;  %v436_v19 = vld [vmem:[%s9600_s16 + $0x18] sm:$0xff]  ;;  %s14763_s17 = scalar_lea.vmem %s15521_s9, %s8704_s13 }
  0x16   : > { %v9630_v15 = vrot.slane %v8700_v10, %v9610_v5  ;;  %v9633_v16 = vrot.slane %v8700_v10, %v9612_v6  ;;  %v9637_v17 = vrot.slane %v8700_v10, %v9615_v8  ;;  %v447_v21 = vld [vmem:[%s9600_s16 + $0x70] sm:$0xff]  ;;  %v437_v23 = vld [vmem:[%s9600_s16 + $0x20] sm:$0xff]  ;;  %v438_v26 = vld [vmem:[%s9600_s16 + $0x28] sm:$0xff] }
  0x17   : > { %15701 = vst [vmem:[#allocation5_spill] sm:$0xff] %v9621_v12  ;;  %15702 = vst [vmem:[#allocation6_spill] sm:$0xff] %v9624_v13  ;;  %v451_v22 = vld [vmem:[%s9600_s16 + $0x90] sm:$0xff]  ;;  %v440_v27 = vld [vmem:[%s9600_s16 + $0x38] sm:$0xff] }
  0x18   : > { %15703 = vst [vmem:[#allocation7_spill] sm:$0xff] %v9627_v14  ;;  %15704 = vst [vmem:[#allocation8_spill] sm:$0xff] %v9630_v15  ;;  %688 = vperm.xlu0 %9289, %v439_v7   ;;  %668 = vperm.xlu1 %9287, %v434_v11   ;;  %v455_v24 = vld [vmem:[%s9600_s16 + $0xb0] sm:$0xff]  ;;  %v441_v28 = vld [vmem:[%s9600_s16 + $0x40] sm:$0xff]  ;;  %v15719_v14 = vmov 1326507024  }
  0x19   : > { %15705 = vst [vmem:[#allocation9_spill] sm:$0xff] %v9633_v16  ;;  %15706 = vst [vmem:[#allocation10_spill] sm:$0xff] %v9637_v17  ;;  %v459_v25 = vld [vmem:[%s9600_s16 + $0xd0] sm:$0xff]  ;;  %v442_v29 = vld [vmem:[%s9600_s16 + $0x48] sm:$0xff] }
  0x1a   : > { %v446_v30 = vld [vmem:[%s9600_s16 + $0x68] sm:$0xff]  ;;  %v444_v31 = vld [vmem:[%s9600_s16 + $0x58] sm:$0xff]  ;;  %v445_v33 = vld [vmem:[%s9600_s16 + $0x60] sm:$0xff] }
  0x1b   : > { %v450_v32 = vld [vmem:[%s9600_s16 + $0x88] sm:$0xff]  ;;  %v448_v36 = vld [vmem:[%s9600_s16 + $0x78] sm:$0xff]  ;;  %v449_v38 = vld [vmem:[%s9600_s16 + $0x80] sm:$0xff] }
  0x1c   : > { %704 = vperm.xlu0 %9289, %v443_v18   ;;  %9288 = vset.pattern.permute.xlu1 %v9514_v20  ;;  %v454_v34 = vld [vmem:[%s9600_s16 + $0xa8] sm:$0xff]  ;;  %v463_v39 = vld [vmem:[%s9600_s16 + $0xf0] sm:$0xff]  ;;  %v452_v40 = vld [vmem:[%s9600_s16 + $0x98] sm:$0xff] }
  0x1d   : > { %483 = vperm.xlu1 %9288, %v436_v19   ;;  %v458_v35 = vld [vmem:[%s9600_s16 + $0xc8] sm:$0xff]  ;;  %v453_v41 = vld [vmem:[%s9600_s16 + $0xa0] sm:$0xff]  ;;  %v456_v42 = vld [vmem:[%s9600_s16 + $0xb8] sm:$0xff] }
  0x1e   : > { %v9678_v37 = vld [vmem:[%s9600_s16 + $0xe8] sm:$0xff]  ;;  %v457_v49 = vld [vmem:[%s9600_s16 + $0xc0] sm:$0xff] }
  0x20   : > { %720 = vperm.xlu0 %9289, %v447_v21  }
  0x21   : > { %9290 = vset.pattern.permute.xlu1 %v9513_v1 }
  0x22   : > { %676 = vperm.xlu1 %9290, %v436_v19  }
  0x24   : > { %736 = vperm.xlu0 %9289, %v451_v22  }
  0x26   : > { %9291 = vset.pattern.permute.xlu1 %v9514_v20 }
  0x27   : > { %488 = vperm.xlu1 %9291, %v437_v23  }
  0x28   : > { %752 = vperm.xlu0 %9289, %v455_v24  }
  0x2b   : > { %9292 = vset.pattern.permute.xlu1 %v9513_v1 }
  0x2c   : > { %768 = vperm.xlu0 %9289, %v459_v25   ;;  %680 = vperm.xlu1 %9292, %v437_v23  }
  0x30   : > { %9314 = vset.pattern.permute.xlu0 %v9514_v20  ;;  %684 = vperm.xlu1 %9292, %v438_v26  }
  0x31   : > { %468 = vperm.xlu0 %9314, %v433_v4  }
  0x34   : > { %9293 = vset.pattern.permute.xlu1 %v9514_v20 }
  0x35   : > { %473 = vperm.xlu0 %9314, %v434_v11   ;;  %503 = vperm.xlu1 %9293, %v440_v27  }
  0x39   : > { %478 = vperm.xlu0 %9314, %v435_v3   ;;  %9294 = vset.pattern.permute.xlu1 %v9513_v1  ;;  %v460_v3 = vld [vmem:[%s9600_s16 + $0xd8] sm:$0xff] }
  0x3a   : > { %692 = vperm.xlu1 %9294, %v440_v27  }
  0x3d   : > { %493 = vperm.xlu0 %9314, %v438_v26  }
  0x3e   : > { %9295 = vset.pattern.permute.xlu1 %v9514_v20 }
  0x3f   : > { %508 = vperm.xlu1 %9295, %v441_v28  }
  0x41   : > { %498 = vperm.xlu0 %9314, %v439_v7  }
  0x43   : > { %9296 = vset.pattern.permute.xlu1 %v9513_v1 }
  0x44   : > { %696 = vperm.xlu1 %9296, %v441_v28  }
  0x45   : > { %513 = vperm.xlu0 %9314, %v442_v29  }
  0x48   : > { %700 = vperm.xlu1 %9296, %v442_v29   ;;  %v15537_v29 = vmov 683565275  }
  0x49   : > { %518 = vperm.xlu0 %9314, %v443_v18  }
  0x4c   : > { %9297 = vset.pattern.permute.xlu1 %v9514_v20 }
  0x4d   : > { %533 = vperm.xlu0 %9314, %v446_v30   ;;  %523 = vperm.xlu1 %9297, %v444_v31  }
  0x51   : > { %538 = vperm.xlu0 %9314, %v447_v21   ;;  %9298 = vset.pattern.permute.xlu1 %v9513_v1 }
  0x52   : > { %708 = vperm.xlu1 %9298, %v444_v31   ;;  %v15528_v31 = vmov 2475754826  }
  0x55   : > { %553 = vperm.xlu0 %9314, %v450_v32  }
  0x56   : > { %9299 = vset.pattern.permute.xlu1 %v9514_v20 }
  0x57   : > { %528 = vperm.xlu1 %9299, %v445_v33  }
  0x59   : > { %558 = vperm.xlu0 %9314, %v451_v22  }
  0x5b   : > { %9300 = vset.pattern.permute.xlu1 %v9513_v1 }
  0x5c   : > { %712 = vperm.xlu1 %9300, %v445_v33   ;;  %v15526_v33 = vmov 2131351028  }
  0x5d   : > { %573 = vperm.xlu0 %9314, %v454_v34  }
  0x60   : > { %716 = vperm.xlu1 %9300, %v446_v30  }
  0x61   : > { %578 = vperm.xlu0 %9314, %v455_v24  }
  0x64   : > { %9301 = vset.pattern.permute.xlu1 %v9514_v20 }
  0x65   : > { %593 = vperm.xlu0 %9314, %v458_v35   ;;  %543 = vperm.xlu1 %9301, %v448_v36  }
  0x69   : > { %598 = vperm.xlu0 %9314, %v459_v25   ;;  %9302 = vset.pattern.permute.xlu1 %v9513_v1 }
  0x6a   : > { %724 = vperm.xlu1 %9302, %v448_v36   ;;  %v15530_v36 = vmov 2102212464  }
  0x6d   : > { %613 = vperm.xlu0 %9314, %v9678_v37  }
  0x6e   : > { %9303 = vset.pattern.permute.xlu1 %v9514_v20 }
  0x6f   : > { %548 = vperm.xlu1 %9303, %v449_v38  }
  0x71   : > { %618 = vperm.xlu0 %9314, %v463_v39  }
  0x73   : > { %9304 = vset.pattern.permute.xlu1 %v9513_v1 }
  0x74   : > { %728 = vperm.xlu1 %9304, %v449_v38  }
  0x75   : > { %9319 = vset.pattern.permute.xlu0 %v9513_v1 }
  0x76   : > { %784 = vperm.xlu0 %9319, %v463_v39   ;;  %v15535_v39 = vmov 920167782  }
  0x78   : > { %732 = vperm.xlu1 %9304, %v450_v32  }
  0x7c   : > { %9305 = vset.pattern.permute.xlu1 %v9514_v20 }
  0x7d   : > { %563 = vperm.xlu1 %9305, %v452_v40  }
  0x81   : > { %9306 = vset.pattern.permute.xlu1 %v9513_v1 }
  0x82   : > { %740 = vperm.xlu1 %9306, %v452_v40  }
  0x86   : > { %9307 = vset.pattern.permute.xlu1 %v9514_v20 }
  0x87   : > { %568 = vperm.xlu1 %9307, %v453_v41  }
  0x8b   : > { %9308 = vset.pattern.permute.xlu1 %v9513_v1 }
  0x8c   : > { %744 = vperm.xlu1 %9308, %v453_v41  }
  0x90   : > { %748 = vperm.xlu1 %9308, %v454_v34  }
  0x93   : > { %v9693_v43 = vpop.permute.xlu0 %672  ;;  %v9695_v44 = vpop.permute.xlu1 %664 }
  0x94   : > { %9309 = vset.pattern.permute.xlu1 %v9514_v20 }
  0x95   : > { %583 = vperm.xlu1 %9309, %v456_v42  }
  0x97   : > { %v9698_v45 = vpop.permute.xlu0 %688  ;;  %v9700_v46 = vpop.permute.xlu1 %668 }
  0x99   : > { %9310 = vset.pattern.permute.xlu1 %v9513_v1 }
  0x9a   : > { %756 = vperm.xlu1 %9310, %v456_v42  }
  0x9b   : > { %v9703_v47 = vpop.permute.xlu0 %704 }
  0x9c   : > { %v484_v48 = vpop.permute.xlu1 %483 }
  0x9d   : > { %v633_v51 = vmul.f32 %v9709_v50, %v484_v48 }
  0x9e   : > { %9311 = vset.pattern.permute.xlu1 %v9514_v20 }
  0x9f   : > { %588 = vperm.xlu1 %9311, %v457_v49   ;;  %v9713_v52 = vpop.permute.xlu0 %720 }
  0xa1   : > { %v677_v54 = vpop.permute.xlu1 %676 }
  0xa2   : > { %v798_v55 = vmul.f32 %v9718_v53, %v677_v54 }
  0xa3   : > { %9312 = vset.pattern.permute.xlu1 %v9513_v1  ;;  %v9730_v59 = vpop.permute.xlu0 %736 }
  0xa4   : > { %v830_v57 = vadd.f32 %v798_v55, %v633_v51  ;;  %760 = vperm.xlu1 %9312, %v457_v49   ;;  %v15532_v55 = vmov 1326507024  }
  0xa6   : > { %v9728_v58 = vadd.f32 %v9724_v56, %v830_v57  ;;  %v489_v60 = vpop.permute.xlu1 %488 }
  0xa7   : > { %v634_v2 = vmul.f32 %v9709_v50, %v489_v60  ;;  %v9736_v9 = vpop.permute.xlu0 %752 }
  0xa8   : > { %15707 = vst [vmem:[#allocation11_spill] sm:$0xff] %v9728_v58  ;;  %v1213_v61 = vand.u32 2139095040, %v9728_v58  ;;  %764 = vperm.xlu1 %9312, %v458_v35   ;;  %v15524_v62 = vand.u32 2147483647, %v9728_v58  ;;  %v461_v35 = vld [vmem:[%s9600_s16 + $0xe0] sm:$0xff] }
  0xaa   : > { %v1214_v63 = vshrl.u32 %v1213_v61, 23  ;;  %v1217_v11 = vand.u32 8388607, %v15524_v62 }
  0xab   : > { %v681_v4 = vpop.permute.xlu1 %680  ;;  %v9748_v26 = vpop.permute.xlu0 %768 }
  0xac   : > { %v8393_v7 = vadd.s32 4294967169, %v1214_v63  ;;  %v799_v10 = vmul.f32 %v9718_v53, %v681_v4  ;;  %9313 = vset.pattern.permute.xlu1 %v9514_v20  ;;  %v1218_v22 = vor.u32 8388608, %v1217_v11 }
  0xad   : > { %603 = vperm.xlu1 %9313, %v460_v3  }
  0xae   : > { %v1220_v18 = vadd.s32 1, %v8393_v7  ;;  %v831_v19 = vadd.f32 %v799_v10, %v634_v2  ;;  %v9757_v41 = vshll.u32 %v1218_v22, 8 }
  0xb0   : > { %vm1221_vm0 = vcmp.gt.s32.totalorder %v1220_v18, 0  ;;  %v9743_v21 = vadd.f32 %v9724_v56, %v831_v19 }
  0xb1   : > { %v1222_v23 = vsel %vm1221_vm0, %v1220_v18, 0  ;;  %9315 = vset.pattern.permute.xlu1 %v9513_v1 }
  0xb2   : > { %15708 = vst [vmem:[#allocation12_spill] sm:$0xff] %v9743_v21  ;;  %v9746_v24 = vshrl.u32 %v1222_v23, 5  ;;  %v1224_v25 = vand.u32 31, %v1222_v23  ;;  %772 = vperm.xlu1 %9315, %v460_v3   ;;  %v1317_v27 = vand.u32 2139095040, %v9743_v21  ;;  %v9768_v3 = vpop.permute.xlu0 %468  ;;  %v15523_v10 = vand.u32 2147483647, %v9743_v21 }
  0xb4   : > { %v1225_v28 = vsub.s32 32, %v1224_v25  ;;  %v1227_v30 = vshll.u32 %v15537_v29, %v1224_v25  ;;  %v1230_v32 = vshll.u32 %v15528_v31, %v1224_v25  ;;  %v1233_v34 = vshll.u32 %v15526_v33, %v1224_v25 }
  0xb5   : > { %v1236_v38 = vshll.u32 %v15530_v36, %v1224_v25  ;;  %v1239_v40 = vshll.u32 %v15535_v39, %v1224_v25  ;;  %vm1242_vm1 = vcmp.lt.s32.totalorder %v9746_v24, 1  ;;  %vm1245_vm2 = vcmp.lt.s32.totalorder %v9746_v24, 4 }
  0xb6   : > { %v1228_v42 = vshrl.u32 %v15528_v31, %v1225_v28  ;;  %v1231_v48 = vshrl.u32 %v15526_v33, %v1225_v28  ;;  %v1234_v49 = vshrl.u32 %v15530_v36, %v1225_v28  ;;  %9316 = vset.pattern.permute.xlu1 %v9514_v20  ;;  %v1226_v51 = vshrl.u32 %v15537_v29, %v1225_v28 }
  0xb7   : > { %v1237_v54 = vshrl.u32 %v15535_v39, %v1225_v28  ;;  %v1240_v57 = vshrl.u32 %v15532_v55, %v1225_v28  ;;  %608 = vperm.xlu1 %9316, %v461_v35   ;;  %v1318_v2 = vshrl.u32 %v1317_v27, 23  ;;  %vm1244_vm3 = vcmp.lt.s32.totalorder %v9746_v24, 3 }
  0xb8   : > { %v1229_v60 = vor.u32 %v1228_v42, %v1227_v30  ;;  %v1232_v61 = vor.u32 %v1231_v48, %v1230_v32  ;;  %v1235_v63 = vor.u32 %v1234_v49, %v1233_v34  ;;  %vm1243_vm4 = vcmp.lt.s32.totalorder %v9746_v24, 2  ;;  %v9786_v32 = vpop.permute.xlu1 %684 }
  0xb9   : > { %v1238_v4 = vor.u32 %v1237_v54, %v1236_v38  ;;  %v1241_v7 = vor.u32 %v1240_v57, %v1239_v40  ;;  %v8397_v25 = vadd.s32 4294967169, %v1318_v2  ;;  %v9801_v57 = vpop.permute.xlu0 %473  ;;  %v797_v2 = vmul.f32 %v9718_v53, %v9693_v43 }
  0xba   : > { %v1247_v11 = vsel %vm1245_vm2, %v1235_v63, 2102212464  ;;  %v1250_v18 = vsel %vm1242_vm1, %v1229_v60, %v1232_v61  ;;  %v1254_v19 = vsel %vm1242_vm1, %v1232_v61, %v1235_v63  ;;  %v1246_v27 = vsel %vm1242_vm1, %v1226_v51, %v1229_v60 }
  0xbb   : > { %v1251_v22 = vsel %vm1245_vm2, %v1238_v4, 920167782  ;;  %v1255_v23 = vsel %vm1245_vm2, %v1241_v7, 1326507024  ;;  %9317 = vset.pattern.permute.xlu1 %v9513_v1  ;;  %v1248_v34 = vsel %vm1244_vm3, %v1232_v61, %v1247_v11  ;;  %v1324_v42 = vadd.s32 1, %v8397_v25  ;;  %v464_v11 = vld [vmem:[%s9600_s16 + $0xf8] sm:$0xff] }
  0xbc   : > { %v1252_v28 = vsel %vm1244_vm3, %v1235_v63, %v1251_v22  ;;  %v1256_v30 = vsel %vm1244_vm3, %v1238_v4, %v1255_v23  ;;  %776 = vperm.xlu1 %9317, %v461_v35   ;;  %v1321_v35 = vand.u32 8388607, %v15523_v10  ;;  %v1249_v61 = vsel %vm1243_vm4, %v1246_v27, %v1248_v34  ;;  %v504_v7 = vpop.permute.xlu1 %503 }
  0xbd   : > { %v1253_v38 = vsel %vm1243_vm4, %v1250_v18, %v1252_v28  ;;  %v1257_v40 = vsel %vm1243_vm4, %v1254_v19, %v1256_v30  ;;  %vm1325_vm5 = vcmp.gt.s32.totalorder %v1324_v42, 0  ;;  %v1265_v25 = vmul.u32 %v9757_v41, %v1249_v61  ;;  %v479_v28 = vpop.permute.xlu0 %478 }
  0xbe   : > { %v9793_v48 = vmul.u32.u64.low %v9757_v41, %v1257_v40  ;;  %v9794_v49 = vmul.u32.u64.high %v9757_v41, %v1257_v40, %v9793_v48  ;;  %v9797_v51 = vmul.u32.u64.low %v9757_v41, %v1253_v38  ;;  %v9798_v54 = vmul.u32.u64.high %v9757_v41, %v1253_v38, %v9797_v51 }
  0xbf   : > { %v1326_v60 = vsel %vm1325_vm5, %v1324_v42, 0  ;;  %v1322_v18 = vor.u32 8388608, %v1321_v35  ;;  %v632_v48 = vmul.f32 %v9709_v50, %v479_v28  ;;  %v637_v28 = vmul.f32 %v9709_v50, %v504_v7 }
  0xc0   : > { %780 = vperm.xlu1 %9317, %v9678_v37   ;;  %v1328_v63 = vand.u32 31, %v1326_v60  ;;  %v9810_v4 = vshrl.u32 %v1326_v60, 5  ;;  %vm1267_vm6 = vc.u32 %v9794_v49, %v9797_v51  ;;  %v1268_v43 = vadd.s32 1, %v9798_v54 }
  0xc1   : > { %v9921_v62 = vmul.f32 %v9718_v53, %v9786_v32 }
  0xc2   : > { %v1329_v19 = vsub.s32 32, %v1328_v63  ;;  %v1331_v22 = vshll.u32 %v15537_v29, %v1328_v63  ;;  %v1334_v23 = vshll.u32 %v15528_v31, %v1328_v63  ;;  %v1337_v37 = vshll.u32 %v15526_v33, %v1328_v63 }
  0xc3   : > { %v1340_v24 = vshll.u32 %v15530_v36, %v1328_v63  ;;  %v1343_v27 = vshll.u32 %v15535_v39, %v1328_v63  ;;  %vm1346_vm7 = vcmp.lt.s32.totalorder %v9810_v4, 1  ;;  %vm1348_vm8 = vcmp.lt.s32.totalorder %v9810_v4, 3  ;;  %v693_v63 = vpop.permute.xlu1 %692 }
  0xc4   : > { %9318 = vset.pattern.permute.xlu1 %v9514_v20  ;;  %v1332_v30 = vshrl.u32 %v15528_v31, %v1329_v19  ;;  %v1335_v34 = vshrl.u32 %v15526_v33, %v1329_v19  ;;  %v1338_v41 = vshrl.u32 %v15530_v36, %v1329_v19  ;;  %v1341_v38 = vshrl.u32 %v15535_v39, %v1329_v19 }
  0xc5   : > { %623 = vperm.xlu1 %9318, %v464_v11   ;;  %v1344_v40 = vshrl.u32 %v15532_v55, %v1329_v19  ;;  %vm1349_vm9 = vcmp.lt.s32.totalorder %v9810_v4, 4  ;;  %v1269_v0 = vsel %vm1267_vm6, %v1268_v43, %v9798_v54  ;;  %vm1347_vm10 = vcmp.lt.s32.totalorder %v9810_v4, 2 }
  0xc6   : > { %v1333_v42 = vor.u32 %v1332_v30, %v1331_v22  ;;  %v1336_v20 = vor.u32 %v1335_v34, %v1334_v23  ;;  %v1339_v35 = vor.u32 %v1338_v41, %v1337_v37  ;;  %v1342_v60 = vor.u32 %v1341_v38, %v1340_v24 }
  0xc7   : > { %v1345_v61 = vor.u32 %v1344_v40, %v1343_v27  ;;  %v1362_v23 = vshll.u32 %v1322_v18, 8  ;;  %v829_v43 = vadd.f32 %v797_v2, %v632_v48  ;;  %v1270_v30 = vadd.s32 %v1269_v0, %v1265_v25 }
  0xc8   : > { %v1354_v22 = vsel %vm1346_vm7, %v1333_v42, %v1336_v20  ;;  %v1355_v37 = vsel %vm1349_vm9, %v1342_v60, 920167782  ;;  %v1358_v24 = vsel %vm1346_vm7, %v1336_v20, %v1339_v35  ;;  %v1330_v38 = vshrl.u32 %v15537_v29, %v1329_v19 }
  0xc9   : > { %9320 = vset.pattern.permute.xlu1 %v9513_v1  ;;  %v1359_v27 = vsel %vm1349_vm9, %v1345_v61, 1326507024  ;;  %v1356_v54 = vsel %vm1348_vm8, %v1339_v35, %v1355_v37  ;;  %v802_v1 = vmul.f32 %v9718_v53, %v693_v63  ;;  %v630_v40 = vmul.f32 %v9709_v50, %v9768_v3 }
  0xca   : > { %788 = vperm.xlu1 %9320, %v464_v11   ;;  %v1360_v18 = vsel %vm1348_vm8, %v1342_v60, %v1359_v27  ;;  %v1357_v34 = vsel %vm1347_vm10, %v1354_v22, %v1356_v54  ;;  %v9867_v0 = vadd.f32 %v9724_v56, %v829_v43  ;;  %v795_v48 = vmul.f32 %v9718_v53, %v9695_v44 }
  0xcb   : > { %v1361_v41 = vsel %vm1347_vm10, %v1358_v24, %v1360_v18  ;;  %v9857_v7 = vmul.u32.u64.low %v1362_v23, %v1357_v34  ;;  %v9858_v11 = vmul.u32.u64.high %v1362_v23, %v1357_v34, %v9857_v7  ;;  %v834_v25 = vadd.f32 %v802_v1, %v637_v28 }
  0xcc   : > { %v9863_v60 = vmul.u32.u64.low %v1362_v23, %v1361_v41  ;;  %v9864_v2 = vmul.u32.u64.high %v1362_v23, %v1361_v41, %v9863_v60  ;;  %15709 = vst [vmem:[#allocation13_spill] sm:$0xff] %v9867_v0  ;;  %v1271_v61 = vadd.s32 536870912, %v1270_v30  ;;  %v1351_v19 = vsel %vm1349_vm9, %v1339_v35, 2102212464 }
  0xcd   : > { %v827_v63 = vadd.f32 %v795_v48, %v630_v40  ;;  %v1350_v22 = vsel %vm1346_vm7, %v1330_v38, %v1333_v42  ;;  %v1352_v3 = vsel %vm1348_vm8, %v1336_v20, %v1351_v19  ;;  %v1109_v37 = vand.u32 2139095040, %v9867_v0 }
  0xce   : > { %v9879_v24 = vadd.f32 %v9724_v56, %v834_v25  ;;  %v9881_v27 = vshrl.u32 %v1271_v61, 30  ;;  %v1353_v44 = vsel %vm1347_vm10, %v1350_v22, %v1352_v3  ;;  %v1372_v35 = vadd.s32 1, %v9858_v11 }
  0xcf   : > { %v1110_v28 = vshrl.u32 %v1109_v37, 23  ;;  %vm1371_vm11 = vc.u32 %v9864_v2, %v9857_v7  ;;  %v9890_v42 = vadd.f32 %v9724_v56, %v827_v63  ;;  %v15525_v43 = vand.u32 2147483647, %v9867_v0 }
  0xd0   : > { %15710 = vst [vmem:[#allocation14_spill] sm:$0xff] %v9879_v24  ;;  %15711 = vst [vmem:[#allocation15_spill] sm:$0xff] %v9881_v27  ;;  %v1629_v54 = vand.u32 2139095040, %v9879_v24  ;;  %v1273_v18 = vshll.u32 %v9881_v27, 30  ;;  %v1369_v1 = vmul.u32 %v1362_v23, %v1353_v44  ;;  %v1373_v4 = vsel %vm1371_vm11, %v1372_v35, %v9858_v11 }
  0xd1   : > { %15712 = vst [vmem:[#allocation16_spill] sm:$0xff] %v9890_v42  ;;  %v8389_v20 = vadd.s32 4294967169, %v1110_v28  ;;  %v901_v38 = vand.u32 2139095040, %v9890_v42  ;;  %v1113_v60 = vand.u32 8388607, %v15525_v43  ;;  %v796_v23 = vmul.f32 %v9718_v53, %v9700_v46 }
  0xd2   : > { %v1630_v34 = vshrl.u32 %v1629_v54, 23  ;;  %v9896_v40 = vsub.s32 %v1270_v30, %v1273_v18  ;;  %v9900_v25 = vadd.s32 %v1373_v4, %v1369_v1  ;;  %v631_v11 = vmul.f32 %v9709_v50, %v9801_v57 }
  0xd3   : > { %v1116_v41 = vadd.s32 1, %v8389_v20  ;;  %v902_v63 = vshrl.u32 %v901_v38, 23  ;;  %v1114_v30 = vor.u32 8388608, %v1113_v60  ;;  %v15534_v37 = vand.u32 2147483647, %v9879_v24 }
  0xd4   : > { %v8409_v61 = vadd.s32 4294967169, %v1630_v34  ;;  %v1276_v22 = vsub.s32 0, %v9896_v40  ;;  %v1375_v28 = vadd.s32 536870912, %v9900_v25  ;;  %v9923_v43 = vadd.f32 %v796_v23, %v631_v11 }
  0xd5   : > { %vm1117_vm12 = vcmp.gt.s32.totalorder %v1116_v41, 0  ;;  %v1633_v32 = vand.u32 8388607, %v15534_v37 }
  0xd6   : > { %v1118_v48 = vsel %vm1117_vm12, %v1116_v41, 0  ;;  %v1636_v54 = vadd.s32 1, %v8409_v61 }
  0xd7   : > { %v1120_v19 = vand.u32 31, %v1118_v48  ;;  %v1119_v1 = vshrl.u32 %v1118_v48, 5  ;;  %v9927_v48 = vadd.s32 4294967169, %v902_v63 }
  0xd8   : > { %vm1637_vm13 = vcmp.gt.s32.totalorder %v1636_v54, 0 }
  0xd9   : > { %v1121_v3 = vsub.s32 32, %v1120_v19  ;;  %v1123_v44 = vshll.u32 %v15537_v29, %v1120_v19  ;;  %v1126_v35 = vshll.u32 %v15528_v31, %v1120_v19  ;;  %v1129_v18 = vshll.u32 %v15526_v33, %v1120_v19 }
  0xda   : > { %v1132_v34 = vshll.u32 %v15530_v36, %v1120_v19  ;;  %v1135_v61 = vshll.u32 %v15535_v39, %v1120_v19  ;;  %vm1138_vm14 = vcmp.lt.s32.totalorder %v1119_v1, 1  ;;  %vm1141_vm15 = vcmp.lt.s32.totalorder %v1119_v1, 4 }
  0xdb   : > { %v1124_v20 = vshrl.u32 %v15528_v31, %v1121_v3  ;;  %v1127_v46 = vshrl.u32 %v15526_v33, %v1121_v3  ;;  %v1130_v57 = vshrl.u32 %v15530_v36, %v1121_v3  ;;  %v1133_v4 = vshrl.u32 %v15535_v39, %v1121_v3 }
  0xdc   : > { %v1136_v41 = vshrl.u32 %v15532_v55, %v1121_v3  ;;  %v9925_v31 = vshrl.u32 %v1375_v28, 30  ;;  %v8394_v55 = vmin.u32 %v1276_v22, %v9896_v40  ;;  %v1122_v23 = vshrl.u32 %v15537_v29, %v1121_v3 }
  0xdd   : > { %v1125_v38 = vor.u32 %v1124_v20, %v1123_v44  ;;  %v1128_v60 = vor.u32 %v1127_v46, %v1126_v35  ;;  %v1131_v10 = vor.u32 %v1130_v57, %v1129_v18  ;;  %v1134_v33 = vor.u32 %v1133_v4, %v1132_v34  ;;  %v494_v18 = vpop.permute.xlu0 %493 }
  0xde   : > { %15713 = vst [vmem:[#allocation17_spill] sm:$0xff] %v9925_v31  ;;  %v1137_v36 = vor.u32 %v1136_v41, %v1135_v61  ;;  %v1154_v44 = vshll.u32 %v1114_v30, 8  ;;  %vm1140_vm0 = vcmp.lt.s32.totalorder %v1119_v1, 3  ;;  %v1638_v11 = vsel %vm1637_vm13, %v1636_v54, 0 }
  0xdf   : > { %v1143_v35 = vsel %vm1141_vm15, %v1131_v10, 2102212464  ;;  %v1146_v19 = vsel %vm1138_vm14, %v1125_v38, %v1128_v60  ;;  %v1147_v20 = vsel %vm1141_vm15, %v1134_v33, 920167782  ;;  %v1150_v63 = vsel %vm1138_vm14, %v1128_v60, %v1131_v10 }
  0xe0   : > { %v1377_v28 = vshll.u32 %v9925_v31, 30  ;;  %vm1139_vm1 = vcmp.lt.s32.totalorder %v1119_v1, 2  ;;  %v1148_v22 = vsel %vm1140_vm0, %v1131_v10, %v1147_v20  ;;  %v1151_v46 = vsel %vm1141_vm15, %v1137_v36, 1326507024 }
  0xe1   : > { %v1142_v30 = vsel %vm1138_vm14, %v1122_v23, %v1125_v38  ;;  %v1144_v57 = vsel %vm1140_vm0, %v1128_v60, %v1143_v35  ;;  %v1149_v34 = vsel %vm1139_vm1, %v1146_v19, %v1148_v22  ;;  %v1152_v4 = vsel %vm1140_vm0, %v1134_v33, %v1151_v46 }
  0xe2   : > { %v1153_v41 = vsel %vm1139_vm1, %v1150_v63, %v1152_v4  ;;  %v9937_v61 = vmul.u32.u64.low %v1154_v44, %v1149_v34  ;;  %v9938_v37 = vmul.u32.u64.high %v1154_v44, %v1149_v34, %v9937_v61  ;;  %v1640_v3 = vand.u32 31, %v1638_v11 }
  0xe3   : > { %v1278_v39 = vclz %v8394_v55  ;;  %v9941_v29 = vmul.u32.u64.low %v1154_v44, %v1153_v41  ;;  %v9942_v54 = vmul.u32.u64.high %v1154_v44, %v1153_v41, %v9941_v29  ;;  %v635_v17 = vmul.f32 %v9709_v50, %v494_v18 }
  0xe4   : > { %v1145_v10 = vsel %vm1139_vm1, %v1142_v30, %v1144_v57  ;;  %v1641_v36 = vsub.s32 32, %v1640_v3  ;;  %v15714_v20 = vmov 683565275   ;;  %v15715_v38 = vmov 2475754826  }
  0xe5   : > { %v1643_v1 = vshll.u32 %v15714_v20, %v1640_v3  ;;  %v1646_v60 = vshll.u32 %v15715_v38, %v1640_v3  ;;  %v9948_v33 = vsub.s32 %v9900_v25, %v1377_v28  ;;  %v1634_v35 = vor.u32 8388608, %v1633_v32 }
  0xe6   : > { %v1639_v19 = vshrl.u32 %v1638_v11, 5  ;;  %v15716_v23 = vmov 2131351028   ;;  %v1164_v55 = vadd.s32 1, %v9938_v37  ;;  %v1644_v22 = vshrl.u32 %v15715_v38, %v1641_v36 }
  0xe7   : > { %v1649_v63 = vshll.u32 %v15716_v23, %v1640_v3  ;;  %v1647_v29 = vshrl.u32 %v15716_v23, %v1641_v36  ;;  %v15717_v46 = vmov 2102212464   ;;  %v1161_v30 = vmul.u32 %v1154_v44, %v1145_v10 }
  0xe8   : > { %v1652_v18 = vshll.u32 %v15717_v46, %v1640_v3  ;;  %vm1163_vm2 = vc.u32 %v9942_v54, %v9937_v61  ;;  %v1650_v57 = vshrl.u32 %v15717_v46, %v1641_v36  ;;  %v15718_v25 = vmov 920167782  }
  0xe9   : > { %v1655_v28 = vshll.u32 %v15718_v25, %v1640_v3  ;;  %v1165_v32 = vsel %vm1163_vm2, %v1164_v55, %v9938_v37  ;;  %v1645_v11 = vor.u32 %v1644_v22, %v1643_v1  ;;  %v1648_v34 = vor.u32 %v1647_v29, %v1646_v60 }
  0xea   : > { %v1653_v4 = vshrl.u32 %v15718_v25, %v1641_v36  ;;  %v1380_v41 = vsub.s32 0, %v9948_v33  ;;  %v9962_v16 = vadd.s32 %v1165_v32, %v1161_v30  ;;  %v1651_v15 = vor.u32 %v1650_v57, %v1649_v63 }
  0xeb   : > { %v1656_v44 = vshrl.u32 %v15719_v14, %v1641_v36  ;;  %v8395_v10 = vadd.s32 4294967294, %v1278_v39  ;;  %vm1658_vm3 = vcmp.lt.s32.totalorder %v1639_v19, 1  ;;  %vm1660_vm4 = vcmp.lt.s32.totalorder %v1639_v19, 3 }
  0xec   : > { %v1654_v13 = vor.u32 %v1653_v4, %v1652_v18  ;;  %vm1659_vm5 = vcmp.lt.s32.totalorder %v1639_v19, 2  ;;  %vm1661_vm6 = vcmp.lt.s32.totalorder %v1639_v19, 4  ;;  %v9965_v3 = vshll.u32 %v1634_v35, 8 }
  0xed   : > { %v1657_v12 = vor.u32 %v1656_v44, %v1655_v28  ;;  %v9969_v37 = vadd.f32 %v9724_v56, %v9923_v43  ;;  %v1666_v1 = vsel %vm1658_vm3, %v1645_v11, %v1648_v34  ;;  %v832_v63 = vadd.f32 %v9921_v62, %v635_v17 }
  0xee   : > { %v1667_v60 = vsel %vm1661_vm6, %v1654_v13, 920167782  ;;  %v8398_v55 = vmin.u32 %v1380_v41, %v9948_v33  ;;  %v1167_v39 = vadd.s32 536870912, %v9962_v16  ;;  %v1642_v22 = vshrl.u32 %v15714_v20, %v1641_v36  ;;  %v499_v41 = vpop.permute.xlu0 %498 }
  0xef   : > { %15720 = vst [vmem:[#allocation18_spill] sm:$0xff] %v9969_v37  ;;  %v1668_v29 = vsel %vm1660_vm4, %v1651_v15, %v1667_v60  ;;  %v1663_v18 = vsel %vm1661_vm6, %v1651_v15, 2102212464  ;;  %v1670_v30 = vsel %vm1658_vm3, %v1648_v34, %v1651_v15  ;;  %v1671_v43 = vsel %vm1661_vm6, %v1657_v12, 1326507024 }
  0xf0   : > { %v1669_v35 = vsel %vm1659_vm5, %v1666_v1, %v1668_v29  ;;  %vm8396_vm7 = vcmp.lt.s32.totalorder %v8395_v10, 0  ;;  %v1672_v57 = vsel %vm1660_vm4, %v1654_v13, %v1671_v43  ;;  %v908_v62 = vadd.s32 1, %v9927_v48  ;;  %v509_v1 = vpop.permute.xlu1 %508 }
  0xf1   : > { %v9981_v28 = vmul.u32.u64.low %v9965_v3, %v1669_v35  ;;  %v9982_v17 = vmul.u32.u64.high %v9965_v3, %v1669_v35, %v9981_v28  ;;  %v1005_v36 = vand.u32 2139095040, %v9969_v37  ;;  %v1673_v32 = vsel %vm1659_vm5, %v1670_v30, %v1672_v57 }
  0xf2   : > { %v9989_v4 = vadd.f32 %v9724_v56, %v832_v63  ;;  %v1662_v12 = vsel %vm1658_vm3, %v1642_v22, %v1645_v11  ;;  %v1664_v15 = vsel %vm1660_vm4, %v1648_v34, %v1663_v18  ;;  %v1281_v60 = vsel %vm8396_vm7, 0, %v8395_v10 }
  0xf3   : > { %v9994_v13 = vmul.u32.u64.low %v9965_v3, %v1673_v32  ;;  %v9995_v44 = vmul.u32.u64.high %v9965_v3, %v1673_v32, %v9994_v13  ;;  %v1382_v29 = vclz %v8398_v55  ;;  %v9997_v48 = vshrl.u32 %v1167_v39, 30 }
  0xf4   : > { %v1421_v35 = vand.u32 2139095040, %v9989_v4  ;;  %v801_v63 = vmul.f32 %v9718_v53, %v9698_v45  ;;  %v10004_v30 = vmul.f32 %v9718_v53, %v9703_v47  ;;  %v636_v11 = vmul.f32 %v9709_v50, %v499_v41  ;;  %v697_v41 = vpop.permute.xlu1 %696 }
  0xf5   : > { %15721 = vst [vmem:[#allocation19_spill] sm:$0xff] %v9997_v48  ;;  %v1006_v34 = vshrl.u32 %v1005_v36, 23  ;;  %v1665_v22 = vsel %vm1659_vm5, %v1662_v12, %v1664_v15  ;;  %v1684_v18 = vadd.s32 1, %v9982_v17  ;;  %v10011_v55 = vmul.f32 %v9718_v53, %v9713_v52 }
  0xf6   : > { %v1422_v10 = vshrl.u32 %v1421_v35, 23  ;;  %v1282_v39 = vsub.s32 32, %v1281_v60  ;;  %vm909_vm8 = vcmp.gt.s32.totalorder %v908_v62, 0  ;;  %vm1683_vm9 = vc.u32 %v9995_v44, %v9981_v28 }
  0xf7   : > { %v10017_v45 = vmul.f32 %v9718_v53, %v9730_v59  ;;  %v8399_v47 = vadd.s32 4294967294, %v1382_v29  ;;  %v1169_v19 = vshll.u32 %v9997_v48, 30  ;;  %v1266_v57 = vadd.s32 %v9797_v51, %v9794_v49 }
  0xf8   : > { %v8401_v43 = vadd.s32 4294967169, %v1422_v10  ;;  %v10024_v52 = vmul.f32 %v9718_v53, %v9736_v9  ;;  %v1681_v36 = vmul.u32 %v9965_v3, %v1665_v22  ;;  %v833_v32 = vadd.f32 %v801_v63, %v636_v11 }
  0xf9   : > { %v910_v12 = vsel %vm909_vm8, %v908_v62, 0  ;;  %v8385_v15 = vadd.s32 4294967169, %v1006_v34  ;;  %v1685_v59 = vsel %vm1683_vm9, %v1684_v18, %v9982_v17  ;;  %v1283_v29 = vshll.u32 %v9896_v40, %v1281_v60 }
  0xfa   : > { %15722 = vst [vmem:[#allocation20_spill] sm:$0xff] %v10024_v52  ;;  %v1428_v13 = vadd.s32 1, %v8401_v43  ;;  %v1284_v35 = vshrl.u32 %v1266_v57, %v1282_v39  ;;  %v1286_v10 = vsub.s32 4294967266, %v1281_v60  ;;  %v638_v8 = vmul.f32 %v9709_v50, %v509_v1 }
  0xfb   : > { %vm8400_vm10 = vcmp.lt.s32.totalorder %v8399_v47, 0  ;;  %v10031_v49 = vsub.s32 %v9962_v16, %v1169_v19  ;;  %v803_v9 = vmul.f32 %v9718_v53, %v697_v41  ;;  %v10034_v51 = vadd.s32 %v1685_v59, %v1681_v36 }
  0xfc   : > { %vm1429_vm11 = vcmp.gt.s32.totalorder %v1428_v13, 0  ;;  %v15546_v3 = vand.u32 2147483647, %v9989_v4  ;;  %v10038_v17 = vadd.f32 %v9724_v56, %v833_v32  ;;  %v10042_v40 = vmul.f32 %v9718_v53, %v9748_v26 }
  0xfd   : > { %v1430_v62 = vsel %vm1429_vm11, %v1428_v13, 0  ;;  %v10044_v1 = vshrl.u32 %v910_v12, 5  ;;  %v10046_v60 = vand.u32 31, %v910_v12  ;;  %v10048_v63 = vor.u32 %v1284_v35, %v1283_v29 }
  0xfe   : > { %15723 = vst [vmem:[#allocation21_spill] sm:$0xff] %v10038_v17  ;;  %15724 = vst [vmem:[#allocation22_spill] sm:$0xff] %v10042_v40  ;;  %v1432_v16 = vand.u32 31, %v1430_v62  ;;  %v10050_v11 = vadd.s32 127, %v1286_v10  ;;  %v1370_v34 = vadd.s32 %v9857_v7, %v9864_v2  ;;  %v10054_v22 = vadd.s32 1, %v8385_v15 }
  0xff   : > { %15725 = vst [vmem:[#allocation23_spill] sm:$0xff] %v10044_v1  ;;  %15726 = vst [vmem:[#allocation24_spill] sm:$0xff] %v10046_v60  ;;  %v10057_v18 = vsel %vm8400_vm10, 0, %v8399_v47  ;;  %v1172_v26 = vsub.s32 0, %v10031_v49  ;;  %v835_v19 = vadd.f32 %v803_v9, %v638_v8  ;;  %v1687_v43 = vadd.s32 536870912, %v10034_v51 }
 0x100   : > { %v1433_v39 = vsub.s32 32, %v1432_v16  ;;  %v1425_v57 = vand.u32 8388607, %v15546_v3  ;;  %v1435_v36 = vshll.u32 %v15714_v20, %v1432_v16  ;;  %v1525_v32 = vand.u32 2139095040, %v10038_v17 }
 0x101   : > { %v1438_v2 = vshll.u32 %v15715_v38, %v1432_v16  ;;  %v1431_v12 = vshrl.u32 %v1430_v62, 5  ;;  %v1441_v8 = vshll.u32 %v15716_v23, %v1432_v16  ;;  %v1444_v15 = vshll.u32 %v15717_v46, %v1432_v16 }
 0x102   : > { %v1436_v7 = vshrl.u32 %v15715_v38, %v1433_v39  ;;  %v1439_v47 = vshrl.u32 %v15716_v23, %v1433_v39  ;;  %v1442_v41 = vshrl.u32 %v15717_v46, %v1433_v39  ;;  %v1445_v59 = vshrl.u32 %v15718_v25, %v1433_v39 }
 0x103   : > { %v1386_v13 = vsub.s32 32, %v10057_v18  ;;  %v1390_v29 = vsub.s32 4294967266, %v10057_v18  ;;  %v1426_v9 = vor.u32 8388608, %v1425_v57  ;;  %v1526_v5 = vshrl.u32 %v1525_v32, 23 }
 0x104   : > { %v1437_v35 = vor.u32 %v1436_v7, %v1435_v36  ;;  %v1440_v10 = vor.u32 %v1439_v47, %v1438_v2  ;;  %v1443_v3 = vor.u32 %v1442_v41, %v1441_v8  ;;  %v1446_v6 = vor.u32 %v1445_v59, %v1444_v15 }
 0x105   : > { %vm1013_vm12 = vcmp.gt.s32.totalorder %v10054_v22, 0  ;;  %v8390_v62 = vmin.u32 %v1172_v26, %v10031_v49  ;;  %v1447_v31 = vshll.u32 %v15718_v25, %v1432_v16  ;;  %v1448_v27 = vshrl.u32 %v15719_v14, %v1433_v39 }
 0x106   : > { %v10079_v48 = vadd.f32 %v9724_v56, %v835_v19  ;;  %v10081_v37 = vshrl.u32 %v1687_v43, 30  ;;  %vm1450_vm13 = vcmp.lt.s32.totalorder %v1431_v12, 1  ;;  %vm1453_vm14 = vcmp.lt.s32.totalorder %v1431_v12, 4 }
 0x107   : > { %v1449_v36 = vor.u32 %v1448_v27, %v1447_v31  ;;  %vm1452_vm15 = vcmp.lt.s32.totalorder %v1431_v12, 3  ;;  %v1458_v32 = vsel %vm1450_vm13, %v1437_v35, %v1440_v10  ;;  %v1459_v7 = vsel %vm1453_vm14, %v1446_v6, 920167782 }
 0x108   : > { %15727 = vst [vmem:[#allocation25_spill] sm:$0xff] %v10079_v48  ;;  %15728 = vst [vmem:[#allocation26_spill] sm:$0xff] %v10081_v37  ;;  %vm1451_vm0 = vcmp.lt.s32.totalorder %v1431_v12, 2  ;;  %v1460_v26 = vsel %vm1452_vm15, %v1443_v3, %v1459_v7  ;;  %v1466_v16 = vshll.u32 %v1426_v9, 8  ;;  %v8405_v2 = vadd.s32 4294967169, %v1526_v5 }
 0x109   : > { %v1455_v47 = vsel %vm1453_vm14, %v1443_v3, 2102212464  ;;  %v1461_v56 = vsel %vm1451_vm0, %v1458_v32, %v1460_v26  ;;  %v1462_v19 = vsel %vm1450_vm13, %v1440_v10, %v1443_v3  ;;  %v1463_v43 = vsel %vm1453_vm14, %v1449_v36, 1326507024 }
 0x10a   : > { %v1174_v41 = vclz %v8390_v62  ;;  %v1689_v8 = vshll.u32 %v10081_v37, 30  ;;  %v1434_v31 = vshrl.u32 %v15714_v20, %v1433_v39  ;;  %v1464_v27 = vsel %vm1452_vm15, %v1446_v6, %v1463_v43 }
 0x10b   : > { %v1465_v15 = vsel %vm1451_vm0, %v1462_v19, %v1464_v27  ;;  %v10092_v59 = vmul.u32.u64.low %v1466_v16, %v1461_v56  ;;  %v10093_v57 = vmul.u32.u64.high %v1466_v16, %v1461_v56, %v10092_v59  ;;  %v1733_v5 = vand.u32 2139095040, %v10079_v48 }
 0x10c   : > { %v1288_v9 = vshll.u32 %v10050_v11, 23  ;;  %v1388_v32 = vshrl.u32 %v1370_v34, %v1386_v13  ;;  %v1454_v3 = vsel %vm1450_vm13, %v1434_v31, %v1437_v35  ;;  %v1456_v62 = vsel %vm1452_vm15, %v1440_v10, %v1455_v47 }
 0x10d   : > { %v10100_v36 = vadd.s32 127, %v1390_v29  ;;  %v10102_v39 = vmul.u32.u64.low %v1466_v16, %v1465_v15  ;;  %v10103_v7 = vmul.u32.u64.high %v1466_v16, %v1465_v15, %v10102_v39  ;;  %v1532_v6 = vadd.s32 1, %v8405_v2 }
 0x10e   : > { %v1387_v26 = vshll.u32 %v9948_v33, %v10057_v18  ;;  %v8391_v56 = vadd.s32 4294967294, %v1174_v41  ;;  %v10108_v19 = vsub.s32 %v10034_v51, %v1689_v8  ;;  %v15729_v11 = vand.u32 2147483647, %v10038_v17 }
 0x10f   : > { %v1457_v13 = vsel %vm1451_vm0, %v1454_v3, %v1456_v62  ;;  %v1476_v35 = vadd.s32 1, %v10093_v57  ;;  %vm1533_vm1 = vcmp.gt.s32.totalorder %v1532_v6, 0  ;;  %v1734_v29 = vshrl.u32 %v1733_v5, 23 }
 0x110   : > { %v1529_v34 = vand.u32 8388607, %v15729_v11  ;;  %v10114_v10 = vor.u32 4788187, %v1288_v9  ;;  %v10120_v33 = vsel %vm1013_vm12, %v10054_v22, 0  ;;  %v1534_v51 = vsel %vm1533_vm1, %v1532_v6, 0 }
 0x111   : > { %v10122_v18 = vor.u32 %v1388_v32, %v1387_v26  ;;  %v1392_v47 = vshll.u32 %v10100_v36, 23  ;;  %vm1475_vm2 = vc.u32 %v10103_v7, %v10092_v59  ;;  %v1536_v12 = vand.u32 31, %v1534_v51 }
 0x112   : > { %v1473_v43 = vmul.u32 %v1466_v16, %v1457_v13  ;;  %v1477_v41 = vsel %vm1475_vm2, %v1476_v35, %v10093_v57  ;;  %v1530_v8 = vor.u32 8388608, %v1529_v34  ;;  %vm8392_vm3 = vcmp.lt.s32.totalorder %v8391_v56, 0 }
 0x113   : > { %v1692_v27 = vsub.s32 0, %v10108_v19  ;;  %v1537_v22 = vsub.s32 32, %v1536_v12  ;;  %v8413_v15 = vadd.s32 4294967169, %v1734_v29  ;;  %v1535_v9 = vshrl.u32 %v1534_v51, 5 }
 0x114   : > { %v10130_v5 = vadd.s32 %v1477_v41, %v1473_v43  ;;  %v1539_v32 = vshll.u32 %v15714_v20, %v1536_v12  ;;  %v1542_v3 = vshll.u32 %v15715_v38, %v1536_v12  ;;  %v1545_v57 = vshll.u32 %v15716_v23, %v1536_v12 }
 0x115   : > { %v1540_v62 = vshrl.u32 %v15715_v38, %v1537_v22  ;;  %v1543_v16 = vshrl.u32 %v15716_v23, %v1537_v22  ;;  %v1548_v36 = vshll.u32 %v15717_v46, %v1536_v12  ;;  %v1546_v39 = vshrl.u32 %v15717_v46, %v1537_v22 }
 0x116   : > { %v1549_v6 = vshrl.u32 %v15718_v25, %v1537_v22  ;;  %v1551_v26 = vshll.u32 %v15718_v25, %v1536_v12  ;;  %v1552_v11 = vshrl.u32 %v15719_v14, %v1537_v22  ;;  %v10143_v34 = vsel %vm8392_vm3, 0, %v8391_v56 }
 0x117   : > { %v8410_v13 = vmin.u32 %v1692_v27, %v10108_v19  ;;  %v1541_v35 = vor.u32 %v1540_v62, %v1539_v32  ;;  %v1544_v29 = vor.u32 %v1543_v16, %v1542_v3  ;;  %v1547_v51 = vor.u32 %v1546_v39, %v1545_v57 }
 0x118   : > { %v1550_v43 = vor.u32 %v1549_v6, %v1548_v36  ;;  %v1553_v41 = vor.u32 %v1552_v11, %v1551_v26  ;;  %v1740_v2 = vadd.s32 1, %v8413_v15  ;;  %v1479_v31 = vadd.s32 536870912, %v10130_v5 }
 0x119   : > { %v1538_v37 = vshrl.u32 %v15714_v20, %v1537_v22  ;;  %vm1554_vm4 = vcmp.lt.s32.totalorder %v1535_v9, 1  ;;  %vm1557_vm5 = vcmp.lt.s32.totalorder %v1535_v9, 4  ;;  %vm1555_vm6 = vcmp.lt.s32.totalorder %v1535_v9, 2 }
 0x11a   : > { %v1559_v12 = vsel %vm1557_vm5, %v1547_v51, 2102212464  ;;  %v1562_v1 = vsel %vm1554_vm4, %v1541_v35, %v1544_v29  ;;  %v1570_v42 = vshll.u32 %v1530_v8, 8  ;;  %vm1556_vm7 = vcmp.lt.s32.totalorder %v1535_v9, 3 }
 0x11b   : > { %v1558_v56 = vsel %vm1554_vm4, %v1538_v37, %v1541_v35  ;;  %v1563_v40 = vsel %vm1557_vm5, %v1550_v43, 920167782  ;;  %v1566_v27 = vsel %vm1554_vm4, %v1544_v29, %v1547_v51  ;;  %v1560_v32 = vsel %vm1556_vm7, %v1544_v29, %v1559_v12  ;;  %v514_v37 = vpop.permute.xlu0 %513 }
 0x11c   : > { %v1564_v3 = vsel %vm1556_vm7, %v1547_v51, %v1563_v40  ;;  %v1567_v62 = vsel %vm1557_vm5, %v1553_v41, 1326507024  ;;  %vm1741_vm8 = vcmp.gt.s32.totalorder %v1740_v2, 0  ;;  %v1694_v16 = vclz %v8410_v13 }
 0x11d   : > { %v10148_v15 = vshrl.u32 %v1479_v31, 30  ;;  %v1565_v57 = vsel %vm1555_vm6, %v1562_v1, %v1564_v3  ;;  %v1568_v22 = vsel %vm1556_vm7, %v1550_v43, %v1567_v62  ;;  %v1742_v8 = vsel %vm1741_vm8, %v1740_v2, 0 }
 0x11e   : > { %v1569_v36 = vsel %vm1555_vm6, %v1566_v27, %v1568_v22  ;;  %v10152_v39 = vmul.u32.u64.low %v1570_v42, %v1565_v57  ;;  %v10153_v6 = vmul.u32.u64.high %v1570_v42, %v1565_v57, %v10152_v39  ;;  %v1561_v40 = vsel %vm1555_vm6, %v1558_v56, %v1560_v32  ;;  %v701_v32 = vpop.permute.xlu1 %700 }
 0x11f   : > { %15730 = vst [vmem:[#allocation27_spill] sm:$0xff] %v10148_v15  ;;  %v10158_v11 = vmul.u32.u64.low %v1570_v42, %v1569_v36  ;;  %v10159_v35 = vmul.u32.u64.high %v1570_v42, %v1569_v36, %v10158_v11  ;;  %v10161_v31 = vor.u32 4788187, %v1392_v47  ;;  %v1162_v13 = vadd.s32 %v9937_v61, %v9942_v54 }
 0x120   : > { %v1744_v29 = vand.u32 31, %v1742_v8  ;;  %v1182_v51 = vsub.s32 4294967266, %v10143_v34  ;;  %v8411_v43 = vadd.s32 4294967294, %v1694_v16  ;;  %v15731_v2 = vand.u32 2147483647, %v10079_v48 }
 0x121   : > { %v639_v9 = vmul.f32 %v9709_v50, %v514_v37  ;;  %v1481_v12 = vshll.u32 %v10148_v15, 30  ;;  %v1577_v56 = vmul.u32 %v1570_v42, %v1561_v40  ;;  %v1580_v47 = vadd.s32 1, %v10153_v6  ;;  %v519_v15 = vpop.permute.xlu0 %518 }
 0x122   : > { %v1737_v41 = vand.u32 8388607, %v15731_v2  ;;  %v1745_v27 = vsub.s32 32, %v1744_v29  ;;  %vm1579_vm9 = vc.u32 %v10159_v35, %v10152_v39  ;;  %v10174_v61 = vshrl.u32 %v1742_v8, 5 }
 0x123   : > { %v1747_v54 = vshll.u32 %v15714_v20, %v1744_v29  ;;  %v1750_v3 = vshll.u32 %v15715_v38, %v1744_v29  ;;  %v1581_v62 = vsel %vm1579_vm9, %v1580_v47, %v10153_v6  ;;  %v1753_v42 = vshll.u32 %v15716_v23, %v1744_v29 }
 0x124   : > { %v1748_v50 = vshrl.u32 %v15715_v38, %v1745_v27  ;;  %v1751_v16 = vshrl.u32 %v15716_v23, %v1745_v27  ;;  %v10182_v57 = vadd.s32 %v1581_v62, %v1577_v56  ;;  %v1754_v22 = vshrl.u32 %v15717_v46, %v1745_v27 }
 0x125   : > { %v1756_v36 = vshll.u32 %v15717_v46, %v1744_v29  ;;  %v804_v8 = vmul.f32 %v9718_v53, %v701_v32  ;;  %v1183_v37 = vadd.s32 127, %v1182_v51  ;;  %vm8412_vm10 = vcmp.lt.s32.totalorder %v8411_v43, 0 }
 0x126   : > { %v1738_v40 = vor.u32 8388608, %v1737_v41  ;;  %v1757_v11 = vshrl.u32 %v15718_v25, %v1745_v27  ;;  %v10189_v6 = vsub.s32 %v10130_v5, %v1481_v12  ;;  %v1749_v2 = vor.u32 %v1748_v50, %v1747_v54 }
 0x127   : > { %v1752_v47 = vor.u32 %v1751_v16, %v1750_v3  ;;  %vm1762_vm11 = vcmp.lt.s32.totalorder %v10174_v61, 1  ;;  %v1755_v56 = vor.u32 %v1754_v22, %v1753_v42  ;;  %v1759_v1 = vshll.u32 %v15718_v25, %v1744_v29  ;;  %v10209_v3 = vld [vmem:[%s15513_s1] ss:$0 sm:$0xff] }
 0x128   : > { %v1758_v62 = vor.u32 %v1757_v11, %v1756_v36  ;;  %v1760_v26 = vshrl.u32 %v15719_v14, %v1745_v27  ;;  %v1178_v53 = vsub.s32 32, %v10143_v34  ;;  %v1583_v51 = vadd.s32 536870912, %v10182_v57 }
 0x129   : > { %vm1765_vm12 = vcmp.lt.s32.totalorder %v10174_v61, 4  ;;  %v836_v41 = vadd.f32 %v804_v8, %v639_v9  ;;  %v1184_v5 = vshll.u32 %v1183_v37, 23  ;;  %v10198_v12 = vsel %vm8412_vm10, 0, %v8411_v43 }
 0x12a   : > { %v1761_v32 = vor.u32 %v1760_v26, %v1759_v1  ;;  %vm1764_vm13 = vcmp.lt.s32.totalorder %v10174_v61, 3  ;;  %vm1763_vm14 = vcmp.lt.s32.totalorder %v10174_v61, 2  ;;  %v1770_v29 = vsel %vm1762_vm11, %v1749_v2, %v1752_v47 }
 0x12b   : > { %v10204_v54 = vshll.u32 %v1738_v40, 8  ;;  %v640_v9 = vmul.f32 %v10209_v3, %v519_v15  ;;  %v1484_v43 = vsub.s32 0, %v10189_v6  ;;  %v1771_v26 = vsel %vm1765_vm12, %v1758_v62, 920167782  ;;  %v10227_v15 = vld [vmem:[%s15514_s2] ss:$0 sm:$0xff] }
 0x12c   : > { %v1774_v1 = vsel %vm1762_vm11, %v1752_v47, %v1755_v56  ;;  %v1775_v50 = vsel %vm1765_vm12, %v1761_v32, 1326507024  ;;  %v1394_v16 = vand.u32 2147483647, %v10161_v31  ;;  %v10220_v42 = vshrl.u32 %v1583_v51, 30 }
 0x12d   : > { %v1772_v22 = vsel %vm1764_vm13, %v1755_v56, %v1771_v26  ;;  %v10230_v36 = vadd.f32 %v10227_v15, %v836_v41  ;;  %v1179_v8 = vshll.u32 %v10031_v49, %v10143_v34  ;;  %v1180_v37 = vshrl.u32 %v1162_v13, %v1178_v53 }
 0x12e   : > { %15732 = vst [vmem:[#allocation28_spill] sm:$0xff] %v10220_v42  ;;  %v1773_v31 = vsel %vm1763_vm14, %v1770_v29, %v1772_v22  ;;  %v1776_v40 = vsel %vm1764_vm13, %v1758_v62, %v1775_v50  ;;  %v1185_v11 = vor.u32 4788187, %v1184_v5  ;;  %v1702_v51 = vsub.s32 4294967266, %v10198_v12 }
 0x12f   : > { %15733 = vst [vmem:[#allocation29_spill] sm:$0xff] %v10230_v36  ;;  %v1777_v32 = vsel %vm1763_vm14, %v1774_v1, %v1776_v40  ;;  %v837_v26 = vadd.f32 %v10004_v30, %v640_v9  ;;  %v8402_v41 = vmin.u32 %v1484_v43, %v10189_v6  ;;  %v1746_v52 = vshrl.u32 %v15714_v20, %v1745_v27 }
 0x130   : > { %v10245_v49 = vmul.u32.u64.low %v10204_v54, %v1773_v31  ;;  %v10246_v34 = vmul.u32.u64.high %v10204_v54, %v1773_v31, %v10245_v49  ;;  %vm1212_vm15 = vcmp.lt.s32.totalorder %v9728_v58, 0  ;;  %v1585_v13 = vshll.u32 %v10220_v42, 30 }
 0x131   : > { %v10252_v62 = vmul.u32.u64.low %v10204_v54, %v1777_v32  ;;  %v10253_v53 = vmul.u32.u64.high %v10204_v54, %v1777_v32, %v10252_v62  ;;  %v1837_v5 = vand.u32 2139095040, %v10230_v36  ;;  %v15734_v30 = vand.u32 2147483647, %v10114_v10 }
 0x132   : > { %v15735_v29 = vcvt.s32.f32 %v10048_v63  ;;  %v10261_v9 = vsub.s32 32, %v10046_v60  ;;  %v1181_v43 = vor.u32 %v1180_v37, %v1179_v8  ;;  %v1767_v1 = vsel %vm1765_vm12, %v1755_v56, 2102212464 }
 0x133   : > { %vm1316_vm0 = vcmp.lt.s32.totalorder %v9743_v21, 0  ;;  %v15737_v50 = vcvt.s32.f32 %v10122_v18  ;;  %v10269_v31 = vand.u32 31, %v10120_v33  ;;  %v1838_v40 = vshrl.u32 %v1837_v5, 23 }
 0x134   : > { %v1293_v27 = vmul.f32 %v15735_v29, %v15734_v30  ;;  %15736 = vst [vmem:[#allocation30_spill] sm:$0xff] %v10261_v9  ;;  %v10272_v10 = vadd.f32 %v10227_v15, %v837_v26  ;;  %v1186_v63 = vand.u32 2147483647, %v1185_v11  ;;  %v1698_v32 = vsub.s32 32, %v10198_v12  ;;  %v10282_v30 = vpop.permute.xlu0 %533 }
 0x135   : > { %v1397_v22 = vmul.f32 %v15737_v50, %v1394_v16  ;;  %15738 = vst [vmem:[#allocation31_spill] sm:$0xff] %v10269_v31  ;;  %v1703_v62 = vadd.s32 127, %v1702_v51  ;;  %v1486_v8 = vclz %v8402_v41  ;;  %v10276_v37 = vsub.s32 %v10182_v57, %v1585_v13 }
 0x136   : > { %15739 = vst [vmem:[#allocation32_spill] sm:$0xff] %v10272_v10  ;;  %v1766_v56 = vsel %vm1762_vm11, %v1746_v52, %v1749_v2  ;;  %v1768_v18 = vsel %vm1764_vm13, %v1752_v47, %v1767_v1  ;;  %v8417_v16 = vadd.s32 4294967169, %v1838_v40  ;;  %v1294_v5 = vxor.u32 2147483648, %v1293_v27 }
 0x137   : > { %v1188_v26 = vcvt.s32.f32 %v1181_v43  ;;  %v1682_v11 = vadd.s32 %v9981_v28, %v9995_v44  ;;  %v15564_v51 = vand.u32 2147483647, %v10230_v36  ;;  %v1398_v41 = vxor.u32 2147483648, %v1397_v22 }
 0x138   : > { %v10288_v57 = vshrl.u32 %v10120_v33, 5  ;;  %v1844_v13 = vadd.s32 1, %v8417_v16  ;;  %v1941_v52 = vand.u32 2139095040, %v10272_v10  ;;  %v1769_v29 = vsel %vm1763_vm14, %v1766_v56, %v1768_v18 }
 0x139   : > { %v10291_v2 = vmul.f32 %v1188_v26, %v1186_v63  ;;  %v1700_v47 = vshrl.u32 %v1682_v11, %v1698_v32  ;;  %v1788_v43 = vadd.s32 1, %v10246_v34  ;;  %v1704_v1 = vshll.u32 %v1703_v62, 23 }
 0x13a   : > { %15740 = vst [vmem:[#allocation33_spill] sm:$0xff] %v10288_v57  ;;  %v8403_v50 = vadd.s32 4294967294, %v1486_v8  ;;  %v1588_v28 = vsub.s32 0, %v10276_v37  ;;  %vm1787_vm1 = vc.u32 %v10253_v53, %v10245_v49  ;;  %v10301_v44 = vsel %vm1212_vm15, %v1294_v5, %v1293_v27  ;;  %v539_v8 = vpop.permute.xlu0 %538 }
 0x13b   : > { %15741 = vst [vmem:[#allocation34_spill] sm:$0xff] %v10301_v44  ;;  %v10304_v33 = vsub.s32 32, %v10269_v31  ;;  %v1841_v61 = vand.u32 8388607, %v15564_v51  ;;  %vm1845_vm2 = vcmp.gt.s32.totalorder %v1844_v13, 0  ;;  %v1699_v40 = vshll.u32 %v10108_v19, %v10198_v12 }
 0x13c   : > { %v1785_v63 = vmul.u32 %v10204_v54, %v1769_v29  ;;  %v1846_v32 = vsel %vm1845_vm2, %v1844_v13, 0  ;;  %v1942_v62 = vshrl.u32 %v1941_v52, 23  ;;  %v10313_v56 = vsel %vm1316_vm0, %v1398_v41, %v1397_v22 }
 0x13d   : > { %15742 = vst [vmem:[#allocation35_spill] sm:$0xff] %v10304_v33  ;;  %15743 = vst [vmem:[#allocation36_spill] sm:$0xff] %v10313_v56  ;;  %v1789_v18 = vsel %vm1787_vm1, %v1788_v43, %v10246_v34  ;;  %v1848_v16 = vand.u32 31, %v1846_v32  ;;  %v10317_v5 = vor.u32 %v1700_v47, %v1699_v40  ;;  %v10319_v26 = vor.u32 4788187, %v1704_v1 }
 0x13e   : > { %vm8404_vm3 = vcmp.lt.s32.totalorder %v8403_v50, 0  ;;  %v8406_v19 = vmin.u32 %v1588_v28, %v10276_v37  ;;  %v1842_v12 = vor.u32 8388608, %v1841_v61  ;;  %v644_v13 = vmul.f32 %v10209_v3, %v539_v8 }
 0x13f   : > { %v1849_v54 = vsub.s32 32, %v1848_v16  ;;  %v10324_v22 = vadd.s32 %v1789_v18, %v1785_v63  ;;  %v1851_v41 = vshll.u32 %v15714_v20, %v1848_v16  ;;  %v1854_v34 = vshll.u32 %v15715_v38, %v1848_v16 }
 0x140   : > { %v8421_v52 = vadd.s32 4294967169, %v1942_v62  ;;  %v1857_v43 = vshll.u32 %v15716_v23, %v1848_v16  ;;  %v1847_v28 = vshrl.u32 %v1846_v32, 5  ;;  %v1860_v61 = vshll.u32 %v15717_v46, %v1848_v16 }
 0x141   : > { %v1852_v47 = vshrl.u32 %v15715_v38, %v1849_v54  ;;  %v1855_v29 = vshrl.u32 %v15716_v23, %v1849_v54  ;;  %v1858_v1 = vshrl.u32 %v15717_v46, %v1849_v54  ;;  %v1861_v40 = vshrl.u32 %v15718_v25, %v1849_v54 }
 0x142   : > { %v1863_v63 = vshll.u32 %v15718_v25, %v1848_v16  ;;  %v1864_v62 = vshrl.u32 %v15719_v14, %v1849_v54  ;;  %v10337_v27 = vsel %vm8404_vm3, 0, %v8403_v50  ;;  %v1590_v11 = vclz %v8406_v19 }
 0x143   : > { %v1853_v8 = vor.u32 %v1852_v47, %v1851_v41  ;;  %v1856_v18 = vor.u32 %v1855_v29, %v1854_v34  ;;  %v1859_v51 = vor.u32 %v1858_v1, %v1857_v43  ;;  %v1791_v42 = vadd.s32 536870912, %v10324_v22 }
 0x144   : > { %v1862_v56 = vor.u32 %v1861_v40, %v1860_v61  ;;  %v1865_v21 = vor.u32 %v1864_v62, %v1863_v63  ;;  %v1882_v32 = vshll.u32 %v1842_v12, 8  ;;  %v15744_v44 = vand.u32 2147483647, %v10272_v10 }
 0x145   : > { %v1948_v57 = vadd.s32 1, %v8421_v52  ;;  %v1850_v16 = vshrl.u32 %v15714_v20, %v1849_v54  ;;  %vm1866_vm4 = vcmp.lt.s32.totalorder %v1847_v28, 1  ;;  %vm1869_vm5 = vcmp.lt.s32.totalorder %v1847_v28, 4 }
 0x146   : > { %v1945_v58 = vand.u32 8388607, %v15744_v44  ;;  %v841_v41 = vadd.f32 %v10011_v55, %v644_v13  ;;  %vm1868_vm6 = vcmp.lt.s32.totalorder %v1847_v28, 3  ;;  %v1871_v34 = vsel %vm1869_vm5, %v1859_v51, 2102212464 }
 0x147   : > { %v1874_v50 = vsel %vm1866_vm4, %v1853_v8, %v1856_v18  ;;  %v1875_v47 = vsel %vm1869_vm5, %v1862_v56, 920167782  ;;  %v10344_v19 = vshrl.u32 %v1791_v42, 30  ;;  %vm1867_vm7 = vcmp.lt.s32.totalorder %v1847_v28, 2 }
 0x148   : > { %v1876_v29 = vsel %vm1868_vm6, %v1859_v51, %v1875_v47  ;;  %v1878_v43 = vsel %vm1866_vm4, %v1856_v18, %v1859_v51  ;;  %v1870_v12 = vsel %vm1866_vm4, %v1850_v16, %v1853_v8  ;;  %v1879_v44 = vsel %vm1869_vm5, %v1865_v21, 1326507024 }
 0x149   : > { %15745 = vst [vmem:[#allocation37_spill] sm:$0xff] %v10344_v19  ;;  %v1877_v1 = vsel %vm1867_vm7, %v1874_v50, %v1876_v29  ;;  %vm1949_vm8 = vcmp.gt.s32.totalorder %v1948_v57, 0  ;;  %v1872_v52 = vsel %vm1868_vm6, %v1856_v18, %v1871_v34  ;;  %v1880_v54 = vsel %vm1868_vm6, %v1862_v56, %v1879_v44 }
 0x14a   : > { %v10347_v61 = vmul.u32.u64.low %v1882_v32, %v1877_v1  ;;  %v10348_v40 = vmul.u32.u64.high %v1882_v32, %v1877_v1, %v10347_v61  ;;  %v1494_v55 = vsub.s32 4294967266, %v10337_v27  ;;  %v1881_v13 = vsel %vm1867_vm7, %v1878_v43, %v1880_v54 }
 0x14b   : > { %v1946_v42 = vor.u32 8388608, %v1945_v58  ;;  %v1950_v63 = vsel %vm1949_vm8, %v1948_v57, 0  ;;  %v10355_v51 = vadd.s32 %v10092_v59, %v10103_v7  ;;  %v10357_v8 = vadd.s32 4294967294, %v1590_v11  ;;  %v524_v11 = vpop.permute.xlu1 %523 }
 0x14c   : > { %v1793_v21 = vshll.u32 %v10344_v19, 30  ;;  %v10361_v56 = vadd.f32 %v10227_v15, %v841_v41  ;;  %v1873_v18 = vsel %vm1867_vm7, %v1870_v12, %v1872_v52  ;;  %v1952_v34 = vand.u32 31, %v1950_v63 }
 0x14d   : > { %v10364_v62 = vmul.u32.u64.low %v1882_v32, %v1881_v13  ;;  %v10365_v16 = vmul.u32.u64.high %v1882_v32, %v1881_v13, %v10364_v62  ;;  %v1706_v58 = vand.u32 2147483647, %v10319_v26  ;;  %v1708_v57 = vcvt.s32.f32 %v10317_v5 }
 0x14e   : > { %15746 = vst [vmem:[#allocation38_spill] sm:$0xff] %v10361_v56  ;;  %v1892_v7 = vadd.s32 1, %v10348_v40  ;;  %v10371_v50 = vadd.s32 127, %v1494_v55  ;;  %v1953_v47 = vsub.s32 32, %v1952_v34  ;;  %v10373_v41 = vshll.u32 %v1946_v42, 8 }
 0x14f   : > { %v10376_v28 = vmul.f32 %v10209_v3, %v524_v11  ;;  %vm8408_vm9 = vcmp.lt.s32.totalorder %v10357_v8, 0  ;;  %v10380_v29 = vsub.s32 %v10324_v22, %v1793_v21  ;;  %v1889_v26 = vmul.u32 %v1882_v32, %v1873_v18 }
 0x150   : > { %v1951_v5 = vshrl.u32 %v1950_v63, 5  ;;  %v2357_v43 = vand.u32 2139095040, %v10361_v56  ;;  %vm1891_vm10 = vc.u32 %v10365_v16, %v10347_v61  ;;  %v1955_v12 = vshll.u32 %v15714_v20, %v1952_v34 }
 0x151   : > { %v1956_v1 = vshrl.u32 %v15715_v38, %v1953_v47  ;;  %v1958_v44 = vshll.u32 %v15715_v38, %v1952_v34  ;;  %v1893_v52 = vsel %vm1891_vm10, %v1892_v7, %v10348_v40  ;;  %v1959_v54 = vshrl.u32 %v15716_v23, %v1953_v47 }
 0x152   : > { %v1961_v22 = vshll.u32 %v15716_v23, %v1952_v34  ;;  %v1964_v32 = vshll.u32 %v15717_v46, %v1952_v34  ;;  %v10392_v55 = vadd.s32 %v1893_v52, %v1889_v26  ;;  %v1962_v42 = vshrl.u32 %v15717_v46, %v1953_v47 }
 0x153   : > { %v1957_v13 = vor.u32 %v1956_v1, %v1955_v12  ;;  %v1965_v63 = vshrl.u32 %v15718_v25, %v1953_v47  ;;  %v1796_v21 = vsub.s32 0, %v10380_v29  ;;  %v1960_v18 = vor.u32 %v1959_v54, %v1958_v44  ;;  %v709_v1 = vpop.permute.xlu1 %708 }
 0x154   : > { %v1967_v62 = vshll.u32 %v15718_v25, %v1952_v34  ;;  %v1968_v40 = vshrl.u32 %v15719_v14, %v1953_v47  ;;  %v1963_v7 = vor.u32 %v1962_v42, %v1961_v22  ;;  %vm1970_vm11 = vcmp.lt.s32.totalorder %v1951_v5, 1  ;;  %v10410_v42 = vld [vmem:[%s15513_s1 + $0x1] ss:$0 sm:$0xff] }
 0x155   : > { %v1966_v11 = vor.u32 %v1965_v63, %v1964_v32  ;;  %v2358_v59 = vshrl.u32 %v2357_v43, 23  ;;  %v1895_v19 = vadd.s32 536870912, %v10392_v55  ;;  %v1954_v26 = vshrl.u32 %v15714_v20, %v1953_v47 }
 0x156   : > { %v1969_v12 = vor.u32 %v1968_v40, %v1967_v62  ;;  %vm1973_vm12 = vcmp.lt.s32.totalorder %v1951_v5, 4  ;;  %vm1972_vm13 = vcmp.lt.s32.totalorder %v1951_v5, 3  ;;  %v1978_v31 = vsel %vm1970_vm11, %v1957_v13, %v1960_v18 }
 0x157   : > { %v1975_v52 = vsel %vm1973_vm12, %v1963_v7, 2102212464  ;;  %v1979_v44 = vsel %vm1973_vm12, %v1966_v11, 920167782  ;;  %vm1108_vm14 = vcmp.lt.s32.totalorder %v9867_v0, 0  ;;  %v8414_v34 = vmin.u32 %v1796_v21, %v10380_v29 }
 0x158   : > { %vm1971_vm1 = vcmp.lt.s32.totalorder %v1951_v5, 2  ;;  %v1980_v54 = vsel %vm1972_vm13, %v1963_v7, %v1979_v44  ;;  %v1982_v43 = vsel %vm1970_vm11, %v1960_v18, %v1963_v7  ;;  %v1974_v22 = vsel %vm1970_vm11, %v1954_v26, %v1957_v13 }
 0x159   : > { %v1981_v47 = vsel %vm1971_vm1, %v1978_v31, %v1980_v54  ;;  %v1983_v32 = vsel %vm1973_vm12, %v1969_v12, 1326507024  ;;  %v806_v63 = vmul.f32 %v10410_v42, %v709_v1  ;;  %v1976_v62 = vsel %vm1972_vm13, %v1960_v18, %v1975_v52 }
 0x15a   : > { %v1984_v40 = vsel %vm1972_vm13, %v1966_v11, %v1983_v32  ;;  %v10414_v21 = vmul.u32.u64.low %v10373_v41, %v1981_v47  ;;  %v10415_v33 = vmul.u32.u64.high %v10373_v41, %v1981_v47, %v10414_v21  ;;  %v10421_v13 = vsel %vm8408_vm9, 0, %v10357_v8 }
 0x15b   : > { %v10423_v31 = vshrl.u32 %v1895_v19, 30  ;;  %v1985_v7 = vsel %vm1971_vm1, %v1982_v43, %v1984_v40  ;;  %v8437_v26 = vadd.s32 4294967169, %v2358_v59  ;;  %v10426_v12 = vmul.f32 %v1708_v57, %v1706_v58 }
 0x15c   : > { %v1798_v1 = vclz %v8414_v34  ;;  %v10429_v18 = vmul.u32.u64.low %v10373_v41, %v1985_v7  ;;  %v10430_v11 = vmul.u32.u64.high %v10373_v41, %v1985_v7, %v10429_v18  ;;  %v1491_v52 = vshll.u32 %v10189_v6, %v10337_v27 }
 0x15d   : > { %15747 = vst [vmem:[#allocation39_spill] sm:$0xff] %v10423_v31  ;;  %v15748_v44 = vsub.s32 32, %v10337_v27  ;;  %v1977_v19 = vsel %vm1971_vm1, %v1974_v22, %v1976_v62  ;;  %v2364_v54 = vadd.s32 1, %v8437_v26  ;;  %v1496_v43 = vshll.u32 %v10371_v50, 23 }
 0x15e   : > { %v1594_v58 = vsub.s32 32, %v10421_v13  ;;  %v1996_v57 = vadd.s32 1, %v10415_v33  ;;  %v838_v59 = vadd.f32 %v806_v63, %v10376_v28  ;;  %v1598_v34 = vsub.s32 4294967266, %v10421_v13 }
 0x15f   : > { %v1492_v8 = vshrl.u32 %v10355_v51, %v15748_v44  ;;  %v1897_v47 = vshll.u32 %v10423_v31, 30  ;;  %v15577_v6 = vand.u32 2147483647, %v10361_v56  ;;  %vm2365_vm2 = vcmp.gt.s32.totalorder %v2364_v54, 0 }
 0x160   : > { %v8415_v27 = vadd.s32 4294967294, %v1798_v1  ;;  %v1993_v51 = vmul.u32 %v10373_v41, %v1977_v19  ;;  %vm1995_vm3 = vc.u32 %v10430_v11, %v10414_v21  ;;  %v2366_v50 = vsel %vm2365_vm2, %v2364_v54, 0 }
 0x161   : > { %v15749_v5 = vxor.u32 2147483648, %v10291_v2  ;;  %v1578_v22 = vadd.s32 %v10152_v39, %v10159_v35  ;;  %v1997_v32 = vsel %vm1995_vm3, %v1996_v57, %v10415_v33  ;;  %v2368_v63 = vand.u32 31, %v2366_v50 }
 0x162   : > { %v10459_v41 = vor.u32 %v1492_v8, %v1491_v52  ;;  %v10461_v40 = vor.u32 4788187, %v1496_v43  ;;  %v10463_v7 = vadd.s32 %v1997_v32, %v1993_v51  ;;  %v1595_v26 = vshll.u32 %v10276_v37, %v10421_v13 }
 0x163   : > { %v10453_v28 = vsel %vm1108_vm14, %v15749_v5, %v10291_v2  ;;  %v1596_v1 = vshrl.u32 %v1578_v22, %v1594_v58  ;;  %v10468_v2 = vsub.s32 %v10392_v55, %v1897_v47  ;;  %v2369_v18 = vsub.s32 32, %v2368_v63 }
 0x164   : > { %15750 = vst [vmem:[#allocation40_spill] sm:$0xff] %v10453_v28  ;;  %v1599_v39 = vadd.s32 127, %v1598_v34  ;;  %vm8416_vm4 = vcmp.lt.s32.totalorder %v8415_v27, 0  ;;  %v2361_v35 = vand.u32 8388607, %v15577_v6  ;;  %v10473_v33 = vadd.f32 %v10227_v15, %v838_v59  ;;  %v10487_v34 = vpop.permute.xlu0 %553 }
 0x165   : > { %v2371_v52 = vshll.u32 %v15714_v20, %v2368_v63  ;;  %v2372_v44 = vshrl.u32 %v15715_v38, %v2369_v18  ;;  %v2374_v8 = vshll.u32 %v15715_v38, %v2368_v63  ;;  %v2375_v37 = vshrl.u32 %v15716_v23, %v2369_v18 }
 0x166   : > { %15751 = vst [vmem:[#allocation41_spill] sm:$0xff] %v10473_v33  ;;  %v1999_v55 = vadd.s32 536870912, %v10463_v7  ;;  %v2378_v13 = vshrl.u32 %v15717_v46, %v2369_v18  ;;  %v2380_v19 = vshll.u32 %v15717_v46, %v2368_v63  ;;  %v2381_v54 = vshrl.u32 %v15718_v25, %v2369_v18 }
 0x167   : > { %v10483_v43 = vsel %vm8416_vm4, 0, %v8415_v27  ;;  %v1900_v58 = vsub.s32 0, %v10468_v2  ;;  %v2367_v57 = vshrl.u32 %v2366_v50, 5  ;;  %v2377_v59 = vshll.u32 %v15716_v23, %v2368_v63 }
 0x168   : > { %v2373_v47 = vor.u32 %v2372_v44, %v2371_v52  ;;  %v2376_v51 = vor.u32 %v2375_v37, %v2374_v8  ;;  %v2382_v5 = vor.u32 %v2381_v54, %v2380_v19  ;;  %v2045_v22 = vand.u32 2139095040, %v10473_v33 }
 0x169   : > { %v2362_v32 = vor.u32 8388608, %v2361_v35  ;;  %v2379_v6 = vor.u32 %v2378_v13, %v2377_v59  ;;  %v2383_v62 = vshll.u32 %v15718_v25, %v2368_v63  ;;  %v2384_v31 = vshrl.u32 %v15719_v14, %v2369_v18 }
 0x16a   : > { %v10492_v27 = vor.u32 %v1596_v1, %v1595_v26  ;;  %v1600_v28 = vshll.u32 %v1599_v39, 23  ;;  %v1786_v50 = vadd.s32 %v10245_v49, %v10253_v53  ;;  %v10496_v0 = vshrl.u32 %v1999_v55, 30  ;;  %v559_v39 = vpop.permute.xlu0 %558 }
 0x16b   : > { %v1802_v52 = vsub.s32 32, %v10483_v43  ;;  %v2385_v44 = vor.u32 %v2384_v31, %v2383_v62  ;;  %vm2386_vm5 = vcmp.lt.s32.totalorder %v2367_v57, 1  ;;  %vm2389_vm6 = vcmp.lt.s32.totalorder %v2367_v57, 4 }
 0x16c   : > { %15752 = vst [vmem:[#allocation42_spill] sm:$0xff] %v10496_v0  ;;  %vm2388_vm7 = vcmp.lt.s32.totalorder %v2367_v57, 3  ;;  %v2394_v35 = vsel %vm2386_vm5, %v2373_v47, %v2376_v51  ;;  %v2395_v8 = vsel %vm2389_vm6, %v2382_v5, 920167782  ;;  %v2046_v63 = vshrl.u32 %v2045_v22, 23 }
 0x16d   : > { %v8418_v37 = vmin.u32 %v1900_v58, %v10468_v2  ;;  %vm2387_vm8 = vcmp.lt.s32.totalorder %v2367_v57, 2  ;;  %v2396_v26 = vsel %vm2388_vm7, %v2379_v6, %v2395_v8  ;;  %v2402_v1 = vshll.u32 %v2362_v32, 8 }
 0x16e   : > { %v2001_v49 = vshll.u32 %v10496_v0, 30  ;;  %v2391_v53 = vsel %vm2389_vm6, %v2379_v6, 2102212464  ;;  %v2397_v55 = vsel %vm2387_vm8, %v2394_v35, %v2396_v26  ;;  %v2398_v31 = vsel %vm2386_vm5, %v2376_v51, %v2379_v6 }
 0x16f   : > { %v2370_v62 = vshrl.u32 %v15714_v20, %v2369_v18  ;;  %v2399_v13 = vsel %vm2389_vm6, %v2385_v44, 1326507024  ;;  %v10506_v19 = vmul.u32.u64.low %v2402_v1, %v2397_v55  ;;  %v10507_v54 = vmul.u32.u64.high %v2402_v1, %v2397_v55, %v10506_v19 }
 0x170   : > { %v10510_v58 = vor.u32 4788187, %v1600_v28  ;;  %v2400_v59 = vsel %vm2388_vm7, %v2382_v5, %v2399_v13  ;;  %v8425_v22 = vadd.s32 4294967169, %v2046_v63  ;;  %v648_v32 = vmul.f32 %v10209_v3, %v559_v39 }
 0x171   : > { %v1806_v8 = vsub.s32 4294967266, %v10483_v43  ;;  %v2390_v35 = vsel %vm2386_vm5, %v2370_v62, %v2373_v47  ;;  %v2392_v6 = vsel %vm2388_vm7, %v2376_v51, %v2391_v53  ;;  %v2401_v18 = vsel %vm2387_vm8, %v2398_v31, %v2400_v59 }
 0x172   : > { %v10519_v44 = vsub.s32 %v10463_v7, %v2001_v49  ;;  %v10521_v26 = vmul.u32.u64.low %v2402_v1, %v2401_v18  ;;  %v10522_v55 = vmul.u32.u64.high %v2402_v1, %v2401_v18, %v10521_v26  ;;  %v2052_v28 = vadd.s32 1, %v8425_v22 }
 0x173   : > { %v1804_v0 = vshrl.u32 %v1786_v50, %v1802_v52  ;;  %v1902_v5 = vclz %v8418_v37  ;;  %v10526_v63 = vmul.f32 %v10209_v3, %v10282_v30  ;;  %v15584_v39 = vand.u32 2147483647, %v10473_v33  ;;  %v529_v33 = vpop.permute.xlu1 %528 }
 0x174   : > { %v2393_v47 = vsel %vm2387_vm8, %v2390_v35, %v2392_v6  ;;  %v2412_v51 = vadd.s32 1, %v10507_v54  ;;  %vm2053_vm9 = vcmp.gt.s32.totalorder %v2052_v28, 0  ;;  %v845_v7 = vadd.f32 %v10017_v45, %v648_v32 }
 0x175   : > { %v1803_v50 = vshll.u32 %v10380_v29, %v10483_v43  ;;  %v2054_v52 = vsel %vm2053_vm9, %v2052_v28, 0  ;;  %v1807_v31 = vadd.s32 127, %v1806_v8  ;;  %v2004_v57 = vsub.s32 0, %v10519_v44 }
 0x176   : > { %v2409_v13 = vmul.u32 %v2402_v1, %v2393_v47  ;;  %vm2411_vm10 = vc.u32 %v10522_v55, %v10506_v19  ;;  %v2056_v45 = vand.u32 31, %v2054_v52  ;;  %v8419_v59 = vadd.s32 4294967294, %v1902_v5 }
 0x177   : > { %v10539_v62 = vor.u32 %v1804_v0, %v1803_v50  ;;  %v2413_v22 = vsel %vm2411_vm10, %v2412_v51, %v10507_v54  ;;  %v2049_v29 = vand.u32 8388607, %v15584_v39  ;;  %v10547_v43 = vadd.f32 %v10227_v15, %v845_v7 }
 0x178   : > { %v2414_v32 = vadd.s32 %v2413_v22, %v2409_v13  ;;  %v2057_v8 = vsub.s32 32, %v2056_v45  ;;  %v2059_v35 = vshll.u32 %v15714_v20, %v2056_v45  ;;  %v2062_v0 = vshll.u32 %v15715_v38, %v2056_v45 }
 0x179   : > { %15753 = vst [vmem:[#allocation43_spill] sm:$0xff] %v10547_v43  ;;  %v1808_v1 = vshll.u32 %v1807_v31, 23  ;;  %v8422_v6 = vmin.u32 %v2004_v57, %v10519_v44  ;;  %v2065_v18 = vshll.u32 %v15716_v23, %v2056_v45  ;;  %v2068_v26 = vshll.u32 %v15717_v46, %v2056_v45 }
 0x17a   : > { %v2415_v54 = vadd.s32 536870912, %v2414_v32  ;;  %v2055_v28 = vshrl.u32 %v2054_v52, 5  ;;  %v2060_v5 = vshrl.u32 %v15715_v38, %v2057_v8  ;;  %v2063_v47 = vshrl.u32 %v15716_v23, %v2057_v8 }
 0x17b   : > { %vm8420_vm11 = vcmp.lt.s32.totalorder %v8419_v59, 0  ;;  %v2050_v51 = vor.u32 8388608, %v2049_v29  ;;  %v2066_v7 = vshrl.u32 %v15717_v46, %v2057_v8  ;;  %v2069_v50 = vshrl.u32 %v15718_v25, %v2057_v8 }
 0x17c   : > { %v2061_v13 = vor.u32 %v2060_v5, %v2059_v35  ;;  %v2064_v31 = vor.u32 %v2063_v47, %v2062_v0  ;;  %v2071_v57 = vshll.u32 %v15718_v25, %v2056_v45  ;;  %v2773_v22 = vand.u32 2139095040, %v10547_v43 }
 0x17d   : > { %v10560_v39 = vshrl.u32 %v2415_v54, 30  ;;  %v2067_v37 = vor.u32 %v2066_v7, %v2065_v18  ;;  %v2070_v52 = vor.u32 %v2069_v50, %v2068_v26  ;;  %v2072_v30 = vshrl.u32 %v15719_v14, %v2057_v8 }
 0x17e   : > { %v2006_v53 = vclz %v8422_v6  ;;  %v2058_v49 = vshrl.u32 %v15714_v20, %v2057_v8  ;;  %vm2074_vm12 = vcmp.lt.s32.totalorder %v2055_v28, 1  ;;  %vm2076_vm13 = vcmp.lt.s32.totalorder %v2055_v28, 3 }
 0x17f   : > { %15754 = vst [vmem:[#allocation44_spill] sm:$0xff] %v10560_v39  ;;  %v2073_v29 = vor.u32 %v2072_v30, %v2071_v57  ;;  %vm2075_vm1 = vcmp.lt.s32.totalorder %v2055_v28, 2  ;;  %vm2077_vm2 = vcmp.lt.s32.totalorder %v2055_v28, 4  ;;  %v2090_v35 = vshll.u32 %v2050_v51, 8 }
 0x180   : > { %v2079_v0 = vsel %vm2077_vm2, %v2067_v37, 2102212464  ;;  %v2082_v5 = vsel %vm2074_vm12, %v2061_v13, %v2064_v31  ;;  %v2083_v45 = vsel %vm2077_vm2, %v2070_v52, 920167782  ;;  %v2774_v47 = vshrl.u32 %v2773_v22, 23 }
 0x181   : > { %v1905_v54 = vsel %vm8420_vm11, 0, %v8419_v59  ;;  %v2417_v18 = vshll.u32 %v10560_v39, 30  ;;  %v2084_v26 = vsel %vm2076_vm13, %v2067_v37, %v2083_v45  ;;  %v2086_v7 = vsel %vm2074_vm12, %v2064_v31, %v2067_v37 }
 0x182   : > { %v2078_v6 = vsel %vm2074_vm12, %v2058_v49, %v2061_v13  ;;  %v2080_v8 = vsel %vm2076_vm13, %v2064_v31, %v2079_v0  ;;  %v2085_v50 = vsel %vm2075_vm1, %v2082_v5, %v2084_v26  ;;  %v2087_v30 = vsel %vm2077_vm2, %v2073_v29, 1326507024 }
 0x183   : > { %v1809_v57 = vor.u32 4788187, %v1808_v1  ;;  %v2088_v51 = vsel %vm2076_vm13, %v2070_v52, %v2087_v30  ;;  %v10570_v60 = vmul.u32.u64.low %v2090_v35, %v2085_v50  ;;  %v10571_v9 = vmul.u32.u64.high %v2090_v35, %v2085_v50, %v10570_v60 }
 0x184   : > { %v1906_v22 = vsub.s32 32, %v1905_v54  ;;  %v8423_v59 = vadd.s32 4294967294, %v2006_v53  ;;  %v2089_v39 = vsel %vm2075_vm1, %v2086_v7, %v2088_v51  ;;  %v8453_v45 = vadd.s32 4294967169, %v2774_v47 }
 0x185   : > { %v1910_v37 = vsub.s32 4294967266, %v1905_v54  ;;  %v2081_v49 = vsel %vm2075_vm1, %v2078_v6, %v2080_v8  ;;  %v10576_v13 = vmul.u32.u64.low %v2090_v35, %v2089_v39  ;;  %v10577_v31 = vmul.u32.u64.high %v2090_v35, %v2089_v39, %v10576_v13 }
 0x186   : > { %v15755_v1 = vand.u32 2147483647, %v10461_v40  ;;  %v15756_v52 = vcvt.s32.f32 %v10459_v41  ;;  %v1890_v0 = vadd.s32 %v10347_v61, %v10365_v16  ;;  %v10587_v53 = vsub.s32 %v2414_v32, %v2417_v18  ;;  %v713_v18 = vpop.permute.xlu1 %712 }
 0x187   : > { %v2780_v5 = vadd.s32 1, %v8453_v45  ;;  %v15757_v47 = vand.u32 2147483647, %v10510_v58  ;;  %v15758_v28 = vcvt.s32.f32 %v10492_v27  ;;  %v1810_v39 = vand.u32 2147483647, %v1809_v57 }
 0x188   : > { %v10583_v29 = vmul.f32 %v15756_v52, %v15755_v1  ;;  %v1812_v7 = vcvt.s32.f32 %v10539_v62  ;;  %v2100_v40 = vadd.s32 1, %v10571_v9  ;;  %v1908_v41 = vshrl.u32 %v1890_v0, %v1906_v22 }
 0x189   : > { %v10593_v26 = vmul.f32 %v15758_v28, %v15757_v47  ;;  %vm8424_vm3 = vcmp.lt.s32.totalorder %v8423_v59, 0  ;;  %v2097_v6 = vmul.u32 %v2090_v35, %v2081_v49  ;;  %vm2781_vm4 = vcmp.gt.s32.totalorder %v2780_v5, 0 }
 0x18a   : > { %v1911_v8 = vadd.s32 127, %v1910_v37  ;;  %vm2099_vm5 = vc.u32 %v10577_v31, %v10570_v60  ;;  %v15592_v61 = vand.u32 2147483647, %v10547_v43  ;;  %v2782_v16 = vsel %vm2781_vm4, %v2780_v5, 0 }
 0x18b   : > { %v2420_v58 = vsub.s32 0, %v10587_v53  ;;  %v2101_v32 = vsel %vm2099_vm5, %v2100_v40, %v10571_v9  ;;  %v2784_v62 = vand.u32 31, %v2782_v16  ;;  %v10604_v30 = vmul.f32 %v1812_v7, %v1810_v39 }
 0x18c   : > { %v1907_v35 = vshll.u32 %v10468_v2, %v1905_v54  ;;  %v10607_v57 = vsel %vm8424_vm3, 0, %v8423_v59  ;;  %v10611_v51 = vadd.s32 %v10414_v21, %v10430_v11  ;;  %v10613_v22 = vadd.s32 %v2101_v32, %v2097_v6 }
 0x18d   : > { %v642_v45 = vmul.f32 %v10209_v3, %v529_v33  ;;  %v2785_v37 = vsub.s32 32, %v2784_v62  ;;  %v1912_v49 = vshll.u32 %v1911_v8, 23  ;;  %v2777_v13 = vand.u32 8388607, %v15592_v61 }
 0x18e   : > { %v10616_v9 = vor.u32 %v1908_v41, %v1907_v35  ;;  %v807_v1 = vmul.f32 %v10410_v42, %v713_v18  ;;  %v2014_v2 = vsub.s32 4294967266, %v10607_v57  ;;  %v8438_v54 = vmin.u32 %v2420_v58, %v10587_v53 }
 0x18f   : > { %v10623_v59 = vshrl.u32 %v2782_v16, 5  ;;  %v2788_v21 = vshrl.u32 %v15715_v38, %v2785_v37  ;;  %v2787_v11 = vshll.u32 %v15714_v20, %v2784_v62  ;;  %v2790_v33 = vshll.u32 %v15715_v38, %v2784_v62 }
 0x190   : > { %v2791_v52 = vshrl.u32 %v15716_v23, %v2785_v37  ;;  %v2794_v0 = vshrl.u32 %v15717_v46, %v2785_v37  ;;  %v2103_v5 = vadd.s32 536870912, %v10613_v22  ;;  %v2793_v47 = vshll.u32 %v15716_v23, %v2784_v62 }
 0x191   : > { %v2796_v28 = vshll.u32 %v15717_v46, %v2784_v62  ;;  %v2797_v39 = vshrl.u32 %v15718_v25, %v2785_v37  ;;  %v2778_v7 = vor.u32 8388608, %v2777_v13  ;;  %v2789_v40 = vor.u32 %v2788_v21, %v2787_v11 }
 0x192   : > { %v2792_v41 = vor.u32 %v2791_v52, %v2790_v33  ;;  %v839_v6 = vadd.f32 %v807_v1, %v642_v45  ;;  %v2795_v8 = vor.u32 %v2794_v0, %v2793_v47  ;;  %v2799_v58 = vshll.u32 %v15718_v25, %v2784_v62  ;;  %v717_v45 = vpop.permute.xlu1 %716 }
 0x193   : > { %v2798_v16 = vor.u32 %v2797_v39, %v2796_v28  ;;  %v2800_v32 = vshrl.u32 %v15719_v14, %v2785_v37  ;;  %v1913_v18 = vor.u32 4788187, %v1912_v49  ;;  %v2010_v35 = vsub.s32 32, %v10607_v57 }
 0x194   : > { %v10637_v61 = vadd.s32 127, %v2014_v2  ;;  %v2422_v50 = vclz %v8438_v54  ;;  %v10639_v27 = vshrl.u32 %v2103_v5, 30  ;;  %vm2802_vm6 = vcmp.lt.s32.totalorder %v10623_v59, 1 }
 0x195   : > { %v2801_v43 = vor.u32 %v2800_v32, %v2799_v58  ;;  %vm2805_vm7 = vcmp.lt.s32.totalorder %v10623_v59, 4  ;;  %vm1628_vm8 = vcmp.lt.s32.totalorder %v9879_v24, 0  ;;  %vm2804_vm9 = vcmp.lt.s32.totalorder %v10623_v59, 3 }
 0x196   : > { %15759 = vst [vmem:[#allocation45_spill] sm:$0xff] %v10639_v27  ;;  %v2810_v62 = vsel %vm2802_vm6, %v2789_v40, %v2792_v41  ;;  %v2811_v49 = vsel %vm2805_vm7, %v2798_v16, 920167782  ;;  %v10650_v13 = vadd.f32 %v10227_v15, %v839_v6  ;;  %vm1420_vm10 = vcmp.lt.s32.totalorder %v9989_v4, 0  ;;  %v544_v24 = vpop.permute.xlu1 %543 }
 0x197   : > { %vm2803_vm11 = vcmp.lt.s32.totalorder %v10623_v59, 2  ;;  %v2812_v1 = vsel %vm2804_vm9, %v2795_v8, %v2811_v49  ;;  %v2814_v2 = vsel %vm2802_vm6, %v2792_v41, %v2795_v8  ;;  %v10658_v54 = vshll.u32 %v2778_v7, 8 }
 0x198   : > { %vm1524_vm12 = vcmp.lt.s32.totalorder %v10038_v17, 0  ;;  %v8439_v21 = vadd.s32 4294967294, %v2422_v50  ;;  %v2813_v11 = vsel %vm2803_vm11, %v2810_v62, %v2812_v1  ;;  %v2815_v33 = vsel %vm2805_vm7, %v2801_v43, 1326507024  ;;  %v9321_v62 = vld [vmem:[%s10685_s26] sm:$0xff]  }
 0x199   : > { %v808_v52 = vmul.f32 %v10410_v42, %v717_v45  ;;  %vm1732_vm13 = vcmp.lt.s32.totalorder %v10079_v48, 0  ;;  %v2105_v0 = vshll.u32 %v10639_v27, 30  ;;  %v2816_v5 = vsel %vm2804_vm9, %v2798_v16, %v2815_v33  ;;  %8845 = vmatprep.subr.bf16.mxu0 %v9321_v62  ;;  %9121 = vmatprep.subr.bf16.mxu1 %v9321_v62 }
 0x19a   : > { %v10671_v47 = vmul.u32.u64.low %v10658_v54, %v2813_v11  ;;  %v10672_v28 = vmul.u32.u64.high %v10658_v54, %v2813_v11, %v10671_v47  ;;  %v1916_v50 = vcvt.s32.f32 %v10616_v9  ;;  %v2807_v43 = vsel %vm2805_vm7, %v2795_v8, 2102212464  ;;  %8846 = vmatpush3.bf16.msra.mxu0 %v9321_v62  ;;  %9123 = vmatpush3.bf16.msra.mxu1 %v9321_v62 }
 0x19b   : > { %v2817_v39 = vsel %vm2803_vm11, %v2814_v2, %v2816_v5  ;;  %v2149_v7 = vand.u32 2139095040, %v10650_v13  ;;  %v1914_v6 = vand.u32 2147483647, %v1913_v18  ;;  %v2786_v16 = vshrl.u32 %v15714_v20, %v2785_v37  ;;  %v10703_v2 = vpop.permute.xlu0 %573 }
 0x19c   : > { %v10689_v58 = vmul.u32.u64.low %v10658_v54, %v2817_v39  ;;  %v10690_v9 = vmul.u32.u64.high %v10658_v54, %v2817_v39, %v10689_v58  ;;  %v2012_v8 = vshrl.u32 %v10611_v51, %v2010_v35  ;;  %vm8440_vm1 = vcmp.lt.s32.totalorder %v8439_v21, 0 }
 0x19d   : > { %v2150_v32 = vshrl.u32 %v2149_v7, 23  ;;  %v840_v45 = vadd.f32 %v808_v52, %v10526_v63  ;;  %v2016_v49 = vshll.u32 %v10637_v61, 23  ;;  %v10697_v1 = vsub.s32 %v10613_v22, %v2105_v0 }
 0x19e   : > { %v2806_v18 = vsel %vm2802_vm6, %v2786_v16, %v2789_v40  ;;  %v2808_v37 = vsel %vm2804_vm9, %v2792_v41, %v2807_v43  ;;  %v1814_v51 = vxor.u32 2147483648, %v10604_v30  ;;  %v2011_v35 = vshll.u32 %v10519_v44, %v10607_v57 }
 0x19f   : > { %v2828_v63 = vadd.s32 1, %v10672_v28  ;;  %v8429_v11 = vadd.s32 4294967169, %v2150_v32  ;;  %v15760_v61 = vxor.u32 2147483648, %v10426_v12  ;;  %v10716_v40 = vmul.f32 %v1916_v50, %v1914_v6  ;;  %v579_v16 = vpop.permute.xlu0 %578 }
 0x1a0   : > { %v10719_v41 = vsel %vm8440_vm1, 0, %v8439_v21  ;;  %vm2827_vm2 = vc.u32 %v10690_v9, %v10671_v47  ;;  %v15762_v44 = vxor.u32 2147483648, %v10583_v29  ;;  %v10730_v33 = vor.u32 %v2012_v8, %v2011_v35 }
 0x1a1   : > { %v10714_v22 = vsel %vm1628_vm8, %v15760_v61, %v10426_v12  ;;  %v2809_v12 = vsel %vm2803_vm11, %v2806_v18, %v2808_v37  ;;  %v10735_v21 = vadd.f32 %v10227_v15, %v840_v45  ;;  %v15765_v52 = vxor.u32 2147483648, %v10593_v26 }
 0x1a2   : > { %15761 = vst [vmem:[#allocation46_spill] sm:$0xff] %v10714_v22  ;;  %v10728_v57 = vsel %vm1420_vm10, %v15762_v44, %v10583_v29  ;;  %v10744_v5 = vor.u32 4788187, %v2016_v49  ;;  %v2108_v29 = vsub.s32 0, %v10697_v1  ;;  %v2156_v50 = vadd.s32 1, %v8429_v11 }
 0x1a3   : > { %15763 = vst [vmem:[#allocation47_spill] sm:$0xff] %v10728_v57  ;;  %15764 = vst [vmem:[#allocation48_spill] sm:$0xff] %v10735_v21  ;;  %v10742_v0 = vsel %vm1524_vm12, %v15765_v52, %v10593_v26  ;;  %v10750_v59 = vsel %vm1732_vm13, %v1814_v51, %v10604_v30  ;;  %v2426_v15 = vsub.s32 32, %v10719_v41  ;;  %v2829_v43 = vsel %vm2827_vm2, %v2828_v63, %v10672_v28 }
 0x1a4   : > { %15766 = vst [vmem:[#allocation49_spill] sm:$0xff] %v10742_v0  ;;  %15767 = vst [vmem:[#allocation50_spill] sm:$0xff] %v10750_v59  ;;  %v15595_v39 = vand.u32 2147483647, %v10650_v13  ;;  %v10758_v26 = vmul.f32 %v10209_v3, %v10487_v34  ;;  %v2825_v6 = vmul.u32 %v10658_v54, %v2809_v12  ;;  %vm2157_vm3 = vcmp.gt.s32.totalorder %v2156_v50, 0 }
 0x1a5   : > { %v2410_v30 = vadd.s32 %v10506_v19, %v10522_v55  ;;  %v2158_v8 = vsel %vm2157_vm3, %v2156_v50, 0  ;;  %v2253_v28 = vand.u32 2139095040, %v10735_v21  ;;  %v8426_v45 = vmin.u32 %v2108_v29, %v10697_v1  ;;  %v10777_v19 = vld [vmem:[%s15513_s1] ss:$0 sm:$0xff] }
 0x1a6   : > { %v10767_v62 = vadd.s32 %v2829_v43, %v2825_v6  ;;  %v2160_v3 = vand.u32 31, %v2158_v8  ;;  %v2430_v54 = vsub.s32 4294967266, %v10719_v41  ;;  %v2153_v49 = vand.u32 8388607, %v15595_v39 }
 0x1a7   : > { %v10769_v34 = vshrl.u32 %v2410_v30, %v2426_v15  ;;  %v10780_v55 = vmul.f32 %v10777_v19, %v579_v16  ;;  %v2159_v18 = vshrl.u32 %v2158_v8, 5  ;;  %v2254_v44 = vshrl.u32 %v2253_v28, 23  ;;  %v9322_v28 = vld [vmem:[%s10685_s26 + $0x8] sm:$0xff]  }
 0x1a8   : > { %v2161_v37 = vsub.s32 32, %v2160_v3  ;;  %v2163_v51 = vshll.u32 %v15714_v20, %v2160_v3  ;;  %v2166_v35 = vshll.u32 %v15715_v38, %v2160_v3  ;;  %v2169_v63 = vshll.u32 %v15716_v23, %v2160_v3  ;;  %8847 = vmatprep.subr.bf16.mxu0 %v9322_v28  ;;  %9122 = vmatprep.subr.bf16.mxu1 %v9322_v28 }
 0x1a9   : > { %v2172_v11 = vshll.u32 %v15717_v46, %v2160_v3  ;;  %v2175_v61 = vshll.u32 %v15718_v25, %v2160_v3  ;;  %v2110_v12 = vclz %v8426_v45  ;;  %v2831_v52 = vadd.s32 536870912, %v10767_v62  ;;  %8848 = vmatpush3.bf16.msra.mxu0 %v9322_v28  ;;  %9124 = vmatpush3.bf16.msra.mxu1 %v9322_v28 }
 0x1aa   : > { %v2164_v29 = vshrl.u32 %v15715_v38, %v2161_v37  ;;  %v2167_v50 = vshrl.u32 %v15716_v23, %v2161_v37  ;;  %v2154_v15 = vor.u32 8388608, %v2153_v49  ;;  %v2170_v43 = vshrl.u32 %v15717_v46, %v2161_v37 }
 0x1ab   : > { %v2173_v6 = vshrl.u32 %v15718_v25, %v2161_v37  ;;  %v2176_v16 = vshrl.u32 %v15719_v14, %v2161_v37  ;;  %v2162_v30 = vshrl.u32 %v15714_v20, %v2161_v37  ;;  %vm2178_vm4 = vcmp.lt.s32.totalorder %v2159_v18, 1 }
 0x1ac   : > { %v2165_v8 = vor.u32 %v2164_v29, %v2163_v51  ;;  %v2168_v39 = vor.u32 %v2167_v50, %v2166_v35  ;;  %v2171_v45 = vor.u32 %v2170_v43, %v2169_v63  ;;  %v8433_v58 = vadd.s32 4294967169, %v2254_v44  ;;  %v10799_v35 = vpop.permute.xlu0 %593 }
 0x1ad   : > { %v2174_v3 = vor.u32 %v2173_v6, %v2172_v11  ;;  %v2177_v7 = vor.u32 %v2176_v16, %v2175_v61  ;;  %v2431_v32 = vadd.s32 127, %v2430_v54  ;;  %v10795_v27 = vshrl.u32 %v2831_v52, 30 }
 0x1ae   : > { %vm2180_vm5 = vcmp.lt.s32.totalorder %v2159_v18, 3  ;;  %vm2181_vm6 = vcmp.lt.s32.totalorder %v2159_v18, 4  ;;  %vm2179_vm7 = vcmp.lt.s32.totalorder %v2159_v18, 2  ;;  %v2186_v37 = vsel %vm2178_vm4, %v2165_v8, %v2168_v39 }
 0x1af   : > { %15768 = vst [vmem:[#allocation51_spill] sm:$0xff] %v10795_v27  ;;  %v2183_v49 = vsel %vm2181_vm6, %v2171_v45, 2102212464  ;;  %v2194_v51 = vshll.u32 %v2154_v15, 8  ;;  %v8427_v63 = vadd.s32 4294967294, %v2110_v12  ;;  %v2182_v11 = vsel %vm2178_vm4, %v2162_v30, %v2165_v8 }
 0x1b0   : > { %v2187_v54 = vsel %vm2181_vm6, %v2174_v3, 920167782  ;;  %v2190_v61 = vsel %vm2178_vm4, %v2168_v39, %v2171_v45  ;;  %v2184_v44 = vsel %vm2180_vm5, %v2168_v39, %v2183_v49  ;;  %v2191_v29 = vsel %vm2181_vm6, %v2177_v7, 1326507024  ;;  %v599_v49 = vpop.permute.xlu0 %598 }
 0x1b1   : > { %v2188_v52 = vsel %vm2180_vm5, %v2171_v45, %v2187_v54  ;;  %v2260_v50 = vadd.s32 1, %v8433_v58  ;;  %v2432_v43 = vshll.u32 %v2431_v32, 23  ;;  %v2833_v15 = vshll.u32 %v10795_v27, 30 }
 0x1b2   : > { %v2189_v6 = vsel %vm2179_vm7, %v2186_v37, %v2188_v52  ;;  %v2192_v12 = vsel %vm2180_vm5, %v2174_v3, %v2191_v29  ;;  %v2185_v39 = vsel %vm2179_vm7, %v2182_v11, %v2184_v44  ;;  %v2427_v58 = vshll.u32 %v10587_v53, %v10719_v41  ;;  %v15771_v53 = vld [vmem:[#allocation20_spill] sm:$0xff] }
 0x1b3   : > { %v2193_v16 = vsel %vm2179_vm7, %v2190_v61, %v2192_v12  ;;  %v10811_v30 = vmul.u32.u64.low %v2194_v51, %v2189_v6  ;;  %v10812_v8 = vmul.u32.u64.high %v2194_v51, %v2189_v6, %v10811_v30  ;;  %vm2261_vm9 = vcmp.gt.s32.totalorder %v2260_v50, 0 }
 0x1b4   : > { %v10816_v28 = vmul.u32.u64.low %v2194_v51, %v2193_v16  ;;  %v10817_v45 = vmul.u32.u64.high %v2194_v51, %v2193_v16, %v10816_v28  ;;  %v2262_v7 = vsel %vm2261_vm9, %v2260_v50, 0  ;;  %vm8428_vm11 = vcmp.lt.s32.totalorder %v8427_v63, 0 }
 0x1b5   : > { %v15598_v32 = vand.u32 2147483647, %v10735_v21  ;;  %v2264_v3 = vand.u32 31, %v2262_v7  ;;  %v15769_v37 = vand.u32 2147483647, %v10744_v5  ;;  %v15770_v54 = vcvt.s32.f32 %v10730_v33 }
 0x1b6   : > { %v10830_v18 = vadd.s32 %v10570_v60, %v10577_v31  ;;  %v10833_v11 = vsub.s32 %v10767_v62, %v2833_v15  ;;  %v849_v41 = vadd.f32 %v15771_v53, %v10780_v55  ;;  %v10838_v44 = vor.u32 %v10769_v34, %v2427_v58  ;;  %v10859_v15 = vld [vmem:[%s15514_s2] ss:$0 sm:$0xff] }
 0x1b7   : > { %v10826_v61 = vmul.f32 %v15770_v54, %v15769_v37  ;;  %v2201_v52 = vmul.u32 %v2194_v51, %v2185_v39  ;;  %v2204_v5 = vadd.s32 1, %v10812_v8  ;;  %v2265_v29 = vsub.s32 32, %v2264_v3 }
 0x1b8   : > { %v10841_v33 = vor.u32 4788187, %v2432_v43  ;;  %v10843_v50 = vsel %vm8428_vm11, 0, %v8427_v63  ;;  %vm2203_vm1 = vc.u32 %v10817_v45, %v10811_v30  ;;  %v656_v60 = vmul.f32 %v10777_v19, %v599_v49 }
 0x1b9   : > { %v2205_v31 = vsel %vm2203_vm1, %v2204_v5, %v10812_v8  ;;  %v2257_v62 = vand.u32 8388607, %v15598_v32  ;;  %v2268_v34 = vshrl.u32 %v15715_v38, %v2265_v29  ;;  %v2271_v55 = vshrl.u32 %v15716_v23, %v2265_v29  ;;  %v15773_v32 = vld [vmem:[#allocation22_spill] sm:$0xff] }
 0x1ba   : > { %v2836_v51 = vsub.s32 0, %v10833_v11  ;;  %v2267_v43 = vshll.u32 %v15714_v20, %v2264_v3  ;;  %v2270_v63 = vshll.u32 %v15715_v38, %v2264_v3  ;;  %v10862_v6 = vadd.f32 %v10859_v15, %v849_v41 }
 0x1bb   : > { %v10864_v12 = vadd.s32 %v2205_v31, %v2201_v52  ;;  %v2263_v16 = vshrl.u32 %v2262_v7, 5  ;;  %v2273_v8 = vshll.u32 %v15716_v23, %v2264_v3  ;;  %v2274_v39 = vshrl.u32 %v15717_v46, %v2265_v29 }
 0x1bc   : > { %15772 = vst [vmem:[#allocation20_spill] sm:$0xff] %v10862_v6  ;;  %v2269_v28 = vor.u32 %v2268_v34, %v2267_v43  ;;  %v2272_v58 = vor.u32 %v2271_v55, %v2270_v63  ;;  %v2276_v49 = vshll.u32 %v15717_v46, %v2264_v3  ;;  %v2277_v37 = vshrl.u32 %v15718_v25, %v2265_v29 }
 0x1bd   : > { %vm1836_vm2 = vcmp.lt.s32.totalorder %v10230_v36, 0  ;;  %v2114_v54 = vsub.s32 32, %v10843_v50  ;;  %v2275_v53 = vor.u32 %v2274_v39, %v2273_v8  ;;  %v2279_v41 = vshll.u32 %v15718_v25, %v2264_v3 }
 0x1be   : > { %v2280_v52 = vshrl.u32 %v15719_v14, %v2265_v29  ;;  %v2118_v7 = vsub.s32 4294967266, %v10843_v50  ;;  %v2258_v5 = vor.u32 8388608, %v2257_v62  ;;  %v2278_v31 = vor.u32 %v2277_v37, %v2276_v49 }
 0x1bf   : > { %v853_v34 = vadd.f32 %v15773_v32, %v656_v60  ;;  %v2207_v55 = vadd.s32 536870912, %v10864_v12  ;;  %vm2282_vm3 = vcmp.lt.s32.totalorder %v2263_v16, 1  ;;  %v3189_v63 = vand.u32 2139095040, %v10862_v6 }
 0x1c0   : > { %v2281_v43 = vor.u32 %v2280_v52, %v2279_v41  ;;  %v8454_v27 = vmin.u32 %v2836_v51, %v10833_v11  ;;  %vm2284_vm4 = vcmp.lt.s32.totalorder %v2263_v16, 3  ;;  %vm2285_vm5 = vcmp.lt.s32.totalorder %v2263_v16, 4 }
 0x1c1   : > { %v2290_v3 = vsel %vm2282_vm3, %v2269_v28, %v2272_v58  ;;  %v2287_v8 = vsel %vm2285_vm5, %v2275_v53, 2102212464  ;;  %v2291_v39 = vsel %vm2285_vm5, %v2278_v31, 920167782  ;;  %v2294_v59 = vsel %vm2282_vm3, %v2272_v58, %v2275_v53 }
 0x1c2   : > { %v2295_v62 = vsel %vm2285_vm5, %v2281_v43, 1326507024  ;;  %v2266_v49 = vshrl.u32 %v15714_v20, %v2265_v29  ;;  %vm2283_vm6 = vcmp.lt.s32.totalorder %v2263_v16, 2  ;;  %v2292_v32 = vsel %vm2284_vm4, %v2275_v53, %v2291_v39 }
 0x1c3   : > { %v2298_v60 = vshll.u32 %v2258_v5, 8  ;;  %v10883_v37 = vshrl.u32 %v2207_v55, 30  ;;  %v2293_v41 = vsel %vm2283_vm6, %v2290_v3, %v2292_v32  ;;  %v2296_v51 = vsel %vm2284_vm4, %v2278_v31, %v2295_v62 }
 0x1c4   : > { %v3190_v52 = vshrl.u32 %v3189_v63, 23  ;;  %vm15665_vm7 = vcmp.lt.s32.totalorder %v10272_v10, 0  ;;  %v2838_v48 = vclz %v8454_v27  ;;  %v2286_v22 = vsel %vm2282_vm3, %v2266_v49, %v2269_v28 }
 0x1c5   : > { %15774 = vst [vmem:[#allocation22_spill] sm:$0xff] %v10883_v37  ;;  %v2288_v43 = vsel %vm2284_vm4, %v2272_v58, %v2287_v8  ;;  %v2297_v29 = vsel %vm2283_vm6, %v2294_v59, %v2296_v51  ;;  %v10894_v5 = vmul.u32.u64.low %v2298_v60, %v2293_v41  ;;  %v10895_v55 = vmul.u32.u64.high %v2298_v60, %v2293_v41, %v10894_v5 }
 0x1c6   : > { %v10891_v0 = vmul.u32.u64.low %v2298_v60, %v2297_v29  ;;  %v10892_v53 = vmul.u32.u64.high %v2298_v60, %v2297_v29, %v10891_v0  ;;  %v15775_v31 = vxor.u32 2147483648, %v10716_v40  ;;  %v2116_v28 = vshrl.u32 %v10830_v18, %v2114_v54 }
 0x1c7   : > { %v2119_v58 = vadd.s32 127, %v2118_v7  ;;  %v8469_v63 = vadd.s32 4294967169, %v3190_v52  ;;  %v2022_v59 = vxor.u32 2147483648, %v10826_v61  ;;  %v2209_v3 = vshll.u32 %v10883_v37, 30 }
 0x1c8   : > { %v10903_v27 = vsel %vm1836_vm2, %v15775_v31, %v10716_v40  ;;  %v2289_v0 = vsel %vm2283_vm6, %v2286_v22, %v2288_v43  ;;  %v15605_v8 = vand.u32 2147483647, %v10862_v6  ;;  %v2115_v39 = vshll.u32 %v10697_v1, %v10843_v50  ;;  %v725_v1 = vpop.permute.xlu1 %724 }
 0x1c9   : > { %15776 = vst [vmem:[#allocation52_spill] sm:$0xff] %v10903_v27  ;;  %v8455_v62 = vadd.s32 4294967294, %v2838_v48  ;;  %v3196_v49 = vadd.s32 1, %v8469_v63  ;;  %v10913_v40 = vadd.f32 %v10859_v15, %v853_v34  ;;  %v2434_v18 = vand.u32 2147483647, %v10841_v33 }
 0x1ca   : > { %v2436_v54 = vcvt.s32.f32 %v10838_v44  ;;  %vm2307_vm9 = vc.u32 %v10892_v53, %v10894_v5  ;;  %v2308_v16 = vadd.s32 1, %v10895_v55  ;;  %v10920_v22 = vor.u32 %v2116_v28, %v2115_v39 }
 0x1cb   : > { %15777 = vst [vmem:[#allocation53_spill] sm:$0xff] %v10913_v40  ;;  %v2120_v7 = vshll.u32 %v2119_v58, 23  ;;  %v2305_v32 = vmul.u32 %v2298_v60, %v2289_v0  ;;  %vm3197_vm11 = vcmp.gt.s32.totalorder %v3196_v49, 0  ;;  %v10923_v48 = vsub.s32 %v10864_v12, %v2209_v3 }
 0x1cc   : > { %v2309_v50 = vsel %vm2307_vm9, %v2308_v16, %v10895_v55  ;;  %v3193_v33 = vand.u32 8388607, %v15605_v8  ;;  %v3198_v44 = vsel %vm3197_vm11, %v3196_v49, 0  ;;  %vm8456_vm1 = vcmp.lt.s32.totalorder %v8455_v62, 0 }
 0x1cd   : > { %v2310_v34 = vadd.s32 %v2309_v50, %v2305_v32  ;;  %v3200_v41 = vand.u32 31, %v3198_v44  ;;  %v3605_v51 = vand.u32 2139095040, %v10913_v40  ;;  %v10932_v60 = vsel %vm15665_vm7, %v2022_v59, %v10826_v61 }
 0x1ce   : > { %15778 = vst [vmem:[#allocation54_spill] sm:$0xff] %v10932_v60  ;;  %v10934_v52 = vmul.f32 %v2436_v54, %v2434_v18  ;;  %v10937_v12 = vmul.f32 %v10777_v19, %v544_v24  ;;  %v10940_v43 = vmul.f32 %v10410_v42, %v725_v1  ;;  %v10942_v29 = vor.u32 4788187, %v2120_v7 }
 0x1cf   : > { %v2826_v31 = vadd.s32 %v10671_v47, %v10690_v9  ;;  %v2311_v28 = vadd.s32 536870912, %v2310_v34  ;;  %v10947_v58 = vsel %vm8456_vm1, 0, %v8455_v62  ;;  %v2212_v61 = vsub.s32 0, %v10923_v48 }
 0x1d0   : > { %v3194_v63 = vor.u32 8388608, %v3193_v33  ;;  %v3201_v59 = vsub.s32 32, %v3200_v41  ;;  %v3203_v24 = vshll.u32 %v15714_v20, %v3200_v41  ;;  %v3206_v42 = vshll.u32 %v15715_v38, %v3200_v41 }
 0x1d1   : > { %v10950_v3 = vshrl.u32 %v2311_v28, 30  ;;  %v3606_v0 = vshrl.u32 %v3605_v51, 23  ;;  %v3209_v47 = vshll.u32 %v15716_v23, %v3200_v41  ;;  %v3199_v18 = vshrl.u32 %v3198_v44, 5 }
 0x1d2   : > { %v3204_v39 = vshrl.u32 %v15715_v38, %v3201_v59  ;;  %v3207_v49 = vshrl.u32 %v15716_v23, %v3201_v59  ;;  %v3210_v9 = vshrl.u32 %v15717_v46, %v3201_v59  ;;  %v3212_v54 = vshll.u32 %v15717_v46, %v3200_v41 }
 0x1d3   : > { %15779 = vst [vmem:[#allocation55_spill] sm:$0xff] %v10950_v3  ;;  %v2313_v62 = vshll.u32 %v10950_v3, 30  ;;  %v3213_v16 = vshrl.u32 %v15718_v25, %v3201_v59  ;;  %v2122_v7 = vand.u32 2147483647, %v10942_v29  ;;  %v2842_v33 = vsub.s32 32, %v10947_v58 }
 0x1d4   : > { %v3205_v32 = vor.u32 %v3204_v39, %v3203_v24  ;;  %v3208_v1 = vor.u32 %v3207_v49, %v3206_v42  ;;  %v3211_v50 = vor.u32 %v3210_v9, %v3209_v47  ;;  %v2846_v51 = vsub.s32 4294967266, %v10947_v58 }
 0x1d5   : > { %v8430_v28 = vmin.u32 %v2212_v61, %v10923_v48  ;;  %v3214_v8 = vor.u32 %v3213_v16, %v3212_v54  ;;  %v3215_v55 = vshll.u32 %v15718_v25, %v3200_v41  ;;  %v3216_v44 = vshrl.u32 %v15719_v14, %v3201_v59 }
 0x1d6   : > { %v3234_v3 = vshll.u32 %v3194_v63, 8  ;;  %v8485_v37 = vadd.s32 4294967169, %v3606_v0  ;;  %v10967_v60 = vsub.s32 %v2310_v34, %v2313_v62  ;;  %vm3218_vm3 = vcmp.lt.s32.totalorder %v3199_v18, 1 }
 0x1d7   : > { %vm3220_vm4 = vcmp.lt.s32.totalorder %v3199_v18, 3  ;;  %vm3221_vm5 = vcmp.lt.s32.totalorder %v3199_v18, 4  ;;  %v3217_v29 = vor.u32 %v3216_v44, %v3215_v55  ;;  %v3226_v42 = vsel %vm3218_vm3, %v3205_v32, %v3208_v1 }
 0x1d8   : > { %v3223_v24 = vsel %vm3221_vm5, %v3211_v50, 2102212464  ;;  %v3227_v39 = vsel %vm3221_vm5, %v3214_v8, 920167782  ;;  %v2214_v49 = vclz %v8430_v28  ;;  %v3202_v61 = vshrl.u32 %v15714_v20, %v3201_v59 }
 0x1d9   : > { %vm3219_vm6 = vcmp.lt.s32.totalorder %v3199_v18, 2  ;;  %v3228_v41 = vsel %vm3220_vm4, %v3211_v50, %v3227_v39  ;;  %v3230_v63 = vsel %vm3218_vm3, %v3208_v1, %v3211_v50  ;;  %v3231_v34 = vsel %vm3221_vm5, %v3217_v29, 1326507024 }
 0x1da   : > { %v3229_v47 = vsel %vm3219_vm6, %v3226_v42, %v3228_v41  ;;  %v15610_v0 = vand.u32 2147483647, %v10913_v40  ;;  %v2316_v9 = vsub.s32 0, %v10967_v60  ;;  %v3222_v55 = vsel %vm3218_vm3, %v3202_v61, %v3205_v32 }
 0x1db   : > { %v3224_v62 = vsel %vm3220_vm4, %v3208_v1, %v3223_v24  ;;  %v3232_v54 = vsel %vm3220_vm4, %v3214_v8, %v3231_v34  ;;  %v10980_v16 = vmul.u32.u64.low %v3234_v3, %v3229_v47  ;;  %v10981_v28 = vmul.u32.u64.high %v3234_v3, %v3229_v47, %v10980_v16 }
 0x1dc   : > { %v3233_v59 = vsel %vm3219_vm6, %v3230_v63, %v3232_v54  ;;  %v3612_v44 = vadd.s32 1, %v8485_v37  ;;  %v2844_v42 = vshrl.u32 %v2826_v31, %v2842_v33  ;;  %v2847_v50 = vadd.s32 127, %v2846_v51 }
 0x1dd   : > { %v10984_v29 = vmul.u32.u64.low %v3234_v3, %v3233_v59  ;;  %v10985_v39 = vmul.u32.u64.high %v3234_v3, %v3233_v59, %v10984_v29  ;;  %v2843_v41 = vshll.u32 %v10833_v11, %v10947_v58  ;;  %v8431_v32 = vadd.s32 4294967294, %v2214_v49 }
 0x1de   : > { %vm3613_vm9 = vcmp.gt.s32.totalorder %v3612_v44, 0  ;;  %v842_v8 = vadd.f32 %v10940_v43, %v10937_v12  ;;  %v8434_v1 = vmin.u32 %v2316_v9, %v10967_v60  ;;  %v3225_v24 = vsel %vm3219_vm6, %v3222_v55, %v3224_v62 }
 0x1df   : > { %v3609_v37 = vand.u32 8388607, %v15610_v0  ;;  %v3614_v31 = vsel %vm3613_vm9, %v3612_v44, 0  ;;  %v10997_v33 = vmul.f32 %v10777_v19, %v10703_v2  ;;  %v3244_v51 = vadd.s32 1, %v10981_v28 }
 0x1e0   : > { %v11002_v11 = vmul.f32 %v10777_v19, %v10799_v35  ;;  %v3616_v58 = vand.u32 31, %v3614_v31  ;;  %v15781_v43 = vcvt.s32.f32 %v10920_v22  ;;  %v11009_v49 = vor.u32 %v2844_v42, %v2843_v41 }
 0x1e1   : > { %v2848_v61 = vshll.u32 %v2847_v50, 23  ;;  %v3241_v47 = vmul.u32 %v3234_v3, %v3225_v24  ;;  %vm3243_vm11 = vc.u32 %v10985_v39, %v10980_v16  ;;  %v11014_v63 = vadd.f32 %v10859_v15, %v842_v8 }
 0x1e2   : > { %15780 = vst [vmem:[#allocation56_spill] sm:$0xff] %v11002_v11  ;;  %v11007_v18 = vmul.f32 %v15781_v43, %v2122_v7  ;;  %v3617_v2 = vsub.s32 32, %v3616_v58  ;;  %vm8432_vm1 = vcmp.lt.s32.totalorder %v8431_v32, 0  ;;  %v2318_v35 = vclz %v8434_v1 }
 0x1e3   : > { %15782 = vst [vmem:[#allocation57_spill] sm:$0xff] %v11014_v63  ;;  %v3245_v34 = vsel %vm3243_vm11, %v3244_v51, %v10981_v28  ;;  %v3610_v9 = vor.u32 8388608, %v3609_v37  ;;  %v3615_v22 = vshrl.u32 %v3614_v31, 5  ;;  %v3619_v3 = vshll.u32 %v15714_v20, %v3616_v58 }
 0x1e4   : > { %v3246_v55 = vadd.s32 %v3245_v34, %v3241_v47  ;;  %v3620_v7 = vshrl.u32 %v15715_v38, %v3617_v2  ;;  %v3623_v62 = vshrl.u32 %v15716_v23, %v3617_v2  ;;  %v3622_v54 = vshll.u32 %v15715_v38, %v3616_v58 }
 0x1e5   : > { %v3625_v59 = vshll.u32 %v15716_v23, %v3616_v58  ;;  %v3626_v44 = vshrl.u32 %v15717_v46, %v3617_v2  ;;  %v11023_v42 = vor.u32 4788187, %v2848_v61  ;;  %v3628_v28 = vshll.u32 %v15717_v46, %v3616_v58 }
 0x1e6   : > { %v3247_v50 = vadd.s32 536870912, %v3246_v55  ;;  %v3629_v29 = vshrl.u32 %v15718_v25, %v3617_v2  ;;  %v11028_v41 = vsel %vm8432_vm1, 0, %v8431_v32  ;;  %v3621_v8 = vor.u32 %v3620_v7, %v3619_v3  ;;  %v549_v7 = vpop.permute.xlu1 %548 }
 0x1e7   : > { %v3624_v1 = vor.u32 %v3623_v62, %v3622_v54  ;;  %v3627_v24 = vor.u32 %v3626_v44, %v3625_v59  ;;  %v3631_v51 = vshll.u32 %v15718_v25, %v3616_v58  ;;  %v3632_v43 = vshrl.u32 %v15719_v14, %v3617_v2  ;;  %v11039_v54 = vpop.permute.xlu0 %613 }
 0x1e8   : > { %v11030_v37 = vshrl.u32 %v3247_v50, 30  ;;  %v3630_v31 = vor.u32 %v3629_v29, %v3628_v28  ;;  %v8435_v61 = vadd.s32 4294967294, %v2318_v35  ;;  %vm3637_vm3 = vcmp.lt.s32.totalorder %v3615_v22, 4 }
 0x1e9   : > { %v3650_v47 = vshll.u32 %v3610_v9, 8  ;;  %v2461_v34 = vand.u32 2139095040, %v11014_v63  ;;  %v3633_v12 = vor.u32 %v3632_v43, %v3631_v51  ;;  %vm3634_vm4 = vcmp.lt.s32.totalorder %v3615_v22, 1 }
 0x1ea   : > { %15783 = vst [vmem:[#allocation58_spill] sm:$0xff] %v11030_v37  ;;  %v3249_v0 = vshll.u32 %v11030_v37, 30  ;;  %v3639_v32 = vsel %vm3637_vm3, %v3627_v24, 2102212464  ;;  %v3618_v62 = vshrl.u32 %v15714_v20, %v3617_v2  ;;  %vm3636_vm5 = vcmp.lt.s32.totalorder %v3615_v22, 3 }
 0x1eb   : > { %v3642_v3 = vsel %vm3634_vm4, %v3621_v8, %v3624_v1  ;;  %v3643_v58 = vsel %vm3637_vm3, %v3630_v31, 920167782  ;;  %vm3635_vm6 = vcmp.lt.s32.totalorder %v3615_v22, 2  ;;  %v3646_v59 = vsel %vm3634_vm4, %v3624_v1, %v3627_v24  ;;  %v11070_v22 = vld [vmem:[%s15513_s1 + $0x1] ss:$0 sm:$0xff] }
 0x1ec   : > { %v11041_v35 = vsub.s32 %v3246_v55, %v3249_v0  ;;  %v3644_v9 = vsel %vm3636_vm5, %v3627_v24, %v3643_v58  ;;  %v3638_v44 = vsel %vm3634_vm4, %v3618_v62, %v3621_v8  ;;  %v3640_v50 = vsel %vm3636_vm5, %v3624_v1, %v3639_v32 }
 0x1ed   : > { %v3645_v28 = vsel %vm3635_vm6, %v3642_v3, %v3644_v9  ;;  %v3647_v29 = vsel %vm3637_vm3, %v3633_v12, 1326507024  ;;  %v2218_v10 = vsub.s32 32, %v11028_v41  ;;  %v2222_v0 = vsub.s32 4294967266, %v11028_v41 }
 0x1ee   : > { %v3252_v51 = vsub.s32 0, %v11041_v35  ;;  %v3648_v2 = vsel %vm3636_vm5, %v3630_v31, %v3647_v29  ;;  %v11046_v43 = vmul.u32.u64.low %v3650_v47, %v3645_v28  ;;  %v11047_v37 = vmul.u32.u64.high %v3650_v47, %v3645_v28, %v11046_v43  ;;  %v729_v31 = vpop.permute.xlu1 %728  ;;  %v619_v28 = vpop.permute.xlu0 %618 }
 0x1ef   : > { %v3649_v55 = vsel %vm3635_vm6, %v3646_v59, %v3648_v2  ;;  %v2462_v24 = vshrl.u32 %v2461_v34, 23  ;;  %v2202_v8 = vadd.s32 %v10811_v30, %v10817_v45  ;;  %v3641_v3 = vsel %vm3635_vm6, %v3638_v44, %v3640_v50 }
 0x1f0   : > { %v8470_v1 = vmin.u32 %v3252_v51, %v11041_v35  ;;  %v11056_v12 = vmul.u32.u64.low %v3650_v47, %v3649_v55  ;;  %v11057_v32 = vmul.u32.u64.high %v3650_v47, %v3649_v55, %v11056_v12  ;;  %v15615_v58 = vand.u32 2147483647, %v11014_v63 }
 0x1f1   : > { %v8441_v9 = vadd.s32 4294967169, %v2462_v24  ;;  %vm8436_vm9 = vcmp.lt.s32.totalorder %v8435_v61, 0  ;;  %v3660_v34 = vadd.s32 1, %v11047_v37  ;;  %v646_v30 = vmul.f32 %v10777_v19, %v549_v7 }
 0x1f2   : > { %v2220_v45 = vshrl.u32 %v2202_v8, %v2218_v10  ;;  %v11065_v29 = vadd.s32 127, %v2222_v0  ;;  %v811_v44 = vmul.f32 %v11070_v22, %v729_v31  ;;  %v2219_v50 = vshll.u32 %v10923_v48, %v11028_v41  ;;  %v785_v31 = vpop.permute.xlu0 %784 }
 0x1f3   : > { %v2468_v51 = vadd.s32 1, %v8441_v9  ;;  %v3254_v2 = vclz %v8470_v1  ;;  %v3657_v55 = vmul.u32 %v3650_v47, %v3641_v3  ;;  %vm3659_vm11 = vc.u32 %v11057_v32, %v11046_v43 }
 0x1f4   : > { %v11077_v7 = vsel %vm8436_vm9, 0, %v8435_v61  ;;  %v3661_v10 = vsel %vm3659_vm11, %v3660_v34, %v11047_v37  ;;  %v2465_v0 = vand.u32 8388607, %v15615_v58  ;;  %v2306_v24 = vadd.s32 %v10894_v5, %v10892_v53 }
 0x1f5   : > { %vm2469_vm1 = vcmp.gt.s32.totalorder %v2468_v51, 0  ;;  %v3662_v8 = vadd.s32 %v3661_v10, %v3657_v55  ;;  %v660_v48 = vmul.f32 %v10777_v19, %v619_v28  ;;  %v11085_v41 = vor.u32 %v2220_v45, %v2219_v50 }
 0x1f6   : > { %v2470_v12 = vsel %vm2469_vm1, %v2468_v51, 0  ;;  %v2224_v47 = vshll.u32 %v11065_v29, 23  ;;  %v843_v61 = vadd.f32 %v811_v44, %v646_v30  ;;  %v2322_v37 = vsub.s32 32, %v11077_v7 }
 0x1f7   : > { %v2472_v1 = vand.u32 31, %v2470_v12  ;;  %v2326_v3 = vsub.s32 4294967266, %v11077_v7  ;;  %v8471_v9 = vadd.s32 4294967294, %v3254_v2  ;;  %v3663_v34 = vadd.s32 536870912, %v3662_v8 }
 0x1f8   : > { %v2466_v58 = vor.u32 8388608, %v2465_v0  ;;  %v825_v30 = vmul.f32 %v11070_v22, %v785_v31  ;;  %v2471_v51 = vshrl.u32 %v2470_v12, 5  ;;  %v2323_v55 = vshll.u32 %v10967_v60, %v11077_v7 }
 0x1f9   : > { %v2473_v62 = vsub.s32 32, %v2472_v1  ;;  %v2475_v53 = vshll.u32 %v15714_v20, %v2472_v1  ;;  %v2478_v5 = vshll.u32 %v15715_v38, %v2472_v1  ;;  %v11092_v28 = vshrl.u32 %v3663_v34, 30  ;;  %v11104_v34 = vpop.permute.xlu1 %732 }
 0x1fa   : > { %v2481_v45 = vshll.u32 %v15716_v23, %v2472_v1  ;;  %v2484_v29 = vshll.u32 %v15717_v46, %v2472_v1  ;;  %vm8472_vm3 = vcmp.lt.s32.totalorder %v8471_v9, 0  ;;  %v2327_v59 = vadd.s32 127, %v2326_v3 }
 0x1fb   : > { %15784 = vst [vmem:[#allocation59_spill] sm:$0xff] %v11092_v28  ;;  %v2476_v44 = vshrl.u32 %v15715_v38, %v2473_v62  ;;  %v2479_v50 = vshrl.u32 %v15716_v23, %v2473_v62  ;;  %v2482_v2 = vshrl.u32 %v15717_v46, %v2473_v62  ;;  %v3665_v10 = vshll.u32 %v11092_v28, 30 }
 0x1fc   : > { %v2485_v0 = vshrl.u32 %v15718_v25, %v2473_v62  ;;  %v2487_v12 = vshll.u32 %v15718_v25, %v2472_v1  ;;  %v11107_v63 = vshll.u32 %v2466_v58, 8  ;;  %v857_v17 = vadd.f32 %v825_v30, %v660_v48 }
 0x1fd   : > { %v2477_v11 = vor.u32 %v2476_v44, %v2475_v53  ;;  %v2480_v31 = vor.u32 %v2479_v50, %v2478_v5  ;;  %v2483_v27 = vor.u32 %v2482_v2, %v2481_v45  ;;  %v11109_v57 = vsel %vm8472_vm3, 0, %v8471_v9  ;;  %v564_v3 = vpop.permute.xlu1 %563 }
 0x1fe   : > { %v2486_v36 = vor.u32 %v2485_v0, %v2484_v29  ;;  %v2488_v60 = vshrl.u32 %v15719_v14, %v2473_v62  ;;  %vm2490_vm4 = vcmp.lt.s32.totalorder %v2471_v51, 1  ;;  %vm2492_vm5 = vcmp.lt.s32.totalorder %v2471_v51, 3 }
 0x1ff   : > { %v11112_v7 = vsub.s32 %v3662_v8, %v3665_v10  ;;  %v2474_v28 = vshrl.u32 %v15714_v20, %v2473_v62  ;;  %vm2491_vm6 = vcmp.lt.s32.totalorder %v2471_v51, 2  ;;  %vm2493_vm9 = vcmp.lt.s32.totalorder %v2471_v51, 4 }
 0x200   : > { %v2489_v53 = vor.u32 %v2488_v60, %v2487_v12  ;;  %v2495_v1 = vsel %vm2493_vm9, %v2483_v27, 2102212464  ;;  %v2498_v5 = vsel %vm2490_vm4, %v2477_v11, %v2480_v31  ;;  %v2499_v58 = vsel %vm2493_vm9, %v2486_v36, 920167782 }
 0x201   : > { %v2324_v45 = vshrl.u32 %v2306_v24, %v2322_v37  ;;  %v2328_v48 = vshll.u32 %v2327_v59, 23  ;;  %v2500_v9 = vsel %vm2492_vm5, %v2483_v27, %v2499_v58  ;;  %v11118_v29 = vadd.f32 %v10859_v15, %v843_v61 }
 0x202   : > { %v2501_v8 = vsel %vm2491_vm6, %v2498_v5, %v2500_v9  ;;  %v2502_v30 = vsel %vm2490_vm4, %v2480_v31, %v2483_v27  ;;  %v2503_v62 = vsel %vm2493_vm9, %v2489_v53, 1326507024  ;;  %v11123_v44 = vadd.f32 %v10859_v15, %v857_v17  ;;  %v15789_v9 = vld [vmem:[#allocation41_spill] sm:$0xff] }
 0x203   : > { %15785 = vst [vmem:[#allocation60_spill] sm:$0xff] %v11118_v29  ;;  %v3262_v50 = vsub.s32 4294967266, %v11109_v57  ;;  %v2494_v2 = vsel %vm2490_vm4, %v2474_v28, %v2477_v11  ;;  %v2496_v24 = vsel %vm2492_vm5, %v2480_v31, %v2495_v1  ;;  %v2504_v59 = vsel %vm2492_vm5, %v2486_v36, %v2503_v62  ;;  %v741_v28 = vpop.permute.xlu1 %740 }
 0x204   : > { %15786 = vst [vmem:[#allocation61_spill] sm:$0xff] %v11123_v44  ;;  %v3668_v37 = vsub.s32 0, %v11112_v7  ;;  %v2505_v61 = vsel %vm2491_vm6, %v2502_v30, %v2504_v59  ;;  %v11132_v10 = vmul.u32.u64.low %v11107_v63, %v2501_v8  ;;  %v11133_v0 = vmul.u32.u64.high %v11107_v63, %v2501_v8, %v11132_v10  ;;  %v15790_v8 = vld [vmem:[#allocation43_spill] sm:$0xff] }
 0x205   : > { %vm15629_vm11 = vcmp.lt.s32.totalorder %v10361_v56, 0  ;;  %v2225_v17 = vor.u32 4788187, %v2224_v47  ;;  %v2325_v27 = vor.u32 %v2324_v45, %v2323_v55  ;;  %v15787_v36 = vand.u32 2147483647, %v11023_v42 }
 0x206   : > { %v11138_v12 = vmul.u32.u64.low %v11107_v63, %v2505_v61  ;;  %v11139_v11 = vmul.u32.u64.high %v11107_v63, %v2505_v61, %v11138_v12  ;;  %v15788_v31 = vcvt.s32.f32 %v11009_v49  ;;  %v2329_v53 = vor.u32 4788187, %v2328_v48 }
 0x207   : > { %v2497_v1 = vsel %vm2491_vm6, %v2494_v2, %v2496_v24  ;;  %v4021_v5 = vand.u32 2139095040, %v11123_v44  ;;  %v2228_v58 = vcvt.s32.f32 %v11085_v41  ;;  %v3258_v47 = vsub.s32 32, %v11109_v57 }
 0x208   : > { %v2853_v60 = vmul.f32 %v15788_v31, %v15787_v36  ;;  %v3263_v55 = vadd.s32 127, %v3262_v50  ;;  %v2565_v45 = vand.u32 2139095040, %v11118_v29  ;;  %vm15631_vm1 = vcmp.lt.s32.totalorder %v15789_v9, 0 }
 0x209   : > { %vm15628_vm3 = vcmp.lt.s32.totalorder %v15790_v8, 0  ;;  %v8486_v42 = vmin.u32 %v3668_v37, %v11112_v7  ;;  %v2516_v49 = vadd.s32 1, %v11133_v0  ;;  %v649_v51 = vmul.f32 %v10777_v19, %v564_v3 }
 0x20a   : > { %v814_v48 = vmul.f32 %v11070_v22, %v741_v28  ;;  %v2226_v30 = vand.u32 2147483647, %v2225_v17  ;;  %v2332_v62 = vcvt.s32.f32 %v2325_v27  ;;  %v3242_v41 = vadd.s32 %v10980_v16, %v10985_v39 }
 0x20b   : > { %v2513_v50 = vmul.u32 %v11107_v63, %v2497_v1  ;;  %v2330_v2 = vand.u32 2147483647, %v2329_v53  ;;  %vm2515_vm4 = vc.u32 %v11139_v11, %v11132_v10  ;;  %v4022_v24 = vshrl.u32 %v4021_v5, 23 }
 0x20c   : > { %v812_v59 = vmul.f32 %v11070_v22, %v11104_v34  ;;  %v3260_v37 = vshrl.u32 %v3242_v41, %v3258_v47  ;;  %v3264_v61 = vshll.u32 %v3263_v55, 23  ;;  %v2517_v3 = vsel %vm2515_vm4, %v2516_v49, %v11133_v0 }
 0x20d   : > { %v2566_v12 = vshrl.u32 %v2565_v45, 23  ;;  %v3670_v17 = vclz %v8486_v42  ;;  %v15624_v27 = vand.u32 2147483647, %v11123_v44  ;;  %v8501_v28 = vadd.s32 4294967169, %v4022_v24 }
 0x20e   : > { %v846_v16 = vadd.f32 %v814_v48, %v649_v51  ;;  %v2126_v39 = vxor.u32 2147483648, %v11007_v18  ;;  %v2854_v63 = vxor.u32 2147483648, %v2853_v60  ;;  %v3259_v36 = vshll.u32 %v11041_v35, %v11109_v57 }
 0x20f   : > { %v11168_v31 = vadd.s32 %v2517_v3, %v2513_v50  ;;  %v15791_v34 = vxor.u32 2147483648, %v10934_v52  ;;  %v11177_v53 = vmul.f32 %v2228_v58, %v2226_v30  ;;  %v11179_v1 = vmul.f32 %v2332_v62, %v2330_v2 }
 0x210   : > { %v4028_v5 = vadd.s32 1, %v8501_v28  ;;  %v11181_v47 = vor.u32 %v3260_v37, %v3259_v36  ;;  %v11183_v55 = vor.u32 4788187, %v3264_v61  ;;  %v8445_v45 = vadd.s32 4294967169, %v2566_v12 }
 0x211   : > { %v11175_v0 = vsel %vm15629_vm11, %v15791_v34, %v10934_v52  ;;  %v844_v57 = vadd.f32 %v812_v59, %v10758_v26  ;;  %v8487_v35 = vadd.s32 4294967294, %v3670_v17  ;;  %v4025_v42 = vand.u32 8388607, %v15624_v27 }
 0x212   : > { %15792 = vst [vmem:[#allocation41_spill] sm:$0xff] %v11175_v0  ;;  %vm4029_vm5 = vcmp.gt.s32.totalorder %v4028_v5, 0  ;;  %v11189_v52 = vadd.f32 %v10859_v15, %v846_v16  ;;  %v11194_v58 = vsel %vm15631_vm1, %v2126_v39, %v11007_v18  ;;  %v11198_v49 = vsel %vm15628_vm3, %v2854_v63, %v2853_v60 }
 0x213   : > { %15793 = vst [vmem:[#allocation62_spill] sm:$0xff] %v11198_v49  ;;  %v2519_v51 = vadd.s32 536870912, %v11168_v31  ;;  %v4030_v26 = vsel %vm4029_vm5, %v4028_v5, 0  ;;  %v11205_v62 = vmul.f32 %v10777_v19, %v11039_v54  ;;  %v3266_v50 = vand.u32 2147483647, %v11183_v55 }
 0x214   : > { %v4032_v41 = vand.u32 31, %v4030_v26  ;;  %v3268_v18 = vcvt.s32.f32 %v11181_v47  ;;  %v11209_v2 = vadd.s32 1, %v8445_v45  ;;  %v11212_v60 = vadd.f32 %v10859_v15, %v844_v57  ;;  %v569_v47 = vpop.permute.xlu1 %568 }
 0x215   : > { %15794 = vst [vmem:[#allocation63_spill] sm:$0xff] %v11205_v62  ;;  %vm8488_vm6 = vcmp.lt.s32.totalorder %v8487_v35, 0  ;;  %v4026_v24 = vor.u32 8388608, %v4025_v42  ;;  %v2877_v37 = vand.u32 2139095040, %v11189_v52  ;;  %v11215_v61 = vshrl.u32 %v2519_v51, 30 }
 0x216   : > { %15795 = vst [vmem:[#allocation64_spill] sm:$0xff] %v11212_v60  ;;  %v4033_v59 = vsub.s32 32, %v4032_v41  ;;  %v4031_v3 = vshrl.u32 %v4030_v26, 5  ;;  %v4035_v54 = vshll.u32 %v15714_v20, %v4032_v41  ;;  %v4038_v12 = vshll.u32 %v15715_v38, %v4032_v41 }
 0x217   : > { %15796 = vst [vmem:[#allocation65_spill] sm:$0xff] %v11215_v61  ;;  %v4041_v16 = vshll.u32 %v15716_v23, %v4032_v41  ;;  %v4044_v39 = vshll.u32 %v15717_v46, %v4032_v41  ;;  %v4047_v34 = vshll.u32 %v15718_v25, %v4032_v41  ;;  %v4066_v57 = vshll.u32 %v4026_v24, 8 }
 0x218   : > { %v4036_v17 = vshrl.u32 %v15715_v38, %v4033_v59  ;;  %v4039_v28 = vshrl.u32 %v15716_v23, %v4033_v59  ;;  %v4042_v63 = vshrl.u32 %v15717_v46, %v4033_v59  ;;  %v4045_v36 = vshrl.u32 %v15718_v25, %v4033_v59 }
 0x219   : > { %v4048_v5 = vshrl.u32 %v15719_v14, %v4033_v59  ;;  %v2878_v42 = vshrl.u32 %v2877_v37, 23  ;;  %v2521_v51 = vshll.u32 %v11215_v61, 30  ;;  %v4034_v48 = vshrl.u32 %v15714_v20, %v4033_v59 }
 0x21a   : > { %v4037_v55 = vor.u32 %v4036_v17, %v4035_v54  ;;  %v4040_v45 = vor.u32 %v4039_v28, %v4038_v12  ;;  %v4043_v26 = vor.u32 %v4042_v63, %v4041_v16  ;;  %v4046_v27 = vor.u32 %v4045_v36, %v4044_v39  ;;  %v745_v16 = vpop.permute.xlu1 %744 }
 0x21b   : > { %v4049_v30 = vor.u32 %v4048_v5, %v4047_v34  ;;  %vm4050_vm9 = vcmp.lt.s32.totalorder %v4031_v3, 1  ;;  %vm4052_vm4 = vcmp.lt.s32.totalorder %v4031_v3, 3  ;;  %vm4053_vm5 = vcmp.lt.s32.totalorder %v4031_v3, 4 }
 0x21c   : > { %v4055_v49 = vsel %vm4053_vm5, %v4043_v26, 2102212464  ;;  %v4058_v8 = vsel %vm4050_vm9, %v4037_v55, %v4040_v45  ;;  %v4059_v41 = vsel %vm4053_vm5, %v4046_v27, 920167782  ;;  %v4062_v29 = vsel %vm4050_vm9, %v4040_v45, %v4043_v26 }
 0x21d   : > { %vm4051_vm3 = vcmp.lt.s32.totalorder %v4031_v3, 2  ;;  %v4060_v0 = vsel %vm4052_vm4, %v4043_v26, %v4059_v41  ;;  %v4063_v54 = vsel %vm4053_vm5, %v4049_v30, 1326507024  ;;  %v8457_v12 = vadd.s32 4294967169, %v2878_v42 }
 0x21e   : > { %v4054_v24 = vsel %vm4050_vm9, %v4034_v48, %v4037_v55  ;;  %v4056_v37 = vsel %vm4052_vm4, %v4040_v45, %v4055_v49  ;;  %v4061_v17 = vsel %vm4051_vm3, %v4058_v8, %v4060_v0  ;;  %v4064_v28 = vsel %vm4052_vm4, %v4046_v27, %v4063_v54 }
 0x21f   : > { %v11231_v39 = vsub.s32 %v11168_v31, %v2521_v51  ;;  %v4065_v59 = vsel %vm4051_vm3, %v4062_v29, %v4064_v28  ;;  %v11234_v63 = vmul.u32.u64.low %v4066_v57, %v4061_v17  ;;  %v11235_v36 = vmul.u32.u64.high %v4066_v57, %v4061_v17, %v11234_v63 }
 0x220   : > { %v11238_v34 = vmul.f32 %v3268_v18, %v3266_v50  ;;  %v11241_v30 = vsel %vm8488_vm6, 0, %v8487_v35  ;;  %v11243_v48 = vmul.u32.u64.low %v4066_v57, %v4065_v59  ;;  %v11244_v49 = vmul.u32.u64.high %v4066_v57, %v4065_v59, %v11243_v48 }
 0x221   : > { %v3658_v8 = vadd.s32 %v11046_v43, %v11057_v32  ;;  %v4057_v27 = vsel %vm4051_vm3, %v4054_v24, %v4056_v37  ;;  %v650_v31 = vmul.f32 %v10777_v19, %v569_v47  ;;  %v815_v29 = vmul.f32 %v11070_v22, %v745_v16 }
 0x222   : > { %vm2573_vm9 = vcmp.gt.s32.totalorder %v11209_v2, 0  ;;  %v2669_v0 = vand.u32 2139095040, %v11212_v60  ;;  %v15630_v50 = vand.u32 2147483647, %v11189_v52  ;;  %v2884_v35 = vadd.s32 1, %v8457_v12 }
 0x223   : > { %v3674_v18 = vsub.s32 32, %v11241_v30  ;;  %v3678_v5 = vsub.s32 4294967266, %v11241_v30  ;;  %v2524_v55 = vsub.s32 0, %v11231_v39  ;;  %v4076_v43 = vadd.s32 1, %v11235_v36 }
 0x224   : > { %v4073_v19 = vmul.u32 %v4066_v57, %v4057_v27  ;;  %vm4075_vm3 = vc.u32 %v11244_v49, %v11234_v63  ;;  %vm2885_vm6 = vcmp.gt.s32.totalorder %v2884_v35, 0  ;;  %v11262_v3 = vsel %vm2573_vm9, %v11209_v2, 0 }
 0x225   : > { %v4077_v47 = vsel %vm4075_vm3, %v4076_v43, %v11235_v36  ;;  %v2886_v45 = vsel %vm2885_vm6, %v2884_v35, 0  ;;  %v847_v42 = vadd.f32 %v815_v29, %v650_v31  ;;  %v2881_v41 = vand.u32 8388607, %v15630_v50 }
 0x226   : > { %v11267_v26 = vadd.s32 %v4077_v47, %v4073_v19  ;;  %v2888_v57 = vand.u32 31, %v2886_v45  ;;  %v3676_v54 = vshrl.u32 %v3658_v8, %v3674_v18  ;;  %v11271_v12 = vadd.s32 127, %v3678_v5 }
 0x227   : > { %v8442_v24 = vmin.u32 %v2524_v55, %v11231_v39  ;;  %v2670_v2 = vshrl.u32 %v2669_v0, 23  ;;  %v2887_v37 = vshrl.u32 %v2886_v45, 5  ;;  %v11280_v27 = vadd.f32 %v10859_v15, %v847_v42 }
 0x228   : > { %v2889_v17 = vsub.s32 32, %v2888_v57  ;;  %v2891_v28 = vshll.u32 %v15714_v20, %v2888_v57  ;;  %v2894_v16 = vshll.u32 %v15715_v38, %v2888_v57  ;;  %v2897_v59 = vshll.u32 %v15716_v23, %v2888_v57 }
 0x229   : > { %v2900_v36 = vshll.u32 %v15717_v46, %v2888_v57  ;;  %v2903_v48 = vshll.u32 %v15718_v25, %v2888_v57  ;;  %v4079_v8 = vadd.s32 536870912, %v11267_v26  ;;  %v2882_v31 = vor.u32 8388608, %v2881_v41 }
 0x22a   : > { %v2892_v29 = vshrl.u32 %v15715_v38, %v2889_v17  ;;  %v2895_v0 = vshrl.u32 %v15716_v23, %v2889_v17  ;;  %vm15664_vm4 = vcmp.lt.s32.totalorder %v10650_v13, 0  ;;  %v2890_v35 = vshrl.u32 %v15714_v20, %v2889_v17 }
 0x22b   : > { %v2898_v18 = vshrl.u32 %v15717_v46, %v2889_v17  ;;  %v2901_v5 = vshrl.u32 %v15718_v25, %v2889_v17  ;;  %v2904_v55 = vshrl.u32 %v15719_v14, %v2889_v17  ;;  %vm15651_vm5 = vcmp.lt.s32.totalorder %v10735_v21, 0 }
 0x22c   : > { %vm15641_vm9 = vcmp.lt.s32.totalorder %v10862_v6, 0  ;;  %v2526_v15 = vclz %v8442_v24  ;;  %v2893_v43 = vor.u32 %v2892_v29, %v2891_v28  ;;  %v2896_v19 = vor.u32 %v2895_v0, %v2894_v16 }
 0x22d   : > { %vm2906_vm3 = vcmp.lt.s32.totalorder %v2887_v37, 1  ;;  %v2899_v47 = vor.u32 %v2898_v18, %v2897_v59  ;;  %v2902_v45 = vor.u32 %v2901_v5, %v2900_v36  ;;  %v2905_v42 = vor.u32 %v2904_v55, %v2903_v48 }
 0x22e   : > { %v2981_v41 = vand.u32 2139095040, %v11280_v27  ;;  %v11293_v57 = vshrl.u32 %v4079_v8, 30  ;;  %vm2908_vm6 = vcmp.lt.s32.totalorder %v2887_v37, 3  ;;  %vm2909_vm11 = vcmp.lt.s32.totalorder %v2887_v37, 4 }
 0x22f   : > { %v2922_v50 = vshll.u32 %v2882_v31, 8  ;;  %vm2907_vm1 = vcmp.lt.s32.totalorder %v2887_v37, 2  ;;  %v2910_v17 = vsel %vm2906_vm3, %v2890_v35, %v2893_v43  ;;  %v2911_v51 = vsel %vm2909_vm11, %v2899_v47, 2102212464 }
 0x230   : > { %15797 = vst [vmem:[#allocation66_spill] sm:$0xff] %v11293_v57  ;;  %v2914_v32 = vsel %vm2906_vm3, %v2893_v43, %v2896_v19  ;;  %v3680_v24 = vshll.u32 %v11271_v12, 23  ;;  %v2912_v28 = vsel %vm2908_vm6, %v2896_v19, %v2911_v51  ;;  %v2915_v16 = vsel %vm2909_vm11, %v2902_v45, 920167782 }
 0x231   : > { %v2918_v59 = vsel %vm2906_vm3, %v2896_v19, %v2899_v47  ;;  %v8443_v36 = vadd.s32 4294967294, %v2526_v15  ;;  %v2916_v48 = vsel %vm2908_vm6, %v2899_v47, %v2915_v16  ;;  %v2919_v8 = vsel %vm2909_vm11, %v2905_v42, 1326507024 }
 0x232   : > { %v2982_v29 = vshrl.u32 %v2981_v41, 23  ;;  %v4081_v31 = vshll.u32 %v11293_v57, 30  ;;  %v2913_v0 = vsel %vm2907_vm1, %v2910_v17, %v2912_v28  ;;  %v2917_v35 = vsel %vm2907_vm1, %v2914_v32, %v2916_v48 }
 0x233   : > { %v2920_v18 = vsel %vm2908_vm6, %v2902_v45, %v2919_v8  ;;  %v11306_v5 = vmul.u32.u64.low %v2922_v50, %v2917_v35  ;;  %v11307_v51 = vmul.u32.u64.high %v2922_v50, %v2917_v35, %v11306_v5  ;;  %v15798_v15 = vxor.u32 2147483648, %v11177_v53 }
 0x234   : > { %v2921_v12 = vsel %vm2907_vm1, %v2918_v59, %v2920_v18  ;;  %v8461_v55 = vadd.s32 4294967169, %v2982_v29  ;;  %v11318_v19 = vand.u32 31, %v11262_v3  ;;  %v15801_v37 = vxor.u32 2147483648, %v11179_v1 }
 0x235   : > { %v11315_v43 = vsel %vm15664_vm4, %v15798_v15, %v11177_v53  ;;  %v11320_v32 = vmul.u32.u64.low %v2922_v50, %v2921_v12  ;;  %v11321_v47 = vmul.u32.u64.high %v2922_v50, %v2921_v12, %v11320_v32  ;;  %v15803_v42 = vxor.u32 2147483648, %v11238_v34 }
 0x236   : > { %15799 = vst [vmem:[#allocation67_spill] sm:$0xff] %v11315_v43  ;;  %15800 = vst [vmem:[#allocation68_spill] sm:$0xff] %v11318_v19  ;;  %v11328_v45 = vsel %vm15651_vm5, %v15801_v37, %v11179_v1  ;;  %v15805_v41 = vshll.u32 %v11112_v7, %v11241_v30  ;;  %v2988_v28 = vadd.s32 1, %v8461_v55  ;;  %vm8444_vm11 = vcmp.lt.s32.totalorder %v8443_v36, 0 }
 0x237   : > { %15802 = vst [vmem:[#allocation69_spill] sm:$0xff] %v11328_v45  ;;  %v11335_v53 = vsel %vm15641_vm9, %v15803_v42, %v11238_v34  ;;  %v11343_v16 = vsub.s32 %v11267_v26, %v4081_v31  ;;  %v8449_v59 = vadd.s32 4294967169, %v2670_v2  ;;  %v2929_v1 = vmul.u32 %v2922_v50, %v2913_v0  ;;  %v15808_v50 = vld [vmem:[#allocation16_spill] sm:$0xff] }
 0x238   : > { %15804 = vst [vmem:[#allocation70_spill] sm:$0xff] %v11335_v53  ;;  %v11340_v17 = vor.u32 %v3676_v54, %v15805_v41  ;;  %v11345_v48 = vor.u32 4788187, %v3680_v24  ;;  %v11348_v8 = vshrl.u32 %v11262_v3, 5  ;;  %v2932_v34 = vadd.s32 1, %v11307_v51 }
 0x239   : > { %vm2989_vm1 = vcmp.gt.s32.totalorder %v2988_v28, 0  ;;  %v2514_v7 = vadd.s32 %v11132_v10, %v11139_v11  ;;  %v11354_v30 = vsub.s32 32, %v11318_v19  ;;  %vm2931_vm3 = vc.u32 %v11321_v47, %v11306_v5 }
 0x23a   : > { %15806 = vst [vmem:[#allocation71_spill] sm:$0xff] %v11348_v8  ;;  %v2990_v26 = vsel %vm2989_vm1, %v2988_v28, 0  ;;  %v11359_v54 = vsel %vm8444_vm11, 0, %v8443_v36  ;;  %v2933_v3 = vsel %vm2931_vm3, %v2932_v34, %v11307_v51  ;;  %v4084_v24 = vsub.s32 0, %v11343_v16 }
 0x23b   : > { %15807 = vst [vmem:[#allocation72_spill] sm:$0xff] %v11354_v30  ;;  %v2992_v2 = vand.u32 31, %v2990_v26  ;;  %v11363_v29 = vadd.s32 1, %v8449_v59  ;;  %v2934_v31 = vadd.s32 %v2933_v3, %v2929_v1  ;;  %v15639_v10 = vand.u32 2147483647, %v11280_v27 }
 0x23c   : > { %v2534_v36 = vsub.s32 4294967266, %v11359_v54  ;;  %v2991_v12 = vshrl.u32 %v2990_v26, 5  ;;  %v2530_v41 = vsub.s32 32, %v11359_v54  ;;  %v8502_v28 = vmin.u32 %v4084_v24, %v11343_v16 }
 0x23d   : > { %v2993_v0 = vsub.s32 32, %v2992_v2  ;;  %v2995_v35 = vshll.u32 %v15714_v20, %v2992_v2  ;;  %v2998_v18 = vshll.u32 %v15715_v38, %v2992_v2  ;;  %v3001_v51 = vshll.u32 %v15716_v23, %v2992_v2 }
 0x23e   : > { %v3004_v55 = vshll.u32 %v15717_v46, %v2992_v2  ;;  %v2935_v15 = vadd.s32 536870912, %v2934_v31  ;;  %v2985_v59 = vand.u32 8388607, %v15639_v10  ;;  %v3007_v3 = vshll.u32 %v15718_v25, %v2992_v2 }
 0x23f   : > { %v2996_v32 = vshrl.u32 %v15715_v38, %v2993_v0  ;;  %v2999_v37 = vshrl.u32 %v15716_v23, %v2993_v0  ;;  %v3002_v42 = vshrl.u32 %v15717_v46, %v2993_v0  ;;  %v3005_v1 = vshrl.u32 %v15718_v25, %v2993_v0 }
 0x240   : > { %v15642_v11 = vand.u32 2147483647, %v15808_v50  ;;  %v2535_v57 = vadd.s32 127, %v2534_v36  ;;  %v2994_v53 = vshrl.u32 %v15714_v20, %v2993_v0  ;;  %v11383_v8 = vshrl.u32 %v2935_v15, 30 }
 0x241   : > { %v2997_v34 = vor.u32 %v2996_v32, %v2995_v35  ;;  %v3000_v26 = vor.u32 %v2999_v37, %v2998_v18  ;;  %v3003_v6 = vor.u32 %v3002_v42, %v3001_v51  ;;  %v3006_v60 = vor.u32 %v3005_v1, %v3004_v55 }
 0x242   : > { %15809 = vst [vmem:[#allocation16_spill] sm:$0xff] %v11383_v8  ;;  %v3008_v24 = vshrl.u32 %v15719_v14, %v2993_v0  ;;  %vm3010_vm6 = vcmp.lt.s32.totalorder %v2991_v12, 1  ;;  %vm3012_vm11 = vcmp.lt.s32.totalorder %v2991_v12, 3  ;;  %v4086_v10 = vclz %v8502_v28 }
 0x243   : > { %v2986_v30 = vor.u32 8388608, %v2985_v59  ;;  %vm3011_vm1 = vcmp.lt.s32.totalorder %v2991_v12, 2  ;;  %vm3013_vm3 = vcmp.lt.s32.totalorder %v2991_v12, 4  ;;  %v3018_v2 = vsel %vm3010_vm6, %v2997_v34, %v3000_v26 }
 0x244   : > { %v3009_v35 = vor.u32 %v3008_v24, %v3007_v3  ;;  %v3015_v18 = vsel %vm3013_vm3, %v3003_v6, 2102212464  ;;  %v3019_v32 = vsel %vm3013_vm3, %v3006_v60, 920167782  ;;  %v2531_v36 = vshll.u32 %v11231_v39, %v11359_v54 }
 0x245   : > { %v2532_v51 = vshrl.u32 %v2514_v7, %v2530_v41  ;;  %vm2677_vm9 = vcmp.gt.s32.totalorder %v11363_v29, 0  ;;  %v3020_v55 = vsel %vm3012_vm11, %v3003_v6, %v3019_v32  ;;  %v2937_v0 = vshll.u32 %v11383_v8, 30 }
 0x246   : > { %v3014_v15 = vsel %vm3010_vm6, %v2994_v53, %v2997_v34  ;;  %v3022_v37 = vsel %vm3010_vm6, %v3000_v26, %v3003_v6  ;;  %v3023_v42 = vsel %vm3013_vm3, %v3009_v35, 1326507024  ;;  %v3016_v28 = vsel %vm3012_vm11, %v3000_v26, %v3015_v18  ;;  %v15810_v53 = vld [vmem:[#allocation30_spill] sm:$0xff] }
 0x247   : > { %v3021_v59 = vsel %vm3011_vm1, %v3018_v2, %v3020_v55  ;;  %v3024_v1 = vsel %vm3012_vm11, %v3006_v60, %v3023_v42  ;;  %v3026_v3 = vshll.u32 %v2986_v30, 8  ;;  %v2536_v39 = vshll.u32 %v2535_v57, 23  ;;  %v15811_v57 = vld [vmem:[#allocation24_spill] sm:$0xff] }
 0x248   : > { %v8503_v7 = vadd.s32 4294967294, %v4086_v10  ;;  %v3025_v54 = vsel %vm3011_vm1, %v3022_v37, %v3024_v1  ;;  %v905_v41 = vand.u32 8388607, %v15642_v11  ;;  %v916_v6 = vshrl.u32 %v15715_v38, %v15810_v53 }
 0x249   : > { %v11400_v24 = vmul.u32.u64.low %v3026_v3, %v3025_v54  ;;  %v11401_v32 = vmul.u32.u64.high %v3026_v3, %v3025_v54, %v11400_v24  ;;  %v919_v34 = vshrl.u32 %v15716_v23, %v15810_v53  ;;  %v3017_v26 = vsel %vm3011_vm1, %v3014_v15, %v3016_v28 }
 0x24a   : > { %v11408_v60 = vmul.u32.u64.low %v3026_v3, %v3021_v59  ;;  %v11409_v30 = vmul.u32.u64.high %v3026_v3, %v3021_v59, %v11408_v60  ;;  %v915_v10 = vshll.u32 %v15714_v20, %v15811_v57  ;;  %v11414_v35 = vsub.s32 %v2934_v31, %v2937_v0 }
 0x24b   : > { %v918_v18 = vshll.u32 %v15715_v38, %v15811_v57  ;;  %v922_v2 = vshrl.u32 %v15717_v46, %v15810_v53  ;;  %v925_v55 = vshrl.u32 %v15718_v25, %v15810_v53  ;;  %v921_v12 = vshll.u32 %v15716_v23, %v15811_v57 }
 0x24c   : > { %v924_v15 = vshll.u32 %v15717_v46, %v15811_v57  ;;  %v927_v37 = vshll.u32 %v15718_v25, %v15811_v57  ;;  %v928_v31 = vshrl.u32 %v15719_v14, %v15810_v53  ;;  %v3033_v0 = vmul.u32 %v3026_v3, %v3017_v26 }
 0x24d   : > { %vm3035_vm6 = vc.u32 %v11401_v32, %v11408_v60  ;;  %v917_v42 = vor.u32 %v916_v6, %v915_v10  ;;  %v920_v28 = vor.u32 %v919_v34, %v918_v18  ;;  %v3036_v59 = vadd.s32 1, %v11409_v30 }
 0x24e   : > { %v923_v1 = vor.u32 %v922_v2, %v921_v12  ;;  %v926_v54 = vor.u32 %v925_v55, %v924_v15  ;;  %v929_v24 = vor.u32 %v928_v31, %v927_v37  ;;  %v15812_v11 = vand.u32 2147483647, %v11345_v48 }
 0x24f   : > { %v15813_v8 = vcvt.s32.f32 %v11340_v17  ;;  %v2533_v57 = vor.u32 %v2532_v51, %v2531_v36  ;;  %v2678_v3 = vsel %vm2677_vm9, %v11363_v29, 0  ;;  %v2940_v26 = vsub.s32 0, %v11414_v35  ;;  %v15814_v17 = vld [vmem:[#allocation23_spill] sm:$0xff] }
 0x250   : > { %v2537_v6 = vor.u32 4788187, %v2536_v39  ;;  %v3037_v34 = vsel %vm3035_vm6, %v3036_v59, %v11409_v30  ;;  %v906_v10 = vor.u32 8388608, %v905_v41  ;;  %v914_v18 = vshrl.u32 %v15714_v20, %v15810_v53 }
 0x251   : > { %v11437_v19 = vmul.f32 %v15813_v8, %v15812_v11  ;;  %vm8504_vm11 = vcmp.lt.s32.totalorder %v8503_v7, 0  ;;  %v11446_v48 = vadd.s32 %v3037_v34, %v3033_v0  ;;  %vm930_vm1 = vcmp.lt.s32.totalorder %v15814_v17, 1 }
 0x252   : > { %vm933_vm3 = vcmp.lt.s32.totalorder %v15814_v17, 4  ;;  %v938_v11 = vsel %vm930_vm1, %v917_v42, %v920_v28  ;;  %v8458_v51 = vmin.u32 %v2940_v26, %v11414_v35  ;;  %vm931_vm9 = vcmp.lt.s32.totalorder %v15814_v17, 2 }
 0x253   : > { %v935_v8 = vsel %vm933_vm3, %v923_v1, 2102212464  ;;  %v939_v36 = vsel %vm933_vm3, %v926_v54, 920167782  ;;  %v943_v29 = vsel %vm933_vm3, %v929_v24, 1326507024  ;;  %v942_v39 = vsel %vm930_vm1, %v920_v28, %v923_v1 }
 0x254   : > { %vm932_vm6 = vcmp.lt.s32.totalorder %v15814_v17, 3  ;;  %v3039_v41 = vadd.s32 536870912, %v11446_v48  ;;  %v946_v2 = vshll.u32 %v906_v10, 8  ;;  %v4089_v55 = vsel %vm8504_vm11, 0, %v8503_v7  ;;  %v15819_v17 = vld [vmem:[#allocation35_spill] sm:$0xff] }
 0x255   : > { %v940_v53 = vsel %vm932_vm6, %v923_v1, %v939_v36  ;;  %v944_v30 = vsel %vm932_vm6, %v926_v54, %v943_v29  ;;  %v934_v12 = vsel %vm930_vm1, %v914_v18, %v917_v42  ;;  %v936_v15 = vsel %vm932_vm6, %v920_v28, %v935_v8 }
 0x256   : > { %v941_v37 = vsel %vm931_vm9, %v938_v11, %v940_v53  ;;  %v2538_v31 = vand.u32 2147483647, %v2537_v6  ;;  %v945_v0 = vsel %vm931_vm9, %v942_v39, %v944_v30  ;;  %v2540_v26 = vcvt.s32.f32 %v2533_v57  ;;  %v15818_v57 = vld [vmem:[#allocation18_spill] sm:$0xff] }
 0x257   : > { %v11459_v59 = vmul.u32.u64.low %v946_v2, %v941_v37  ;;  %v11460_v24 = vmul.u32.u64.high %v946_v2, %v941_v37, %v11459_v59  ;;  %v11463_v34 = vshrl.u32 %v2678_v3, 5  ;;  %v4094_v7 = vsub.s32 4294967266, %v4089_v55 }
 0x258   : > { %v11465_v1 = vmul.u32.u64.low %v946_v2, %v945_v0  ;;  %v11466_v54 = vmul.u32.u64.high %v946_v2, %v945_v0, %v11465_v1  ;;  %v2942_v42 = vclz %v8458_v51  ;;  %v11468_v28 = vshrl.u32 %v3039_v41, 30 }
 0x259   : > { %15815 = vst [vmem:[#allocation30_spill] sm:$0xff] %v11463_v34  ;;  %v937_v6 = vsel %vm931_vm9, %v934_v12, %v936_v15  ;;  %v4074_v18 = vadd.s32 %v11234_v63, %v11244_v49  ;;  %v11475_v8 = vand.u32 31, %v2678_v3  ;;  %v15647_v11 = vand.u32 2147483647, %v15818_v57  ;;  %v15821_v34 = vld [vmem:[#allocation33_spill] sm:$0xff] }
 0x25a   : > { %15816 = vst [vmem:[#allocation24_spill] sm:$0xff] %v11468_v28  ;;  %v11478_v36 = vmul.f32 %v2540_v26, %v2538_v31  ;;  %v4090_v29 = vsub.s32 32, %v4089_v55  ;;  %v4091_v39 = vshll.u32 %v11343_v16, %v4089_v55  ;;  %v956_v51 = vadd.s32 1, %v11460_v24 }
 0x25b   : > { %15817 = vst [vmem:[#allocation23_spill] sm:$0xff] %v11475_v8  ;;  %v953_v41 = vmul.u32 %v946_v2, %v937_v6  ;;  %vm955_vm11 = vc.u32 %v11466_v54, %v11459_v59  ;;  %v1020_v53 = vshrl.u32 %v15715_v38, %v15819_v17  ;;  %v1023_v63 = vshrl.u32 %v15716_v23, %v15819_v17  ;;  %v15820_v2 = vld [vmem:[#allocation31_spill] sm:$0xff] }
 0x25c   : > { %v4095_v49 = vadd.s32 127, %v4094_v7  ;;  %v8459_v3 = vadd.s32 4294967294, %v2942_v42  ;;  %v3041_v30 = vshll.u32 %v11468_v28, 30  ;;  %v957_v12 = vsel %vm955_vm11, %v956_v51, %v11460_v24 }
 0x25d   : > { %v958_v15 = vadd.s32 %v957_v12, %v953_v41  ;;  %v1009_v16 = vand.u32 8388607, %v15647_v11  ;;  %v1019_v55 = vshll.u32 %v15714_v20, %v15820_v2  ;;  %v1022_v37 = vshll.u32 %v15715_v38, %v15820_v2 }
 0x25e   : > { %v1025_v31 = vshll.u32 %v15716_v23, %v15820_v2  ;;  %v1026_v0 = vshrl.u32 %v15717_v46, %v15819_v17  ;;  %v1028_v26 = vshll.u32 %v15717_v46, %v15820_v2  ;;  %v1029_v24 = vshrl.u32 %v15718_v25, %v15819_v17 }
 0x25f   : > { %v959_v1 = vadd.s32 536870912, %v958_v15  ;;  %v1021_v7 = vor.u32 %v1020_v53, %v1019_v55  ;;  %v1024_v42 = vor.u32 %v1023_v63, %v1022_v37  ;;  %v1032_v6 = vshrl.u32 %v15719_v14, %v15819_v17 }
 0x260   : > { %vm15663_vm1 = vcmp.lt.s32.totalorder %v10913_v40, 0  ;;  %v4092_v51 = vshrl.u32 %v4074_v18, %v4090_v29  ;;  %v1027_v41 = vor.u32 %v1026_v0, %v1025_v31  ;;  %v1030_v12 = vor.u32 %v1029_v24, %v1028_v26 }
 0x261   : > { %v1031_v11 = vshll.u32 %v15718_v25, %v15820_v2  ;;  %vm8460_vm3 = vcmp.lt.s32.totalorder %v8459_v3, 0  ;;  %v11510_v10 = vsub.s32 %v11446_v48, %v3041_v30  ;;  %v11512_v28 = vshrl.u32 %v959_v1, 30 }
 0x262   : > { %vm1037_vm9 = vcmp.lt.s32.totalorder %v15821_v34, 4  ;;  %v1010_v53 = vor.u32 8388608, %v1009_v16  ;;  %vm1034_vm6 = vcmp.lt.s32.totalorder %v15821_v34, 1  ;;  %v4096_v29 = vshll.u32 %v4095_v49, 23 }
 0x263   : > { %v1033_v63 = vor.u32 %v1032_v6, %v1031_v11  ;;  %v1043_v18 = vsel %vm1037_vm9, %v1030_v12, 920167782  ;;  %v961_v55 = vshll.u32 %v11512_v28, 30  ;;  %vm1036_vm11 = vcmp.lt.s32.totalorder %v15821_v34, 3 }
 0x264   : > { %v1042_v48 = vsel %vm1034_vm6, %v1021_v7, %v1024_v42  ;;  %v11522_v30 = vor.u32 %v4092_v51, %v4091_v39  ;;  %v2945_v2 = vsel %vm8460_vm3, 0, %v8459_v3  ;;  %v1018_v16 = vshrl.u32 %v15714_v20, %v15819_v17 }
 0x265   : > { %v1044_v11 = vsel %vm1036_vm11, %v1027_v41, %v1043_v18  ;;  %v3044_v37 = vsub.s32 0, %v11510_v10  ;;  %v11529_v31 = vsub.s32 %v958_v15, %v961_v55  ;;  %vm1035_vm5 = vcmp.lt.s32.totalorder %v15821_v34, 2 }
 0x266   : > { %v1039_v49 = vsel %vm1037_vm9, %v1027_v41, 2102212464  ;;  %v1045_v39 = vsel %vm1035_vm5, %v1042_v48, %v1044_v11  ;;  %v1046_v3 = vsel %vm1034_vm6, %v1024_v42, %v1027_v41  ;;  %v1047_v17 = vsel %vm1037_vm9, %v1033_v63, 1326507024 }
 0x267   : > { %v1050_v0 = vshll.u32 %v1010_v53, 8  ;;  %v11540_v26 = vor.u32 4788187, %v4096_v29  ;;  %v2950_v24 = vsub.s32 4294967266, %v2945_v2  ;;  %v964_v15 = vsub.s32 0, %v11529_v31 }
 0x268   : > { %v1038_v1 = vsel %vm1034_vm6, %v1018_v16, %v1021_v7  ;;  %v1040_v6 = vsel %vm1036_vm11, %v1024_v42, %v1039_v49  ;;  %v1048_v51 = vsel %vm1036_vm11, %v1030_v12, %v1047_v17  ;;  %v15822_v53 = vxor.u32 2147483648, %v11437_v19  ;;  %v749_v16 = vpop.permute.xlu1 %748 }
 0x269   : > { %v11549_v18 = vmul.u32.u64.low %v1050_v0, %v1045_v39  ;;  %v11550_v41 = vmul.u32.u64.high %v1050_v0, %v1045_v39, %v11549_v18  ;;  %v8462_v29 = vmin.u32 %v3044_v37, %v11510_v10  ;;  %v8382_v7 = vmin.u32 %v964_v15, %v11529_v31 }
 0x26a   : > { %v11558_v63 = vsel %vm15663_vm1, %v15822_v53, %v11437_v19  ;;  %v1049_v42 = vsel %vm1035_vm5, %v1046_v3, %v1048_v51  ;;  %v2946_v55 = vsub.s32 32, %v2945_v2  ;;  %vm900_vm3 = vcmp.lt.s32.totalorder %v15808_v50, 0 }
 0x26b   : > { %15823 = vst [vmem:[#allocation18_spill] sm:$0xff] %v11558_v63  ;;  %v11565_v12 = vmul.u32.u64.low %v1050_v0, %v1049_v42  ;;  %v11566_v48 = vmul.u32.u64.high %v1050_v0, %v1049_v42, %v11565_v12  ;;  %v2951_v49 = vadd.s32 127, %v2950_v24  ;;  %v966_v39 = vclz %v8382_v7 }
 0x26c   : > { %v1041_v19 = vsel %vm1035_vm5, %v1038_v1, %v1040_v6  ;;  %v2930_v3 = vadd.s32 %v11306_v5, %v11321_v47  ;;  %v15824_v15 = vand.u32 2147483647, %v15808_v50  ;;  %v1060_v53 = vadd.s32 1, %v11550_v41 }
 0x26d   : > { %v11584_v24 = vadd.s32 %v11408_v60, %v11401_v32  ;;  %v3046_v34 = vclz %v8462_v29  ;;  %v8383_v1 = vadd.s32 4294967294, %v966_v39  ;;  %v816_v6 = vmul.f32 %v11070_v22, %v749_v16  ;;  %v15827_v39 = vld [vmem:[#allocation19_spill] sm:$0xff] }
 0x26e   : > { %vm11577_vm9 = vcmp.le.f32.partialorder %v15824_v15, 0.7853982  ;;  %v2948_v7 = vshrl.u32 %v2930_v3, %v2946_v55  ;;  %v984_v42 = vsub.s32 4, %v11512_v28  ;;  %v1057_v5 = vmul.u32 %v1050_v0, %v1041_v19 }
 0x26f   : > { %vm1059_vm5 = vc.u32 %v11566_v48, %v11549_v18  ;;  %v2952_v47 = vshll.u32 %v2951_v49, 23  ;;  %vm8384_vm6 = vcmp.lt.s32.totalorder %v8383_v1, 0  ;;  %v848_v15 = vadd.f32 %v816_v6, %v10997_v33  ;;  %v11604_v33 = vld [vmem:[%s15514_s2] ss:$0 sm:$0xff] }
 0x270   : > { %v1061_v12 = vsel %vm1059_vm5, %v1060_v53, %v11550_v41  ;;  %v2947_v32 = vshll.u32 %v11414_v35, %v2945_v2  ;;  %v969_v60 = vsel %vm8384_vm6, 0, %v8383_v1  ;;  %v1192_v17 = vsub.s32 4, %v15827_v39  ;;  %v15829_v1 = vld [vmem:[#allocation13_spill] sm:$0xff] }
 0x271   : > { %v1062_v29 = vadd.s32 %v1061_v12, %v1057_v5  ;;  %v8463_v22 = vadd.s32 4294967294, %v3046_v34  ;;  %v954_v55 = vadd.s32 %v11459_v59, %v11466_v54  ;;  %v970_v0 = vsub.s32 32, %v969_v60 }
 0x272   : > { %v974_v16 = vsub.s32 4294967266, %v969_v60  ;;  %v11596_v19 = vor.u32 %v2948_v7, %v2947_v32  ;;  %v985_v41 = vsel %vm900_vm3, %v984_v42, %v11512_v28  ;;  %v11607_v35 = vadd.f32 %v11604_v33, %v848_v15 }
 0x273   : > { %v1063_v49 = vadd.s32 536870912, %v1062_v29  ;;  %v11609_v2 = vor.u32 4788187, %v2952_v47  ;;  %v971_v59 = vshll.u32 %v11529_v31, %v969_v60  ;;  %v972_v54 = vshrl.u32 %v954_v55, %v970_v0 }
 0x274   : > { %15828 = vst [vmem:[#allocation35_spill] sm:$0xff] %v11607_v35  ;;  %v975_v3 = vadd.s32 127, %v974_v16  ;;  %v15652_v34 = vand.u32 2147483647, %v11607_v35  ;;  %v3085_v28 = vand.u32 2139095040, %v11607_v35  ;;  %v1193_v6 = vsel %vm1108_vm14, %v1192_v17, %v15827_v39  ;;  %v15833_v17 = vld [vmem:[#allocation40_spill] sm:$0xff] }
 0x275   : > { %v1064_v53 = vshrl.u32 %v1063_v49, 30  ;;  %vm8464_vm11 = vcmp.lt.s32.totalorder %v8463_v22, 0  ;;  %v973_v7 = vor.u32 %v972_v54, %v971_v59  ;;  %v987_v5 = vsel %vm11577_vm9, 0, %v985_v41 }
 0x276   : > { %v976_v42 = vshll.u32 %v975_v3, 23  ;;  %v3086_v31 = vshrl.u32 %v3085_v28, 23  ;;  %v15830_v15 = vand.u32 2147483647, %v15829_v1  ;;  %v3089_v55 = vand.u32 8388607, %v15652_v34 }
 0x277   : > { %v1065_v47 = vshll.u32 %v1064_v53, 30  ;;  %v1088_v12 = vsub.s32 4, %v1064_v53  ;;  %v11633_v16 = vsel %vm8464_vm11, 0, %v8463_v22  ;;  %vm1004_vm14 = vcmp.lt.s32.totalorder %v15818_v57, 0 }
 0x278   : > { %vm11621_vm5 = vcmp.le.f32.partialorder %v15830_v15, 0.7853982  ;;  %v977_v60 = vor.u32 4788187, %v976_v42  ;;  %v8465_v49 = vadd.s32 4294967169, %v3086_v31  ;;  %v980_v54 = vcvt.s32.f32 %v973_v7 }
 0x279   : > { %v1194_v39 = vsel %vm11621_vm5, %v15829_v1, %v15833_v17  ;;  %v1195_v0 = vsel %vm11621_vm5, 0, %v1193_v6  ;;  %v11636_v41 = vsub.s32 %v1062_v29, %v1065_v47  ;;  %v991_v3 = vadd.s32 3, %v987_v5  ;;  %v15837_v5 = vld [vmem:[#allocation11_spill] sm:$0xff] }
 0x27a   : > { %v978_v59 = vand.u32 2147483647, %v977_v60  ;;  %v1089_v28 = vsel %vm1004_vm14, %v1088_v12, %v1064_v53  ;;  %v3092_v15 = vadd.s32 1, %v8465_v49  ;;  %9347 = vcosq.f32 %v1194_v39  ;;  %v15842_v6 = vld [vmem:[#allocation15_spill] sm:$0xff] }
 0x27b   : > { %v1068_v42 = vsub.s32 0, %v11636_v41  ;;  %v1199_v17 = vadd.s32 3, %v1195_v0  ;;  %v15834_v32 = vand.u32 2147483647, %v15818_v57  ;;  %v3090_v47 = vor.u32 8388608, %v3089_v55 }
 0x27c   : > { %v981_v22 = vmul.f32 %v980_v54, %v978_v59  ;;  %vm3093_vm11 = vcmp.gt.s32.totalorder %v3092_v15, 0  ;;  %v15838_v12 = vand.u32 2147483647, %v15837_v5  ;;  %v11657_v0 = vand.u32 3, %v991_v3  ;;  %v15841_v59 = vld [vmem:[#allocation34_spill] sm:$0xff] }
 0x27d   : > { %vm11644_vm6 = vcmp.le.f32.partialorder %v15834_v32, 0.7853982  ;;  %v8386_v7 = vmin.u32 %v1068_v42, %v11636_v41  ;;  %v3094_v49 = vsel %vm3093_vm11, %v3092_v15, 0  ;;  %v1058_v54 = vadd.s32 %v11549_v18, %v11566_v48 }
 0x27e   : > { %v1091_v53 = vsel %vm11644_vm6, 0, %v1089_v28  ;;  %vm11653_vm5 = vcmp.le.f32.partialorder %v15838_v12, 0.7853982  ;;  %v982_v60 = vxor.u32 2147483648, %v981_v22  ;;  %9349 = vsinq.f32 %v1194_v39 }
 0x27f   : > { %v11663_v55 = vsel %vm11653_vm5, %v15837_v5, %v15841_v59  ;;  %v1070_v28 = vclz %v8386_v7  ;;  %v11667_v42 = vand.u32 3, %v1199_v17  ;;  %v11671_v12 = vadd.s32 3, %v1091_v53 }
 0x280   : > { %v983_v32 = vsel %vm900_vm3, %v982_v60, %v981_v22  ;;  %v3096_v3 = vand.u32 31, %v3094_v49  ;;  %v11673_v15 = vshll.u32 %v3090_v47, 8  ;;  %v1296_v37 = vsub.s32 4, %v15842_v6 }
 0x281   : > { %v986_v59 = vsel %vm11577_vm9, %v15808_v50, %v983_v32  ;;  %v8387_v34 = vadd.s32 4294967294, %v1070_v28  ;;  %9351 = vcosq.f32 %v11663_v55  ;;  %v11680_v18 = vshrl.u32 %v3094_v49, 5 }
 0x282   : > { %9353 = vcosq.f32 %v986_v59  ;;  %v3097_v48 = vsub.s32 32, %v3096_v3  ;;  %v3099_v39 = vshll.u32 %v15714_v20, %v3096_v3  ;;  %v3102_v17 = vshll.u32 %v15715_v38, %v3096_v3 }
 0x283   : > { %9355 = vsinq.f32 %v986_v59  ;;  %vm8388_vm3 = vcmp.lt.s32.totalorder %v8387_v34, 0  ;;  %v3105_v22 = vshll.u32 %v15716_v23, %v3096_v3  ;;  %v3108_v53 = vshll.u32 %v15717_v46, %v3096_v3 }
 0x284   : > { %v1073_v47 = vsel %vm8388_vm3, 0, %v8387_v34  ;;  %v3100_v51 = vshrl.u32 %v15715_v38, %v3097_v48  ;;  %v3103_v7 = vshrl.u32 %v15716_v23, %v3097_v48  ;;  %v11688_v60 = vpop.eup %9347  ;;  %v3106_v59 = vshrl.u32 %v15717_v46, %v3097_v48 }
 0x285   : > { %v1074_v49 = vsub.s32 32, %v1073_v47  ;;  %v1075_v28 = vshll.u32 %v11636_v41, %v1073_v47  ;;  %v1078_v32 = vsub.s32 4294967266, %v1073_v47  ;;  %v3109_v40 = vshrl.u32 %v15718_v25, %v3097_v48 }
 0x286   : > { %v3101_v11 = vor.u32 %v3100_v51, %v3099_v39  ;;  %v3104_v63 = vor.u32 %v3103_v7, %v3102_v17  ;;  %v3111_v34 = vshll.u32 %v15718_v25, %v3096_v3  ;;  %v3107_v62 = vor.u32 %v3106_v59, %v3105_v22 }
 0x287   : > { %v1076_v61 = vshrl.u32 %v1058_v54, %v1074_v49  ;;  %v1079_v56 = vadd.s32 127, %v1078_v32  ;;  %v3112_v45 = vshrl.u32 %v15719_v14, %v3097_v48  ;;  %v3098_v21 = vshrl.u32 %v15714_v20, %v3097_v48 }
 0x288   : > { %v3110_v35 = vor.u32 %v3109_v40, %v3108_v53  ;;  %vm3114_vm9 = vcmp.lt.s32.totalorder %v11680_v18, 1  ;;  %v1206_v41 = vxor.u32 2147483648, %v11688_v60  ;;  %v9350_v47 = vpop.eup %9349  ;;  %vm3117_vm11 = vcmp.lt.s32.totalorder %v11680_v18, 4 }
 0x289   : > { %v1077_v43 = vor.u32 %v1076_v61, %v1075_v28  ;;  %v1080_v39 = vshll.u32 %v1079_v56, 23  ;;  %v3113_v17 = vor.u32 %v3112_v45, %v3111_v34  ;;  %vm3116_vm3 = vcmp.lt.s32.totalorder %v11680_v18, 3 }
 0x28a   : > { %v3119_v54 = vsel %vm3117_vm11, %v3107_v62, 2102212464  ;;  %v3122_v3 = vsel %vm3114_vm9, %v3101_v11, %v3104_v63  ;;  %v3123_v22 = vsel %vm3117_vm11, %v3110_v35, 920167782  ;;  %vm994_vm1 = vcmp.eq.s32.totalorder %v11657_v0, 0 }
 0x28b   : > { %v11702_v51 = vpop.eup %9351  ;;  %v1081_v40 = vor.u32 4788187, %v1080_v39  ;;  %vm3115_vm4 = vcmp.lt.s32.totalorder %v11680_v18, 2  ;;  %v3124_v56 = vsel %vm3116_vm3, %v3107_v62, %v3123_v22  ;;  %v1297_v61 = vsel %vm1212_vm15, %v1296_v37, %v15842_v6 }
 0x28c   : > { %v9354_v45 = vpop.eup %9353  ;;  %v3118_v48 = vsel %vm3114_vm9, %v3098_v21, %v3101_v11  ;;  %v3125_v7 = vsel %vm3115_vm4, %v3122_v3, %v3124_v56  ;;  %v3126_v53 = vsel %vm3114_vm9, %v3104_v63, %v3107_v62  ;;  %v3127_v49 = vsel %vm3117_vm11, %v3113_v17, 1326507024 }
 0x28d   : > { %v9356_v28 = vpop.eup %9355  ;;  %v1082_v32 = vand.u32 2147483647, %v1081_v40  ;;  %v1084_v59 = vcvt.s32.f32 %v1077_v43  ;;  %v3120_v34 = vsel %vm3116_vm3, %v3104_v63, %v3119_v54  ;;  %v3128_v37 = vsel %vm3116_vm3, %v3110_v35, %v3127_v49 }
 0x28e   : > { %v3129_v6 = vsel %vm3115_vm4, %v3126_v53, %v3128_v37  ;;  %v11724_v21 = vmul.u32.u64.low %v11673_v15, %v3125_v7  ;;  %v11725_v11 = vmul.u32.u64.high %v11673_v15, %v3125_v7, %v11724_v21  ;;  %v1299_v62 = vsel %vm11653_vm5, 0, %v1297_v61 }
 0x28f   : > { %v998_v39 = vxor.u32 2147483648, %v9354_v45  ;;  %v1085_v17 = vmul.f32 %v1084_v59, %v1082_v32  ;;  %v11731_v43 = vmul.u32.u64.low %v11673_v15, %v3129_v6  ;;  %v11732_v3 = vmul.u32.u64.high %v11673_v15, %v3129_v6, %v11731_v43  ;;  %v15846_v59 = vld [vmem:[#allocation36_spill] sm:$0xff] }
 0x290   : > { %vm993_vm15 = vcmp.lt.s32.totalorder %v11657_v0, 2  ;;  %v995_v63 = vxor.u32 2147483648, %v9356_v28  ;;  %vm997_vm9 = vcmp.eq.s32.totalorder %v11657_v0, 2  ;;  %v3121_v35 = vsel %vm3115_vm4, %v3118_v48, %v3120_v34 }
 0x291   : > { %9357 = vsinq.f32 %v11663_v55  ;;  %v1086_v54 = vxor.u32 2147483648, %v1085_v17  ;;  %vm1202_vm11 = vcmp.eq.s32.totalorder %v11667_v42, 0  ;;  %v1203_v31 = vxor.u32 2147483648, %v9350_v47 }
 0x292   : > { %vm1205_vm5 = vcmp.eq.s32.totalorder %v11667_v42, 2  ;;  %v11742_v22 = vand.u32 3, %v11671_v12  ;;  %v3140_v40 = vadd.s32 1, %v11725_v11  ;;  %v1303_v61 = vadd.s32 3, %v1299_v62 }
 0x293   : > { %v1207_v56 = vsel %vm1205_vm5, %v1206_v41, %v9350_v47  ;;  %v999_v7 = vsel %vm997_vm9, %v998_v39, %v9356_v28  ;;  %v1087_v18 = vsel %vm1004_vm14, %v1086_v54, %v1085_v17  ;;  %v3137_v48 = vmul.u32 %v11673_v15, %v3121_v35  ;;  %v15843_v41 = vld [vmem:[#allocation17_spill] sm:$0xff]  ;;  %v15844_v28 = vld [vmem:[#allocation12_spill] sm:$0xff]  ;;  %v15850_v17 = vld [vmem:[#allocation27_spill] sm:$0xff] }
 0x294   : > { %vm3139_vm4 = vc.u32 %v11732_v3, %v11724_v21  ;;  %v996_v55 = vsel %vm994_vm1, %v9354_v45, %v995_v63  ;;  %v1090_v12 = vsel %vm11644_vm6, %v15818_v57, %v1087_v18  ;;  %v1400_v47 = vsub.s32 4, %v15843_v41  ;;  %v15852_v54 = vld [vmem:[#allocation47_spill] sm:$0xff] }
 0x295   : > { %v3141_v53 = vsel %vm3139_vm4, %v3140_v40, %v11725_v11  ;;  %vm990_vm3 = vweird.f32 %v15808_v50  ;;  %9359 = vcosq.f32 %v1090_v12  ;;  %v1204_v15 = vsel %vm1202_vm11, %v11688_v60, %v1203_v31 }
 0x296   : > { %v3142_v49 = vadd.s32 %v3141_v53, %v3137_v48  ;;  %v15845_v32 = vand.u32 2147483647, %v15844_v28  ;;  %9361 = vsinq.f32 %v1090_v12  ;;  %vm1198_vm1 = vweird.f32 %v15829_v1 }
 0x297   : > { %v1304_v29 = vand.u32 3, %v1303_v61  ;;  %v1401_v45 = vsel %vm1316_vm0, %v1400_v47, %v15843_v41  ;;  %v1310_v6 = vxor.u32 2147483648, %v11702_v51  ;;  %v15847_v62 = vand.u32 2147483647, %v9989_v4 }
 0x298   : > { %vm1315_vm14 = vcmp.le.f32.partialorder %v15845_v32, 0.7853982  ;;  %v3143_v37 = vadd.s32 536870912, %v3142_v49  ;;  %v1504_v43 = vsub.s32 4, %v15850_v17  ;;  %v1000_v63 = vsel %vm993_vm15, %v996_v55, %v999_v7  ;;  %v15853_v55 = vld [vmem:[#allocation21_spill] sm:$0xff]  ;;  %v15857_v32 = vld [vmem:[#allocation28_spill] sm:$0xff] }
 0x299   : > { %v1402_v34 = vsel %vm1315_vm14, %v15844_v28, %v15846_v59  ;;  %v1403_v11 = vsel %vm1315_vm14, 0, %v1401_v45  ;;  %vm11772_vm6 = vcmp.le.f32.partialorder %v15847_v62, 0.7853982  ;;  %vm1201_vm0 = vcmp.lt.s32.totalorder %v11667_v42, 2 }
 0x29a   : > { %9363 = vcosq.f32 %v1402_v34  ;;  %v1407_v60 = vadd.s32 3, %v1403_v11  ;;  %v11779_v35 = vshrl.u32 %v3143_v37, 30  ;;  %v1506_v31 = vsel %vm11772_vm6, %v9989_v4, %v15852_v54 }
 0x29b   : > { %9365 = vsinq.f32 %v1402_v34  ;;  %v9358_v40 = vpop.eup %9357  ;;  %vm1098_vm9 = vcmp.eq.s32.totalorder %v11742_v22, 0  ;;  %v1208_v61 = vsel %vm1201_vm0, %v1204_v15, %v1207_v56  ;;  %vm1309_vm11 = vcmp.eq.s32.totalorder %v1304_v29, 2  ;;  %v15858_v34 = vld [vmem:[#allocation49_spill] sm:$0xff] }
 0x29c   : > { %15851 = vst [vmem:[#allocation31_spill] sm:$0xff] %v11779_v35  ;;  %v1505_v18 = vsel %vm1420_vm10, %v1504_v43, %v15850_v17  ;;  %9367 = vcosq.f32 %v1506_v31  ;;  %vm1097_vm15 = vcmp.lt.s32.totalorder %v11742_v22, 2  ;;  %v3145_v0 = vshll.u32 %v11779_v35, 30 }
 0x29d   : > { %v1307_v42 = vxor.u32 2147483648, %v9358_v40  ;;  %v11792_v7 = vand.u32 3, %v1407_v60  ;;  %v1507_v48 = vsel %vm11772_vm6, 0, %v1505_v18  ;;  %vm1094_vm5 = vweird.f32 %v15818_v57  ;;  %v584_v18 = vpop.permute.xlu1 %583  ;;  %v15865_v57 = vld [vmem:[#allocation46_spill] sm:$0xff] }
 0x29e   : > { %vm1306_vm4 = vcmp.eq.s32.totalorder %v1304_v29, 0  ;;  %v1311_v56 = vsel %vm1309_vm11, %v1310_v6, %v9358_v40  ;;  %9369 = vsinq.f32 %v1506_v31  ;;  %v15854_v12 = vand.u32 2147483647, %v15853_v55 }
 0x29f   : > { %vm15696_vm10 = vcmask 261120   ;;  %v11803_v41 = vsub.s32 %v3142_v49, %v3145_v0  ;;  %v1308_v47 = vsel %vm1306_vm4, %v11702_v51, %v1307_v42  ;;  %v1511_v15 = vadd.s32 3, %v1507_v48  ;;  %v9360_v6 = vpop.eup %9359  ;;  %v15859_v48 = vld [vmem:[#allocation57_spill] sm:$0xff] }
 0x2a0   : > { %vm11799_vm14 = vcmp.le.f32.partialorder %v15854_v12, 0.7853982  ;;  %v1608_v45 = vsub.s32 4, %v15857_v32  ;;  %v1001_v59 = vsel %vm990_vm3, nan, %v1000_v63  ;;  %vm1101_vm6 = vcmp.eq.s32.totalorder %v11742_v22, 2  ;;  %v9362_v50 = vpop.eup %9361 }
 0x2a1   : > { %vm1302_vm0 = vweird.f32 %v15837_v5  ;;  %v1610_v37 = vsel %vm11799_vm14, %v15853_v55, %v15858_v34  ;;  %v3148_v49 = vsub.s32 0, %v11803_v41  ;;  %v1209_v51 = vsel %vm1198_vm1, nan, %v1208_v61  ;;  %v15864_v5 = vld [vmem:[#allocation26_spill] sm:$0xff] }
 0x2a2   : > { %vm1305_vm11 = vcmp.lt.s32.totalorder %v1304_v29, 2  ;;  %vm1409_vm4 = vcmp.lt.s32.totalorder %v11792_v7, 2  ;;  %v1102_v11 = vxor.u32 2147483648, %v9360_v6  ;;  %v1609_v62 = vsel %vm1524_vm12, %v1608_v45, %v15857_v32 }
 0x2a3   : > { %v1312_v60 = vsel %vm1305_vm11, %v1308_v47, %v1311_v56  ;;  %9371 = vcosq.f32 %v1610_v37  ;;  %v1099_v17 = vxor.u32 2147483648, %v9362_v50  ;;  %vm1410_vm3 = vcmp.eq.s32.totalorder %v11792_v7, 0  ;;  %v15860_v47 = vld [vmem:[#allocation14_spill] sm:$0xff] }
 0x2a4   : > { %v9364_v39 = vpop.eup %9363  ;;  %vm1413_vm7 = vcmp.eq.s32.totalorder %v11792_v7, 2  ;;  %v1512_v43 = vand.u32 3, %v1511_v15  ;;  %v1103_v29 = vsel %vm1101_vm6, %v1102_v11, %v9362_v50  ;;  %v8466_v63 = vmin.u32 %v3148_v49, %v11803_v41 }
 0x2a5   : > { %v9366_v1 = vpop.eup %9365  ;;  %v1414_v54 = vxor.u32 2147483648, %v9364_v39  ;;  %9373 = vsinq.f32 %v1610_v37  ;;  %v1100_v31 = vsel %vm1098_vm9, %v9360_v6, %v1099_v17  ;;  %v1313_v40 = vsel %vm1302_vm0, nan, %v1312_v60 }
 0x2a6   : > { %v1411_v61 = vxor.u32 2147483648, %v9366_v1  ;;  %v1611_v0 = vsel %vm11799_vm14, 0, %v1609_v62  ;;  %v9368_v42 = vpop.eup %9367  ;;  %vm2460_vm12 = vcmp.lt.s32.totalorder %v15859_v48, 0  ;;  %v1104_v56 = vsel %vm1097_vm15, %v1100_v31, %v1103_v29  ;;  %v11866_v29 = vld [vmem:[%s15513_s1] ss:$0 sm:$0xff] }
 0x2a7   : > { %v4232_v12 = vpack.c.bf16 %v1313_v40, %v1209_v51  ;;  %v15861_v15 = vand.u32 2147483647, %v15860_v47  ;;  %v1712_v45 = vsub.s32 4, %v15864_v5  ;;  %v1105_v34 = vsel %vm1094_vm5, nan, %v1104_v56 }
 0x2a8   : > { %v1412_v53 = vsel %vm1410_vm3, %v9364_v39, %v1411_v61  ;;  %v1415_v37 = vsel %vm1413_vm7, %v1414_v54, %v9366_v1  ;;  %v1518_v22 = vxor.u32 2147483648, %v9368_v42  ;;  %v9370_v6 = vpop.eup %9369  ;;  %v4231_v49 = vpack.c.bf16 %v1105_v34, %v1001_v59  ;;  %v757_v54 = vpop.permute.xlu1 %756 }
 0x2a9   : > { %vm11838_vm1 = vcmp.le.f32.partialorder %v15861_v15, 0.7853982  ;;  %v3150_v51 = vclz %v8466_v63  ;;  %vm1517_vm9 = vcmp.eq.s32.totalorder %v1512_v43, 2  ;;  %v1615_v50 = vadd.s32 3, %v1611_v0 }
 0x2aa   : > { %v1515_v11 = vxor.u32 2147483648, %v9370_v6  ;;  %v1519_v60 = vsel %vm1517_vm9, %v1518_v22, %v9370_v6  ;;  %v1713_v62 = vsel %vm1628_vm8, %v1712_v45, %v15864_v5  ;;  %v1714_v39 = vsel %vm11838_vm1, %v15860_v47, %v15865_v57  ;;  %8849 = vmatprep.mubr.msk.bf16.mxu0 %vm15696_vm10, %v4231_v49 }
 0x2ab   : > { %v3054_v17 = vsub.s32 4294967266, %v11633_v16  ;;  %vm1406_vm7 = vweird.f32 %v15844_v28  ;;  %v1416_v59 = vsel %vm1409_vm4, %v1412_v53, %v1415_v37  ;;  %vm1514_vm15 = vcmp.eq.s32.totalorder %v1512_v43, 0  ;;  %8850 = vmatmul.mubr.msk.bf16.vlgmr.msra.gmra.mrb[0].mxu0 %vm15696_vm10, %v4232_v12 }
 0x2ac   : > { %vm1510_vm5 = vweird.f32 %v9989_v4  ;;  %vm1513_vm8 = vcmp.lt.s32.totalorder %v1512_v43, 2  ;;  %v1516_v1 = vsel %vm1514_vm15, %v9368_v42, %v1515_v11  ;;  %v653_v63 = vmul.f32 %v11866_v29, %v584_v18  ;;  %v11874_v18 = vld [vmem:[%s15513_s1 + $0x1] ss:$0 sm:$0xff]  ;;  %v589_v6 = vpop.permute.xlu1 %588  ;;  %v15871_v11 = vld [vmem:[#allocation37_spill] sm:$0xff] }
 0x2ad   : > { %v9372_v31 = vpop.eup %9371  ;;  %v8467_v28 = vadd.s32 4294967294, %v3150_v51  ;;  %v1520_v40 = vsel %vm1513_vm8, %v1516_v1, %v1519_v60  ;;  %v1715_v7 = vsel %vm11838_vm1, 0, %v1713_v62  ;;  %9375 = vcosq.f32 %v1714_v39 }
 0x2ae   : > { %v1417_v61 = vsel %vm1406_vm7, nan, %v1416_v59  ;;  %v1521_v0 = vsel %vm1510_vm5, nan, %v1520_v40  ;;  %v1616_v4 = vand.u32 3, %v1615_v50  ;;  %v1622_v43 = vxor.u32 2147483648, %v9372_v31 }
 0x2af   : > { %v9374_v42 = vpop.eup %9373  ;;  %v4233_v56 = vpack.c.bf16 %v1521_v0, %v1417_v61  ;;  %9377 = vsinq.f32 %v1714_v39  ;;  %v1719_v12 = vadd.s32 3, %v1715_v7  ;;  %v818_v15 = vmul.f32 %v11874_v18, %v757_v54  ;;  %v15876_v61 = vld [vmem:[#allocation50_spill] sm:$0xff] }
 0x2b0   : > { %v15866_v32 = vxor.u32 2147483648, %v11478_v36  ;;  %v15867_v45 = vand.u32 2147483647, %v11540_v26  ;;  %v15868_v34 = vcvt.s32.f32 %v11522_v30  ;;  %v11891_v37 = vsub.s32 32, %v11475_v8 }
 0x2b1   : > { %v1619_v22 = vxor.u32 2147483648, %v9374_v42  ;;  %v15870_v50 = vsub.s32 32, %v11633_v16  ;;  %8853 = vmatprep.mubr.msk.bf16.mxu0 %vm15696_vm10, %v4233_v56  ;;  %v850_v26 = vadd.f32 %v818_v15, %v653_v63  ;;  %v3051_v30 = vshll.u32 %v11510_v10, %v11633_v16 }
 0x2b2   : > { %v11882_v5 = vsel %vm2460_vm12, %v15866_v32, %v11478_v36  ;;  %v11888_v53 = vmul.f32 %v15868_v34, %v15867_v45  ;;  %15869 = vst [vmem:[#allocation33_spill] sm:$0xff] %v11891_v37  ;;  %vm8468_vm14 = vcmp.lt.s32.totalorder %v8467_v28, 0  ;;  %vm1621_vm6 = vcmp.eq.s32.totalorder %v1616_v4, 2  ;;  %v15878_v45 = vld [vmem:[#allocation29_spill] sm:$0xff] }
 0x2b3   : > { %v3052_v36 = vshrl.u32 %v11584_v24, %v15870_v50  ;;  %v1816_v60 = vsub.s32 4, %v15871_v11  ;;  %v11902_v62 = vadd.s32 127, %v3054_v17  ;;  %vm1618_vm0 = vcmp.eq.s32.totalorder %v1616_v4, 0  ;;  %v15872_v24 = vld [vmem:[#allocation25_spill] sm:$0xff] }
 0x2b4   : > { %v1623_v57 = vsel %vm1621_vm6, %v1622_v43, %v9374_v42  ;;  %v1720_v39 = vand.u32 3, %v1719_v12  ;;  %v1620_v59 = vsel %vm1618_vm0, %v9372_v31, %v1619_v22  ;;  %v11905_v1 = vadd.f32 %v11604_v33, %v850_v26  ;;  %v761_v43 = vpop.permute.xlu1 %760 }
 0x2b5   : > { %v15873_v54 = vand.u32 2147483647, %v15872_v24  ;;  %v1817_v10 = vsel %vm1732_vm13, %v1816_v60, %v15871_v11  ;;  %v11916_v16 = vor.u32 %v3052_v36, %v3051_v30  ;;  %v11918_v17 = vsel %vm8468_vm14, 0, %v8467_v28  ;;  %v15877_v28 = vld [vmem:[#allocation39_spill] sm:$0xff]  ;;  %v15882_v30 = vld [vmem:[#allocation52_spill] sm:$0xff] }
 0x2b6   : > { %vm1614_vm4 = vweird.f32 %v15853_v55  ;;  %vm1617_vm3 = vcmp.lt.s32.totalorder %v1616_v4, 2  ;;  %v15666_v40 = vand.u32 2147483647, %v11905_v1  ;;  %v3293_v7 = vand.u32 2139095040, %v11905_v1 }
 0x2b7   : > { %vm11909_vm11 = vcmp.le.f32.partialorder %v15873_v54, 0.7853982  ;;  %v9376_v42 = vpop.eup %9375  ;;  %v1624_v56 = vsel %vm1617_vm3, %v1620_v59, %v1623_v57  ;;  %vm1718_vm13 = vweird.f32 %v15860_v47  ;;  %vm1725_vm1 = vcmp.eq.s32.totalorder %v1720_v39, 2 }
 0x2b8   : > { %v1819_v31 = vsel %vm11909_vm11, 0, %v1817_v10  ;;  %v1818_v0 = vsel %vm11909_vm11, %v15872_v24, %v15876_v61  ;;  %v1920_v12 = vsub.s32 4, %v15877_v28  ;;  %v1726_v15 = vxor.u32 2147483648, %v9376_v42  ;;  %v765_v61 = vpop.permute.xlu1 %764 }
 0x2b9   : > { %v3294_v32 = vshrl.u32 %v3293_v7, 23  ;;  %v1823_v4 = vadd.s32 3, %v1819_v31  ;;  %v15879_v34 = vand.u32 2147483647, %v15878_v45  ;;  %v9378_v50 = vpop.eup %9377  ;;  %v3297_v36 = vand.u32 8388607, %v15666_v40 }
 0x2ba   : > { %9379 = vsinq.f32 %v1818_v0  ;;  %v1921_v26 = vsel %vm1836_vm2, %v1920_v12, %v15877_v28  ;;  %v1723_v60 = vxor.u32 2147483648, %v9378_v50  ;;  %v1727_v57 = vsel %vm1725_vm1, %v1726_v15, %v9378_v50 }
 0x2bb   : > { %vm11933_vm9 = vcmp.le.f32.partialorder %v15879_v34, 0.7853982  ;;  %v8473_v59 = vadd.s32 4294967169, %v3294_v32  ;;  %9381 = vcosq.f32 %v1818_v0  ;;  %v1625_v54 = vsel %vm1614_vm4, nan, %v1624_v56 }
 0x2bc   : > { %v1922_v11 = vsel %vm11933_vm9, %v15878_v45, %v15882_v30  ;;  %vm1721_vm7 = vcmp.lt.s32.totalorder %v1720_v39, 2  ;;  %vm1722_vm15 = vcmp.eq.s32.totalorder %v1720_v39, 0  ;;  %v654_v63 = vmul.f32 %v11866_v29, %v589_v6 }
 0x2bd   : > { %v1724_v10 = vsel %vm1722_vm15, %v9376_v42, %v1723_v60  ;;  %v3300_v31 = vadd.s32 1, %v8473_v59  ;;  %v1923_v7 = vsel %vm11933_vm9, 0, %v1921_v26  ;;  %9383 = vcosq.f32 %v1922_v11 }
 0x2be   : > { %v1728_v28 = vsel %vm1721_vm7, %v1724_v10, %v1727_v57  ;;  %v3298_v12 = vor.u32 8388608, %v3297_v36  ;;  %v11951_v34 = vand.u32 3, %v1823_v4  ;;  %v1927_v15 = vadd.s32 3, %v1923_v7  ;;  %v15883_v10 = vld [vmem:[#allocation56_spill] sm:$0xff] }
 0x2bf   : > { %v1729_v55 = vsel %vm1718_vm13, nan, %v1728_v28  ;;  %vm3301_vm2 = vcmp.gt.s32.totalorder %v3300_v31, 0  ;;  %v819_v6 = vmul.f32 %v11874_v18, %v761_v43  ;;  %v820_v32 = vmul.f32 %v11874_v18, %v765_v61 }
 0x2c0   : > { %v4234_v42 = vpack.c.bf16 %v1729_v55, %v1625_v54  ;;  %v3302_v56 = vsel %vm3301_vm2, %v3300_v31, 0  ;;  %9385 = vsinq.f32 %v1922_v11  ;;  %v11961_v36 = vshll.u32 %v3298_v12, 8 }
 0x2c1   : > { %v3303_v50 = vshrl.u32 %v3302_v56, 5  ;;  %v3304_v4 = vand.u32 31, %v3302_v56  ;;  %vm1826_vm5 = vcmp.eq.s32.totalorder %v11951_v34, 0  ;;  %v11964_v47 = vand.u32 3, %v1927_v15 }
 0x2c2   : > { %8854 = vmatmul.mubr.msk.bf16.gmra.mrb[4].mxu0 %vm15696_vm10, %v4234_v42  ;;  %v851_v43 = vadd.f32 %v819_v6, %v654_v63  ;;  %vm1829_vm8 = vcmp.eq.s32.totalorder %v11951_v34, 2  ;;  %v852_v31 = vadd.f32 %v820_v32, %v15883_v10  ;;  %vm1822_vm4 = vweird.f32 %v15872_v24 }
 0x2c3   : > { %v3305_v26 = vsub.s32 32, %v3304_v4  ;;  %v3307_v30 = vshll.u32 %v15714_v20, %v3304_v4  ;;  %v3310_v60 = vshll.u32 %v15715_v38, %v3304_v4  ;;  %v3313_v57 = vshll.u32 %v15716_v23, %v3304_v4 }
 0x2c4   : > { %v9380_v59 = vpop.eup %9379  ;;  %v3316_v11 = vshll.u32 %v15717_v46, %v3304_v4  ;;  %v3319_v54 = vshll.u32 %v15718_v25, %v3304_v4  ;;  %vm3322_vm14 = vcmp.lt.s32.totalorder %v3303_v50, 1  ;;  %vm3323_vm6 = vcmp.lt.s32.totalorder %v3303_v50, 2 }
 0x2c5   : > { %v9382_v7 = vpop.eup %9381  ;;  %v3306_v63 = vshrl.u32 %v15714_v20, %v3305_v26  ;;  %v3308_v61 = vshrl.u32 %v15715_v38, %v3305_v26  ;;  %v3311_v28 = vshrl.u32 %v15716_v23, %v3305_v26  ;;  %v3314_v12 = vshrl.u32 %v15717_v46, %v3305_v26 }
 0x2c6   : > { %v3317_v15 = vshrl.u32 %v15718_v25, %v3305_v26  ;;  %v3320_v55 = vshrl.u32 %v15719_v14, %v3305_v26  ;;  %vm3325_vm0 = vcmp.lt.s32.totalorder %v3303_v50, 4  ;;  %v1827_v32 = vxor.u32 2147483648, %v9380_v59 }
 0x2c7   : > { %v9384_v6 = vpop.eup %9383  ;;  %v3309_v42 = vor.u32 %v3308_v61, %v3307_v30  ;;  %v3312_v56 = vor.u32 %v3311_v28, %v3310_v60  ;;  %v3315_v4 = vor.u32 %v3314_v12, %v3313_v57  ;;  %vm3324_vm11 = vcmp.lt.s32.totalorder %v3303_v50, 3 }
 0x2c8   : > { %v3318_v10 = vor.u32 %v3317_v15, %v3316_v11  ;;  %v3321_v40 = vor.u32 %v3320_v55, %v3319_v54  ;;  %v1830_v22 = vxor.u32 2147483648, %v9382_v7  ;;  %v1934_v57 = vxor.u32 2147483648, %v9384_v6 }
 0x2c9   : > { %v3326_v51 = vsel %vm3322_vm14, %v3306_v63, %v3309_v42  ;;  %v3327_v49 = vsel %vm3325_vm0, %v3315_v4, 2102212464  ;;  %v3330_v39 = vsel %vm3322_vm14, %v3309_v42, %v3312_v56  ;;  %v3334_v0 = vsel %vm3322_vm14, %v3312_v56, %v3315_v4 }
 0x2ca   : > { %v3328_v26 = vsel %vm3324_vm11, %v3312_v56, %v3327_v49  ;;  %v3331_v30 = vsel %vm3325_vm0, %v3318_v10, 920167782  ;;  %v3335_v60 = vsel %vm3325_vm0, %v3321_v40, 1326507024  ;;  %v9386_v11 = vpop.eup %9385  ;;  %v1828_v63 = vsel %vm1826_vm5, %v9382_v7, %v1827_v32 }
 0x2cb   : > { %v3332_v54 = vsel %vm3324_vm11, %v3315_v4, %v3331_v30  ;;  %v3336_v61 = vsel %vm3324_vm11, %v3318_v10, %v3335_v60  ;;  %vm1933_vm3 = vcmp.eq.s32.totalorder %v11964_v47, 2  ;;  %v3329_v28 = vsel %vm3323_vm6, %v3326_v51, %v3328_v26 }
 0x2cc   : > { %v3333_v12 = vsel %vm3323_vm6, %v3330_v39, %v3332_v54  ;;  %v3337_v15 = vsel %vm3323_vm6, %v3334_v0, %v3336_v61  ;;  %v1831_v49 = vsel %vm1829_vm8, %v1830_v22, %v9380_v59  ;;  %vm1825_vm13 = vcmp.lt.s32.totalorder %v11951_v34, 2 }
 0x2cd   : > { %v11995_v40 = vmul.u32.u64.low %v11961_v36, %v3337_v15  ;;  %v11996_v55 = vmul.u32.u64.high %v11961_v36, %v3337_v15, %v11995_v40  ;;  %v11999_v42 = vmul.u32.u64.low %v11961_v36, %v3333_v12  ;;  %v12000_v56 = vmul.u32.u64.high %v11961_v36, %v3333_v12, %v11999_v42 }
 0x2ce   : > { %v1931_v7 = vxor.u32 2147483648, %v9386_v11  ;;  %v1935_v51 = vsel %vm1933_vm3, %v1934_v57, %v9386_v11  ;;  %v12005_v39 = vadd.f32 %v11604_v33, %v851_v43  ;;  %v1832_v0 = vsel %vm1825_vm13, %v1828_v63, %v1831_v49 }
 0x2cf   : > { %vm1929_vm1 = vcmp.lt.s32.totalorder %v11964_v47, 2  ;;  %vm1930_vm9 = vcmp.eq.s32.totalorder %v11964_v47, 0  ;;  %v12010_v22 = vadd.f32 %v11604_v33, %v852_v31  ;;  %v3345_v50 = vmul.u32 %v11961_v36, %v3329_v28 }
 0x2d0   : > { %v1932_v59 = vsel %vm1930_vm9, %v9384_v6, %v1931_v7  ;;  %v15668_v4 = vand.u32 2147483647, %v12005_v39  ;;  %v3397_v34 = vand.u32 2139095040, %v12005_v39  ;;  %vm3347_vm7 = vc.u32 %v11996_v55, %v11999_v42 }
 0x2d1   : > { %15884 = vst [vmem:[#allocation19_spill] sm:$0xff] %v12010_v22  ;;  %v3348_v43 = vadd.s32 1, %v12000_v56  ;;  %vm1926_vm15 = vweird.f32 %v15878_v45  ;;  %v1936_v32 = vsel %vm1929_vm1, %v1932_v59, %v1935_v51  ;;  %v3138_v47 = vadd.s32 %v11724_v21, %v11732_v3 }
 0x2d2   : > { %v1833_v33 = vsel %vm1822_vm4, nan, %v1832_v0  ;;  %v1937_v36 = vsel %vm1926_vm15, nan, %v1936_v32  ;;  %v3398_v31 = vshrl.u32 %v3397_v34, 23  ;;  %v3401_v26 = vand.u32 8388607, %v15668_v4  ;;  %v15892_v32 = vld [vmem:[#allocation32_spill] sm:$0xff] }
 0x2d3   : > { %v3349_v6 = vsel %vm3347_vm7, %v3348_v43, %v12000_v56  ;;  %v4235_v10 = vpack.c.bf16 %v1937_v36, %v1833_v33  ;;  %v3501_v30 = vand.u32 2139095040, %v12010_v22  ;;  %v15885_v60 = vshll.u32 %v11902_v62, 23  ;;  %v15890_v56 = vld [vmem:[#allocation42_spill] sm:$0xff] }
 0x2d4   : > { %v15886_v57 = vsub.s32 32, %v11918_v17  ;;  %v3350_v3 = vadd.s32 %v3349_v6, %v3345_v50  ;;  %v8477_v24 = vadd.s32 4294967169, %v3398_v31  ;;  %v15887_v54 = vand.u32 2147483647, %v11609_v2 }
 0x2d5   : > { %v12029_v45 = vor.u32 4788187, %v15885_v60  ;;  %v15888_v61 = vcvt.s32.f32 %v11596_v19  ;;  %v15889_v28 = vsub.s32 4294967266, %v11918_v17  ;;  %8857 = vmatprep.mubr.msk.bf16.mxu0 %vm15696_vm10, %v4235_v10  ;;  %v3502_v62 = vshrl.u32 %v3501_v30, 23  ;;  %v15897_v60 = vld [vmem:[#allocation54_spill] sm:$0xff] }
 0x2d6   : > { %v3156_v21 = vshrl.u32 %v3138_v47, %v15886_v57  ;;  %v3155_v15 = vshll.u32 %v11803_v41, %v11918_v17  ;;  %v3351_v49 = vadd.s32 536870912, %v3350_v3  ;;  %v3404_v40 = vadd.s32 1, %v8477_v24 }
 0x2d7   : > { %v12038_v63 = vmul.f32 %v15888_v61, %v15887_v54  ;;  %v12042_v12 = vadd.s32 127, %v15889_v28  ;;  %v2024_v7 = vsub.s32 4, %v15890_v56  ;;  %v3402_v51 = vor.u32 8388608, %v3401_v26 }
 0x2d8   : > { %v15667_v19 = vand.u32 2147483647, %v12010_v22  ;;  %v8481_v0 = vadd.s32 4294967169, %v3502_v62  ;;  %v12051_v59 = vor.u32 %v3156_v21, %v3155_v15  ;;  %v12053_v34 = vshrl.u32 %v3351_v49, 30 }
 0x2d9   : > { %vm3405_vm2 = vcmp.gt.s32.totalorder %v3404_v40, 0  ;;  %v3160_v43 = vshll.u32 %v12042_v12, 23  ;;  %v15893_v47 = vand.u32 2147483647, %v15892_v32  ;;  %vm15896_vm8 = vcmp.lt.s32.totalorder %v15892_v32, 0 }
 0x2da   : > { %15891 = vst [vmem:[#allocation13_spill] sm:$0xff] %v12053_v34  ;;  %v3406_v41 = vsel %vm3405_vm2, %v3404_v40, 0  ;;  %v3508_v17 = vadd.s32 1, %v8481_v0  ;;  %v3353_v36 = vshll.u32 %v12053_v34, 30  ;;  %v2025_v10 = vsel %vm15896_vm8, %v2024_v7, %v15890_v56 }
 0x2db   : > { %vm12058_vm5 = vcmp.le.f32.partialorder %v15893_v47, 0.7853982  ;;  %v3407_v31 = vshrl.u32 %v3406_v41, 5  ;;  %v3408_v6 = vand.u32 31, %v3406_v41  ;;  %v12066_v26 = vshll.u32 %v3402_v51, 8 }
 0x2dc   : > { %v3505_v30 = vand.u32 8388607, %v15667_v19  ;;  %vm3509_vm14 = vcmp.gt.s32.totalorder %v3508_v17, 0  ;;  %v2026_v57 = vsel %vm12058_vm5, %v15892_v32, %v15897_v60  ;;  %v12074_v21 = vsub.s32 %v3350_v3, %v3353_v36 }
 0x2dd   : > { %v3409_v24 = vsub.s32 32, %v3408_v6  ;;  %v3411_v54 = vshll.u32 %v15714_v20, %v3408_v6  ;;  %v3414_v61 = vshll.u32 %v15715_v38, %v3408_v6  ;;  %v3417_v28 = vshll.u32 %v15716_v23, %v3408_v6 }
 0x2de   : > { %v3420_v12 = vshll.u32 %v15717_v46, %v3408_v6  ;;  %v3423_v62 = vshll.u32 %v15718_v25, %v3408_v6  ;;  %vm3426_vm6 = vcmp.lt.s32.totalorder %v3407_v31, 1  ;;  %v3356_v15 = vsub.s32 0, %v12074_v21 }
 0x2df   : > { %v3410_v49 = vshrl.u32 %v15714_v20, %v3409_v24  ;;  %v3412_v40 = vshrl.u32 %v15715_v38, %v3409_v24  ;;  %v3415_v3 = vshrl.u32 %v15716_v23, %v3409_v24  ;;  %v3418_v56 = vshrl.u32 %v15717_v46, %v3409_v24 }
 0x2e0   : > { %v3421_v7 = vshrl.u32 %v15718_v25, %v3409_v24  ;;  %v3424_v51 = vshrl.u32 %v15719_v14, %v3409_v24  ;;  %vm3427_vm0 = vcmp.lt.s32.totalorder %v3407_v31, 2  ;;  %v8474_v0 = vmin.u32 %v3356_v15, %v12074_v21 }
 0x2e1   : > { %v3413_v41 = vor.u32 %v3412_v40, %v3411_v54  ;;  %v3416_v47 = vor.u32 %v3415_v3, %v3414_v61  ;;  %vm3428_vm11 = vcmp.lt.s32.totalorder %v3407_v31, 3  ;;  %v3419_v36 = vor.u32 %v3418_v56, %v3417_v28 }
 0x2e2   : > { %v3422_v6 = vor.u32 %v3421_v7, %v3420_v12  ;;  %v3425_v60 = vor.u32 %v3424_v51, %v3423_v62  ;;  %vm3429_vm4 = vcmp.lt.s32.totalorder %v3407_v31, 4  ;;  %v3358_v19 = vclz %v8474_v0  ;;  %v15901_v7 = vld [vmem:[#allocation45_spill] sm:$0xff] }
 0x2e3   : > { %v3430_v4 = vsel %vm3426_vm6, %v3410_v49, %v3413_v41  ;;  %v3434_v11 = vsel %vm3426_vm6, %v3413_v41, %v3416_v47  ;;  %v3510_v2 = vsel %vm3509_vm14, %v3508_v17, 0  ;;  %v3431_v50 = vsel %vm3429_vm4, %v3419_v36, 2102212464 }
 0x2e4   : > { %v3435_v34 = vsel %vm3429_vm4, %v3422_v6, 920167782  ;;  %v3438_v24 = vsel %vm3426_vm6, %v3416_v47, %v3419_v36  ;;  %v3439_v35 = vsel %vm3429_vm4, %v3425_v60, 1326507024  ;;  %v8475_v15 = vadd.s32 4294967294, %v3358_v19 }
 0x2e5   : > { %v3432_v54 = vsel %vm3428_vm11, %v3416_v47, %v3431_v50  ;;  %v3436_v61 = vsel %vm3428_vm11, %v3419_v36, %v3435_v34  ;;  %v3440_v28 = vsel %vm3428_vm11, %v3422_v6, %v3439_v35  ;;  %v3506_v49 = vor.u32 8388608, %v3505_v30 }
 0x2e6   : > { %v3437_v12 = vsel %vm3427_vm0, %v3434_v11, %v3436_v61  ;;  %v3441_v62 = vsel %vm3427_vm0, %v3438_v24, %v3440_v28  ;;  %v2027_v17 = vsel %vm12058_vm5, 0, %v2025_v10  ;;  %vm8476_vm3 = vcmp.lt.s32.totalorder %v8475_v15, 0 }
 0x2e7   : > { %v12101_v40 = vmul.u32.u64.low %v12066_v26, %v3441_v62  ;;  %v12102_v3 = vmul.u32.u64.high %v12066_v26, %v3441_v62, %v12101_v40  ;;  %9387 = vcosq.f32 %v2026_v57  ;;  %v3433_v19 = vsel %vm3427_vm0, %v3430_v4, %v3432_v54 }
 0x2e8   : > { %v12106_v50 = vmul.u32.u64.low %v12066_v26, %v3437_v12  ;;  %v12107_v34 = vmul.u32.u64.high %v12066_v26, %v3437_v12, %v12106_v50  ;;  %v3512_v35 = vand.u32 31, %v3510_v2  ;;  %v12110_v11 = vor.u32 4788187, %v3160_v43 }
 0x2e9   : > { %9389 = vsinq.f32 %v2026_v57  ;;  %v12112_v30 = vadd.s32 3, %v2027_v17  ;;  %v15898_v33 = vand.u32 2147483647, %v15789_v9  ;;  %v12120_v56 = vsel %vm8476_vm3, 0, %v8475_v15 }
 0x2ea   : > { %v3513_v4 = vsub.s32 32, %v3512_v35  ;;  %v12122_v31 = vshll.u32 %v3506_v49, 8  ;;  %v2128_v51 = vsub.s32 4, %v15901_v7  ;;  %v3449_v0 = vmul.u32 %v12066_v26, %v3433_v19 }
 0x2eb   : > { %vm12116_vm13 = vcmp.le.f32.partialorder %v15898_v33, 0.7853982  ;;  %vm3451_vm1 = vc.u32 %v12102_v3, %v12106_v50  ;;  %v3511_v43 = vshrl.u32 %v3510_v2, 5  ;;  %v3515_v57 = vshll.u32 %v15714_v20, %v3512_v35 }
 0x2ec   : > { %v3452_v41 = vadd.s32 1, %v12107_v34  ;;  %v3516_v47 = vshrl.u32 %v15715_v38, %v3513_v4  ;;  %v3518_v36 = vshll.u32 %v15715_v38, %v3512_v35  ;;  %v3519_v6 = vshrl.u32 %v15716_v23, %v3513_v4 }
 0x2ed   : > { %v3366_v60 = vsub.s32 4294967266, %v12120_v56  ;;  %v3521_v24 = vshll.u32 %v15716_v23, %v3512_v35  ;;  %v3522_v26 = vshrl.u32 %v15717_v46, %v3513_v4  ;;  %v3524_v15 = vshll.u32 %v15717_v46, %v3512_v35 }
 0x2ee   : > { %v3453_v2 = vsel %vm3451_vm1, %v3452_v41, %v12107_v34  ;;  %v3517_v54 = vor.u32 %v3516_v47, %v3515_v57  ;;  %v3520_v61 = vor.u32 %v3519_v6, %v3518_v36  ;;  %v3525_v28 = vshrl.u32 %v15718_v25, %v3513_v4  ;;  %v604_v47 = vpop.permute.xlu1 %603 }
 0x2ef   : > { %v3454_v12 = vadd.s32 %v3453_v2, %v3449_v0  ;;  %v3523_v62 = vor.u32 %v3522_v26, %v3521_v24  ;;  %vm15902_vm9 = vcmp.lt.s32.totalorder %v15789_v9, 0  ;;  %v2130_v17 = vsel %vm12116_vm13, %v15789_v9, %v11194_v58 }
 0x2f0   : > { %v2129_v49 = vsel %vm15902_vm9, %v2128_v51, %v15901_v7  ;;  %v3362_v40 = vsub.s32 32, %v12120_v56  ;;  %v3526_v19 = vor.u32 %v3525_v28, %v3524_v15  ;;  %v3527_v34 = vshll.u32 %v15718_v25, %v3512_v35 }
 0x2f1   : > { %v3528_v33 = vshrl.u32 %v15719_v14, %v3513_v4  ;;  %v12149_v57 = vpop.eup %9387  ;;  %v3367_v0 = vadd.s32 127, %v3366_v60  ;;  %v3455_v41 = vadd.s32 536870912, %v3454_v12  ;;  %vm3530_vm7 = vcmp.lt.s32.totalorder %v3511_v43, 1 }
 0x2f2   : > { %vm3533_vm15 = vcmp.lt.s32.totalorder %v3511_v43, 4  ;;  %v3514_v7 = vshrl.u32 %v15714_v20, %v3513_v4  ;;  %v3538_v6 = vsel %vm3530_vm7, %v3517_v54, %v3520_v61  ;;  %vm3531_vm2 = vcmp.lt.s32.totalorder %v3511_v43, 2 }
 0x2f3   : > { %v3529_v51 = vor.u32 %v3528_v33, %v3527_v34  ;;  %v3535_v36 = vsel %vm3533_vm15, %v3523_v62, 2102212464  ;;  %v9390_v58 = vpop.eup %9389  ;;  %v12152_v24 = vshrl.u32 %v3455_v41, 30  ;;  %vm3532_vm5 = vcmp.lt.s32.totalorder %v3511_v43, 3 }
 0x2f4   : > { %v3539_v35 = vsel %vm3533_vm15, %v3526_v19, 920167782  ;;  %v3534_v26 = vsel %vm3530_vm7, %v3514_v7, %v3517_v54  ;;  %v3542_v2 = vsel %vm3530_vm7, %v3520_v61, %v3523_v62  ;;  %v3536_v8 = vsel %vm3532_vm5, %v3520_v61, %v3535_v36  ;;  %v773_v61 = vpop.permute.xlu1 %772 }
 0x2f5   : > { %v3540_v15 = vsel %vm3532_vm5, %v3523_v62, %v3539_v35  ;;  %v3543_v28 = vsel %vm3533_vm15, %v3529_v51, 1326507024  ;;  %v3457_v60 = vshll.u32 %v12152_v24, 30  ;;  %v3368_v4 = vshll.u32 %v3367_v0, 23 }
 0x2f6   : > { %v3541_v37 = vsel %vm3531_vm2, %v3538_v6, %v3540_v15  ;;  %v3544_v22 = vsel %vm3532_vm5, %v3526_v19, %v3543_v28  ;;  %v3346_v54 = vadd.s32 %v11999_v42, %v11996_v55  ;;  %v3537_v19 = vsel %vm3531_vm2, %v3534_v26, %v3536_v8 }
 0x2f7   : > { %v3545_v34 = vsel %vm3531_vm2, %v3542_v2, %v3544_v22  ;;  %v12158_v33 = vmul.u32.u64.low %v12122_v31, %v3541_v37  ;;  %v12159_v41 = vmul.u32.u64.high %v12122_v31, %v3541_v37, %v12158_v33  ;;  %v12164_v7 = vsub.s32 %v3454_v12, %v3457_v60 }
 0x2f8   : > { %v12167_v62 = vmul.u32.u64.low %v12122_v31, %v3545_v34  ;;  %v12168_v51 = vmul.u32.u64.high %v12122_v31, %v3545_v34, %v12167_v62  ;;  %v2032_v0 = vand.u32 3, %v12112_v30  ;;  %v2131_v22 = vsel %vm12116_vm13, 0, %v2129_v49 }
 0x2f9   : > { %9391 = vcosq.f32 %v2130_v17  ;;  %v3364_v37 = vshrl.u32 %v3346_v54, %v3362_v40  ;;  %v3460_v36 = vsub.s32 0, %v12164_v7  ;;  %v657_v55 = vmul.f32 %v11866_v29, %v604_v47 }
 0x2fa   : > { %9393 = vsinq.f32 %v2130_v17  ;;  %v3363_v42 = vshll.u32 %v12074_v21, %v12120_v56  ;;  %v3369_v12 = vor.u32 4788187, %v3368_v4  ;;  %v3556_v6 = vadd.s32 1, %v12159_v41  ;;  %v12196_v4 = vld [vmem:[%s15514_s2] ss:$0 sm:$0xff] }
 0x2fb   : > { %v822_v8 = vmul.f32 %v11874_v18, %v773_v61  ;;  %v8478_v30 = vmin.u32 %v3460_v36, %v12164_v7  ;;  %v3553_v10 = vmul.u32 %v12122_v31, %v3537_v19  ;;  %vm3555_vm8 = vc.u32 %v12168_v51, %v12158_v33 }
 0x2fc   : > { %v2035_v43 = vxor.u32 2147483648, %v9390_v58  ;;  %v3557_v49 = vsel %vm3555_vm8, %v3556_v6, %v12159_v41  ;;  %v2038_v17 = vxor.u32 2147483648, %v12149_v57  ;;  %v2135_v40 = vadd.s32 3, %v2131_v22 }
 0x2fd   : > { %v854_v47 = vadd.f32 %v822_v8, %v657_v55  ;;  %v15903_v21 = vand.u32 2147483647, %v12029_v45  ;;  %v15904_v56 = vcvt.s32.f32 %v11916_v16  ;;  %v3162_v26 = vand.u32 2147483647, %v12110_v11 }
 0x2fe   : > { %v3365_v15 = vor.u32 %v3364_v37, %v3363_v42  ;;  %v3558_v2 = vadd.s32 %v3557_v49, %v3553_v10  ;;  %v2958_v31 = vxor.u32 2147483648, %v12038_v63  ;;  %v3164_v28 = vcvt.s32.f32 %v12051_v59 }
 0x2ff   : > { %v3061_v35 = vmul.f32 %v15904_v56, %v15903_v21  ;;  %v3462_v60 = vclz %v8478_v30  ;;  %v12199_v34 = vadd.f32 %v12196_v4, %v854_v47  ;;  %v3370_v45 = vand.u32 2147483647, %v3369_v12 }
 0x300   : > { %v3559_v16 = vadd.s32 536870912, %v3558_v2  ;;  %vm2034_vm14 = vcmp.eq.s32.totalorder %v2032_v0, 0  ;;  %vm2037_vm6 = vcmp.eq.s32.totalorder %v2032_v0, 2  ;;  %v2136_v54 = vand.u32 3, %v2135_v40 }
 0x301   : > { %v2036_v11 = vsel %vm2034_vm14, %v12149_v57, %v2035_v43  ;;  %v2039_v41 = vsel %vm2037_vm6, %v2038_v17, %v9390_v58  ;;  %v3709_v62 = vand.u32 2139095040, %v12199_v34  ;;  %vm15691_vm0 = vcmp.lt.s32.totalorder %v11123_v44, 0 }
 0x302   : > { %vm2876_vm11 = vcmp.lt.s32.totalorder %v11189_v52, 0  ;;  %vm2980_vm4 = vcmp.lt.s32.totalorder %v11280_v27, 0  ;;  %v3062_v59 = vxor.u32 2147483648, %v3061_v35  ;;  %v12206_v61 = vmul.f32 %v3164_v28, %v3162_v26 }
 0x303   : > { %v3372_v19 = vcvt.s32.f32 %v3365_v15  ;;  %v12208_v22 = vshrl.u32 %v3559_v16, 30  ;;  %v9392_v37 = vpop.eup %9391  ;;  %v8479_v36 = vadd.s32 4294967294, %v3462_v60  ;;  %vm2030_vm3 = vweird.f32 %v15892_v32  ;;  %v15909_v60 = vld [vmem:[#allocation67_spill] sm:$0xff] }
 0x304   : > { %vm2033_vm13 = vcmp.lt.s32.totalorder %v2032_v0, 2  ;;  %v3710_v57 = vshrl.u32 %v3709_v62, 23  ;;  %v9394_v58 = vpop.eup %9393  ;;  %vm2134_vm1 = vweird.f32 %v15789_v9  ;;  %vm2137_vm9 = vcmp.lt.s32.totalorder %v2136_v54, 2 }
 0x305   : > { %v12211_v55 = vmul.f32 %v3372_v19, %v3370_v45  ;;  %v3561_v42 = vshll.u32 %v12208_v22, 30  ;;  %v2040_v12 = vsel %vm2033_vm13, %v2036_v11, %v2039_v41  ;;  %v2139_v6 = vxor.u32 2147483648, %v9394_v58 }
 0x306   : > { %v2142_v8 = vxor.u32 2147483648, %v9392_v37  ;;  %v8489_v30 = vadd.s32 4294967169, %v3710_v57  ;;  %vm2138_vm7 = vcmp.eq.s32.totalorder %v2136_v54, 0  ;;  %vm2141_vm15 = vcmp.eq.s32.totalorder %v2136_v54, 2 }
 0x307   : > { %v12215_v10 = vsub.s32 %v3558_v2, %v3561_v42  ;;  %v15678_v43 = vand.u32 2147483647, %v12199_v34  ;;  %vm8480_vm2 = vcmp.lt.s32.totalorder %v8479_v36, 0  ;;  %v2140_v0 = vsel %vm2138_vm7, %v9392_v37, %v2139_v6  ;;  %v15908_v2 = vld [vmem:[#allocation22_spill] sm:$0xff] }
 0x308   : > { %v2143_v49 = vsel %vm2141_vm15, %v2142_v8, %v9394_v58  ;;  %v3716_v17 = vadd.s32 1, %v8489_v30  ;;  %v2041_v47 = vsel %vm2030_vm3, nan, %v2040_v12  ;;  %v15905_v56 = vand.u32 2147483647, %v10650_v13 }
 0x309   : > { %v3564_v40 = vsub.s32 0, %v12215_v10  ;;  %v2144_v21 = vsel %vm2137_vm9, %v2140_v0, %v2143_v49  ;;  %v2232_v28 = vsub.s32 4, %v15908_v2  ;;  %v12234_v32 = vsel %vm8480_vm2, 0, %v8479_v36 }
 0x30a   : > { %vm12223_vm5 = vcmp.le.f32.partialorder %v15905_v56, 0.7853982  ;;  %v2145_v15 = vsel %vm2134_vm1, nan, %v2144_v21  ;;  %vm3717_vm8 = vcmp.gt.s32.totalorder %v3716_v17, 0  ;;  %v3713_v41 = vand.u32 8388607, %v15678_v43 }
 0x30b   : > { %v2234_v45 = vsel %vm12223_vm5, %v10650_v13, %v15909_v60  ;;  %v8482_v16 = vmin.u32 %v3564_v40, %v12215_v10  ;;  %v4236_v11 = vpack.c.bf16 %v2145_v15, %v2041_v47  ;;  %v15910_v9 = vxor.u32 2147483648, %v11888_v53 }
 0x30c   : > { %v12249_v62 = vsel %vm2876_vm11, %v2958_v31, %v12038_v63  ;;  %v12253_v19 = vsel %vm2980_vm4, %v3062_v59, %v3061_v35  ;;  %v3718_v37 = vsel %vm3717_vm8, %v3716_v17, 0  ;;  %v3450_v57 = vadd.s32 %v12106_v50, %v12102_v3  ;;  %v609_v63 = vpop.permute.xlu1 %608 }
 0x30d   : > { %v12244_v54 = vsel %vm15691_vm0, %v15910_v9, %v11888_v53  ;;  %v3566_v58 = vclz %v8482_v16  ;;  %8858 = vmatmul.mubr.msk.bf16.gmra.mrb[8].mxu0 %vm15696_vm10, %v4236_v11  ;;  %v3720_v53 = vand.u32 31, %v3718_v37  ;;  %v3470_v12 = vsub.s32 4294967266, %v12234_v32  ;;  %v15913_v11 = vld [vmem:[#allocation35_spill] sm:$0xff] }
 0x30e   : > { %15911 = vst [vmem:[#allocation40_spill] sm:$0xff] %v12244_v54  ;;  %vm15912_vm14 = vcmp.lt.s32.totalorder %v10650_v13, 0  ;;  %9395 = vcosq.f32 %v2234_v45  ;;  %v3714_v31 = vor.u32 8388608, %v3713_v41  ;;  %v12267_v6 = vmul.f32 %v11866_v29, %v609_v63 }
 0x30f   : > { %v12264_v35 = vsel %vm15912_vm14, %v2232_v28, %v15908_v2  ;;  %v3721_v59 = vsub.s32 32, %v3720_v53  ;;  %9397 = vsinq.f32 %v2234_v45  ;;  %v8483_v3 = vadd.s32 4294967294, %v3566_v58 }
 0x310   : > { %v3723_v50 = vshll.u32 %v15714_v20, %v3720_v53  ;;  %v3726_v8 = vshll.u32 %v15715_v38, %v3720_v53  ;;  %v3732_v30 = vshll.u32 %v15717_v46, %v3720_v53  ;;  %v3719_v0 = vshrl.u32 %v3718_v37, 5 }
 0x311   : > { %v3724_v49 = vshrl.u32 %v15715_v38, %v3721_v59  ;;  %v3729_v17 = vshll.u32 %v15716_v23, %v3720_v53  ;;  %v2235_v40 = vsel %vm12223_vm5, 0, %v12264_v35  ;;  %v3471_v47 = vadd.s32 127, %v3470_v12  ;;  %v15918_v35 = vld [vmem:[#allocation55_spill] sm:$0xff] }
 0x312   : > { %v3727_v29 = vshrl.u32 %v15716_v23, %v3721_v59  ;;  %v3730_v21 = vshrl.u32 %v15717_v46, %v3721_v59  ;;  %v3733_v56 = vshrl.u32 %v15718_v25, %v3721_v59  ;;  %v3466_v15 = vsub.s32 32, %v12234_v32 }
 0x313   : > { %v3467_v2 = vshll.u32 %v12164_v7, %v12234_v32  ;;  %v3735_v28 = vshll.u32 %v15718_v25, %v3720_v53  ;;  %v12284_v60 = vshll.u32 %v3714_v31, 8  ;;  %vm8484_vm6 = vcmp.lt.s32.totalorder %v8483_v3, 0  ;;  %v15914_v7 = vld [vmem:[#allocation48_spill] sm:$0xff] }
 0x314   : > { %v3725_v45 = vor.u32 %v3724_v49, %v3723_v50  ;;  %v3728_v26 = vor.u32 %v3727_v29, %v3726_v8  ;;  %v3734_v16 = vor.u32 %v3733_v56, %v3732_v30  ;;  %vm3084_vm3 = vcmp.lt.s32.totalorder %v15913_v11, 0  ;;  %v777_v50 = vpop.permute.xlu1 %776 }
 0x315   : > { %v3722_v41 = vshrl.u32 %v15714_v20, %v3721_v59  ;;  %v3731_v9 = vor.u32 %v3730_v21, %v3729_v17  ;;  %v3736_v37 = vshrl.u32 %v15719_v14, %v3721_v59  ;;  %vm3738_vm13 = vcmp.lt.s32.totalorder %v3719_v0, 1  ;;  %v15919_v17 = vld [vmem:[#allocation69_spill] sm:$0xff] }
 0x316   : > { %v3472_v58 = vshll.u32 %v3471_v47, 23  ;;  %vm3740_vm1 = vcmp.lt.s32.totalorder %v3719_v0, 3  ;;  %vm3741_vm9 = vcmp.lt.s32.totalorder %v3719_v0, 4  ;;  %v15915_v32 = vand.u32 2147483647, %v15914_v7 }
 0x317   : > { %v3737_v12 = vor.u32 %v3736_v37, %v3735_v28  ;;  %vm3739_vm15 = vcmp.lt.s32.totalorder %v3719_v0, 2  ;;  %v3743_v63 = vsel %vm3741_vm9, %v3731_v9, 2102212464  ;;  %v2336_v31 = vsub.s32 4, %v15918_v35 }
 0x318   : > { %vm12291_vm7 = vcmp.le.f32.partialorder %v15915_v32, 0.7853982  ;;  %v12297_v8 = vpop.eup %9395  ;;  %vm3292_vm2 = vcmp.lt.s32.totalorder %v11905_v1, 0  ;;  %v3569_v59 = vsel %vm8484_vm6, 0, %v8483_v3  ;;  %v3746_v30 = vsel %vm3738_vm13, %v3725_v45, %v3728_v26 }
 0x319   : > { %v3747_v49 = vsel %vm3741_vm9, %v3734_v16, 920167782  ;;  %v2338_v47 = vsel %vm12291_vm7, %v15914_v7, %v15919_v17  ;;  %v9398_v29 = vpop.eup %9397  ;;  %v3742_v21 = vsel %vm3738_vm13, %v3722_v41, %v3725_v45  ;;  %v3744_v56 = vsel %vm3740_vm1, %v3728_v26, %v3743_v63 }
 0x31a   : > { %v3748_v28 = vsel %vm3740_vm1, %v3731_v9, %v3747_v49  ;;  %v3750_v37 = vsel %vm3738_vm13, %v3728_v26, %v3731_v9  ;;  %v3468_v32 = vshrl.u32 %v3450_v57, %v3466_v15  ;;  %v3473_v3 = vor.u32 4788187, %v3472_v58 }
 0x31b   : > { %v3749_v43 = vsel %vm3739_vm15, %v3746_v30, %v3748_v28  ;;  %v3751_v42 = vsel %vm3741_vm9, %v3737_v12, 1326507024  ;;  %v3574_v36 = vsub.s32 4294967266, %v3569_v59  ;;  %v3745_v45 = vsel %vm3739_vm15, %v3742_v21, %v3744_v56  ;;  %v15923_v28 = vld [vmem:[#allocation63_spill] sm:$0xff] }
 0x31c   : > { %v3752_v54 = vsel %vm3740_vm1, %v3734_v16, %v3751_v42  ;;  %v12315_v17 = vmul.u32.u64.low %v12284_v60, %v3749_v43  ;;  %v12316_v44 = vmul.u32.u64.high %v12284_v60, %v3749_v43, %v12315_v17  ;;  %vm15920_vm5 = vcmp.lt.s32.totalorder %v15914_v7, 0  ;;  %v781_v43 = vpop.permute.xlu1 %780 }
 0x31d   : > { %v3753_v41 = vsel %vm3739_vm15, %v3750_v37, %v3752_v54  ;;  %v2337_v57 = vsel %vm15920_vm5, %v2336_v31, %v15918_v35  ;;  %9399 = vcosq.f32 %v2338_v47  ;;  %v2239_v9 = vadd.s32 3, %v2235_v40 }
 0x31e   : > { %v12325_v15 = vmul.u32.u64.low %v12284_v60, %v3753_v41  ;;  %v12326_v26 = vmul.u32.u64.high %v12284_v60, %v3753_v41, %v12325_v15  ;;  %v2339_v42 = vsel %vm12291_vm7, 0, %v2337_v57  ;;  %v15921_v16 = vxor.u32 2147483648, %v12206_v61 }
 0x31f   : > { %v3469_v0 = vor.u32 %v3468_v32, %v3467_v2  ;;  %v3570_v58 = vsub.s32 32, %v3569_v59  ;;  %9401 = vsinq.f32 %v2338_v47  ;;  %v3554_v12 = vadd.s32 %v12158_v33, %v12168_v51 }
 0x320   : > { %v12335_v54 = vsel %vm3084_vm3, %v15921_v16, %v12206_v61  ;;  %v3761_v63 = vmul.u32 %v12284_v60, %v3745_v45  ;;  %v3764_v40 = vadd.s32 1, %v12316_v44  ;;  %v823_v53 = vmul.f32 %v11874_v18, %v777_v50 }
 0x321   : > { %v3474_v35 = vand.u32 2147483647, %v3473_v3  ;;  %v3575_v31 = vadd.s32 127, %v3574_v36  ;;  %v2343_v30 = vadd.s32 3, %v2339_v42  ;;  %v824_v49 = vmul.f32 %v11874_v18, %v781_v43 }
 0x322   : > { %v15922_v61 = vxor.u32 2147483648, %v12211_v55  ;;  %vm3763_vm8 = vc.u32 %v12326_v26, %v12315_v17  ;;  %v2240_v33 = vand.u32 3, %v2239_v9  ;;  %v855_v51 = vadd.f32 %v823_v53, %v12267_v6 }
 0x323   : > { %v3476_v60 = vcvt.s32.f32 %v3469_v0  ;;  %v3572_v50 = vshrl.u32 %v3554_v12, %v3570_v58  ;;  %v3765_v36 = vsel %vm3763_vm8, %v3764_v40, %v12316_v44  ;;  %v2243_v47 = vxor.u32 2147483648, %v9398_v29 }
 0x324   : > { %v12348_v2 = vsel %vm3292_vm2, %v15922_v61, %v12211_v55  ;;  %v3766_v21 = vadd.s32 %v3765_v36, %v3761_v63  ;;  %v2246_v18 = vxor.u32 2147483648, %v12297_v8  ;;  %v12356_v56 = vadd.f32 %v12196_v4, %v855_v51 }
 0x325   : > { %v856_v55 = vadd.f32 %v824_v49, %v15923_v28  ;;  %v12359_v37 = vmul.f32 %v3476_v60, %v3474_v35  ;;  %v3571_v32 = vshll.u32 %v12215_v10, %v3569_v59  ;;  %v3576_v3 = vshll.u32 %v3575_v31, 23 }
 0x326   : > { %vm2238_vm14 = vweird.f32 %v10650_v13  ;;  %v2344_v6 = vand.u32 3, %v2343_v30  ;;  %v3767_v45 = vadd.s32 536870912, %v3766_v21  ;;  %vm2241_vm6 = vcmp.lt.s32.totalorder %v2240_v33, 2 }
 0x327   : > { %vm2242_vm13 = vcmp.eq.s32.totalorder %v2240_v33, 0  ;;  %v3813_v44 = vand.u32 2139095040, %v12356_v56  ;;  %v9400_v41 = vpop.eup %9399  ;;  %v12364_v57 = vor.u32 %v3572_v50, %v3571_v32  ;;  %vm2245_vm1 = vcmp.eq.s32.totalorder %v2240_v33, 2  ;;  %v15925_v50 = vld [vmem:[#allocation44_spill] sm:$0xff] }
 0x328   : > { %v2244_v15 = vsel %vm2242_vm13, %v12297_v8, %v2243_v47  ;;  %v12368_v9 = vadd.f32 %v12196_v4, %v856_v55  ;;  %v12370_v42 = vshrl.u32 %v3767_v45, 30  ;;  %v2247_v10 = vsel %vm2245_vm1, %v2246_v18, %v9398_v29  ;;  %v15926_v45 = vld [vmem:[#allocation38_spill] sm:$0xff] }
 0x329   : > { %v2350_v59 = vxor.u32 2147483648, %v9400_v41  ;;  %v3814_v43 = vshrl.u32 %v3813_v44, 23  ;;  %v9402_v16 = vpop.eup %9401  ;;  %v12373_v58 = vor.u32 4788187, %v3576_v3  ;;  %vm2349_vm9 = vcmp.eq.s32.totalorder %v2344_v6, 2 }
 0x32a   : > { %15924 = vst [vmem:[#allocation11_spill] sm:$0xff] %v12370_v42  ;;  %v3917_v12 = vand.u32 2139095040, %v12368_v9  ;;  %v3769_v63 = vshll.u32 %v12370_v42, 30  ;;  %v2347_v8 = vxor.u32 2147483648, %v9402_v16  ;;  %v3580_v35 = vcvt.s32.f32 %v12364_v57 }
 0x32b   : > { %v2351_v40 = vsel %vm2349_vm9, %v2350_v59, %v9402_v16  ;;  %v8493_v53 = vadd.s32 4294967169, %v3814_v43  ;;  %v2248_v31 = vsel %vm2241_vm6, %v2244_v15, %v2247_v10  ;;  %vm2346_vm7 = vcmp.eq.s32.totalorder %v2344_v6, 0  ;;  %v15931_v59 = vld [vmem:[#allocation41_spill] sm:$0xff] }
 0x32c   : > { %v15682_v29 = vand.u32 2147483647, %v12356_v56  ;;  %v12380_v30 = vsub.s32 %v3766_v21, %v3769_v63  ;;  %vm2345_vm15 = vcmp.lt.s32.totalorder %v2344_v6, 2  ;;  %v2348_v49 = vsel %vm2346_vm7, %v9400_v41, %v2347_v8 }
 0x32d   : > { %v3820_v61 = vadd.s32 1, %v8493_v53  ;;  %vm2342_vm5 = vweird.f32 %v15914_v7  ;;  %v2352_v51 = vsel %vm2345_vm15, %v2348_v49, %v2351_v40  ;;  %v3918_v60 = vshrl.u32 %v3917_v12, 23 }
 0x32e   : > { %v2440_v36 = vsub.s32 4, %v15925_v50  ;;  %v3772_v47 = vsub.s32 0, %v12380_v30  ;;  %v2249_v33 = vsel %vm2238_vm14, nan, %v2248_v31  ;;  %v2353_v18 = vsel %vm2342_vm5, nan, %v2352_v51 }
 0x32f   : > { %vm3821_vm8 = vcmp.gt.s32.totalorder %v3820_v61, 0  ;;  %v3578_v28 = vand.u32 2147483647, %v12373_v58  ;;  %v4237_v21 = vpack.c.bf16 %v2353_v18, %v2249_v33  ;;  %v3817_v55 = vand.u32 8388607, %v15682_v29 }
 0x330   : > { %v3822_v32 = vsel %vm3821_vm8, %v3820_v61, 0  ;;  %v8490_v7 = vmin.u32 %v3772_v47, %v12380_v30  ;;  %v15681_v6 = vand.u32 2147483647, %v12368_v9  ;;  %v15927_v44 = vand.u32 2147483647, %v15926_v45 }
 0x331   : > { %v3824_v3 = vand.u32 31, %v3822_v32  ;;  %8861 = vmatprep.mubr.msk.bf16.mxu0 %vm15696_vm10, %v4237_v21  ;;  %v3823_v13 = vshrl.u32 %v3822_v32, 5  ;;  %v8497_v15 = vadd.s32 4294967169, %v3918_v60  ;;  %vm15930_vm14 = vcmp.lt.s32.totalorder %v15926_v45, 0 }
 0x332   : > { %vm12394_vm6 = vcmp.le.f32.partialorder %v15927_v44, 0.7853982  ;;  %v2441_v10 = vsel %vm15930_vm14, %v2440_v36, %v15925_v50  ;;  %v3774_v16 = vclz %v8490_v7  ;;  %v3818_v8 = vor.u32 8388608, %v3817_v55 }
 0x333   : > { %v2442_v43 = vsel %vm12394_vm6, %v15926_v45, %v15931_v59  ;;  %v3825_v58 = vsub.s32 32, %v3824_v3  ;;  %v3827_v12 = vshll.u32 %v15714_v20, %v3824_v3  ;;  %v3830_v63 = vshll.u32 %v15715_v38, %v3824_v3 }
 0x334   : > { %v3833_v40 = vshll.u32 %v15716_v23, %v3824_v3  ;;  %v3836_v53 = vshll.u32 %v15717_v46, %v3824_v3  ;;  %v3839_v31 = vshll.u32 %v15718_v25, %v3824_v3  ;;  %v8491_v49 = vadd.s32 4294967294, %v3774_v16 }
 0x335   : > { %v3828_v61 = vshrl.u32 %v15715_v38, %v3825_v58  ;;  %v3831_v51 = vshrl.u32 %v15716_v23, %v3825_v58  ;;  %v3921_v60 = vand.u32 8388607, %v15681_v6  ;;  %v3826_v50 = vshrl.u32 %v15714_v20, %v3825_v58 }
 0x336   : > { %v3834_v36 = vshrl.u32 %v15717_v46, %v3825_v58  ;;  %v3837_v47 = vshrl.u32 %v15718_v25, %v3825_v58  ;;  %v3840_v33 = vshrl.u32 %v15719_v14, %v3825_v58  ;;  %vm3842_vm13 = vcmp.lt.s32.totalorder %v3823_v13, 1 }
 0x337   : > { %v3829_v18 = vor.u32 %v3828_v61, %v3827_v12  ;;  %v3832_v21 = vor.u32 %v3831_v51, %v3830_v63  ;;  %v3924_v55 = vadd.s32 1, %v8497_v15  ;;  %vm3844_vm1 = vcmp.lt.s32.totalorder %v3823_v13, 3  ;;  %v15932_v15 = vld [vmem:[#allocation65_spill] sm:$0xff] }
 0x338   : > { %v3835_v32 = vor.u32 %v3834_v36, %v3833_v40  ;;  %v3838_v7 = vor.u32 %v3837_v47, %v3836_v53  ;;  %v3841_v3 = vor.u32 %v3840_v33, %v3839_v31  ;;  %vm8492_vm9 = vcmp.lt.s32.totalorder %v8491_v49, 0 }
 0x339   : > { %vm3843_vm7 = vcmp.lt.s32.totalorder %v3823_v13, 2  ;;  %vm3845_vm15 = vcmp.lt.s32.totalorder %v3823_v13, 4  ;;  %v3858_v44 = vshll.u32 %v3818_v8, 8  ;;  %v3846_v59 = vsel %vm3842_vm13, %v3826_v50, %v3829_v18 }
 0x33a   : > { %v3847_v16 = vsel %vm3845_vm15, %v3835_v32, 2102212464  ;;  %v3850_v6 = vsel %vm3842_vm13, %v3829_v18, %v3832_v21  ;;  %v3851_v29 = vsel %vm3845_vm15, %v3838_v7, 920167782  ;;  %vm3925_vm5 = vcmp.gt.s32.totalorder %v3924_v55, 0 }
 0x33b   : > { %v3848_v58 = vsel %vm3844_vm1, %v3832_v21, %v3847_v16  ;;  %v3852_v12 = vsel %vm3844_vm1, %v3835_v32, %v3851_v29  ;;  %v2544_v63 = vsub.s32 4, %v15932_v15  ;;  %v3854_v53 = vsel %vm3842_vm13, %v3832_v21, %v3835_v32 }
 0x33c   : > { %v3853_v40 = vsel %vm3843_vm7, %v3850_v6, %v3852_v12  ;;  %v3855_v31 = vsel %vm3845_vm15, %v3841_v3, 1326507024  ;;  %v2443_v8 = vsel %vm12394_vm6, 0, %v2441_v10  ;;  %v12429_v61 = vsel %vm8492_vm9, 0, %v8491_v49 }
 0x33d   : > { %v3849_v51 = vsel %vm3843_vm7, %v3846_v59, %v3848_v58  ;;  %v3856_v50 = vsel %vm3844_vm1, %v3838_v7, %v3855_v31  ;;  %v3922_v36 = vor.u32 8388608, %v3921_v60  ;;  %v3926_v6 = vsel %vm3925_vm5, %v3924_v55, 0  ;;  %v9486_v60 = vld [vmem:[%s15513_s1 + $0x1] ss:$0 sm:$0xff] }
 0x33e   : > { %v3857_v29 = vsel %vm3843_vm7, %v3854_v53, %v3856_v50  ;;  %v12434_v47 = vmul.u32.u64.low %v3858_v44, %v3853_v40  ;;  %v12435_v33 = vmul.u32.u64.high %v3858_v44, %v3853_v40, %v12434_v47  ;;  %v12440_v18 = vmul.f32 %v3580_v35, %v3578_v28 }
 0x33f   : > { %v12444_v41 = vadd.s32 %v12315_v17, %v12326_v26  ;;  %v12446_v10 = vmul.u32.u64.low %v3858_v44, %v3857_v29  ;;  %v12447_v49 = vmul.u32.u64.high %v3858_v44, %v3857_v29, %v12446_v10  ;;  %v3928_v21 = vand.u32 31, %v3926_v6 }
 0x340   : > { %9403 = vcosq.f32 %v2442_v43  ;;  %v15933_v13 = vand.u32 2147483647, %v15859_v48  ;;  %v12458_v57 = vsel %vm2460_vm12, %v2544_v63, %v15932_v15  ;;  %v3782_v35 = vsub.s32 4294967266, %v12429_v61 }
 0x341   : > { %v3865_v17 = vmul.u32 %v3858_v44, %v3849_v51  ;;  %9405 = vsinq.f32 %v2442_v43  ;;  %v2447_v26 = vadd.s32 3, %v2443_v8  ;;  %v3868_v28 = vadd.s32 1, %v12435_v33 }
 0x342   : > { %vm12451_vm8 = vcmp.le.f32.partialorder %v15933_v13, 0.7853982  ;;  %v3929_v55 = vsub.s32 32, %v3928_v21  ;;  %v12462_v32 = vshll.u32 %v3922_v36, 8  ;;  %v3778_v3 = vsub.s32 32, %v12429_v61 }
 0x343   : > { %v2546_v7 = vsel %vm12451_vm8, %v15859_v48, %v11882_v5  ;;  %vm3867_vm12 = vc.u32 %v12447_v49, %v12434_v47  ;;  %v3927_v59 = vshrl.u32 %v3926_v6, 5  ;;  %v3931_v44 = vshll.u32 %v15714_v20, %v3928_v21  ;;  %v624_v6 = vpop.permute.xlu1 %623 }
 0x344   : > { %v3869_v43 = vsel %vm3867_vm12, %v3868_v28, %v12435_v33  ;;  %v3932_v16 = vshrl.u32 %v15715_v38, %v3929_v55  ;;  %v3934_v58 = vshll.u32 %v15715_v38, %v3928_v21  ;;  %v3935_v12 = vshrl.u32 %v15716_v23, %v3929_v55 }
 0x345   : > { %v12476_v15 = vadd.s32 127, %v3782_v35  ;;  %v3870_v63 = vadd.s32 %v3869_v43, %v3865_v17  ;;  %v3937_v5 = vshll.u32 %v15716_v23, %v3928_v21  ;;  %v3938_v40 = vshrl.u32 %v15717_v46, %v3929_v55 }
 0x346   : > { %v3933_v53 = vor.u32 %v3932_v16, %v3931_v44  ;;  %v3936_v31 = vor.u32 %v3935_v12, %v3934_v58  ;;  %v3940_v8 = vshll.u32 %v15717_v46, %v3928_v21  ;;  %v3941_v51 = vshrl.u32 %v15718_v25, %v3929_v55 }
 0x347   : > { %v3871_v50 = vadd.s32 536870912, %v3870_v63  ;;  %v3939_v36 = vor.u32 %v3938_v40, %v3937_v5  ;;  %v3943_v29 = vshll.u32 %v15718_v25, %v3928_v21  ;;  %v3944_v33 = vshrl.u32 %v15719_v14, %v3929_v55 }
 0x348   : > { %v3930_v10 = vshrl.u32 %v15714_v20, %v3929_v55  ;;  %v3942_v13 = vor.u32 %v3941_v51, %v3940_v8  ;;  %vm3946_vm6 = vcmp.lt.s32.totalorder %v3927_v59, 1  ;;  %9407 = vcosq.f32 %v2546_v7 }
 0x349   : > { %v12485_v35 = vshrl.u32 %v3871_v50, 30  ;;  %v3945_v17 = vor.u32 %v3944_v33, %v3943_v29  ;;  %vm3948_vm14 = vcmp.lt.s32.totalorder %v3927_v59, 3  ;;  %vm3949_vm13 = vcmp.lt.s32.totalorder %v3927_v59, 4 }
 0x34a   : > { %v9404_v28 = vpop.eup %9403  ;;  %vm3396_vm1 = vcmp.lt.s32.totalorder %v12005_v39, 0  ;;  %v3951_v44 = vsel %vm3949_vm13, %v3939_v36, 2102212464  ;;  %v3954_v43 = vsel %vm3946_vm6, %v3933_v53, %v3936_v31  ;;  %v3955_v21 = vsel %vm3949_vm13, %v3942_v13, 920167782 }
 0x34b   : > { %15936 = vst [vmem:[#allocation34_spill] sm:$0xff] %v12485_v35  ;;  %v3958_v16 = vsel %vm3946_vm6, %v3936_v31, %v3939_v36  ;;  %v9406_v58 = vpop.eup %9405  ;;  %v3873_v55 = vshll.u32 %v12485_v35, 30  ;;  %vm3947_vm9 = vcmp.lt.s32.totalorder %v3927_v59, 2  ;;  %v3956_v12 = vsel %vm3948_vm14, %v3939_v36, %v3955_v21  ;;  %v789_v35 = vpop.permute.xlu1 %788  ;;  %v15937_v36 = vld [vmem:[#allocation19_spill] sm:$0xff] }
 0x34c   : > { %v3959_v5 = vsel %vm3949_vm13, %v3945_v17, 1326507024  ;;  %v3950_v40 = vsel %vm3946_vm6, %v3930_v10, %v3933_v53  ;;  %v3952_v8 = vsel %vm3948_vm14, %v3936_v31, %v3951_v44  ;;  %v3957_v51 = vsel %vm3947_vm9, %v3954_v43, %v3956_v12 }
 0x34d   : > { %v3960_v50 = vsel %vm3948_vm14, %v3942_v13, %v3959_v5  ;;  %v12496_v29 = vsub.s32 %v3870_v63, %v3873_v55  ;;  %v12500_v0 = vmul.u32.u64.low %v12462_v32, %v3957_v51  ;;  %v12501_v42 = vmul.u32.u64.high %v12462_v32, %v3957_v51, %v12500_v0 }
 0x34e   : > { %v3961_v33 = vsel %vm3947_vm9, %v3958_v16, %v3960_v50  ;;  %vm15697_vm7 = vcmp.lt.s32.totalorder %v15937_v36, 0  ;;  %v2448_v31 = vand.u32 3, %v2447_v26  ;;  %v2547_v63 = vsel %vm12451_vm8, 0, %v12458_v57  ;;  %v9485_v26 = vld [vmem:[%s15513_s1] ss:$0 sm:$0xff] }
 0x34f   : > { %v12506_v53 = vmul.u32.u64.low %v12462_v32, %v3961_v33  ;;  %v12507_v10 = vmul.u32.u64.high %v12462_v32, %v3961_v33, %v12506_v53  ;;  %v3779_v13 = vshll.u32 %v12380_v30, %v12429_v61  ;;  %v3876_v17 = vsub.s32 0, %v12496_v29 }
 0x350   : > { %v3953_v44 = vsel %vm3947_vm9, %v3950_v40, %v3952_v8  ;;  %9409 = vsinq.f32 %v2546_v7  ;;  %v3780_v43 = vshrl.u32 %v12444_v41, %v3778_v3  ;;  %v3784_v21 = vshll.u32 %v12476_v15, 23 }
 0x351   : > { %v661_v16 = vmul.f32 %v9485_v26, %v624_v6  ;;  %v826_v57 = vmul.f32 %v9486_v60, %v789_v35  ;;  %v8494_v30 = vmin.u32 %v3876_v17, %v12496_v29  ;;  %v3972_v61 = vadd.s32 1, %v12501_v42 }
 0x352   : > { %v2451_v59 = vxor.u32 2147483648, %v9406_v58  ;;  %v2551_v7 = vadd.s32 3, %v2547_v63  ;;  %v9408_v55 = vpop.eup %9407  ;;  %v3969_v41 = vmul.u32 %v12462_v32, %v3953_v44  ;;  %vm3971_vm15 = vc.u32 %v12507_v10, %v12500_v0 }
 0x353   : > { %v2454_v3 = vxor.u32 2147483648, %v9404_v28  ;;  %v858_v15 = vadd.f32 %v826_v57, %v661_v16  ;;  %v15938_v6 = vxor.u32 2147483648, %v12359_v37  ;;  %v3582_v12 = vxor.u32 2147483648, %v12440_v18 }
 0x354   : > { %v3878_v5 = vclz %v8494_v30  ;;  %v3973_v40 = vsel %vm3971_vm15, %v3972_v61, %v12501_v42  ;;  %v3781_v8 = vor.u32 %v3780_v43, %v3779_v13  ;;  %vm2450_vm5 = vcmp.eq.s32.totalorder %v2448_v31, 0  ;;  %v15940_v43 = vld [vmem:[#allocation60_spill] sm:$0xff] }
 0x355   : > { %v12534_v35 = vsel %vm3396_vm1, %v15938_v6, %v12359_v37  ;;  %v3974_v51 = vadd.s32 %v3973_v40, %v3969_v41  ;;  %v12539_v32 = vadd.f32 %v12196_v4, %v858_v15  ;;  %v3785_v50 = vor.u32 4788187, %v3784_v21 }
 0x356   : > { %v2452_v33 = vsel %vm2450_vm5, %v9404_v28, %v2451_v59  ;;  %vm2453_vm8 = vcmp.eq.s32.totalorder %v2448_v31, 2  ;;  %v2552_v53 = vand.u32 3, %v2551_v7  ;;  %v2558_v44 = vxor.u32 2147483648, %v9408_v55 }
 0x357   : > { %v3975_v63 = vadd.s32 536870912, %v3974_v51  ;;  %v2455_v17 = vsel %vm2453_vm8, %v2454_v3, %v9406_v58  ;;  %v4125_v37 = vand.u32 2139095040, %v12539_v32  ;;  %v12545_v26 = vsel %vm15697_vm7, %v3582_v12, %v12440_v18 }
 0x358   : > { %v8495_v42 = vadd.s32 4294967294, %v3878_v5  ;;  %vm2446_vm12 = vweird.f32 %v15926_v45  ;;  %vm2449_vm6 = vcmp.lt.s32.totalorder %v2448_v31, 2  ;;  %v3788_v4 = vcvt.s32.f32 %v3781_v8  ;;  %v15941_v5 = vld [vmem:[#allocation68_spill] sm:$0xff] }
 0x359   : > { %v12548_v13 = vshrl.u32 %v3975_v63, 30  ;;  %v4126_v28 = vshrl.u32 %v4125_v37, 23  ;;  %v15688_v21 = vand.u32 2147483647, %v15940_v43  ;;  %v3786_v58 = vand.u32 2147483647, %v3785_v50 }
 0x35a   : > { %v9410_v16 = vpop.eup %9409  ;;  %v2456_v60 = vsel %vm2449_vm6, %v2452_v33, %v2455_v17  ;;  %vm2550_vm14 = vweird.f32 %v15859_v48  ;;  %vm2557_vm13 = vcmp.eq.s32.totalorder %v2552_v53, 2  ;;  %vm8496_vm9 = vcmp.lt.s32.totalorder %v8495_v42, 0 }
 0x35b   : > { %15939 = vst [vmem:[#allocation15_spill] sm:$0xff] %v12548_v13  ;;  %v3977_v57 = vshll.u32 %v12548_v13, 30  ;;  %v2555_v18 = vxor.u32 2147483648, %v9410_v16  ;;  %v2559_v30 = vsel %vm2557_vm13, %v2558_v44, %v9410_v16  ;;  %v8505_v61 = vadd.s32 4294967169, %v4126_v28 }
 0x35c   : > { %vm2553_vm15 = vcmp.lt.s32.totalorder %v2552_v53, 2  ;;  %vm2554_vm5 = vcmp.eq.s32.totalorder %v2552_v53, 0  ;;  %v15687_v31 = vand.u32 2147483647, %v12539_v32  ;;  %v12558_v3 = vand.u32 8388607, %v15688_v21 }
 0x35d   : > { %v12554_v59 = vsub.s32 %v3974_v51, %v3977_v57  ;;  %v2556_v7 = vsel %vm2554_vm5, %v9408_v55, %v2555_v18  ;;  %v4132_v41 = vadd.s32 1, %v8505_v61  ;;  %v12560_v15 = vmul.f32 %v3788_v4, %v3786_v58  ;;  %v15942_v55 = vld [vmem:[#allocation72_spill] sm:$0xff] }
 0x35e   : > { %v2457_v6 = vsel %vm2446_vm12, nan, %v2456_v60  ;;  %v2560_v12 = vsel %vm2553_vm15, %v2556_v7, %v2559_v30  ;;  %v2579_v40 = vshll.u32 %v15714_v20, %v15941_v5  ;;  %v3881_v8 = vsel %vm8496_vm9, 0, %v8495_v42 }
 0x35f   : > { %v2561_v51 = vsel %vm2550_vm14, nan, %v2560_v12  ;;  %vm4133_vm8 = vcmp.gt.s32.totalorder %v4132_v41, 0  ;;  %v2580_v50 = vshrl.u32 %v15715_v38, %v15942_v55  ;;  %v3866_v33 = vadd.s32 %v12434_v47, %v12447_v49 }
 0x360   : > { %v4238_v53 = vpack.c.bf16 %v2561_v51, %v2457_v6  ;;  %v4129_v45 = vand.u32 8388607, %v15687_v31  ;;  %v4134_v63 = vsel %vm4133_vm8, %v4132_v41, 0  ;;  %v3980_v17 = vsub.s32 0, %v12554_v59 }
 0x361   : > { %v4136_v44 = vand.u32 31, %v4134_v63  ;;  %v12578_v48 = vshrl.u32 %v15714_v20, %v15942_v55  ;;  %v3882_v42 = vsub.s32 32, %v3881_v8  ;;  %v3883_v4 = vshll.u32 %v12496_v29, %v3881_v8 }
 0x362   : > { %v3886_v28 = vsub.s32 4294967266, %v3881_v8  ;;  %8862 = vmatmul.mubr.msk.bf16.gmra.mrb[12].mxu0 %vm15696_vm10, %v4238_v53  ;;  %v2582_v47 = vshll.u32 %v15715_v38, %v15941_v5  ;;  %v12586_v60 = vor.u32 %v2580_v50, %v2579_v40  ;;  %v4130_v57 = vor.u32 8388608, %v4129_v45 }
 0x363   : > { %v4137_v49 = vsub.s32 32, %v4136_v44  ;;  %v4139_v16 = vshll.u32 %v15714_v20, %v4136_v44  ;;  %v4142_v58 = vshll.u32 %v15715_v38, %v4136_v44  ;;  %v4135_v18 = vshrl.u32 %v4134_v63, 5 }
 0x364   : > { %v4145_v30 = vshll.u32 %v15716_v23, %v4136_v44  ;;  %v4148_v61 = vshll.u32 %v15717_v46, %v4136_v44  ;;  %v8498_v29 = vmin.u32 %v3980_v17, %v12554_v59  ;;  %v4151_v6 = vshll.u32 %v15718_v25, %v4136_v44 }
 0x365   : > { %v4140_v7 = vshrl.u32 %v15715_v38, %v4137_v49  ;;  %v4143_v41 = vshrl.u32 %v15716_v23, %v4137_v49  ;;  %v3884_v12 = vshrl.u32 %v3866_v33, %v3882_v42  ;;  %v4146_v8 = vshrl.u32 %v15717_v46, %v4137_v49 }
 0x366   : > { %v4149_v40 = vshrl.u32 %v15718_v25, %v4137_v49  ;;  %v4152_v51 = vshrl.u32 %v15719_v14, %v4137_v49  ;;  %v3887_v50 = vadd.s32 127, %v3886_v28  ;;  %v4138_v53 = vshrl.u32 %v15714_v20, %v4137_v49 }
 0x367   : > { %v4141_v45 = vor.u32 %v4140_v7, %v4139_v16  ;;  %v4144_v63 = vor.u32 %v4143_v41, %v4142_v58  ;;  %v4147_v31 = vor.u32 %v4146_v8, %v4145_v30  ;;  %vm4154_vm12 = vcmp.lt.s32.totalorder %v4135_v18, 1 }
 0x368   : > { %v4150_v17 = vor.u32 %v4149_v40, %v4148_v61  ;;  %v2583_v21 = vshrl.u32 %v15716_v23, %v15942_v55  ;;  %v3982_v37 = vclz %v8498_v29  ;;  %v4153_v44 = vor.u32 %v4152_v51, %v4151_v6 }
 0x369   : > { %v4170_v33 = vshll.u32 %v4130_v57, 8  ;;  %v2585_v42 = vshll.u32 %v15716_v23, %v15941_v5  ;;  %vm4156_vm6 = vcmp.lt.s32.totalorder %v4135_v18, 3  ;;  %vm4157_vm14 = vcmp.lt.s32.totalorder %v4135_v18, 4 }
 0x36a   : > { %v2588_v28 = vshll.u32 %v15717_v46, %v15941_v5  ;;  %v2589_v49 = vshrl.u32 %v15718_v25, %v15942_v55  ;;  %vm4155_vm13 = vcmp.lt.s32.totalorder %v4135_v18, 2  ;;  %v4158_v16 = vsel %vm4154_vm12, %v4138_v53, %v4141_v45  ;;  %v12632_v18 = vld [vmem:[%s9644_s24] sm:$0xff]  }
 0x36b   : > { %v4159_v58 = vsel %vm4157_vm14, %v4147_v31, 2102212464  ;;  %v4162_v30 = vsel %vm4154_vm12, %v4141_v45, %v4144_v63  ;;  %v4163_v57 = vsel %vm4157_vm14, %v4150_v17, 920167782  ;;  %v4166_v29 = vsel %vm4154_vm12, %v4144_v63, %v4147_v31  ;;  %8881 = vmatprep.subr.bf16.mxu1 %v12632_v18 }
 0x36c   : > { %v4160_v61 = vsel %vm4156_vm6, %v4144_v63, %v4159_v58  ;;  %v4167_v7 = vsel %vm4157_vm14, %v4153_v44, 1326507024  ;;  %v12610_v41 = vor.u32 %v3884_v12, %v3883_v4  ;;  %v8499_v6 = vadd.s32 4294967294, %v3982_v37 }
 0x36d   : > { %v4164_v8 = vsel %vm4156_vm6, %v4147_v31, %v4163_v57  ;;  %v2586_v40 = vshrl.u32 %v15717_v46, %v15942_v55  ;;  %v3888_v51 = vshll.u32 %v3887_v50, 23  ;;  %v4168_v45 = vsel %vm4156_vm6, %v4150_v17, %v4167_v7 }
 0x36e   : > { %v4165_v53 = vsel %vm4155_vm13, %v4162_v30, %v4164_v8  ;;  %v2584_v13 = vor.u32 %v2583_v21, %v2582_v47  ;;  %v4161_v58 = vsel %vm4155_vm13, %v4158_v16, %v4160_v61  ;;  %v4169_v63 = vsel %vm4155_vm13, %v4166_v29, %v4168_v45  ;;  %v15943_v47 = vld [vmem:[#allocation71_spill] sm:$0xff] }
 0x36f   : > { %v2590_v44 = vor.u32 %v2589_v49, %v2588_v28  ;;  %v2591_v37 = vshll.u32 %v15718_v25, %v15941_v5  ;;  %v12621_v4 = vmul.u32.u64.low %v4170_v33, %v4169_v63  ;;  %v12622_v31 = vmul.u32.u64.high %v4170_v33, %v4169_v63, %v12621_v4 }
 0x370   : > { %v12624_v12 = vmul.u32.u64.low %v4170_v33, %v4165_v53  ;;  %v12625_v57 = vmul.u32.u64.high %v4170_v33, %v4165_v53, %v12624_v12  ;;  %vm8500_vm9 = vcmp.lt.s32.totalorder %v8499_v6, 0  ;;  %v2587_v50 = vor.u32 %v2586_v40, %v2585_v42 }
 0x371   : > { %v2592_v21 = vshrl.u32 %v15719_v14, %v15942_v55  ;;  %vm2594_vm15 = vcmp.lt.s32.totalorder %v15943_v47, 1  ;;  %v4177_v17 = vmul.u32 %v4170_v33, %v4161_v58  ;;  %vm2595_vm5 = vcmp.lt.s32.totalorder %v15943_v47, 2 }
 0x372   : > { %vm2596_vm8 = vcmp.lt.s32.totalorder %v15943_v47, 3  ;;  %vm2597_vm12 = vcmp.lt.s32.totalorder %v15943_v47, 4  ;;  %v2602_v42 = vsel %vm2594_vm15, %v12586_v60, %v2584_v13  ;;  %v12645_v33 = vor.u32 4788187, %v3888_v51 }
 0x373   : > { %v2593_v5 = vor.u32 %v2592_v21, %v2591_v37  ;;  %v2599_v28 = vsel %vm2597_vm12, %v2587_v50, 2102212464  ;;  %v2603_v55 = vsel %vm2597_vm12, %v2590_v44, 920167782  ;;  %v12648_v49 = vsel %vm8500_vm9, 0, %v8499_v6  ;;  %v15945_v21 = vld [vmem:[#allocation64_spill] sm:$0xff] }
 0x374   : > { %vm4179_vm6 = vc.u32 %v12622_v31, %v12624_v12  ;;  %v4180_v16 = vadd.s32 1, %v12625_v57  ;;  %v2598_v30 = vsel %vm2594_vm15, %v12578_v48, %v12586_v60  ;;  %v2600_v61 = vsel %vm2596_vm8, %v2584_v13, %v2599_v28 }
 0x375   : > { %v2604_v29 = vsel %vm2596_vm8, %v2587_v50, %v2603_v55  ;;  %v2606_v7 = vsel %vm2594_vm15, %v2584_v13, %v2587_v50  ;;  %v2607_v40 = vsel %vm2597_vm12, %v2593_v5, 1326507024  ;;  %v15944_v51 = vor.u32 8388608, %v12558_v3 }
 0x376   : > { %v4181_v6 = vsel %vm4179_vm6, %v4180_v16, %v12625_v57  ;;  %v2605_v8 = vsel %vm2595_vm5, %v2602_v42, %v2604_v29  ;;  %v3790_v60 = vxor.u32 2147483648, %v12560_v15  ;;  %v3986_v53 = vsub.s32 32, %v12648_v49  ;;  %v15946_v42 = vld [vmem:[#allocation33_spill] sm:$0xff] }
 0x377   : > { %v2610_v48 = vshll.u32 %v15944_v51, 8  ;;  %v4182_v45 = vadd.s32 %v4181_v6, %v4177_v17  ;;  %v2608_v58 = vsel %vm2596_vm8, %v2590_v44, %v2607_v40  ;;  %v2601_v13 = vsel %vm2595_vm5, %v2598_v30, %v2600_v61 }
 0x378   : > { %v2609_v63 = vsel %vm2595_vm5, %v2606_v7, %v2608_v58  ;;  %v2666_v5 = vand.u32 2147483647, %v15945_v21  ;;  %v3890_v17 = vand.u32 2147483647, %v12645_v33  ;;  %v3892_v44 = vcvt.s32.f32 %v12610_v41  ;;  %v15947_v33 = vld [vmem:[#allocation23_spill] sm:$0xff] }
 0x379   : > { %v12678_v37 = vmul.u32.u64.low %v2610_v48, %v2605_v8  ;;  %v12679_v4 = vmul.u32.u64.high %v2610_v48, %v2605_v8, %v12678_v37  ;;  %v4183_v3 = vadd.s32 536870912, %v4182_v45  ;;  %v3970_v28 = vadd.s32 %v12500_v0, %v12507_v10 }
 0x37a   : > { %v12682_v57 = vmul.u32.u64.low %v2610_v48, %v2609_v63  ;;  %v12683_v50 = vmul.u32.u64.high %v2610_v48, %v2609_v63, %v12682_v57  ;;  %v2684_v47 = vshrl.u32 %v15715_v38, %v15946_v42  ;;  %v3987_v55 = vshll.u32 %v12554_v59, %v12648_v49 }
 0x37b   : > { %v3990_v16 = vsub.s32 4294967266, %v12648_v49  ;;  %v12695_v30 = vshrl.u32 %v4183_v3, 30  ;;  %v2617_v61 = vmul.u32 %v2610_v48, %v2601_v13  ;;  %v3988_v29 = vshrl.u32 %v3970_v28, %v3986_v53 }
 0x37c   : > { %v2620_v7 = vadd.s32 1, %v12679_v4  ;;  %v2683_v41 = vshll.u32 %v15714_v20, %v15947_v33  ;;  %v2687_v0 = vshrl.u32 %v15716_v23, %v15946_v42  ;;  %vm2619_vm14 = vc.u32 %v12683_v50, %v12678_v37 }
 0x37d   : > { %v4185_v10 = vshll.u32 %v12695_v30, 30  ;;  %v2673_v59 = vand.u32 8388607, %v2666_v5  ;;  %v2686_v49 = vshll.u32 %v15715_v38, %v15947_v33  ;;  %v2689_v40 = vshll.u32 %v15716_v23, %v15947_v33 }
 0x37e   : > { %v2621_v6 = vsel %vm2619_vm14, %v2620_v7, %v12679_v4  ;;  %v2685_v8 = vor.u32 %v2684_v47, %v2683_v41  ;;  %v2690_v51 = vshrl.u32 %v15717_v46, %v15946_v42  ;;  %v2692_v58 = vshll.u32 %v15717_v46, %v15947_v33 }
 0x37f   : > { %v12714_v48 = vsub.s32 %v4182_v45, %v4185_v10  ;;  %v2622_v53 = vadd.s32 %v2621_v6, %v2617_v61  ;;  %v2693_v13 = vshrl.u32 %v15718_v25, %v15946_v42  ;;  %v2688_v63 = vor.u32 %v2687_v0, %v2686_v49  ;;  %v15948_v61 = vld [vmem:[#allocation30_spill] sm:$0xff] }
 0x380   : > { %v2691_v38 = vor.u32 %v2690_v51, %v2689_v40  ;;  %v2695_v4 = vshll.u32 %v15718_v25, %v15947_v33  ;;  %v2696_v23 = vshrl.u32 %v15719_v14, %v15946_v42  ;;  %v3991_v3 = vadd.s32 127, %v3990_v16 }
 0x381   : > { %v4188_v57 = vsub.s32 0, %v12714_v48  ;;  %v2623_v45 = vadd.s32 536870912, %v2622_v53  ;;  %v2694_v28 = vor.u32 %v2693_v13, %v2692_v58  ;;  %vm15695_vm13 = vcmp.lt.s32.totalorder %v12199_v34, 0  ;;  %v12744_v13 = vpop.f32.mrb[0].mxu0 }
 0x382   : > { %v2674_v47 = vor.u32 8388608, %v2673_v59  ;;  %v2697_v46 = vor.u32 %v2696_v23, %v2695_v4  ;;  %vm2698_vm9 = vcmp.lt.s32.totalorder %v15948_v61, 1  ;;  %vm2701_vm15 = vcmp.lt.s32.totalorder %v15948_v61, 4 }
 0x383   : > { %v8506_v7 = vmin.u32 %v4188_v57, %v12714_v48  ;;  %v12729_v41 = vshrl.u32 %v2623_v45, 30  ;;  %vm2700_vm5 = vcmp.lt.s32.totalorder %v15948_v61, 3  ;;  %v2707_v14 = vsel %vm2701_vm15, %v2694_v28, 920167782  ;;  %v12752_v45 = vpop.f32.mrb[1].mxu0 }
 0x384   : > { %v2706_v25 = vsel %vm2698_vm9, %v2685_v8, %v2688_v63  ;;  %v2708_v16 = vsel %vm2700_vm5, %v2691_v38, %v2707_v14  ;;  %v2710_v33 = vsel %vm2698_vm9, %v2688_v63, %v2691_v38  ;;  %v2711_v0 = vsel %vm2701_vm15, %v2697_v46, 1326507024 }
 0x385   : > { %v3992_v10 = vshll.u32 %v3991_v3, 23  ;;  %v4190_v59 = vclz %v8506_v7  ;;  %v2625_v49 = vshll.u32 %v12729_v41, 30  ;;  %v2682_v6 = vshrl.u32 %v15714_v20, %v15946_v42 }
 0x386   : > { %vm2699_vm8 = vcmp.lt.s32.totalorder %v15948_v61, 2  ;;  %v2703_v40 = vsel %vm2701_vm15, %v2691_v38, 2102212464  ;;  %v2712_v51 = vsel %vm2700_vm5, %v2694_v28, %v2711_v0  ;;  %v2714_v58 = vshll.u32 %v2674_v47, 8  ;;  %v12759_v28 = vpop.f32.mrb[2].mxu0 }
 0x387   : > { %v8507_v4 = vadd.s32 4294967294, %v4190_v59  ;;  %v12746_v23 = vsub.s32 %v2622_v53, %v2625_v49  ;;  %v2709_v3 = vsel %vm2699_vm8, %v2706_v25, %v2708_v16  ;;  %v2713_v57 = vsel %vm2699_vm8, %v2710_v33, %v2712_v51  ;;  %v12766_v14 = vpop.f32.mrb[3].mxu0 }
 0x388   : > { %v12754_v20 = vmul.f32 %v3892_v44, %v3890_v17  ;;  %v3989_v42 = vor.u32 %v3988_v29, %v3987_v55  ;;  %v12756_v38 = vmul.u32.u64.low %v2714_v58, %v2713_v57  ;;  %v12757_v46 = vmul.u32.u64.high %v2714_v58, %v2713_v57, %v12756_v38 }
 0x389   : > { %vm8508_vm12 = vcmp.lt.s32.totalorder %v8507_v4, 0  ;;  %v2628_v53 = vsub.s32 0, %v12746_v23  ;;  %v2702_v47 = vsel %vm2698_vm9, %v2682_v6, %v2685_v8  ;;  %v2704_v7 = vsel %vm2700_vm5, %v2688_v63, %v2703_v40 }
 0x38a   : > { %v3993_v25 = vor.u32 4788187, %v3992_v10  ;;  %v4193_v17 = vsel %vm8508_vm12, 0, %v8507_v4  ;;  %v12768_v44 = vmul.u32.u64.low %v2714_v58, %v2709_v3  ;;  %v12769_v55 = vmul.u32.u64.high %v2714_v58, %v2709_v3, %v12768_v44  ;;  %v15949_v10 = vld [vmem:[#allocation51_spill] sm:$0xff] }
 0x38b   : > { %v12777_v29 = vsel %vm15695_vm13, %v3790_v60, %v12560_v15  ;;  %v4194_v16 = vsub.s32 32, %v4193_v17  ;;  %v4198_v8 = vsub.s32 4294967266, %v4193_v17  ;;  %v8446_v33 = vmin.u32 %v2628_v53, %v12746_v23 }
 0x38c   : > { %v3894_v63 = vxor.u32 2147483648, %v12754_v20  ;;  %vm2564_vm6 = vcmp.lt.s32.totalorder %v15940_v43, 0  ;;  %v2705_v0 = vsel %vm2699_vm8, %v2702_v47, %v2704_v7  ;;  %v2856_v59 = vsub.s32 4, %v15949_v10  ;;  %v15953_v7 = vld [vmem:[#allocation43_spill] sm:$0xff] }
 0x38d   : > { %v4178_v49 = vadd.s32 %v12624_v12, %v12622_v31  ;;  %v4199_v6 = vadd.s32 127, %v4198_v8  ;;  %v15950_v15 = vand.u32 2147483647, %v15940_v43  ;;  %v2630_v40 = vclz %v8446_v33 }
 0x38e   : > { %vm2723_vm9 = vc.u32 %v12757_v46, %v12768_v44  ;;  %v3994_v51 = vand.u32 2147483647, %v3993_v25  ;;  %v3996_v4 = vcvt.s32.f32 %v3989_v42  ;;  %v2648_v61 = vsub.s32 4, %v12729_v41 }
 0x38f   : > { %vm12789_vm14 = vcmp.le.f32.partialorder %v15950_v15, 0.7853982  ;;  %v2724_v3 = vadd.s32 1, %v12769_v55  ;;  %v4196_v57 = vshrl.u32 %v4178_v49, %v4194_v16  ;;  %v4200_v38 = vshll.u32 %v4199_v6, 23  ;;  %v15958_v49 = vld [vmem:[#allocation62_spill] sm:$0xff] }
 0x390   : > { %v8447_v31 = vadd.s32 4294967294, %v2630_v40  ;;  %v2721_v12 = vmul.u32 %v2714_v58, %v2705_v0  ;;  %v4195_v53 = vshll.u32 %v12714_v48, %v4193_v17  ;;  %v15954_v8 = vand.u32 2147483647, %v15953_v7 }
 0x391   : > { %v2725_v47 = vsel %vm2723_vm9, %v2724_v3, %v12769_v55  ;;  %vm15957_vm5 = vcmp.lt.s32.totalorder %v15953_v7, 0  ;;  %v4201_v25 = vor.u32 4788187, %v4200_v38  ;;  %v3997_v58 = vmul.f32 %v3996_v4, %v3994_v51 }
 0x392   : > { %vm12801_vm15 = vcmp.le.f32.partialorder %v15954_v8, 0.7853982  ;;  %v2857_v42 = vsel %vm15957_vm5, %v2856_v59, %v15949_v10  ;;  %vm8448_vm8 = vcmp.lt.s32.totalorder %v8447_v31, 0  ;;  %v2726_v16 = vadd.s32 %v2725_v47, %v2721_v12 }
 0x393   : > { %v2858_v48 = vsel %vm12801_vm15, %v15953_v7, %v15958_v49  ;;  %v2618_v17 = vadd.s32 %v12678_v37, %v12683_v50  ;;  %v2633_v55 = vsel %vm8448_vm8, 0, %v8447_v31  ;;  %v2649_v0 = vsel %vm2564_vm6, %v2648_v61, %v12729_v41  ;;  %v15962_v61 = vld [vmem:[#allocation16_spill] sm:$0xff] }
 0x394   : > { %v4197_v6 = vor.u32 %v4196_v57, %v4195_v53  ;;  %v2634_v15 = vsub.s32 32, %v2633_v55  ;;  %v2638_v10 = vsub.s32 4294967266, %v2633_v55  ;;  %v2859_v59 = vsel %vm12801_vm15, 0, %v2857_v42 }
 0x395   : > { %vm15694_vm12 = vcmp.lt.s32.totalorder %v12356_v56, 0  ;;  %v4202_v40 = vand.u32 2147483647, %v4201_v25  ;;  %v2727_v3 = vadd.s32 536870912, %v2726_v16  ;;  %9411 = vcosq.f32 %v2858_v48 }
 0x396   : > { %v15959_v51 = vand.u32 2147483647, %v11189_v52  ;;  %vm15692_vm5 = vcmp.lt.s32.totalorder %v12368_v9, 0  ;;  %v2635_v50 = vshll.u32 %v12746_v23, %v2633_v55  ;;  %v2636_v41 = vshrl.u32 %v2618_v17, %v2634_v15 }
 0x397   : > { %v2639_v4 = vadd.s32 127, %v2638_v10  ;;  %v2960_v57 = vsub.s32 4, %v15962_v61  ;;  %v2651_v38 = vsel %vm12789_vm14, 0, %v2649_v0  ;;  %v2728_v31 = vshrl.u32 %v2727_v3, 30  ;;  %v15963_v0 = vld [vmem:[#allocation24_spill] sm:$0xff] }
 0x398   : > { %vm12822_vm9 = vcmp.le.f32.partialorder %v15959_v51, 0.7853982  ;;  %9413 = vsinq.f32 %v2858_v48  ;;  %v4204_v53 = vcvt.s32.f32 %v4197_v6  ;;  %v2637_v47 = vor.u32 %v2636_v41, %v2635_v50  ;;  %v12851_v51 = vpop.f32.mrb[4].mxu0 }
 0x399   : > { %v2962_v12 = vsel %vm12822_vm9, %v11189_v52, %v12249_v62  ;;  %v2640_v8 = vshll.u32 %v2639_v4, 23  ;;  %v2863_v33 = vadd.s32 3, %v2859_v59  ;;  %v3998_v42 = vxor.u32 2147483648, %v3997_v58 }
 0x39a   : > { %vm15693_vm15 = vcmp.lt.s32.totalorder %v12539_v32, 0  ;;  %v2729_v23 = vshll.u32 %v2728_v31, 30  ;;  %v2752_v25 = vsub.s32 4, %v2728_v31  ;;  %9415 = vcosq.f32 %v2962_v12 }
 0x39b   : > { %v4205_v49 = vmul.f32 %v4204_v53, %v4202_v40  ;;  %v2641_v17 = vor.u32 4788187, %v2640_v8  ;;  %v2961_v48 = vsel %vm2876_vm11, %v2960_v57, %v15962_v61  ;;  %9417 = vsinq.f32 %v2962_v12  ;;  %v12862_v61 = vpop.f32.mrb[5].mxu0 }
 0x39c   : > { %v2655_v55 = vadd.s32 3, %v2651_v38  ;;  %vm2668_vm8 = vcmp.lt.s32.totalorder %v15945_v21, 0  ;;  %v12840_v62 = vsub.s32 %v2726_v16, %v2729_v23  ;;  %v3064_v6 = vsub.s32 4, %v15963_v0 }
 0x39d   : > { %v2642_v15 = vand.u32 2147483647, %v2641_v17  ;;  %v2644_v10 = vcvt.s32.f32 %v2637_v47  ;;  %v12843_v59 = vand.u32 3, %v2863_v33  ;;  %v15964_v3 = vand.u32 2147483647, %v11280_v27 }
 0x39e   : > { %v2732_v50 = vsub.s32 0, %v12840_v62  ;;  %v2753_v16 = vsel %vm2668_vm8, %v2752_v25, %v2728_v31  ;;  %v2963_v41 = vsel %vm12822_vm9, 0, %v2961_v48  ;;  %v12869_v57 = vsel %vm15694_vm12, %v3894_v63, %v12754_v20  ;;  %v12874_v31 = vpop.f32.mrb[6].mxu0 }
 0x39f   : > { %vm12847_vm0 = vcmp.le.f32.partialorder %v15964_v3, 0.7853982  ;;  %v4206_v38 = vxor.u32 2147483648, %v4205_v49  ;;  %v2645_v12 = vmul.f32 %v2644_v10, %v2642_v15  ;;  %v3065_v37 = vsel %vm2980_vm4, %v3064_v6, %v15963_v0  ;;  %v9412_v53 = vpop.eup %9411  ;;  %v12889_v8 = vpop.f32.mrb[7].mxu0 }
 0x3a0   : > { %v3066_v4 = vsel %vm12847_vm0, %v11280_v27, %v12253_v19  ;;  %v12878_v19 = vsel %vm15692_vm5, %v3998_v42, %v3997_v58  ;;  %v12880_v47 = vand.u32 3, %v2655_v55  ;;  %vm12884_vm11 = vcmp.le.f32.partialorder %v2666_v5, 0.7853982  ;;  %15969 = vst [vmem:[#allocation17_spill] sm:$0xff] %v12889_v8 }
 0x3a1   : > { %v8450_v63 = vmin.u32 %v2732_v50, %v12840_v62  ;;  %v2646_v33 = vxor.u32 2147483648, %v2645_v12  ;;  %v2755_v23 = vsel %vm12884_vm11, 0, %v2753_v16  ;;  %v2967_v25 = vadd.s32 3, %v2963_v41  ;;  %v15970_v50 = vld [vmem:[#allocation31_spill] sm:$0xff] }
 0x3a2   : > { %9419 = vcosq.f32 %v3066_v4  ;;  %v9414_v58 = vpop.eup %9413  ;;  %v2722_v42 = vadd.s32 %v12768_v44, %v12757_v46  ;;  %vm2866_vm4 = vcmp.eq.s32.totalorder %v12843_v59, 0  ;;  %v3067_v5 = vsel %vm12847_vm0, 0, %v3065_v37 }
 0x3a3   : > { %v2734_v17 = vclz %v8450_v63  ;;  %v12900_v48 = vsel %vm15693_vm15, %v4206_v38, %v4205_v49  ;;  %v2647_v55 = vsel %vm2564_vm6, %v2646_v33, %v2645_v12  ;;  %vm2865_vm9 = vcmp.lt.s32.totalorder %v12843_v59, 2 }
 0x3a4   : > { %vm2869_vm5 = vcmp.eq.s32.totalorder %v12843_v59, 2  ;;  %9421 = vsinq.f32 %v3066_v4  ;;  %v9416_v0 = vpop.eup %9415  ;;  %v2650_v46 = vsel %vm12789_vm14, %v15940_v43, %v2647_v55  ;;  %v2759_v6 = vadd.s32 3, %v2755_v23 }
 0x3a5   : > { %v8451_v44 = vadd.s32 4294967294, %v2734_v17  ;;  %v2870_v15 = vxor.u32 2147483648, %v9412_v53  ;;  %v9418_v10 = vpop.eup %9417  ;;  %v2867_v3 = vxor.u32 2147483648, %v9414_v58  ;;  %v2968_v49 = vand.u32 3, %v2967_v25 }
 0x3a6   : > { %v3071_v40 = vadd.s32 3, %v3067_v5  ;;  %v3168_v16 = vsub.s32 4, %v15970_v50  ;;  %9423 = vcosq.f32 %v2650_v46  ;;  %vm2862_vm6 = vweird.f32 %v15953_v7 }
 0x3a7   : > { %vm8452_vm0 = vcmp.lt.s32.totalorder %v8451_v44, 0  ;;  %v2974_v41 = vxor.u32 2147483648, %v9416_v0  ;;  %v15971_v4 = vand.u32 2147483647, %v15913_v11  ;;  %9425 = vsinq.f32 %v2650_v46 }
 0x3a8   : > { %v2737_v60 = vsel %vm8452_vm0, 0, %v8451_v44  ;;  %v2971_v12 = vxor.u32 2147483648, %v9418_v10  ;;  %v3169_v37 = vsel %vm3084_vm3, %v3168_v16, %v15970_v50  ;;  %v2871_v23 = vsel %vm2869_vm5, %v2870_v15, %v9414_v58 }
 0x3a9   : > { %vm12913_vm15 = vcmp.le.f32.partialorder %v15971_v4, 0.7853982  ;;  %v2738_v63 = vsub.s32 32, %v2737_v60  ;;  %v2742_v33 = vsub.s32 4294967266, %v2737_v60  ;;  %vm2966_vm14 = vweird.f32 %v11189_v52 }
 0x3aa   : > { %v3170_v25 = vsel %vm12913_vm15, %v15913_v11, %v12335_v54  ;;  %v2868_v17 = vsel %vm2866_vm4, %v9412_v53, %v2867_v3  ;;  %vm2970_vm0 = vcmp.eq.s32.totalorder %v2968_v49, 0  ;;  %vm2973_vm12 = vcmp.eq.s32.totalorder %v2968_v49, 2 }
 0x3ab   : > { %v3072_v5 = vand.u32 3, %v3071_v40  ;;  %v2739_v55 = vshll.u32 %v12840_v62, %v2737_v60  ;;  %v2740_v46 = vshrl.u32 %v2722_v42, %v2738_v63  ;;  %v2743_v44 = vadd.s32 127, %v2742_v33  ;;  %v15974_v42 = vld [vmem:[#allocation58_spill] sm:$0xff] }
 0x3ac   : > { %v3171_v58 = vsel %vm12913_vm15, 0, %v3169_v37  ;;  %v9420_v15 = vpop.eup %9419  ;;  %v2972_v50 = vsel %vm2970_vm0, %v9416_v0, %v2971_v12  ;;  %v2975_v16 = vsel %vm2973_vm12, %v2974_v41, %v9418_v10  ;;  %9427 = vcosq.f32 %v3170_v25 }
 0x3ad   : > { %v3175_v4 = vadd.s32 3, %v3171_v58  ;;  %v2741_v8 = vor.u32 %v2740_v46, %v2739_v55  ;;  %v2744_v54 = vshll.u32 %v2743_v44, 23  ;;  %v2872_v53 = vsel %vm2865_vm9, %v2868_v17, %v2871_v23  ;;  %v15979_v23 = vld [vmem:[#allocation70_spill] sm:$0xff] }
 0x3ae   : > { %9429 = vsinq.f32 %v3170_v25  ;;  %v9422_v3 = vpop.eup %9421  ;;  %v12934_v40 = vand.u32 3, %v2759_v6  ;;  %vm2969_vm3 = vcmp.lt.s32.totalorder %v2968_v49, 2  ;;  %v3078_v62 = vxor.u32 2147483648, %v9420_v15  ;;  %v15975_v6 = vld [vmem:[#allocation20_spill] sm:$0xff] }
 0x3af   : > { %v3272_v60 = vsub.s32 4, %v15974_v42  ;;  %vm2661_vm5 = vcmp.eq.s32.totalorder %v12880_v47, 2  ;;  %v2745_v38 = vor.u32 4788187, %v2744_v54  ;;  %v2976_v0 = vsel %vm2969_vm3, %v2972_v50, %v2975_v16  ;;  %v15984_v16 = vld [vmem:[#allocation13_spill] sm:$0xff] }
 0x3b0   : > { %v3075_v10 = vxor.u32 2147483648, %v9422_v3  ;;  %v3176_v41 = vand.u32 3, %v3175_v4  ;;  %vm2658_vm12 = vcmp.eq.s32.totalorder %v12880_v47, 0  ;;  %v12941_v59 = vsel %vm2862_vm6, nan, %v2872_v53  ;;  %v9424_v37 = vpop.eup %9423 }
 0x3b1   : > { %vm3073_vm15 = vcmp.lt.s32.totalorder %v3072_v5, 2  ;;  %vm3074_vm4 = vcmp.eq.s32.totalorder %v3072_v5, 0  ;;  %v15976_v12 = vand.u32 2147483647, %v15975_v6  ;;  %v2746_v63 = vand.u32 2147483647, %v2745_v38  ;;  %v9426_v7 = vpop.eup %9425 }
 0x3b2   : > { %v2748_v33 = vcvt.s32.f32 %v2741_v8  ;;  %vm3077_vm0 = vcmp.eq.s32.totalorder %v3072_v5, 2  ;;  %v12955_v17 = vsel %vm2966_vm14, nan, %v2976_v0  ;;  %vm15980_vm6 = vcmp.lt.s32.totalorder %v15975_v6, 0 }
 0x3b3   : > { %vm12945_vm9 = vcmp.le.f32.partialorder %v15976_v12, 0.7853982  ;;  %v3079_v55 = vsel %vm3077_vm0, %v3078_v62, %v9422_v3  ;;  %v3273_v46 = vsel %vm15980_vm6, %v3272_v60, %v15974_v42  ;;  %v3076_v58 = vsel %vm3074_vm4, %v9420_v15, %v3075_v10 }
 0x3b4   : > { %v3274_v25 = vsel %vm12945_vm9, %v15975_v6, %v15979_v23  ;;  %v2749_v44 = vmul.f32 %v2748_v33, %v2746_v63  ;;  %vm3177_vm3 = vcmp.lt.s32.totalorder %v3176_v41, 2  ;;  %vm2657_vm13 = vcmp.lt.s32.totalorder %v12880_v47, 2 }
 0x3b5   : > { %9431 = vcosq.f32 %v3274_v25  ;;  %v2662_v8 = vxor.u32 2147483648, %v9424_v37  ;;  %vm3178_vm10 = vcmp.eq.s32.totalorder %v3176_v41, 0  ;;  %v15981_v50 = vand.u32 2147483647, %v11905_v1 }
 0x3b6   : > { %9433 = vsinq.f32 %v3274_v25  ;;  %v3376_v4 = vsub.s32 4, %v15984_v16  ;;  %v2659_v54 = vxor.u32 2147483648, %v9426_v7  ;;  %v2750_v53 = vxor.u32 2147483648, %v2749_v44  ;;  %v9428_v62 = vpop.eup %9427 }
 0x3b7   : > { %vm12963_vm7 = vcmp.le.f32.partialorder %v15981_v50, 0.7853982  ;;  %v3275_v3 = vsel %vm12945_vm9, 0, %v3273_v46  ;;  %v3080_v42 = vsel %vm3073_vm15, %v3076_v58, %v3079_v55  ;;  %vm3181_vm14 = vcmp.eq.s32.totalorder %v3176_v41, 2 }
 0x3b8   : > { %v3378_v15 = vsel %vm12963_vm7, %v11905_v1, %v12348_v2  ;;  %v3377_v60 = vsel %vm3292_vm2, %v3376_v4, %v15984_v16  ;;  %v9430_v38 = vpop.eup %9429  ;;  %vm2654_vm4 = vweird.f32 %v15940_v43  ;;  %v2751_v0 = vsel %vm2668_vm8, %v2750_v53, %v2749_v44 }
 0x3b9   : > { %9435 = vcosq.f32 %v3378_v15  ;;  %v3182_v10 = vxor.u32 2147483648, %v9428_v62  ;;  %v3379_v12 = vsel %vm12963_vm7, 0, %v3377_v60  ;;  %v2663_v2 = vsel %vm2661_vm5, %v2662_v8, %v9426_v7 }
 0x3ba   : > { %9437 = vsinq.f32 %v3378_v15  ;;  %v2754_v5 = vsel %vm12884_vm11, %v15945_v21, %v2751_v0  ;;  %v3179_v49 = vxor.u32 2147483648, %v9430_v38  ;;  %v3279_v63 = vadd.s32 3, %v3275_v3 }
 0x3bb   : > { %v2660_v33 = vsel %vm2658_vm12, %v9424_v37, %v2659_v54  ;;  %9439 = vcosq.f32 %v2754_v5  ;;  %v3183_v23 = vsel %vm3181_vm14, %v3182_v10, %v9430_v38  ;;  %v3383_v25 = vadd.s32 3, %v3379_v12 }
 0x3bc   : > { %9441 = vsinq.f32 %v2754_v5  ;;  %v3180_v55 = vsel %vm3178_vm10, %v9428_v62, %v3179_v49  ;;  %v15985_v46 = vand.u32 2147483647, %v12005_v39  ;;  %v3480_v20 = vsub.s32 4, %v12152_v24 }
 0x3bd   : > { %v4240_v7 = vpack.c.bf16 %v12955_v17, %v12941_v59  ;;  %vm3070_vm7 = vweird.f32 %v11280_v27  ;;  %v3184_v37 = vsel %vm3177_vm3, %v3180_v55, %v3183_v23  ;;  %vm3174_vm10 = vweird.f32 %v15913_v11  ;;  %v15992_v55 = vld [vmem:[#allocation59_spill] sm:$0xff] }
 0x3be   : > { %vm12993_vm2 = vcmp.le.f32.partialorder %v15985_v46, 0.7853982  ;;  %v3280_v50 = vand.u32 3, %v3279_v63  ;;  %v3481_v52 = vsel %vm3396_vm1, %v3480_v20, %v12152_v24  ;;  %v2664_v27 = vsel %vm2657_vm13, %v2660_v33, %v2663_v2 }
 0x3bf   : > { %v3482_v58 = vsel %vm12993_vm2, %v12005_v39, %v12534_v35  ;;  %v9432_v8 = vpop.eup %9431  ;;  %vm2765_vm8 = vcmp.eq.s32.totalorder %v12934_v40, 2  ;;  %v13013_v41 = vsel %vm3070_vm7, nan, %v3080_v42  ;;  %v13015_v4 = vsel %vm3174_vm10, nan, %v3184_v37  ;;  %v15993_v37 = vld [vmem:[#allocation53_spill] sm:$0xff] }
 0x3c0   : > { %9443 = vcosq.f32 %v3482_v58  ;;  %v9434_v16 = vpop.eup %9433  ;;  %v3384_v35 = vand.u32 3, %v3383_v25  ;;  %vm2762_vm11 = vcmp.eq.s32.totalorder %v12934_v40, 0  ;;  %v3286_v11 = vxor.u32 2147483648, %v9432_v8 }
 0x3c1   : > { %v3483_v54 = vsel %vm12993_vm2, 0, %v3481_v52  ;;  %9445 = vsinq.f32 %v3482_v58  ;;  %v15988_v24 = vand.u32 2147483647, %v15937_v36  ;;  %vm2761_vm13 = vcmp.lt.s32.totalorder %v12934_v40, 2 }
 0x3c2   : > { %v3283_v47 = vxor.u32 2147483648, %v9434_v16  ;;  %v3487_v3 = vadd.s32 3, %v3483_v54  ;;  %v3584_v15 = vsub.s32 4, %v12208_v22  ;;  %v2665_v60 = vsel %vm2654_vm4, nan, %v2664_v27  ;;  %v15998_v54 = vld [vmem:[#allocation18_spill] sm:$0xff] }
 0x3c3   : > { %vm13022_vm1 = vcmp.le.f32.partialorder %v15988_v24, 0.7853982  ;;  %v9436_v42 = vpop.eup %9435  ;;  %vm2758_vm5 = vweird.f32 %v15945_v21  ;;  %vm3281_vm12 = vcmp.lt.s32.totalorder %v3280_v50, 2  ;;  %vm3282_vm15 = vcmp.eq.s32.totalorder %v3280_v50, 0 }
 0x3c4   : > { %v3586_v62 = vsel %vm13022_vm1, %v15937_v36, %v12545_v26  ;;  %v9438_v38 = vpop.eup %9437  ;;  %v4241_v0 = vpack.c.bf16 %v13015_v4, %v13013_v41  ;;  %vm3285_vm9 = vcmp.eq.s32.totalorder %v3280_v50, 2  ;;  %v3390_v10 = vxor.u32 2147483648, %v9436_v42  ;;  %v9325_v41 = vld [vmem:[%s9644_s24 + $0x10] sm:$0xff]  }
 0x3c5   : > { %9447 = vcosq.f32 %v3586_v62  ;;  %vm15991_vm0 = vcmp.lt.s32.totalorder %v15937_v36, 0  ;;  %vm3385_vm6 = vcmp.lt.s32.totalorder %v3384_v35, 2  ;;  %v3387_v26 = vxor.u32 2147483648, %v9438_v38  ;;  %v9440_v2 = vpop.eup %9439 }
 0x3c6   : > { %v3585_v12 = vsel %vm15991_vm0, %v3584_v15, %v12208_v22  ;;  %9449 = vsinq.f32 %v3586_v62  ;;  %v3284_v5 = vsel %vm3282_vm15, %v9432_v8, %v3283_v47  ;;  %v3287_v49 = vsel %vm3285_vm9, %v3286_v11, %v9434_v16  ;;  %v9442_v33 = vpop.eup %9441 }
 0x3c7   : > { %v3587_v43 = vsel %vm13022_vm1, 0, %v3585_v12  ;;  %vm3382_vm3 = vweird.f32 %v11905_v1  ;;  %vm3386_vm14 = vcmp.eq.s32.totalorder %v3384_v35, 0  ;;  %v3488_v63 = vand.u32 3, %v3487_v3 }
 0x3c8   : > { %v2766_v23 = vxor.u32 2147483648, %v9440_v2  ;;  %vm3389_vm4 = vcmp.eq.s32.totalorder %v3384_v35, 2  ;;  %v3591_v25 = vadd.s32 3, %v3587_v43  ;;  %v3688_v46 = vsub.s32 4, %v15992_v55 }
 0x3c9   : > { %v2763_v22 = vxor.u32 2147483648, %v9442_v33  ;;  %v3388_v44 = vsel %vm3386_vm14, %v9436_v42, %v3387_v26  ;;  %v3391_v20 = vsel %vm3389_vm4, %v3390_v10, %v9438_v38  ;;  %v15994_v58 = vand.u32 2147483647, %v15993_v37 }
 0x3ca   : > { %v9444_v8 = vpop.eup %9443  ;;  %v2767_v16 = vsel %vm2765_vm8, %v2766_v23, %v9442_v33  ;;  %v3288_v27 = vsel %vm3281_vm12, %v3284_v5, %v3287_v49  ;;  %vm15997_vm7 = vcmp.lt.s32.totalorder %v15993_v37, 0  ;;  %vm3278_vm10 = vweird.f32 %v15975_v6  ;;  %v16002_v33 = vld [vmem:[#allocation11_spill] sm:$0xff] }
 0x3cb   : > { %vm13046_vm2 = vcmp.le.f32.partialorder %v15994_v58, 0.7853982  ;;  %v3689_v11 = vsel %vm15997_vm7, %v3688_v46, %v15992_v55  ;;  %v2764_v53 = vsel %vm2762_vm11, %v9440_v2, %v2763_v22  ;;  %vm3490_vm1 = vcmp.eq.s32.totalorder %v3488_v63, 0  ;;  %v9446_v3 = vpop.eup %9445  ;;  %v16010_v58 = vld [vmem:[#allocation34_spill] sm:$0xff] }
 0x3cc   : > { %v3690_v24 = vsel %vm13046_vm2, %v15993_v37, %v15998_v54  ;;  %v3494_v47 = vxor.u32 2147483648, %v9444_v8  ;;  %v3691_v50 = vsel %vm13046_vm2, 0, %v3689_v11  ;;  %v2768_v15 = vsel %vm2761_vm13, %v2764_v53, %v2767_v16  ;;  %v16012_v54 = vld [vmem:[#allocation15_spill] sm:$0xff]  ;;  %v16019_v2 = vld [vmem:[#allocation66_spill] sm:$0xff] }
 0x3cd   : > { %v3392_v62 = vsel %vm3385_vm6, %v3388_v44, %v3391_v20  ;;  %vm3486_vm8 = vweird.f32 %v12005_v39  ;;  %vm3493_vm12 = vcmp.eq.s32.totalorder %v3488_v63, 2  ;;  %vm3590_vm15 = vweird.f32 %v15937_v36 }
 0x3ce   : > { %v3592_v42 = vand.u32 3, %v3591_v25  ;;  %v2769_v38 = vsel %vm2758_vm5, nan, %v2768_v15  ;;  %v3491_v10 = vxor.u32 2147483648, %v9446_v3  ;;  %v3495_v12 = vsel %vm3493_vm12, %v3494_v47, %v9446_v3  ;;  %v9324_v25 = vld [vmem:[%s9644_s24 + $0x8] sm:$0xff]  }
 0x3cf   : > { %9451 = vcosq.f32 %v3690_v24  ;;  %v9448_v26 = vpop.eup %9447  ;;  %v4239_v43 = vpack.c.bf16 %v2769_v38, %v2665_v60  ;;  %v3695_v40 = vadd.s32 3, %v3691_v50  ;;  %v15999_v35 = vand.u32 2147483647, %v12199_v34  ;;  %v9326_v50 = vld [vmem:[%s9644_s24 + $0x18] sm:$0xff]  }
 0x3d0   : > { %9453 = vsinq.f32 %v3690_v24  ;;  %v3492_v5 = vsel %vm3490_vm1, %v9444_v8, %v3491_v10  ;;  %v3598_v49 = vxor.u32 2147483648, %v9448_v26  ;;  %v3792_v23 = vsub.s32 4, %v16002_v33  ;;  %v9450_v60 = vpop.eup %9449 }
 0x3d1   : > { %vm13074_vm11 = vcmp.le.f32.partialorder %v15999_v35, 0.7853982  ;;  %vm16003_vm13 = vcmask 261120   ;;  %v3393_v55 = vsel %vm3382_vm3, nan, %v3392_v62  ;;  %vm3489_vm5 = vcmp.lt.s32.totalorder %v3488_v63, 2 }
 0x3d2   : > { %v3794_v21 = vsel %vm13074_vm11, %v12199_v34, %v12777_v29  ;;  %8865 = vmatprep.mubr.msk.bf16.mxu1 %vm16003_vm13, %v4239_v43  ;;  %vm3597_vm9 = vcmp.eq.s32.totalorder %v3592_v42, 2  ;;  %vm16004_vm0 = vmmov %vm16003_vm13  ;;  %vm3593_vm6 = vcmp.lt.s32.totalorder %v3592_v42, 2  ;;  %v3595_v46 = vxor.u32 2147483648, %v9450_v60 }
 0x3d3   : > { %9455 = vcosq.f32 %v3794_v21  ;;  %8866 = vmatmul.mubr.msk.bf16.vlgmr.msra.gmra.mrb[0].mxu1 %vm16004_vm0, %v4240_v7  ;;  %v3599_v22 = vsel %vm3597_vm9, %v3598_v49, %v9450_v60  ;;  %vm16005_vm14 = vcmp.lt.s32.totalorder %v12199_v34, 0  ;;  %vm16006_vm3 = vmmov %vm16004_vm0  ;;  %v3496_v1 = vsel %vm3489_vm5, %v3492_v5, %v3495_v12 }
 0x3d4   : > { %v3793_v29 = vsel %vm16005_vm14, %v3792_v23, %v16002_v33  ;;  %8869 = vmatprep.mubr.msk.bf16.mxu1 %vm16006_vm3, %v4241_v0  ;;  %vm3594_vm4 = vcmp.eq.s32.totalorder %v3592_v42, 0  ;;  %v3696_v63 = vand.u32 3, %v3695_v40  ;;  %8882 = vmatpush3.bf16.msra.mxu1 %v12632_v18  ;;  %9457 = vsinq.f32 %v3794_v21  ;;  %vm16018_vm5 = vmmov %vm16004_vm0  ;;  %v16020_v23 = vld [vmem:[#allocation61_spill] sm:$0xff] }
 0x3d5   : > { %v3795_v59 = vsel %vm13074_vm11, 0, %v3793_v29  ;;  %v3596_v17 = vsel %vm3594_vm4, %v9448_v26, %v3595_v46  ;;  %v16007_v44 = vand.u32 2147483647, %v12356_v56  ;;  %8883 = vmatprep.subr.bf16.mxu1 %v9324_v25  ;;  %v3289_v4 = vsel %vm3278_vm10, nan, %v3288_v27  ;;  %v16025_v46 = vld [vmem:[#allocation40_spill] sm:$0xff] }
 0x3d6   : > { %v3799_v7 = vadd.s32 3, %v3795_v59  ;;  %v3600_v0 = vsel %vm3593_vm6, %v3596_v17, %v3599_v22  ;;  %v3896_v52 = vsub.s32 4, %v16010_v58  ;;  %v4242_v8 = vpack.c.bf16 %v3393_v55, %v3289_v4 }
 0x3d7   : > { %vm13104_vm2 = vcmp.le.f32.partialorder %v16007_v44, 0.7853982  ;;  %v3497_v16 = vsel %vm3486_vm8, nan, %v3496_v1  ;;  %v3601_v11 = vsel %vm3590_vm15, nan, %v3600_v0  ;;  %vm3694_vm7 = vweird.f32 %v15993_v37  ;;  %vm16017_vm15 = vmmov %vm16004_vm0 }
 0x3d8   : > { %v3898_v18 = vsel %vm13104_vm2, %v12356_v56, %v12869_v57  ;;  %v4243_v6 = vpack.c.bf16 %v3601_v11, %v3497_v16  ;;  %vm16011_vm10 = vcmp.lt.s32.totalorder %v12356_v56, 0  ;;  %v4000_v24 = vsub.s32 4, %v16012_v54  ;;  %8884 = vmatpush3.bf16.msra.mxu1 %v9324_v25 }
 0x3d9   : > { %9459 = vcosq.f32 %v3898_v18  ;;  %v3897_v27 = vsel %vm16011_vm10, %v3896_v52, %v16010_v58  ;;  %v9452_v57 = vpop.eup %9451  ;;  %vm3697_vm1 = vcmp.lt.s32.totalorder %v3696_v63, 2  ;;  %v3800_v39 = vand.u32 3, %v3799_v7  ;;  %8885 = vmatprep.subr.bf16.mxu1 %v9325_v41 }
 0x3da   : > { %9461 = vsinq.f32 %v3898_v18  ;;  %v3899_v53 = vsel %vm13104_vm2, 0, %v3897_v27  ;;  %v16013_v36 = vand.u32 2147483647, %v12368_v9  ;;  %v9454_v3 = vpop.eup %9453  ;;  %v3702_v15 = vxor.u32 2147483648, %v9452_v57 }
 0x3db   : > { %v3903_v62 = vadd.s32 3, %v3899_v53  ;;  %vm16016_vm12 = vcmp.lt.s32.totalorder %v12368_v9, 0  ;;  %8870 = vmatmul.mubr.msk.bf16.gmra.mrb[4].mxu1 %vm16017_vm15, %v4242_v8  ;;  %v3699_v10 = vxor.u32 2147483648, %v9454_v3  ;;  %vm3701_vm11 = vcmp.eq.s32.totalorder %v3696_v63, 2 }
 0x3dc   : > { %vm13130_vm8 = vcmp.le.f32.partialorder %v16013_v36, 0.7853982  ;;  %v4001_v42 = vsel %vm16016_vm12, %v4000_v24, %v16012_v54  ;;  %vm3798_vm13 = vweird.f32 %v12199_v34  ;;  %8873 = vmatprep.mubr.msk.bf16.mxu1 %vm16018_vm5, %v4243_v6  ;;  %vm3698_vm9 = vcmp.eq.s32.totalorder %v3696_v63, 0  ;;  %8886 = vmatpush3.bf16.msra.mxu1 %v9325_v41 }
 0x3dd   : > { %v4002_v38 = vsel %vm13130_vm8, %v12368_v9, %v12878_v19  ;;  %v4003_v12 = vsel %vm13130_vm8, 0, %v4001_v42  ;;  %v9456_v26 = vpop.eup %9455  ;;  %v3703_v43 = vsel %vm3701_vm11, %v3702_v15, %v9454_v3  ;;  %v3904_v40 = vand.u32 3, %v3903_v62  ;;  %8887 = vmatprep.subr.bf16.mxu1 %v9326_v50 }
 0x3de   : > { %9463 = vcosq.f32 %v4002_v38  ;;  %v3700_v35 = vsel %vm3698_vm9, %v9452_v57, %v3699_v10  ;;  %vm3801_vm0 = vcmp.lt.s32.totalorder %v3800_v39, 2  ;;  %v3806_v19 = vxor.u32 2147483648, %v9456_v26  ;;  %v9458_v60 = vpop.eup %9457 }
 0x3df   : > { %9465 = vsinq.f32 %v4002_v38  ;;  %v4104_v5 = vsub.s32 4, %v16019_v2  ;;  %v3704_v49 = vsel %vm3697_vm1, %v3700_v35, %v3703_v43  ;;  %vm3802_vm6 = vcmp.eq.s32.totalorder %v3800_v39, 0 }
 0x3e0   : > { %v4007_v33 = vadd.s32 3, %v4003_v12  ;;  %v16021_v21 = vand.u32 2147483647, %v16020_v23  ;;  %vm3805_vm3 = vcmp.eq.s32.totalorder %v3800_v39, 2  ;;  %vm3905_vm4 = vcmp.lt.s32.totalorder %v3904_v40, 2  ;;  %8888 = vmatpush3.bf16.msra.mxu1 %v9326_v50 }
 0x3e1   : > { %vm16024_vm2 = vcmp.lt.s32.totalorder %v16020_v23, 0  ;;  %v3803_v29 = vxor.u32 2147483648, %v9458_v60  ;;  %v3807_v1 = vsel %vm3805_vm3, %v3806_v19, %v9458_v60  ;;  %vm3902_vm10 = vweird.f32 %v12356_v56 }
 0x3e2   : > { %vm13151_vm14 = vcmp.le.f32.partialorder %v16021_v21, 0.7853982  ;;  %v4105_v55 = vsel %vm16024_vm2, %v4104_v5, %v16019_v2  ;;  %v3705_v17 = vsel %vm3694_vm7, nan, %v3704_v49  ;;  %vm3906_vm1 = vcmp.eq.s32.totalorder %v3904_v40, 0  ;;  %v8859_v49 = vpop.f32.mrb[8].mxu0 }
 0x3e3   : > { %v4106_v22 = vsel %vm13151_vm14, %v16020_v23, %v16025_v46  ;;  %v4107_v63 = vsel %vm13151_vm14, 0, %v4105_v55  ;;  %v9460_v59 = vpop.eup %9459  ;;  %vm3909_vm8 = vcmp.eq.s32.totalorder %v3904_v40, 2  ;;  %v3804_v44 = vsel %vm3802_vm6, %v9456_v26, %v3803_v29 }
 0x3e4   : > { %9467 = vcosq.f32 %v4106_v22  ;;  %v9462_v7 = vpop.eup %9461  ;;  %v3910_v20 = vxor.u32 2147483648, %v9460_v59  ;;  %v4008_v41 = vand.u32 3, %v4007_v33  ;;  %v4111_v4 = vadd.s32 3, %v4107_v63 }
 0x3e5   : > { %9469 = vsinq.f32 %v4106_v22  ;;  %v3808_v0 = vsel %vm3801_vm0, %v3804_v44, %v3807_v1  ;;  %v3907_v58 = vxor.u32 2147483648, %v9462_v7  ;;  %v16026_v52 = vand.u32 2147483647, %v12539_v32  ;;  %v16032_v22 = vld [vmem:[#allocation17_spill] sm:$0xff] }
 0x3e6   : > { %v4208_v37 = vsub.s32 4, %v12695_v30  ;;  %v3809_v8 = vsel %vm3798_vm13, nan, %v3808_v0  ;;  %v3911_v16 = vsel %vm3909_vm8, %v3910_v20, %v9462_v7  ;;  %v13178_v11 = vand.u32 3, %v4111_v4  ;;  %vm16030_vm13 = vmmov %vm16018_vm5 }
 0x3e7   : > { %vm13171_vm12 = vcmp.le.f32.partialorder %v16026_v52, 0.7853982  ;;  %v4244_v54 = vpack.c.bf16 %v3809_v8, %v3705_v17  ;;  %v3908_v24 = vsel %vm3906_vm1, %v9460_v59, %v3907_v58  ;;  %vm16029_vm7 = vcmp.lt.s32.totalorder %v12539_v32, 0 }
 0x3e8   : > { %v4210_v6 = vsel %vm13171_vm12, %v12539_v32, %v12900_v48  ;;  %v9464_v27 = vpop.eup %9463  ;;  %v4209_v57 = vsel %vm16029_vm7, %v4208_v37, %v12695_v30  ;;  %v3912_v34 = vsel %vm3905_vm4, %v3908_v24, %v3911_v16  ;;  %vm4006_vm15 = vweird.f32 %v12368_v9  ;;  %v13193_v48 = vld [vmem:[%s15516_s4] ss:$0 sm:$0xff] }
 0x3e9   : > { %9471 = vcosq.f32 %v4210_v6  ;;  %v9466_v39 = vpop.eup %9465  ;;  %vm4009_vm11 = vcmp.lt.s32.totalorder %v4008_v41, 2  ;;  %v4014_v53 = vxor.u32 2147483648, %v9464_v27  ;;  %8874 = vmatmul.mubr.msk.bf16.gmra.mrb[8].mxu1 %vm16030_vm13, %v4244_v54  ;;  %vm4010_vm5 = vcmp.eq.s32.totalorder %v4008_v41, 0 }
 0x3ea   : > { %v4011_v36 = vxor.u32 2147483648, %v9466_v39  ;;  %vm4013_vm9 = vcmp.eq.s32.totalorder %v4008_v41, 2  ;;  %v4211_v30 = vsel %vm13171_vm12, 0, %v4209_v57  ;;  %vm4114_vm0 = vcmp.eq.s32.totalorder %v13178_v11, 0 }
 0x3eb   : > { %v4015_v47 = vsel %vm4013_vm9, %v4014_v53, %v9466_v39  ;;  %9473 = vsinq.f32 %v4210_v6  ;;  %v4215_v50 = vadd.s32 3, %v4211_v30  ;;  %v3913_v3 = vsel %vm3902_vm10, nan, %v3912_v34  ;;  %vm16031_vm10 = vmmov %vm16030_vm13 }
 0x3ec   : > { %v4012_v15 = vsel %vm4010_vm5, %v9464_v27, %v4011_v36  ;;  %vm4113_vm6 = vcmp.lt.s32.totalorder %v13178_v11, 2  ;;  %v4357_v62 = vadd.f32 %v12744_v13, %v13193_v48  ;;  %v4349_v42 = vadd.f32 %v13193_v48, %v12752_v45  ;;  %vm16033_vm7 = vmmov %vm16031_vm10 }
 0x3ed   : > { %v4016_v10 = vsel %vm4009_vm11, %v4012_v15, %v4015_v47  ;;  %v4216_v12 = vand.u32 3, %v4215_v50  ;;  %v4360_v26 = vadd.f32 %v12759_v28, %v13193_v48  ;;  %v4352_v56 = vadd.f32 %v13193_v48, %v12766_v14  ;;  %v4380_v28 = vpop.f32.mrb[9].mxu0 }
 0x3ee   : > { %v9468_v38 = vpop.eup %9467  ;;  %v4017_v40 = vsel %vm4006_vm15, nan, %v4016_v10  ;;  %v4477_v19 = vmul.f32 0.2, %v4357_v62  ;;  %v4373_v13 = vadd.f32 %v12851_v51, %v13193_v48  ;;  %vm4117_vm14 = vcmp.eq.s32.totalorder %v13178_v11, 2  ;;  %v8860_v1 = vpop.f32.mrb[10].mxu0 }
 0x3ef   : > { %v9470_v43 = vpop.eup %9469  ;;  %v4118_v35 = vxor.u32 2147483648, %v9468_v38  ;;  %v4245_v45 = vpack.c.bf16 %v4017_v40, %v3913_v3  ;;  %v4475_v5 = vmul.f32 0.2, %v4349_v42  ;;  %vm4217_vm3 = vcmp.lt.s32.totalorder %v4216_v12, 2  ;;  %v4383_v44 = vpop.f32.mrb[11].mxu0 }
 0x3f0   : > { %v4115_v2 = vxor.u32 2147483648, %v9470_v43  ;;  %vm4218_vm4 = vcmp.eq.s32.totalorder %v4216_v12, 0  ;;  %vm4221_vm2 = vcmp.eq.s32.totalorder %v4216_v12, 2  ;;  %v4509_v14 = vmax.f32 %v4357_v62, %v4477_v19 }
 0x3f1   : > { %v4119_v33 = vsel %vm4117_vm14, %v4118_v35, %v9470_v43  ;;  %8877 = vmatprep.mubr.msk.bf16.mxu1 %vm16031_vm10, %v4245_v45  ;;  %v4478_v21 = vmul.f32 0.2, %v4360_v26  ;;  %v4476_v25 = vmul.f32 0.2, %v4352_v56  ;;  %v4481_v60 = vmul.f32 0.2, %v4373_v13 }
 0x3f2   : > { %v4116_v9 = vsel %vm4114_vm0, %v9468_v38, %v4115_v2  ;;  %v4365_v55 = vadd.f32 %v13193_v48, %v12862_v61  ;;  %v4376_v46 = vadd.f32 %v12874_v31, %v13193_v48  ;;  %v4368_v29 = vadd.f32 %v13193_v48, %v16032_v22  ;;  %v9330_v22 = vld [vmem:[%s9644_s24 + $0x38] sm:$0xff]  }
 0x3f3   : > { %v9472_v51 = vpop.eup %9471  ;;  %v4507_v59 = vmax.f32 %v4349_v42, %v4475_v5  ;;  %v4510_v17 = vmax.f32 %v4360_v26, %v4478_v21  ;;  %v4508_v7 = vmax.f32 %v4352_v56, %v4476_v25  ;;  %vm4110_vm1 = vweird.f32 %v16020_v23 }
 0x3f4   : > { %v4222_v63 = vxor.u32 2147483648, %v9472_v51  ;;  %v4479_v20 = vmul.f32 0.2, %v4365_v55  ;;  %v4482_v41 = vmul.f32 0.2, %v4376_v46  ;;  %v4120_v61 = vsel %vm4113_vm6, %v4116_v9, %v4119_v33 }
 0x3f5   : > { %v4480_v4 = vmul.f32 0.2, %v4368_v29  ;;  %v9474_v0 = vpop.eup %9473  ;;  %v4549_v58 = vpack.c.bf16 %v4510_v17, %v4509_v14  ;;  %v4548_v31 = vpack.c.bf16 %v4508_v7, %v4507_v59  ;;  %v4389_v52 = vadd.f32 %v8859_v49, %v13193_v48 }
 0x3f6   : > { %v4219_v18 = vxor.u32 2147483648, %v9474_v0  ;;  %v4223_v37 = vsel %vm4221_vm2, %v4222_v63, %v9474_v0  ;;  %v4513_v8 = vmax.f32 %v4373_v13, %v4481_v60  ;;  %v4514_v16 = vmax.f32 %v4376_v46, %v4482_v41  ;;  %v9327_v60 = vld [vmem:[%s9644_s24 + $0x20] sm:$0xff]   ;;  %v9329_v46 = vld [vmem:[%s9644_s24 + $0x30] sm:$0xff]  }
 0x3f7   : > { %v4511_v6 = vmax.f32 %v4365_v55, %v4479_v20  ;;  %v4512_v27 = vmax.f32 %v4368_v29, %v4480_v4  ;;  %v4381_v54 = vadd.f32 %v13193_v48, %v4380_v28  ;;  %v4392_v24 = vadd.f32 %v8860_v1, %v13193_v48  ;;  %v9328_v55 = vld [vmem:[%s9644_s24 + $0x28] sm:$0xff]   ;;  %8921 = vmatprep.subr.bf16.mxu0 %v9327_v60 }
 0x3f8   : > { %v4220_v57 = vsel %vm4218_vm4, %v9472_v51, %v4219_v18  ;;  %v4551_v39 = vpack.c.bf16 %v4514_v16, %v4513_v8  ;;  %v4485_v11 = vmul.f32 0.2, %v4389_v52  ;;  %v4384_v34 = vadd.f32 %v13193_v48, %v4383_v44  ;;  %8922 = vmatpush3.bf16.msra.mxu0 %v9327_v60 }
 0x3f9   : > { %vm4214_vm8 = vweird.f32 %v12539_v32  ;;  %v4224_v53 = vsel %vm4217_vm3, %v4220_v57, %v4223_v37  ;;  %v4550_v36 = vpack.c.bf16 %v4512_v27, %v4511_v6  ;;  %v4483_v30 = vmul.f32 0.2, %v4381_v54  ;;  %8923 = vmatprep.subr.bf16.mxu0 %v9328_v55 }
 0x3fa   : > { %v4121_v47 = vsel %vm4110_vm1, nan, %v4120_v61  ;;  %v4225_v50 = vsel %vm4214_vm8, nan, %v4224_v53  ;;  %v4486_v3 = vmul.f32 0.2, %v4392_v24  ;;  %v4484_v15 = vmul.f32 0.2, %v4384_v34 }
 0x3fb   : > { %v4246_v62 = vpack.c.bf16 %v4225_v50, %v4121_v47  ;;  %vm4594_vm12 = vcmask 523264   ;;  %v4517_v42 = vmax.f32 %v4389_v52, %v4485_v11  ;;  %v4515_v38 = vmax.f32 %v4381_v54, %v4483_v30 }
 0x3fc   : > { %v4518_v10 = vmax.f32 %v4392_v24, %v4486_v3  ;;  %v4516_v26 = vmax.f32 %v4384_v34, %v4484_v15  ;;  %8924 = vmatpush3.bf16.msra.mxu0 %v9328_v55  ;;  %vm8209_vm5 = vcmask 23552  }
 0x3fd   : > { %8878 = vmatmul.mubr.msk.bf16.gmra.mrb[12].mxu1 %vm16033_vm7, %v4246_v62  ;;  %8925 = vmatprep.subr.bf16.mxu0 %v9329_v46 }
 0x3fe   : > { %8889 = vmatprep.mubr.msk.bf16.mxu1 %vm4594_vm12, %v4548_v31  ;;  %v4553_v32 = vpack.c.bf16 %v4518_v10, %v4517_v42  ;;  %v4552_v12 = vpack.c.bf16 %v4516_v26, %v4515_v38 }
 0x400   : > { %8926 = vmatpush3.bf16.msra.mxu0 %v9329_v46 }
 0x401   : > { %8927 = vmatprep.subr.bf16.mxu0 %v9330_v22 }
 0x404   : > { %8928 = vmatpush3.bf16.msra.mxu0 %v9330_v22 }
 0x405   : > { %8890 = vmatmul.mubr.msk.bf16.vlgmr.msra.gmra.mrb[16].mxu1 %vm4594_vm12, %v4549_v58 }
 0x406   : > { %8893 = vmatprep.mubr.msk.bf16.mxu1 %vm4594_vm12, %v4550_v36 }
 0x40d   : > { %8894 = vmatmul.mubr.msk.bf16.gmra.mrb[20].mxu1 %vm4594_vm12, %v4551_v39 }
 0x40e   : > { %8897 = vmatprep.mubr.msk.bf16.mxu1 %vm4594_vm12, %v4552_v12 }
 0x415   : > { %8898 = vmatmul.mubr.msk.bf16.gmra.mrb[24].mxu1 %vm4594_vm12, %v4553_v32 }
 0x435   : > { %v8863_v23 = vpop.f32.mrb[12].mxu0 }
 0x436   : > { %v4405_v56 = vadd.f32 %v8863_v23, %v13193_v48  ;;  %v4396_v43 = vpop.f32.mrb[13].mxu0 }
 0x437   : > { %v4397_v40 = vadd.f32 %v13193_v48, %v4396_v43  ;;  %v8864_v35 = vpop.f32.mrb[14].mxu0 }
 0x438   : > { %v4489_v19 = vmul.f32 0.2, %v4405_v56  ;;  %v4408_v13 = vadd.f32 %v8864_v35, %v13193_v48  ;;  %v4399_v45 = vpop.f32.mrb[15].mxu0 }
 0x439   : > { %v4487_v2 = vmul.f32 0.2, %v4397_v40  ;;  %v4400_v5 = vadd.f32 %v13193_v48, %v4399_v45 }
 0x43a   : > { %v4490_v49 = vmul.f32 0.2, %v4408_v13  ;;  %v4521_v28 = vmax.f32 %v4405_v56, %v4489_v19 }
 0x43b   : > { %v4488_v33 = vmul.f32 0.2, %v4400_v5  ;;  %v4519_v14 = vmax.f32 %v4397_v40, %v4487_v2 }
 0x43c   : > { %v4522_v9 = vmax.f32 %v4408_v13, %v4490_v49 }
 0x43d   : > { %v4520_v21 = vmax.f32 %v4400_v5, %v4488_v33 }
 0x43e   : > { %v4555_v25 = vpack.c.bf16 %v4522_v9, %v4521_v28 }
 0x43f   : > { %v4554_v51 = vpack.c.bf16 %v4520_v21, %v4519_v14 }
 0x441   : > { %8901 = vmatprep.mubr.msk.bf16.mxu1 %vm4594_vm12, %v4554_v51 }
 0x442   : > { %8902 = vmatmul.mubr.msk.bf16.gmra.mrb[28].mxu1 %vm4594_vm12, %v4555_v25 }
 0x4a6   : > { %v8867_v29 = vpop.f32.mrb[0].mxu1 }
 0x4a7   : > { %v4421_v1 = vadd.f32 %v8867_v29, %v13193_v48  ;;  %v4412_v63 = vpop.f32.mrb[1].mxu1 }
 0x4a8   : > { %v4413_v59 = vadd.f32 %v13193_v48, %v4412_v63  ;;  %v8868_v17 = vpop.f32.mrb[2].mxu1 }
 0x4a9   : > { %v4493_v7 = vmul.f32 0.2, %v4421_v1  ;;  %v4424_v44 = vadd.f32 %v8868_v17, %v13193_v48  ;;  %v4415_v20 = vpop.f32.mrb[3].mxu1 }
 0x4aa   : > { %v4491_v41 = vmul.f32 0.2, %v4413_v59  ;;  %v4416_v4 = vadd.f32 %v13193_v48, %v4415_v20 }
 0x4ab   : > { %v4494_v0 = vmul.f32 0.2, %v4424_v44  ;;  %v4525_v58 = vmax.f32 %v4421_v1, %v4493_v7 }
 0x4ac   : > { %v4492_v61 = vmul.f32 0.2, %v4416_v4  ;;  %v4523_v52 = vmax.f32 %v4413_v59, %v4491_v41  ;;  %v13280_v59 = vld [vmem:[%s15518_s6] ss:$0 sm:$0xff] }
 0x4ad   : > { %v4526_v31 = vmax.f32 %v4424_v44, %v4494_v0 }
 0x4ae   : > { %v4524_v18 = vmax.f32 %v4416_v4, %v4492_v61  ;;  %v8871_v37 = vpop.f32.mrb[4].mxu1 }
 0x4af   : > { %v4557_v8 = vpack.c.bf16 %v4526_v31, %v4525_v58  ;;  %v4437_v16 = vadd.f32 %v8871_v37, %v13193_v48  ;;  %v4428_v6 = vpop.f32.mrb[5].mxu1 }
 0x4b0   : > { %v4556_v27 = vpack.c.bf16 %v4524_v18, %v4523_v52  ;;  %v4429_v54 = vadd.f32 %v13193_v48, %v4428_v6  ;;  %v8872_v24 = vpop.f32.mrb[6].mxu1 }
 0x4b1   : > { %v4497_v57 = vmul.f32 0.2, %v4437_v16  ;;  %v4440_v39 = vadd.f32 %v8872_v24, %v13193_v48  ;;  %v4431_v11 = vpop.f32.mrb[7].mxu1 }
 0x4b2   : > { %8905 = vmatprep.mubr.msk.bf16.mxu1 %vm4594_vm12, %v4556_v27  ;;  %v4495_v34 = vmul.f32 0.2, %v4429_v54  ;;  %v4432_v53 = vadd.f32 %v13193_v48, %v4431_v11 }
 0x4b3   : > { %8906 = vmatmul.mubr.msk.bf16.gmra.mrb[32].mxu1 %vm4594_vm12, %v4557_v8  ;;  %v4498_v36 = vmul.f32 0.2, %v4440_v39  ;;  %v4529_v47 = vmax.f32 %v4437_v16, %v4497_v57 }
 0x4b4   : > { %v4496_v30 = vmul.f32 0.2, %v4432_v53  ;;  %v4527_v3 = vmax.f32 %v4429_v54, %v4495_v34 }
 0x4b5   : > { %v4530_v50 = vmax.f32 %v4440_v39, %v4498_v36 }
 0x4b6   : > { %v4528_v15 = vmax.f32 %v4432_v53, %v4496_v30 }
 0x4b7   : > { %v4559_v62 = vpack.c.bf16 %v4530_v50, %v4529_v47 }
 0x4b8   : > { %v4558_v42 = vpack.c.bf16 %v4528_v15, %v4527_v3 }
 0x4ba   : > { %8909 = vmatprep.mubr.msk.bf16.mxu1 %vm4594_vm12, %v4558_v42 }
 0x4bb   : > { %8910 = vmatmul.mubr.msk.bf16.gmra.mrb[36].mxu1 %vm4594_vm12, %v4559_v62 }
 0x4bc   : > { %v8875_v38 = vpop.f32.mrb[8].mxu1 }
 0x4bd   : > { %v4453_v10 = vadd.f32 %v8875_v38, %v13193_v48  ;;  %v4444_v26 = vpop.f32.mrb[9].mxu1 }
 0x4be   : > { %v4445_v32 = vadd.f32 %v13193_v48, %v4444_v26  ;;  %v8876_v12 = vpop.f32.mrb[10].mxu1 }
 0x4bf   : > { %v4501_v23 = vmul.f32 0.2, %v4453_v10  ;;  %v4456_v56 = vadd.f32 %v8876_v12, %v13193_v48  ;;  %v4447_v43 = vpop.f32.mrb[11].mxu1 }
 0x4c0   : > { %v4499_v40 = vmul.f32 0.2, %v4445_v32  ;;  %v4448_v35 = vadd.f32 %v13193_v48, %v4447_v43 }
 0x4c1   : > { %v4502_v19 = vmul.f32 0.2, %v4456_v56  ;;  %v4533_v45 = vmax.f32 %v4453_v10, %v4501_v23 }
 0x4c2   : > { %v4500_v13 = vmul.f32 0.2, %v4448_v35  ;;  %v4531_v5 = vmax.f32 %v4445_v32, %v4499_v40 }
 0x4c3   : > { %v4534_v2 = vmax.f32 %v4456_v56, %v4502_v19 }
 0x4c4   : > { %v4532_v49 = vmax.f32 %v4448_v35, %v4500_v13 }
 0x4c5   : > { %v4561_v33 = vpack.c.bf16 %v4534_v2, %v4533_v45 }
 0x4c6   : > { %v4560_v28 = vpack.c.bf16 %v4532_v49, %v4531_v5 }
 0x4c8   : > { %8913 = vmatprep.mubr.msk.bf16.mxu1 %vm4594_vm12, %v4560_v28 }
 0x4c9   : > { %8914 = vmatmul.mubr.msk.bf16.gmra.mrb[40].mxu1 %vm4594_vm12, %v4561_v33 }
 0x4d0   : > { %v8879_v9 = vpop.f32.mrb[12].mxu1 }
 0x4d1   : > { %v4469_v14 = vadd.f32 %v8879_v9, %v13193_v48  ;;  %v4460_v21 = vpop.f32.mrb[13].mxu1 }
 0x4d2   : > { %v4461_v25 = vadd.f32 %v13193_v48, %v4460_v21  ;;  %v8880_v51 = vpop.f32.mrb[14].mxu1 }
 0x4d3   : > { %v4505_v60 = vmul.f32 0.2, %v4469_v14  ;;  %v4472_v55 = vadd.f32 %v8880_v51, %v13193_v48  ;;  %v4463_v46 = vpop.f32.mrb[15].mxu1 }
 0x4d4   : > { %v4503_v22 = vmul.f32 0.2, %v4461_v25  ;;  %v4464_v29 = vadd.f32 %v13193_v48, %v4463_v46 }
 0x4d5   : > { %v4506_v1 = vmul.f32 0.2, %v4472_v55  ;;  %v4537_v17 = vmax.f32 %v4469_v14, %v4505_v60 }
 0x4d6   : > { %v4504_v63 = vmul.f32 0.2, %v4464_v29  ;;  %v4535_v44 = vmax.f32 %v4461_v25, %v4503_v22 }
 0x4d7   : > { %v4538_v7 = vmax.f32 %v4472_v55, %v4506_v1 }
 0x4d8   : > { %v4536_v20 = vmax.f32 %v4464_v29, %v4504_v63  ;;  %v8891_v41 = vpop.f32.mrb[16].mxu1 }
 0x4d9   : > { %v4563_v4 = vpack.c.bf16 %v4538_v7, %v4537_v17  ;;  %v4686_v0 = vadd.f32 %v8891_v41, %v13280_v59  ;;  %v4677_v61 = vpop.f32.mrb[17].mxu1 }
 0x4da   : > { %v4562_v58 = vpack.c.bf16 %v4536_v20, %v4535_v44  ;;  %v4678_v31 = vadd.f32 %v13280_v59, %v4677_v61  ;;  %v8892_v48 = vpop.f32.mrb[18].mxu1 }
 0x4db   : > { %v4806_v52 = vmul.f32 0.2, %v4686_v0  ;;  %v4689_v18 = vadd.f32 %v8892_v48, %v13280_v59  ;;  %v4680_v37 = vpop.f32.mrb[19].mxu1 }
 0x4dc   : > { %8917 = vmatprep.mubr.msk.bf16.mxu1 %vm4594_vm12, %v4562_v58  ;;  %v4804_v8 = vmul.f32 0.2, %v4678_v31  ;;  %v4681_v16 = vadd.f32 %v13280_v59, %v4680_v37 }
 0x4dd   : > { %8918 = vmatmul.mubr.msk.bf16.gmra.mrb[44].mxu1 %vm4594_vm12, %v4563_v4  ;;  %v4807_v6 = vmul.f32 0.2, %v4689_v18  ;;  %v4838_v54 = vmax.f32 %v4686_v0, %v4806_v52 }
 0x4de   : > { %v4805_v27 = vmul.f32 0.2, %v4681_v16  ;;  %v4836_v57 = vmax.f32 %v4678_v31, %v4804_v8 }
 0x4df   : > { %v4839_v24 = vmax.f32 %v4689_v18, %v4807_v6  ;;  %v9332_v6 = vld [vmem:[%s9644_s24 + $0x48] sm:$0xff]  }
 0x4e0   : > { %v4837_v39 = vmax.f32 %v4681_v16, %v4805_v27  ;;  %v8895_v11 = vpop.f32.mrb[20].mxu1  ;;  %v9331_v16 = vld [vmem:[%s9644_s24 + $0x40] sm:$0xff]   ;;  %v9333_v27 = vld [vmem:[%s9644_s24 + $0x50] sm:$0xff]  }
 0x4e1   : > { %v4880_v34 = vpack.c.bf16 %v4839_v24, %v4838_v54  ;;  %v4702_v53 = vadd.f32 %v8895_v11, %v13280_v59  ;;  %v4693_v36 = vpop.f32.mrb[21].mxu1  ;;  %8961 = vmatprep.subr.bf16.mxu1 %v9331_v16  ;;  %v9334_v54 = vld [vmem:[%s9644_s24 + $0x58] sm:$0xff]  }
 0x4e2   : > { %v4879_v30 = vpack.c.bf16 %v4837_v39, %v4836_v57  ;;  %v4694_v47 = vadd.f32 %v13280_v59, %v4693_v36  ;;  %v8896_v50 = vpop.f32.mrb[22].mxu1  ;;  %8962 = vmatpush3.bf16.msra.mxu1 %v9331_v16 }
 0x4e3   : > { %v4810_v3 = vmul.f32 0.2, %v4702_v53  ;;  %v4705_v15 = vadd.f32 %v8896_v50, %v13280_v59  ;;  %v4696_v62 = vpop.f32.mrb[23].mxu1  ;;  %8963 = vmatprep.subr.bf16.mxu1 %v9332_v6 }
 0x4e4   : > { %v4808_v42 = vmul.f32 0.2, %v4694_v47  ;;  %v4697_v38 = vadd.f32 %v13280_v59, %v4696_v62  ;;  %8929 = vmatprep.mubr.msk.bf16.mxu0 %vm4594_vm12, %v4879_v30 }
 0x4e5   : > { %v4811_v10 = vmul.f32 0.2, %v4705_v15  ;;  %8930 = vmatmul.mubr.msk.bf16.vlgmr.msra.gmra.mrb[16].mxu0 %vm4594_vm12, %v4880_v34  ;;  %v4842_v32 = vmax.f32 %v4702_v53, %v4810_v3 }
 0x4e6   : > { %v4809_v26 = vmul.f32 0.2, %v4697_v38  ;;  %v4840_v23 = vmax.f32 %v4694_v47, %v4808_v42  ;;  %8964 = vmatpush3.bf16.msra.mxu1 %v9332_v6 }
 0x4e7   : > { %v4843_v12 = vmax.f32 %v4705_v15, %v4811_v10  ;;  %8965 = vmatprep.subr.bf16.mxu1 %v9333_v27 }
 0x4e8   : > { %v4841_v56 = vmax.f32 %v4697_v38, %v4809_v26  ;;  %v8899_v43 = vpop.f32.mrb[24].mxu1 }
 0x4e9   : > { %v4882_v40 = vpack.c.bf16 %v4843_v12, %v4842_v32  ;;  %v4718_v35 = vadd.f32 %v8899_v43, %v13280_v59  ;;  %v4709_v19 = vpop.f32.mrb[25].mxu1 }
 0x4ea   : > { %v4881_v13 = vpack.c.bf16 %v4841_v56, %v4840_v23  ;;  %v4710_v45 = vadd.f32 %v13280_v59, %v4709_v19  ;;  %v8900_v2 = vpop.f32.mrb[26].mxu1  ;;  %8966 = vmatpush3.bf16.msra.mxu1 %v9333_v27 }
 0x4eb   : > { %v4814_v5 = vmul.f32 0.2, %v4718_v35  ;;  %v4721_v49 = vadd.f32 %v8900_v2, %v13280_v59  ;;  %v4712_v33 = vpop.f32.mrb[27].mxu1  ;;  %8967 = vmatprep.subr.bf16.mxu1 %v9334_v54 }
 0x4ec   : > { %8933 = vmatprep.mubr.msk.bf16.mxu0 %vm4594_vm12, %v4881_v13  ;;  %v4812_v28 = vmul.f32 0.2, %v4710_v45  ;;  %v4713_v9 = vadd.f32 %v13280_v59, %v4712_v33 }
 0x4ed   : > { %8934 = vmatmul.mubr.msk.bf16.gmra.mrb[20].mxu0 %vm4594_vm12, %v4882_v40  ;;  %v4815_v14 = vmul.f32 0.2, %v4721_v49  ;;  %v4846_v25 = vmax.f32 %v4718_v35, %v4814_v5 }
 0x4ee   : > { %v4813_v21 = vmul.f32 0.2, %v4713_v9  ;;  %v4844_v60 = vmax.f32 %v4710_v45, %v4812_v28  ;;  %8968 = vmatpush3.bf16.msra.mxu1 %v9334_v54 }
 0x4ef   : > { %v4847_v51 = vmax.f32 %v4721_v49, %v4815_v14 }
 0x4f0   : > { %v4845_v55 = vmax.f32 %v4713_v9, %v4813_v21 }
 0x4f1   : > { %v4884_v46 = vpack.c.bf16 %v4847_v51, %v4846_v25 }
 0x4f2   : > { %v4883_v22 = vpack.c.bf16 %v4845_v55, %v4844_v60 }
 0x4f4   : > { %8937 = vmatprep.mubr.msk.bf16.mxu0 %vm4594_vm12, %v4883_v22 }
 0x4f5   : > { %8938 = vmatmul.mubr.msk.bf16.gmra.mrb[24].mxu0 %vm4594_vm12, %v4884_v46 }
 0x515   : > { %v8903_v29 = vpop.f32.mrb[28].mxu1 }
 0x516   : > { %v4734_v1 = vadd.f32 %v8903_v29, %v13280_v59  ;;  %v4725_v63 = vpop.f32.mrb[29].mxu1 }
 0x517   : > { %v4726_v17 = vadd.f32 %v13280_v59, %v4725_v63  ;;  %v8904_v7 = vpop.f32.mrb[30].mxu1 }
 0x518   : > { %v4818_v44 = vmul.f32 0.2, %v4734_v1  ;;  %v4737_v20 = vadd.f32 %v8904_v7, %v13280_v59  ;;  %v4728_v41 = vpop.f32.mrb[31].mxu1 }
 0x519   : > { %v4816_v4 = vmul.f32 0.2, %v4726_v17  ;;  %v4729_v0 = vadd.f32 %v13280_v59, %v4728_v41 }
 0x51a   : > { %v4819_v61 = vmul.f32 0.2, %v4737_v20  ;;  %v4850_v31 = vmax.f32 %v4734_v1, %v4818_v44 }
 0x51b   : > { %v4817_v58 = vmul.f32 0.2, %v4729_v0  ;;  %v4848_v52 = vmax.f32 %v4726_v17, %v4816_v4 }
 0x51c   : > { %v4851_v48 = vmax.f32 %v4737_v20, %v4819_v61 }
 0x51d   : > { %v4849_v18 = vmax.f32 %v4729_v0, %v4817_v58 }
 0x51e   : > { %v4886_v37 = vpack.c.bf16 %v4851_v48, %v4850_v31 }
 0x51f   : > { %v4885_v8 = vpack.c.bf16 %v4849_v18, %v4848_v52 }
 0x521   : > { %8941 = vmatprep.mubr.msk.bf16.mxu0 %vm4594_vm12, %v4885_v8 }
 0x522   : > { %8942 = vmatmul.mubr.msk.bf16.gmra.mrb[28].mxu0 %vm4594_vm12, %v4886_v37 }
 0x586   : > { %v8907_v24 = vpop.f32.mrb[32].mxu1 }
 0x587   : > { %v4750_v57 = vadd.f32 %v8907_v24, %v13280_v59  ;;  %v4741_v39 = vpop.f32.mrb[33].mxu1 }
 0x588   : > { %v4742_v11 = vadd.f32 %v13280_v59, %v4741_v39  ;;  %v8908_v34 = vpop.f32.mrb[34].mxu1 }
 0x589   : > { %v4822_v53 = vmul.f32 0.2, %v4750_v57  ;;  %v4753_v36 = vadd.f32 %v8908_v34, %v13280_v59  ;;  %v4744_v30 = vpop.f32.mrb[35].mxu1 }
 0x58a   : > { %v4820_v47 = vmul.f32 0.2, %v4742_v11  ;;  %v4745_v50 = vadd.f32 %v13280_v59, %v4744_v30 }
 0x58b   : > { %v4823_v3 = vmul.f32 0.2, %v4753_v36  ;;  %v4854_v62 = vmax.f32 %v4750_v57, %v4822_v53 }
 0x58c   : > { %v4821_v15 = vmul.f32 0.2, %v4745_v50  ;;  %v4852_v38 = vmax.f32 %v4742_v11, %v4820_v47  ;;  %v13337_v11 = vld [vmem:[%s15518_s6 + $0x1] ss:$0 sm:$0xff] }
 0x58d   : > { %v4855_v42 = vmax.f32 %v4753_v36, %v4823_v3  ;;  %v5198_v36 = vld [vmem:[%s9608_s20] sm:$0x7] }
 0x58e   : > { %v4853_v10 = vmax.f32 %v4745_v50, %v4821_v15  ;;  %v8911_v26 = vpop.f32.mrb[36].mxu1 }
 0x58f   : > { %v4888_v32 = vpack.c.bf16 %v4855_v42, %v4854_v62  ;;  %v4766_v12 = vadd.f32 %v8911_v26, %v13280_v59  ;;  %v4757_v23 = vpop.f32.mrb[37].mxu1 }
 0x590   : > { %v4887_v56 = vpack.c.bf16 %v4853_v10, %v4852_v38  ;;  %v4758_v43 = vadd.f32 %v13280_v59, %v4757_v23  ;;  %v8912_v40 = vpop.f32.mrb[38].mxu1  ;;  %v16034_v10 = vld [vmem:[#allocation2_spill] sm:$0xff] }
 0x591   : > { %v4826_v35 = vmul.f32 0.2, %v4766_v12  ;;  %v4769_v19 = vadd.f32 %v8912_v40, %v13280_v59  ;;  %v4760_v13 = vpop.f32.mrb[39].mxu1  ;;  %v13343_v26 = vrot.slane %v5198_v36, %v16034_v10  ;;  %v16035_v40 = vld [vmem:[#allocation3_spill] sm:$0xff] }
 0x592   : > { %8945 = vmatprep.mubr.msk.bf16.mxu0 %vm4594_vm12, %v4887_v56  ;;  %v4824_v45 = vmul.f32 0.2, %v4758_v43  ;;  %v4761_v2 = vadd.f32 %v13280_v59, %v4760_v13 }
 0x593   : > { %8946 = vmatmul.mubr.msk.bf16.gmra.mrb[32].mxu0 %vm4594_vm12, %v4888_v32  ;;  %v4827_v5 = vmul.f32 0.2, %v4769_v19  ;;  %v4858_v33 = vmax.f32 %v4766_v12, %v4826_v35  ;;  %v13349_v35 = vrot.slane %v5198_v36, %v16035_v40 }
 0x594   : > { %v4825_v49 = vmul.f32 0.2, %v4761_v2  ;;  %v4856_v9 = vmax.f32 %v4758_v43, %v4824_v45 }
 0x595   : > { %v4859_v28 = vmax.f32 %v4769_v19, %v4827_v5 }
 0x596   : > { %v4857_v14 = vmax.f32 %v4761_v2, %v4825_v49 }
 0x597   : > { %v4890_v21 = vpack.c.bf16 %v4859_v28, %v4858_v33  ;;  %v16036_v33 = vld [vmem:[#allocation4_spill] sm:$0xff] }
 0x598   : > { %v4889_v25 = vpack.c.bf16 %v4857_v14, %v4856_v9  ;;  %v13354_v28 = vrot.slane %v5198_v36, %v16036_v33 }
 0x59a   : > { %8949 = vmatprep.mubr.msk.bf16.mxu0 %vm4594_vm12, %v4889_v25 }
 0x59b   : > { %8950 = vmatmul.mubr.msk.bf16.gmra.mrb[36].mxu0 %vm4594_vm12, %v4890_v21 }
 0x59c   : > { %v8915_v51 = vpop.f32.mrb[40].mxu1 }
 0x59d   : > { %v4782_v60 = vadd.f32 %v8915_v51, %v13280_v59  ;;  %v4773_v55 = vpop.f32.mrb[41].mxu1 }
 0x59e   : > { %v4774_v46 = vadd.f32 %v13280_v59, %v4773_v55  ;;  %v8916_v22 = vpop.f32.mrb[42].mxu1 }
 0x59f   : > { %v4830_v29 = vmul.f32 0.2, %v4782_v60  ;;  %v4785_v1 = vadd.f32 %v8916_v22, %v13280_v59  ;;  %v4776_v63 = vpop.f32.mrb[43].mxu1 }
 0x5a0   : > { %v4828_v17 = vmul.f32 0.2, %v4774_v46  ;;  %v4777_v7 = vadd.f32 %v13280_v59, %v4776_v63 }
 0x5a1   : > { %v4831_v44 = vmul.f32 0.2, %v4785_v1  ;;  %v4862_v41 = vmax.f32 %v4782_v60, %v4830_v29 }
 0x5a2   : > { %v4829_v20 = vmul.f32 0.2, %v4777_v7  ;;  %v4860_v0 = vmax.f32 %v4774_v46, %v4828_v17 }
 0x5a3   : > { %v4863_v4 = vmax.f32 %v4785_v1, %v4831_v44 }
 0x5a4   : > { %v4861_v61 = vmax.f32 %v4777_v7, %v4829_v20 }
 0x5a5   : > { %v4892_v58 = vpack.c.bf16 %v4863_v4, %v4862_v41 }
 0x5a6   : > { %v4891_v31 = vpack.c.bf16 %v4861_v61, %v4860_v0 }
 0x5a8   : > { %8953 = vmatprep.mubr.msk.bf16.mxu0 %vm4594_vm12, %v4891_v31 }
 0x5a9   : > { %8954 = vmatmul.mubr.msk.bf16.gmra.mrb[40].mxu0 %vm4594_vm12, %v4892_v58 }
 0x5b0   : > { %v8919_v48 = vpop.f32.mrb[44].mxu1 }
 0x5b1   : > { %v4798_v52 = vadd.f32 %v8919_v48, %v13280_v59  ;;  %v4789_v18 = vpop.f32.mrb[45].mxu1 }
 0x5b2   : > { %v4790_v37 = vadd.f32 %v13280_v59, %v4789_v18  ;;  %v8920_v8 = vpop.f32.mrb[46].mxu1 }
 0x5b3   : > { %v4834_v16 = vmul.f32 0.2, %v4798_v52  ;;  %v4801_v6 = vadd.f32 %v8920_v8, %v13280_v59  ;;  %v4792_v27 = vpop.f32.mrb[47].mxu1 }
 0x5b4   : > { %v4832_v54 = vmul.f32 0.2, %v4790_v37  ;;  %v4793_v24 = vadd.f32 %v13280_v59, %v4792_v27 }
 0x5b5   : > { %v4835_v57 = vmul.f32 0.2, %v4801_v6  ;;  %v4866_v34 = vmax.f32 %v4798_v52, %v4834_v16 }
 0x5b6   : > { %v4833_v39 = vmul.f32 0.2, %v4793_v24  ;;  %v4864_v30 = vmax.f32 %v4790_v37, %v4832_v54 }
 0x5b7   : > { %v4867_v53 = vmax.f32 %v4801_v6, %v4835_v57 }
 0x5b8   : > { %v4865_v47 = vmax.f32 %v4793_v24, %v4833_v39  ;;  %v8931_v50 = vpop.f32.mrb[16].mxu0 }
 0x5b9   : > { %v4894_v3 = vpack.c.bf16 %v4867_v53, %v4866_v34  ;;  %v5016_v15 = vadd.f32 %v8931_v50, %v13337_v11  ;;  %v5007_v62 = vpop.f32.mrb[17].mxu0 }
 0x5ba   : > { %v4893_v42 = vpack.c.bf16 %v4865_v47, %v4864_v30  ;;  %v5008_v59 = vadd.f32 %v13337_v11, %v5007_v62  ;;  %v8932_v38 = vpop.f32.mrb[18].mxu0 }
 0x5bb   : > { %v5136_v32 = vmul.f32 0.2, %v5016_v15  ;;  %v5019_v12 = vadd.f32 %v8932_v38, %v13337_v11  ;;  %v5010_v23 = vpop.f32.mrb[19].mxu0 }
 0x5bc   : > { %8957 = vmatprep.mubr.msk.bf16.mxu0 %vm4594_vm12, %v4893_v42  ;;  %v5134_v56 = vmul.f32 0.2, %v5008_v59  ;;  %v5011_v43 = vadd.f32 %v13337_v11, %v5010_v23 }
 0x5bd   : > { %8958 = vmatmul.mubr.msk.bf16.gmra.mrb[44].mxu0 %vm4594_vm12, %v4894_v3  ;;  %v5168_v19 = vmax.f32 %v5016_v15, %v5136_v32  ;;  %v5137_v13 = vmul.f32 0.2, %v5019_v12 }
 0x5be   : > { %v5166_v45 = vmax.f32 %v5008_v59, %v5134_v56  ;;  %v5135_v2 = vmul.f32 0.2, %v5011_v43 }
 0x5bf   : > { %v5169_v5 = vmax.f32 %v5019_v12, %v5137_v13  ;;  %v5205_v49 = vmul.f32 %v13343_v26, %v5168_v19  ;;  %v5369_v46 = vmul.f32 %v13349_v35, %v5168_v19  ;;  %v5533_v58 = vmul.f32 %v13354_v28, %v5168_v19 }
 0x5c0   : > { %v13356_v9 = vmax.f32 %v5011_v43, %v5135_v2  ;;  %v8935_v14 = vpop.f32.mrb[20].mxu0  ;;  %v5203_v21 = vmul.f32 %v13343_v26, %v5166_v45  ;;  %v5367_v24 = vmul.f32 %v13349_v35, %v5166_v45  ;;  %v5531_v38 = vmul.f32 %v13354_v28, %v5166_v45 }
 0x5c1   : > { %v5703_v25 = vpack.c.bf16 %v5169_v5, %v5168_v19  ;;  %v5032_v51 = vadd.f32 %v8935_v14, %v13337_v11  ;;  %v5023_v60 = vpop.f32.mrb[21].mxu0  ;;  %v5241_v55 = vsel %vm4594_vm12, %v5205_v49, 0.0  ;;  %v5206_v17 = vmul.f32 %v13343_v26, %v5169_v5 }
 0x5c2   : > { %v5024_v22 = vadd.f32 %v13337_v11, %v5023_v60  ;;  %5242 = vadd.xlane.f32.xlu0 %v5241_v55  ;;  %v8936_v29 = vpop.f32.mrb[22].mxu0  ;;  %v5235_v1 = vsel %vm4594_vm12, %v5203_v21, 0.0  ;;  %v5702_v63 = vpack.c.bf16 %v13356_v9, %v5166_v45  ;;  %v5405_v61 = vsel %vm4594_vm12, %v5369_v46, 0.0 }
 0x5c3   : > { %v5140_v7 = vmul.f32 0.2, %v5032_v51  ;;  %v5035_v44 = vadd.f32 %v8936_v29, %v13337_v11  ;;  %v5026_v20 = vpop.f32.mrb[23].mxu0  ;;  %5236 = vadd.xlane.f32.xlu1 %v5235_v1  ;;  %v5244_v48 = vsel %vm4594_vm12, %v5206_v17, 0.0  ;;  %v5370_v52 = vmul.f32 %v13349_v35, %v5169_v5 }
 0x5c4   : > { %v5138_v41 = vmul.f32 0.2, %v5024_v22  ;;  %v5027_v4 = vadd.f32 %v13337_v11, %v5026_v20  ;;  %8969 = vmatprep.mubr.msk.bf16.mxu1 %vm4594_vm12, %v5702_v63  ;;  %v5569_v27 = vsel %vm4594_vm12, %v5533_v58, 0.0  ;;  %v5534_v36 = vmul.f32 %v13354_v28, %v5169_v5 }
 0x5c5   : > { %v5141_v0 = vmul.f32 0.2, %v5035_v44  ;;  %8970 = vmatmul.mubr.msk.bf16.vlgmr.msra.gmra.mrb[48].mxu1 %vm4594_vm12, %v5703_v25  ;;  %v5172_v18 = vmax.f32 %v5032_v51, %v5140_v7  ;;  %v5408_v34 = vsel %vm4594_vm12, %v5370_v52, 0.0  ;;  %v5399_v59 = vsel %vm4594_vm12, %v5367_v24, 0.0 }
 0x5c6   : > { %v5139_v31 = vmul.f32 0.2, %v5027_v4  ;;  %5406 = vadd.xlane.f32.xlu0 %v5405_v61  ;;  %v13374_v8 = vmax.f32 %v5024_v22, %v5138_v41  ;;  %v5572_v32 = vsel %vm4594_vm12, %v5534_v36, 0.0  ;;  %v5368_v12 = vmul.f32 %v13349_v35, %v13356_v9 }
 0x5c7   : > { %v5173_v37 = vmax.f32 %v5035_v44, %v5141_v0  ;;  %5245 = vadd.xlane.f32.xlu1 %v5244_v48  ;;  %v5563_v13 = vsel %vm4594_vm12, %v5531_v38, 0.0  ;;  %v5204_v45 = vmul.f32 %v13343_v26, %v13356_v9  ;;  %v5532_v49 = vmul.f32 %v13354_v28, %v13356_v9 }
 0x5c8   : > { %v13376_v16 = vmax.f32 %v5027_v4, %v5139_v31  ;;  %v8939_v6 = vpop.f32.mrb[24].mxu0  ;;  %v5402_v5 = vsel %vm4594_vm12, %v5368_v12, 0.0  ;;  %v5209_v21 = vmul.f32 %v13343_v26, %v5172_v18  ;;  %v5373_v60 = vmul.f32 %v13349_v35, %v5172_v18 }
 0x5c9   : > { %v5705_v54 = vpack.c.bf16 %v5173_v37, %v5172_v18  ;;  %v5048_v57 = vadd.f32 %v8939_v6, %v13337_v11  ;;  %v5039_v39 = vpop.f32.mrb[25].mxu0  ;;  %v5238_v14 = vsel %vm4594_vm12, %v5204_v45, 0.0  ;;  %v5566_v25 = vsel %vm4594_vm12, %v5532_v49, 0.0 }
 0x5ca   : > { %5570 = vadd.xlane.f32.xlu0 %v5569_v27  ;;  %v5704_v53 = vpack.c.bf16 %v13376_v16, %v13374_v8  ;;  %v5040_v30 = vadd.f32 %v13337_v11, %v5039_v39  ;;  %v8940_v47 = vpop.f32.mrb[26].mxu0  ;;  %v5210_v51 = vmul.f32 %v13343_v26, %v5173_v37  ;;  %v5253_v9 = vsel %vm4594_vm12, %v5209_v21, 0.0 }
 0x5cb   : > { %5409 = vadd.xlane.f32.xlu1 %v5408_v34  ;;  %v5144_v50 = vmul.f32 0.2, %v5048_v57  ;;  %v5051_v3 = vadd.f32 %v8940_v47, %v13337_v11  ;;  %v5042_v15 = vpop.f32.mrb[27].mxu0  ;;  %v5374_v46 = vmul.f32 %v13349_v35, %v5173_v37  ;;  %v5417_v22 = vsel %vm4594_vm12, %v5373_v60, 0.0 }
 0x5cc   : > { %8973 = vmatprep.mubr.msk.bf16.mxu1 %vm4594_vm12, %v5704_v53  ;;  %v5142_v62 = vmul.f32 0.2, %v5040_v30  ;;  %v5043_v42 = vadd.f32 %v13337_v11, %v5042_v15  ;;  %v5256_v55 = vsel %vm4594_vm12, %v5210_v51, 0.0  ;;  %v5537_v29 = vmul.f32 %v13354_v28, %v5172_v18 }
 0x5cd   : > { %8974 = vmatmul.mubr.msk.bf16.gmra.mrb[52].mxu1 %vm4594_vm12, %v5705_v54  ;;  %v5145_v10 = vmul.f32 0.2, %v5051_v3  ;;  %v13395_v56 = vmax.f32 %v5048_v57, %v5144_v50  ;;  %v5420_v1 = vsel %vm4594_vm12, %v5374_v46, 0.0  ;;  %v5538_v63 = vmul.f32 %v13354_v28, %v5173_v37 }
 0x5ce   : > { %5400 = vadd.xlane.f32.xlu0 %v5399_v59  ;;  %v5143_v23 = vmul.f32 0.2, %v5043_v42  ;;  %v13399_v40 = vmax.f32 %v5040_v30, %v5142_v62  ;;  %v5581_v17 = vsel %vm4594_vm12, %v5537_v29, 0.0  ;;  %v5207_v7 = vmul.f32 %v13343_v26, %v13374_v8 }
 0x5cf   : > { %5573 = vadd.xlane.f32.xlu1 %v5572_v32  ;;  %v13397_v43 = vmax.f32 %v5051_v3, %v5145_v10  ;;  %v5584_v44 = vsel %vm4594_vm12, %v5538_v63, 0.0  ;;  %v5208_v20 = vmul.f32 %v13343_v26, %v13376_v16  ;;  %v5371_v4 = vmul.f32 %v13349_v35, %v13374_v8 }
 0x5d0   : > { %v13401_v19 = vmax.f32 %v5043_v42, %v5143_v23  ;;  %v5247_v41 = vsel %vm4594_vm12, %v5207_v7, 0.0  ;;  %v5372_v61 = vmul.f32 %v13349_v35, %v13376_v16  ;;  %v5535_v31 = vmul.f32 %v13354_v28, %v13374_v8 }
 0x5d1   : > { %v5707_v2 = vpack.c.bf16 %v13397_v43, %v13395_v56  ;;  %v5250_v0 = vsel %vm4594_vm12, %v5208_v20, 0.0  ;;  %v5411_v58 = vsel %vm4594_vm12, %v5371_v4, 0.0  ;;  %v5536_v52 = vmul.f32 %v13354_v28, %v13376_v16 }
 0x5d2   : > { %5564 = vadd.xlane.f32.xlu0 %v5563_v13  ;;  %v5706_v33 = vpack.c.bf16 %v13401_v19, %v13399_v40  ;;  %v5414_v48 = vsel %vm4594_vm12, %v5372_v61, 0.0  ;;  %v5575_v18 = vsel %vm4594_vm12, %v5535_v31, 0.0  ;;  %v5213_v37 = vmul.f32 %v13343_v26, %v13395_v56 }
 0x5d3   : > { %5403 = vadd.xlane.f32.xlu1 %v5402_v5  ;;  %v5578_v6 = vsel %vm4594_vm12, %v5536_v52, 0.0  ;;  %v5214_v27 = vmul.f32 %v13343_v26, %v13397_v43  ;;  %v5377_v54 = vmul.f32 %v13349_v35, %v13395_v56  ;;  %v5378_v24 = vmul.f32 %v13349_v35, %v13397_v43 }
 0x5d4   : > { %8977 = vmatprep.mubr.msk.bf16.mxu1 %vm4594_vm12, %v5706_v33  ;;  %v5265_v8 = vsel %vm4594_vm12, %v5213_v37, 0.0  ;;  %v5541_v39 = vmul.f32 %v13354_v28, %v13395_v56  ;;  %v5542_v53 = vmul.f32 %v13354_v28, %v13397_v43  ;;  %v5211_v30 = vmul.f32 %v13343_v26, %v13399_v40 }
 0x5d5   : > { %8978 = vmatmul.mubr.msk.bf16.gmra.mrb[56].mxu1 %vm4594_vm12, %v5707_v2  ;;  %v5268_v16 = vsel %vm4594_vm12, %v5214_v27, 0.0  ;;  %v5429_v57 = vsel %vm4594_vm12, %v5377_v54, 0.0  ;;  %v5432_v34 = vsel %vm4594_vm12, %v5378_v24, 0.0  ;;  %v5212_v50 = vmul.f32 %v13343_v26, %v13401_v19 }
 0x5d6   : > { %5239 = vadd.xlane.f32.xlu0 %v5238_v14  ;;  %v5593_v36 = vsel %vm4594_vm12, %v5541_v39, 0.0  ;;  %v5596_v47 = vsel %vm4594_vm12, %v5542_v53, 0.0  ;;  %v5259_v3 = vsel %vm4594_vm12, %v5211_v30, 0.0  ;;  %v5375_v15 = vmul.f32 %v13349_v35, %v13399_v40  ;;  %v9336_v39 = vld [vmem:[%s9644_s24 + $0x68] sm:$0xff]   ;;  %v9338_v53 = vld [vmem:[%s9644_s24 + $0x78] sm:$0xff]  }
 0x5d7   : > { %5567 = vadd.xlane.f32.xlu1 %v5566_v25  ;;  %v5262_v62 = vsel %vm4594_vm12, %v5212_v50, 0.0  ;;  %v5376_v42 = vmul.f32 %v13349_v35, %v13401_v19  ;;  %v5539_v10 = vmul.f32 %v13354_v28, %v13399_v40  ;;  %v5540_v56 = vmul.f32 %v13354_v28, %v13401_v19 }
 0x5d8   : > { %v5423_v38 = vsel %vm4594_vm12, %v5375_v15, 0.0 }
 0x5d9   : > { %v5426_v23 = vsel %vm4594_vm12, %v5376_v42, 0.0  ;;  %v5587_v33 = vsel %vm4594_vm12, %v5539_v10, 0.0  ;;  %v5590_v25 = vsel %vm4594_vm12, %v5540_v56, 0.0 }
 0x5da   : > { %5254 = vadd.xlane.f32.xlu0 %v5253_v9 }
 0x5db   : > { %5257 = vadd.xlane.f32.xlu1 %v5256_v55 }
 0x5de   : > { %5418 = vadd.xlane.f32.xlu0 %v5417_v22 }
 0x5df   : > { %5421 = vadd.xlane.f32.xlu1 %v5420_v1 }
 0x5e2   : > { %5582 = vadd.xlane.f32.xlu0 %v5581_v17 }
 0x5e3   : > { %5585 = vadd.xlane.f32.xlu1 %v5584_v44 }
 0x5e6   : > { %5248 = vadd.xlane.f32.xlu0 %v5247_v41 }
 0x5e7   : > { %5251 = vadd.xlane.f32.xlu1 %v5250_v0 }
 0x5ea   : > { %5412 = vadd.xlane.f32.xlu0 %v5411_v58 }
 0x5eb   : > { %5415 = vadd.xlane.f32.xlu1 %v5414_v48 }
 0x5ee   : > { %5576 = vadd.xlane.f32.xlu0 %v5575_v18 }
 0x5ef   : > { %5579 = vadd.xlane.f32.xlu1 %v5578_v6 }
 0x5f2   : > { %5266 = vadd.xlane.f32.xlu0 %v5265_v8 }
 0x5f3   : > { %5269 = vadd.xlane.f32.xlu1 %v5268_v16 }
 0x5f5   : > { %v8943_v59 = vpop.f32.mrb[28].mxu0 }
 0x5f6   : > { %5430 = vadd.xlane.f32.xlu0 %v5429_v57  ;;  %v5064_v32 = vadd.f32 %v8943_v59, %v13337_v11  ;;  %v5055_v12 = vpop.f32.mrb[29].mxu0  ;;  %v9335_v57 = vld [vmem:[%s9644_s24 + $0x60] sm:$0xff]  }
 0x5f7   : > { %5433 = vadd.xlane.f32.xlu1 %v5432_v34  ;;  %v5056_v43 = vadd.f32 %v13337_v11, %v5055_v12  ;;  %v8944_v13 = vpop.f32.mrb[30].mxu0  ;;  %9001 = vmatprep.subr.bf16.mxu0 %v9335_v57  ;;  %v9337_v34 = vld [vmem:[%s9644_s24 + $0x70] sm:$0xff]  }
 0x5f8   : > { %v5148_v45 = vmul.f32 0.2, %v5064_v32  ;;  %v5067_v2 = vadd.f32 %v8944_v13, %v13337_v11  ;;  %v5058_v5 = vpop.f32.mrb[31].mxu0  ;;  %9002 = vmatpush3.bf16.msra.mxu0 %v9335_v57 }
 0x5f9   : > { %v5146_v49 = vmul.f32 0.2, %v5056_v43  ;;  %v5059_v40 = vadd.f32 %v13337_v11, %v5058_v5  ;;  %9003 = vmatprep.subr.bf16.mxu0 %v9336_v39 }
 0x5fa   : > { %5594 = vadd.xlane.f32.xlu0 %v5593_v36  ;;  %v5180_v14 = vmax.f32 %v5064_v32, %v5148_v45  ;;  %v5149_v21 = vmul.f32 0.2, %v5067_v2 }
 0x5fb   : > { %5597 = vadd.xlane.f32.xlu1 %v5596_v47  ;;  %v5147_v51 = vmul.f32 0.2, %v5059_v40  ;;  %v5178_v60 = vmax.f32 %v5056_v43, %v5146_v49 }
 0x5fc   : > { %v5181_v19 = vmax.f32 %v5067_v2, %v5149_v21  ;;  %v5217_v9 = vmul.f32 %v13343_v26, %v5180_v14  ;;  %v5381_v1 = vmul.f32 %v13349_v35, %v5180_v14  ;;  %v5545_v20 = vmul.f32 %v13354_v28, %v5180_v14  ;;  %9004 = vmatpush3.bf16.msra.mxu0 %v9336_v39 }
 0x5fd   : > { %v5179_v55 = vmax.f32 %v5059_v40, %v5147_v51  ;;  %v5215_v61 = vmul.f32 %v13343_v26, %v5178_v60  ;;  %v5379_v52 = vmul.f32 %v13349_v35, %v5178_v60  ;;  %v5543_v27 = vmul.f32 %v13354_v28, %v5178_v60  ;;  %9005 = vmatprep.subr.bf16.mxu0 %v9337_v34 }
 0x5fe   : > { %5260 = vadd.xlane.f32.xlu0 %v5259_v3  ;;  %v5709_v46 = vpack.c.bf16 %v5181_v19, %v5180_v14  ;;  %v5277_v22 = vsel %vm4594_vm12, %v5217_v9, 0.0  ;;  %v5218_v29 = vmul.f32 %v13343_v26, %v5181_v19  ;;  %v5382_v7 = vmul.f32 %v13349_v35, %v5181_v19 }
 0x5ff   : > { %5263 = vadd.xlane.f32.xlu1 %v5262_v62  ;;  %v5708_v63 = vpack.c.bf16 %v5179_v55, %v5178_v60  ;;  %v5441_v44 = vsel %vm4594_vm12, %v5381_v1, 0.0  ;;  %v5546_v4 = vmul.f32 %v13354_v28, %v5181_v19  ;;  %v5605_v0 = vsel %vm4594_vm12, %v5545_v20, 0.0 }
 0x600   : > { %v5280_v17 = vsel %vm4594_vm12, %v5218_v29, 0.0  ;;  %v5444_v41 = vsel %vm4594_vm12, %v5382_v7, 0.0  ;;  %v5216_v31 = vmul.f32 %v13343_v26, %v5179_v55  ;;  %v5271_v48 = vsel %vm4594_vm12, %v5215_v61, 0.0  ;;  %9006 = vmatpush3.bf16.msra.mxu0 %v9337_v34 }
 0x601   : > { %8981 = vmatprep.mubr.msk.bf16.mxu1 %vm4594_vm12, %v5708_v63  ;;  %v5608_v58 = vsel %vm4594_vm12, %v5546_v4, 0.0  ;;  %v5380_v37 = vmul.f32 %v13349_v35, %v5179_v55  ;;  %v5435_v6 = vsel %vm4594_vm12, %v5379_v52, 0.0  ;;  %v5544_v54 = vmul.f32 %v13354_v28, %v5179_v55  ;;  %9007 = vmatprep.subr.bf16.mxu0 %v9338_v53 }
 0x602   : > { %5424 = vadd.xlane.f32.xlu0 %v5423_v38  ;;  %8982 = vmatmul.mubr.msk.bf16.gmra.mrb[60].mxu1 %vm4594_vm12, %v5709_v46  ;;  %v5274_v18 = vsel %vm4594_vm12, %v5216_v31, 0.0  ;;  %v5599_v16 = vsel %vm4594_vm12, %v5543_v27, 0.0 }
 0x603   : > { %5427 = vadd.xlane.f32.xlu1 %v5426_v23  ;;  %v5438_v8 = vsel %vm4594_vm12, %v5380_v37, 0.0  ;;  %v5602_v24 = vsel %vm4594_vm12, %v5544_v54, 0.0 }
 0x604   : > { %9008 = vmatpush3.bf16.msra.mxu0 %v9338_v53 }
 0x606   : > { %5588 = vadd.xlane.f32.xlu0 %v5587_v33 }
 0x607   : > { %5591 = vadd.xlane.f32.xlu1 %v5590_v25 }
 0x60a   : > { %5278 = vadd.xlane.f32.xlu0 %v5277_v22 }
 0x60b   : > { %5281 = vadd.xlane.f32.xlu1 %v5280_v17 }
 0x60e   : > { %5442 = vadd.xlane.f32.xlu0 %v5441_v44 }
 0x60f   : > { %5445 = vadd.xlane.f32.xlu1 %v5444_v41 }
 0x612   : > { %5606 = vadd.xlane.f32.xlu0 %v5605_v0 }
 0x613   : > { %5609 = vadd.xlane.f32.xlu1 %v5608_v58 }
 0x616   : > { %5272 = vadd.xlane.f32.xlu0 %v5271_v48 }
 0x617   : > { %5275 = vadd.xlane.f32.xlu1 %v5274_v18 }
 0x61a   : > { %5436 = vadd.xlane.f32.xlu0 %v5435_v6 }
 0x61b   : > { %5439 = vadd.xlane.f32.xlu1 %v5438_v8 }
 0x61e   : > { %5600 = vadd.xlane.f32.xlu0 %v5599_v16 }
 0x61f   : > { %5603 = vadd.xlane.f32.xlu1 %v5602_v24 }
 0x666   : > { %v8947_v36 = vpop.f32.mrb[32].mxu0 }
 0x667   : > { %v5080_v30 = vadd.f32 %v8947_v36, %v13337_v11  ;;  %v5071_v47 = vpop.f32.mrb[33].mxu0 }
 0x668   : > { %v5072_v50 = vadd.f32 %v13337_v11, %v5071_v47  ;;  %v8948_v3 = vpop.f32.mrb[34].mxu0 }
 0x669   : > { %v5152_v15 = vmul.f32 0.2, %v5080_v30  ;;  %v5083_v62 = vadd.f32 %v8948_v3, %v13337_v11  ;;  %v5074_v42 = vpop.f32.mrb[35].mxu0 }
 0x66a   : > { %v5150_v59 = vmul.f32 0.2, %v5072_v50  ;;  %v5075_v38 = vadd.f32 %v13337_v11, %v5074_v42 }
 0x66b   : > { %v5184_v10 = vmax.f32 %v5080_v30, %v5152_v15  ;;  %v5153_v32 = vmul.f32 0.2, %v5083_v62 }
 0x66c   : > { %v5151_v12 = vmul.f32 0.2, %v5075_v38  ;;  %v13522_v43 = vmax.f32 %v5072_v50, %v5150_v59 }
 0x66d   : > { %v5185_v23 = vmax.f32 %v5083_v62, %v5153_v32  ;;  %v5221_v56 = vmul.f32 %v13343_v26, %v5184_v10  ;;  %v5385_v2 = vmul.f32 %v13349_v35, %v5184_v10  ;;  %v5549_v17 = vmul.f32 %v13354_v28, %v5184_v10 }
 0x66e   : > { %v13524_v13 = vmax.f32 %v5075_v38, %v5151_v12  ;;  %v8951_v45 = vpop.f32.mrb[36].mxu0  ;;  %v5219_v48 = vmul.f32 %v13343_v26, %v13522_v43  ;;  %v5383_v16 = vmul.f32 %v13349_v35, %v13522_v43  ;;  %v5547_v62 = vmul.f32 %v13354_v28, %v13522_v43 }
 0x66f   : > { %v5711_v5 = vpack.c.bf16 %v5185_v23, %v5184_v10  ;;  %v5096_v49 = vadd.f32 %v8951_v45, %v13337_v11  ;;  %v5087_v40 = vpop.f32.mrb[37].mxu0  ;;  %v5289_v33 = vsel %vm4594_vm12, %v5221_v56, 0.0  ;;  %v5222_v14 = vmul.f32 %v13343_v26, %v5185_v23 }
 0x670   : > { %v5710_v21 = vpack.c.bf16 %v13524_v13, %v13522_v43  ;;  %v5088_v25 = vadd.f32 %v13337_v11, %v5087_v40  ;;  %v8952_v51 = vpop.f32.mrb[38].mxu0  ;;  %5290 = vadd.xlane.f32.xlu0 %v5289_v33  ;;  %v5386_v46 = vmul.f32 %v13349_v35, %v5185_v23  ;;  %v5453_v63 = vsel %vm4594_vm12, %v5385_v2, 0.0 }
 0x671   : > { %v5156_v19 = vmul.f32 0.2, %v5096_v49  ;;  %v5099_v9 = vadd.f32 %v8952_v51, %v13337_v11  ;;  %v5090_v60 = vpop.f32.mrb[39].mxu0  ;;  %v5292_v55 = vsel %vm4594_vm12, %v5222_v14, 0.0  ;;  %v5550_v4 = vmul.f32 %v13354_v28, %v5185_v23 }
 0x672   : > { %8985 = vmatprep.mubr.msk.bf16.mxu1 %vm4594_vm12, %v5710_v21  ;;  %v5154_v22 = vmul.f32 0.2, %v5088_v25  ;;  %v5091_v29 = vadd.f32 %v13337_v11, %v5090_v60  ;;  %5293 = vadd.xlane.f32.xlu1 %v5292_v55  ;;  %v5456_v41 = vsel %vm4594_vm12, %v5386_v46, 0.0  ;;  %v5617_v31 = vsel %vm4594_vm12, %v5549_v17, 0.0 }
 0x673   : > { %8986 = vmatmul.mubr.msk.bf16.gmra.mrb[64].mxu1 %vm4594_vm12, %v5711_v5  ;;  %v5157_v1 = vmul.f32 0.2, %v5099_v9  ;;  %v5188_v44 = vmax.f32 %v5096_v49, %v5156_v19  ;;  %v5620_v18 = vsel %vm4594_vm12, %v5550_v4, 0.0  ;;  %v5220_v37 = vmul.f32 %v13343_v26, %v13524_v13 }
 0x674   : > { %v5155_v7 = vmul.f32 0.2, %v5091_v29  ;;  %5454 = vadd.xlane.f32.xlu0 %v5453_v63  ;;  %v13545_v0 = vmax.f32 %v5088_v25, %v5154_v22  ;;  %v5283_v27 = vsel %vm4594_vm12, %v5219_v48, 0.0  ;;  %v5384_v36 = vmul.f32 %v13349_v35, %v13524_v13 }
 0x675   : > { %v13541_v20 = vmax.f32 %v5099_v9, %v5157_v1  ;;  %v5286_v39 = vsel %vm4594_vm12, %v5220_v37, 0.0  ;;  %v5447_v3 = vsel %vm4594_vm12, %v5383_v16, 0.0  ;;  %v5548_v32 = vmul.f32 %v13354_v28, %v13524_v13 }
 0x676   : > { %v13547_v61 = vmax.f32 %v5091_v29, %v5155_v7  ;;  %5457 = vadd.xlane.f32.xlu1 %v5456_v41  ;;  %v5450_v10 = vsel %vm4594_vm12, %v5384_v36, 0.0  ;;  %v5611_v56 = vsel %vm4594_vm12, %v5547_v62, 0.0  ;;  %v5225_v43 = vmul.f32 %v13343_v26, %v5188_v44 }
 0x677   : > { %v5713_v58 = vpack.c.bf16 %v13541_v20, %v5188_v44  ;;  %v5614_v5 = vsel %vm4594_vm12, %v5548_v32, 0.0  ;;  %v5226_v13 = vmul.f32 %v13343_v26, %v13541_v20  ;;  %v5389_v40 = vmul.f32 %v13349_v35, %v5188_v44 }
 0x678   : > { %v5712_v52 = vpack.c.bf16 %v13547_v61, %v13545_v0  ;;  %5618 = vadd.xlane.f32.xlu0 %v5617_v31  ;;  %v5301_v49 = vsel %vm4594_vm12, %v5225_v43, 0.0  ;;  %v5390_v14 = vmul.f32 %v13349_v35, %v13541_v20  ;;  %v5553_v25 = vmul.f32 %v13354_v28, %v5188_v44 }
 0x679   : > { %v5304_v33 = vsel %vm4594_vm12, %v5226_v13, 0.0  ;;  %v5465_v21 = vsel %vm4594_vm12, %v5389_v40, 0.0  ;;  %v5554_v19 = vmul.f32 %v13354_v28, %v13541_v20  ;;  %v5223_v22 = vmul.f32 %v13343_v26, %v13545_v0 }
 0x67a   : > { %8989 = vmatprep.mubr.msk.bf16.mxu1 %vm4594_vm12, %v5712_v52  ;;  %5621 = vadd.xlane.f32.xlu1 %v5620_v18  ;;  %v5468_v51 = vsel %vm4594_vm12, %v5390_v14, 0.0  ;;  %v5629_v46 = vsel %vm4594_vm12, %v5553_v25, 0.0  ;;  %v5224_v20 = vmul.f32 %v13343_v26, %v13547_v61  ;;  %v5387_v48 = vmul.f32 %v13349_v35, %v13545_v0 }
 0x67b   : > { %8990 = vmatmul.mubr.msk.bf16.gmra.mrb[68].mxu1 %vm4594_vm12, %v5713_v58  ;;  %v5632_v44 = vsel %vm4594_vm12, %v5554_v19, 0.0  ;;  %v5295_v31 = vsel %vm4594_vm12, %v5223_v22, 0.0 }
 0x67c   : > { %v8955_v6 = vpop.f32.mrb[40].mxu0  ;;  %5284 = vadd.xlane.f32.xlu0 %v5283_v27 }
 0x67d   : > { %v5112_v8 = vadd.f32 %v8955_v6, %v13337_v11  ;;  %v5103_v54 = vpop.f32.mrb[41].mxu0  ;;  %v5298_v6 = vsel %vm4594_vm12, %v5224_v20, 0.0 }
 0x67e   : > { %v5104_v24 = vadd.f32 %v13337_v11, %v5103_v54  ;;  %v8956_v57 = vpop.f32.mrb[42].mxu0  ;;  %5287 = vadd.xlane.f32.xlu1 %v5286_v39  ;;  %v5551_v39 = vmul.f32 %v13354_v28, %v13545_v0 }
 0x67f   : > { %v5160_v34 = vmul.f32 0.2, %v5112_v8  ;;  %v5115_v53 = vadd.f32 %v8956_v57, %v13337_v11  ;;  %v5106_v30 = vpop.f32.mrb[43].mxu0  ;;  %v5459_v57 = vsel %vm4594_vm12, %v5387_v48, 0.0 }
 0x680   : > { %v5158_v47 = vmul.f32 0.2, %v5104_v24  ;;  %v5107_v50 = vadd.f32 %v13337_v11, %v5106_v30  ;;  %5448 = vadd.xlane.f32.xlu0 %v5447_v3  ;;  %v5623_v62 = vsel %vm4594_vm12, %v5551_v39, 0.0 }
 0x681   : > { %v5161_v15 = vmul.f32 0.2, %v5115_v53  ;;  %v13573_v59 = vmax.f32 %v5112_v8, %v5160_v34 }
 0x682   : > { %v5159_v42 = vmul.f32 0.2, %v5107_v50  ;;  %v13580_v12 = vmax.f32 %v5104_v24, %v5158_v47  ;;  %5451 = vadd.xlane.f32.xlu1 %v5450_v10 }
 0x683   : > { %v13575_v38 = vmax.f32 %v5115_v53, %v5161_v15  ;;  %v13639_v53 = vld [vmem:[%s15518_s6 + $0x2] ss:$0 sm:$0xff]  ;;  %v5229_v0 = vmul.f32 %v13343_v26, %v13573_v59 }
 0x684   : > { %v13582_v23 = vmax.f32 %v5107_v50, %v5159_v42  ;;  %5612 = vadd.xlane.f32.xlu0 %v5611_v56  ;;  %v5552_v50 = vmul.f32 %v13354_v28, %v13547_v61  ;;  %v5227_v39 = vmul.f32 %v13343_v26, %v13580_v12 }
 0x685   : > { %v5715_v45 = vpack.c.bf16 %v13575_v38, %v13573_v59  ;;  %v5313_v13 = vsel %vm4594_vm12, %v5229_v0, 0.0 }
 0x686   : > { %v5714_v2 = vpack.c.bf16 %v13582_v23, %v13580_v12  ;;  %5615 = vadd.xlane.f32.xlu1 %v5614_v5  ;;  %v5626_v43 = vsel %vm4594_vm12, %v5552_v50, 0.0 }
 0x688   : > { %8993 = vmatprep.mubr.msk.bf16.mxu1 %vm4594_vm12, %v5714_v2  ;;  %5302 = vadd.xlane.f32.xlu0 %v5301_v49  ;;  %v5393_v49 = vmul.f32 %v13349_v35, %v13573_v59 }
 0x689   : > { %8994 = vmatmul.mubr.msk.bf16.gmra.mrb[72].mxu1 %vm4594_vm12, %v5715_v45 }
 0x68a   : > { %5305 = vadd.xlane.f32.xlu1 %v5304_v33  ;;  %v5477_v20 = vsel %vm4594_vm12, %v5393_v49, 0.0 }
 0x68c   : > { %5466 = vadd.xlane.f32.xlu0 %v5465_v21 }
 0x68e   : > { %5469 = vadd.xlane.f32.xlu1 %v5468_v51 }
 0x690   : > { %v8959_v9 = vpop.f32.mrb[44].mxu0  ;;  %5630 = vadd.xlane.f32.xlu0 %v5629_v46 }
 0x691   : > { %v5128_v60 = vadd.f32 %v8959_v9, %v13337_v11  ;;  %v5119_v55 = vpop.f32.mrb[45].mxu0 }
 0x692   : > { %v5120_v29 = vadd.f32 %v13337_v11, %v5119_v55  ;;  %v8960_v1 = vpop.f32.mrb[46].mxu0  ;;  %5633 = vadd.xlane.f32.xlu1 %v5632_v44  ;;  %v5394_v55 = vmul.f32 %v13349_v35, %v13575_v38 }
 0x693   : > { %v5164_v63 = vmul.f32 0.2, %v5128_v60  ;;  %v5131_v17 = vadd.f32 %v8960_v1, %v13337_v11  ;;  %v5122_v7 = vpop.f32.mrb[47].mxu0 }
 0x694   : > { %v5162_v41 = vmul.f32 0.2, %v5120_v29  ;;  %v5123_v4 = vadd.f32 %v13337_v11, %v5122_v7  ;;  %5296 = vadd.xlane.f32.xlu0 %v5295_v31  ;;  %v5388_v11 = vmul.f32 %v13349_v35, %v13547_v61  ;;  %v5230_v61 = vmul.f32 %v13343_v26, %v13575_v38 }
 0x695   : > { %v5165_v58 = vmul.f32 0.2, %v5131_v17  ;;  %v13618_v18 = vmax.f32 %v5128_v60, %v5164_v63  ;;  %v5480_v48 = vsel %vm4594_vm12, %v5394_v55, 0.0 }
 0x696   : > { %v5163_v52 = vmul.f32 0.2, %v5123_v4  ;;  %v13623_v27 = vmax.f32 %v5120_v29, %v5162_v41  ;;  %5299 = vadd.xlane.f32.xlu1 %v5298_v6  ;;  %v5462_v47 = vsel %vm4594_vm12, %v5388_v11, 0.0  ;;  %v5316_v60 = vsel %vm4594_vm12, %v5230_v61, 0.0 }
 0x697   : > { %v13620_v37 = vmax.f32 %v5131_v17, %v5165_v58  ;;  %v5557_v41 = vmul.f32 %v13354_v28, %v13573_v59  ;;  %v5391_v61 = vmul.f32 %v13349_v35, %v13580_v12 }
 0x698   : > { %v13627_v8 = vmax.f32 %v5123_v4, %v5163_v52  ;;  %v8971_v54 = vpop.f32.mrb[48].mxu1  ;;  %5460 = vadd.xlane.f32.xlu0 %v5459_v57  ;;  %v5558_v52 = vmul.f32 %v13354_v28, %v13575_v38 }
 0x699   : > { %v5717_v16 = vpack.c.bf16 %v13620_v37, %v13618_v18  ;;  %v5830_v24 = vpop.f32.mrb[49].mxu1  ;;  %v5839_v3 = vadd.f32 %v8971_v54, %v13639_v53  ;;  %v5641_v57 = vsel %vm4594_vm12, %v5557_v41, 0.0  ;;  %v5395_v41 = vmul.f32 %v13349_v35, %v13623_v27 }
 0x69a   : > { %v5716_v34 = vpack.c.bf16 %v13627_v8, %v13623_v27  ;;  %v8972_v36 = vpop.f32.mrb[50].mxu1  ;;  %5463 = vadd.xlane.f32.xlu1 %v5462_v47  ;;  %v5831_v15 = vadd.f32 %v13639_v53, %v5830_v24  ;;  %v5644_v0 = vsel %vm4594_vm12, %v5558_v52, 0.0 }
 0x69b   : > { %v5833_v30 = vpop.f32.mrb[51].mxu1  ;;  %v5842_v42 = vadd.f32 %v8972_v36, %v13639_v53  ;;  %v5959_v32 = vmul.f32 0.2, %v5839_v3 }
 0x69c   : > { %8997 = vmatprep.mubr.msk.bf16.mxu1 %vm4594_vm12, %v5716_v34  ;;  %v5834_v10 = vadd.f32 %v13639_v53, %v5833_v30  ;;  %5624 = vadd.xlane.f32.xlu0 %v5623_v62  ;;  %v5957_v56 = vmul.f32 0.2, %v5831_v15 }
 0x69d   : > { %8998 = vmatmul.mubr.msk.bf16.gmra.mrb[76].mxu1 %vm4594_vm12, %v5717_v16  ;;  %v5960_v45 = vmul.f32 0.2, %v5842_v42  ;;  %v5991_v40 = vmax.f32 %v5839_v3, %v5959_v32  ;;  %v5228_v3 = vmul.f32 %v13343_v26, %v13582_v23 }
 0x69e   : > { %v5958_v2 = vmul.f32 0.2, %v5834_v10  ;;  %5627 = vadd.xlane.f32.xlu1 %v5626_v43  ;;  %v5989_v21 = vmax.f32 %v5831_v15, %v5957_v56 }
 0x69f   : > { %v5992_v25 = vmax.f32 %v5842_v42, %v5960_v45  ;;  %v5310_v45 = vsel %vm4594_vm12, %v5228_v3, 0.0  ;;  %v9339_v3 = vld [vmem:[%s9644_s24 + $0x80] sm:$0xff]  }
 0x6a0   : > { %v8975_v5 = vpop.f32.mrb[52].mxu1  ;;  %v5990_v51 = vmax.f32 %v5834_v10, %v5958_v2  ;;  %5314 = vadd.xlane.f32.xlu0 %v5313_v13  ;;  %v5307_v10 = vsel %vm4594_vm12, %v5227_v39, 0.0  ;;  %v5392_v2 = vmul.f32 %v13349_v35, %v13582_v23  ;;  %9041 = vmatprep.subr.bf16.mxu1 %v9339_v3 }
 0x6a1   : > { %v5855_v33 = vadd.f32 %v8975_v5, %v13639_v53  ;;  %v5846_v14 = vpop.f32.mrb[53].mxu1  ;;  %v6033_v1 = vpack.c.bf16 %v5992_v25, %v5991_v40  ;;  %v5471_v40 = vsel %vm4594_vm12, %v5391_v61, 0.0  ;;  %v5556_v25 = vmul.f32 %v13354_v28, %v13582_v23  ;;  %9042 = vmatpush3.bf16.msra.mxu1 %v9339_v3 }
 0x6a2   : > { %v5847_v19 = vadd.f32 %v13639_v53, %v5846_v14  ;;  %v8976_v9 = vpop.f32.mrb[54].mxu1  ;;  %v6032_v63 = vpack.c.bf16 %v5990_v51, %v5989_v21  ;;  %5317 = vadd.xlane.f32.xlu1 %v5316_v60  ;;  %v5474_v21 = vsel %vm4594_vm12, %v5392_v2, 0.0  ;;  %v5397_v23 = vmul.f32 %v13349_v35, %v13618_v18 }
 0x6a3   : > { %v5963_v46 = vmul.f32 0.2, %v5855_v33  ;;  %v5858_v22 = vadd.f32 %v8976_v9, %v13639_v53  ;;  %v5849_v29 = vpop.f32.mrb[55].mxu1  ;;  %v5234_v9 = vmul.f32 %v13343_v26, %v13620_v37 }
 0x6a4   : > { %v5961_v17 = vmul.f32 0.2, %v5847_v19  ;;  %v5850_v7 = vadd.f32 %v13639_v53, %v5849_v29  ;;  %9009 = vmatprep.mubr.msk.bf16.mxu0 %vm4594_vm12, %v6032_v63  ;;  %5478 = vadd.xlane.f32.xlu0 %v5477_v20  ;;  %v5561_v29 = vmul.f32 %v13354_v28, %v13618_v18  ;;  %v5562_v63 = vmul.f32 %v13354_v28, %v13620_v37 }
 0x6a5   : > { %v5964_v44 = vmul.f32 0.2, %v5858_v22  ;;  %v5995_v58 = vmax.f32 %v5855_v33, %v5963_v46  ;;  %9010 = vmatmul.mubr.msk.bf16.vlgmr.msra.gmra.mrb[48].mxu0 %vm4594_vm12, %v6033_v1  ;;  %v5555_v33 = vmul.f32 %v13354_v28, %v13580_v12  ;;  %v5638_v12 = vsel %vm4594_vm12, %v5556_v25, 0.0 }
 0x6a6   : > { %v5962_v4 = vmul.f32 0.2, %v5850_v7  ;;  %v5993_v6 = vmax.f32 %v5847_v19, %v5961_v17  ;;  %5481 = vadd.xlane.f32.xlu1 %v5480_v48  ;;  %v5233_v19 = vmul.f32 %v13343_v26, %v13618_v18  ;;  %v5328_v55 = vsel %vm4594_vm12, %v5234_v9, 0.0 }
 0x6a7   : > { %v5996_v31 = vmax.f32 %v5858_v22, %v5964_v44  ;;  %v5635_v51 = vsel %vm4594_vm12, %v5555_v33, 0.0  ;;  %v5398_v46 = vmul.f32 %v13349_v35, %v13620_v37  ;;  %v5489_v22 = vsel %vm4594_vm12, %v5397_v23, 0.0 }
 0x6a8   : > { %v5994_v11 = vmax.f32 %v5850_v7, %v5962_v4  ;;  %v8979_v54 = vpop.f32.mrb[56].mxu1  ;;  %5642 = vadd.xlane.f32.xlu0 %v5641_v57  ;;  %v5325_v60 = vsel %vm4594_vm12, %v5233_v19, 0.0  ;;  %v5653_v17 = vsel %vm4594_vm12, %v5561_v29, 0.0  ;;  %v5231_v7 = vmul.f32 %v13343_v26, %v13623_v27 }
 0x6a9   : > { %v6035_v16 = vpack.c.bf16 %v5996_v31, %v5995_v58  ;;  %v5871_v59 = vadd.f32 %v8979_v54, %v13639_v53  ;;  %v5862_v24 = vpop.f32.mrb[57].mxu1  ;;  %v5492_v1 = vsel %vm4594_vm12, %v5398_v46, 0.0  ;;  %v5656_v44 = vsel %vm4594_vm12, %v5562_v63, 0.0 }
 0x6aa   : > { %v6034_v34 = vpack.c.bf16 %v5994_v11, %v5993_v6  ;;  %v5863_v36 = vadd.f32 %v13639_v53, %v5862_v24  ;;  %v8980_v30 = vpop.f32.mrb[58].mxu1  ;;  %5645 = vadd.xlane.f32.xlu1 %v5644_v0  ;;  %v5232_v20 = vmul.f32 %v13343_v26, %v13627_v8  ;;  %v5319_v18 = vsel %vm4594_vm12, %v5231_v7, 0.0 }
 0x6ab   : > { %v5967_v47 = vmul.f32 0.2, %v5871_v59  ;;  %v5874_v38 = vadd.f32 %v8980_v30, %v13639_v53  ;;  %v5865_v50 = vpop.f32.mrb[59].mxu1  ;;  %v5396_v4 = vmul.f32 %v13349_v35, %v13627_v8  ;;  %v5483_v58 = vsel %vm4594_vm12, %v5395_v41, 0.0 }
 0x6ac   : > { %9013 = vmatprep.mubr.msk.bf16.mxu0 %vm4594_vm12, %v6034_v34  ;;  %v5965_v15 = vmul.f32 0.2, %v5863_v36  ;;  %v5866_v62 = vadd.f32 %v13639_v53, %v5865_v50  ;;  %5308 = vadd.xlane.f32.xlu0 %v5307_v10  ;;  %v5322_v37 = vsel %vm4594_vm12, %v5232_v20, 0.0  ;;  %v5559_v31 = vmul.f32 %v13354_v28, %v13623_v27 }
 0x6ad   : > { %v5968_v42 = vmul.f32 0.2, %v5874_v38  ;;  %9014 = vmatmul.mubr.msk.bf16.gmra.mrb[52].mxu0 %vm4594_vm12, %v6035_v16  ;;  %v5999_v56 = vmax.f32 %v5871_v59, %v5967_v47  ;;  %v5486_v26 = vsel %vm4594_vm12, %v5396_v4, 0.0  ;;  %v5560_v48 = vmul.f32 %v13354_v28, %v13627_v8 }
 0x6ae   : > { %v5966_v32 = vmul.f32 0.2, %v5866_v62  ;;  %v5997_v5 = vmax.f32 %v5863_v36, %v5965_v15  ;;  %5311 = vadd.xlane.f32.xlu1 %v5310_v45  ;;  %v5647_v52 = vsel %vm4594_vm12, %v5559_v31, 0.0  ;;  %v9340_v15 = vld [vmem:[%s9644_s24 + $0x88] sm:$0xff]   ;;  %v13758_v31 = vpop.xlane.xlu0 %5242 }
 0x6af   : > { %v6000_v43 = vmax.f32 %v5874_v38, %v5968_v42  ;;  %v5650_v6 = vsel %vm4594_vm12, %v5560_v48, 0.0  ;;  %9043 = vmatprep.subr.bf16.mxu1 %v9340_v15  ;;  %v9342_v42 = vld [vmem:[%s9644_s24 + $0x98] sm:$0xff]   ;;  %v13761_v48 = vpop.xlane.xlu1 %5236 }
 0x6b0   : > { %v5998_v13 = vmax.f32 %v5866_v62, %v5966_v32  ;;  %5472 = vadd.xlane.f32.xlu0 %v5471_v40  ;;  %v9341_v62 = vld [vmem:[%s9644_s24 + $0x90] sm:$0xff]   ;;  %9044 = vmatpush3.bf16.msra.mxu1 %v9340_v15 }
 0x6b1   : > { %v6037_v49 = vpack.c.bf16 %v6000_v43, %v5999_v56  ;;  %9045 = vmatprep.subr.bf16.mxu1 %v9341_v62 }
 0x6b2   : > { %v6036_v14 = vpack.c.bf16 %v5998_v13, %v5997_v5  ;;  %5475 = vadd.xlane.f32.xlu1 %v5474_v21 }
 0x6b4   : > { %9017 = vmatprep.mubr.msk.bf16.mxu0 %vm4594_vm12, %v6036_v14  ;;  %5636 = vadd.xlane.f32.xlu0 %v5635_v51 }
 0x6b5   : > { %9018 = vmatmul.mubr.msk.bf16.gmra.mrb[56].mxu0 %vm4594_vm12, %v6037_v49  ;;  %9046 = vmatpush3.bf16.msra.mxu1 %v9341_v62 }
 0x6b6   : > { %5639 = vadd.xlane.f32.xlu1 %v5638_v12  ;;  %9047 = vmatprep.subr.bf16.mxu1 %v9342_v42 }
 0x6b8   : > { %5326 = vadd.xlane.f32.xlu0 %v5325_v60 }
 0x6b9   : > { %9048 = vmatpush3.bf16.msra.mxu1 %v9342_v42 }
 0x6ba   : > { %5329 = vadd.xlane.f32.xlu1 %v5328_v55 }
 0x6bc   : > { %5490 = vadd.xlane.f32.xlu0 %v5489_v22 }
 0x6be   : > { %5493 = vadd.xlane.f32.xlu1 %v5492_v1 }
 0x6c0   : > { %5654 = vadd.xlane.f32.xlu0 %v5653_v17 }
 0x6c2   : > { %5657 = vadd.xlane.f32.xlu1 %v5656_v44 }
 0x6c4   : > { %5320 = vadd.xlane.f32.xlu0 %v5319_v18 }
 0x6c6   : > { %5323 = vadd.xlane.f32.xlu1 %v5322_v37 }
 0x6c8   : > { %5484 = vadd.xlane.f32.xlu0 %v5483_v58 }
 0x6ca   : > { %5487 = vadd.xlane.f32.xlu1 %v5486_v26 }
 0x6cc   : > { %5648 = vadd.xlane.f32.xlu0 %v5647_v52 }
 0x6ce   : > { %5651 = vadd.xlane.f32.xlu1 %v5650_v6 }
 0x6d5   : > { %v8983_v35 = vpop.f32.mrb[60].mxu1 }
 0x6d6   : > { %v5887_v11 = vadd.f32 %v8983_v35, %v13639_v53  ;;  %v5878_v54 = vpop.f32.mrb[61].mxu1 }
 0x6d7   : > { %v5879_v16 = vadd.f32 %v13639_v53, %v5878_v54  ;;  %v8984_v27 = vpop.f32.mrb[62].mxu1 }
 0x6d8   : > { %v5971_v59 = vmul.f32 0.2, %v5887_v11  ;;  %v5890_v24 = vadd.f32 %v8984_v27, %v13639_v53  ;;  %v5881_v28 = vpop.f32.mrb[63].mxu1 }
 0x6d9   : > { %v5969_v8 = vmul.f32 0.2, %v5879_v16  ;;  %v5882_v57 = vadd.f32 %v13639_v53, %v5881_v28  ;;  %v13768_v28 = vpop.xlane.xlu0 %5406 }
 0x6da   : > { %v5972_v39 = vmul.f32 0.2, %v5890_v24  ;;  %v6003_v36 = vmax.f32 %v5887_v11, %v5971_v59 }
 0x6db   : > { %v5970_v34 = vmul.f32 0.2, %v5882_v57  ;;  %v6001_v47 = vmax.f32 %v5879_v16, %v5969_v8 }
 0x6dc   : > { %v6004_v30 = vmax.f32 %v5890_v24, %v5972_v39  ;;  %v13770_v39 = vpop.xlane.xlu1 %5245 }
 0x6dd   : > { %v6002_v38 = vmax.f32 %v5882_v57, %v5970_v34 }
 0x6de   : > { %v6039_v50 = vpack.c.bf16 %v6004_v30, %v6003_v36 }
 0x6df   : > { %v6038_v0 = vpack.c.bf16 %v6002_v38, %v6001_v47 }
 0x6e0   : > { %v13775_v3 = vpop.xlane.xlu1 %5409 }
 0x6e1   : > { %9021 = vmatprep.mubr.msk.bf16.mxu0 %vm4594_vm12, %v6038_v0  ;;  %v13772_v0 = vpop.xlane.xlu0 %5570 }
 0x6e2   : > { %9022 = vmatmul.mubr.msk.bf16.gmra.mrb[60].mxu0 %vm4594_vm12, %v6039_v50 }
 0x6e4   : > { %v13780_v62 = vpop.xlane.xlu1 %5573 }
 0x6e5   : > { %v13778_v15 = vpop.xlane.xlu0 %5400 }
 0x746   : > { %v8987_v10 = vpop.f32.mrb[64].mxu1 }
 0x747   : > { %v5903_v61 = vadd.f32 %v8987_v10, %v13639_v53  ;;  %v5894_v32 = vpop.f32.mrb[65].mxu1 }
 0x748   : > { %v5895_v56 = vadd.f32 %v13639_v53, %v5894_v32  ;;  %v8988_v43 = vpop.f32.mrb[66].mxu1 }
 0x749   : > { %v5975_v45 = vmul.f32 0.2, %v5903_v61  ;;  %v5906_v2 = vadd.f32 %v8988_v43, %v13639_v53  ;;  %v5897_v5 = vpop.f32.mrb[67].mxu1 }
 0x74a   : > { %v5973_v13 = vmul.f32 0.2, %v5895_v56  ;;  %v5898_v49 = vadd.f32 %v13639_v53, %v5897_v5  ;;  %v13785_v5 = vpop.xlane.xlu0 %5564 }
 0x74b   : > { %v5976_v40 = vmul.f32 0.2, %v5906_v2  ;;  %v6007_v14 = vmax.f32 %v5903_v61, %v5975_v45 }
 0x74c   : > { %v5974_v33 = vmul.f32 0.2, %v5898_v49  ;;  %v6005_v25 = vmax.f32 %v5895_v56, %v5973_v13 }
 0x74d   : > { %v6008_v21 = vmax.f32 %v5906_v2, %v5976_v40 }
 0x74e   : > { %v6006_v51 = vmax.f32 %v5898_v49, %v5974_v33  ;;  %v8991_v19 = vpop.f32.mrb[68].mxu1  ;;  %v13788_v33 = vpop.xlane.xlu1 %5403 }
 0x74f   : > { %v6041_v12 = vpack.c.bf16 %v6008_v21, %v6007_v14  ;;  %v5919_v9 = vadd.f32 %v8991_v19, %v13639_v53  ;;  %v5910_v60 = vpop.f32.mrb[69].mxu1 }
 0x750   : > { %v6040_v23 = vpack.c.bf16 %v6006_v51, %v6005_v25  ;;  %v5911_v55 = vadd.f32 %v13639_v53, %v5910_v60  ;;  %v8992_v46 = vpop.f32.mrb[70].mxu1  ;;  %v13795_v60 = vpop.xlane.xlu0 %5239 }
 0x751   : > { %v5979_v22 = vmul.f32 0.2, %v5919_v9  ;;  %v5922_v29 = vadd.f32 %v8992_v46, %v13639_v53  ;;  %v5913_v1 = vpop.f32.mrb[71].mxu1 }
 0x752   : > { %9025 = vmatprep.mubr.msk.bf16.mxu0 %vm4594_vm12, %v6040_v23  ;;  %v5977_v63 = vmul.f32 0.2, %v5911_v55  ;;  %v5914_v17 = vadd.f32 %v13639_v53, %v5913_v1 }
 0x753   : > { %9026 = vmatmul.mubr.msk.bf16.gmra.mrb[64].mxu0 %vm4594_vm12, %v6041_v12  ;;  %v5980_v7 = vmul.f32 0.2, %v5922_v29  ;;  %v6011_v20 = vmax.f32 %v5919_v9, %v5979_v22  ;;  %v13793_v12 = vld [vmem:[%s15518_s6 + $0x3] ss:$0 sm:$0xff]  ;;  %v13798_v22 = vpop.xlane.xlu1 %5567 }
 0x754   : > { %v5978_v44 = vmul.f32 0.2, %v5914_v17  ;;  %v6009_v41 = vmax.f32 %v5911_v55, %v5977_v63 }
 0x755   : > { %v6012_v18 = vmax.f32 %v5922_v29, %v5980_v7 }
 0x756   : > { %v6010_v37 = vmax.f32 %v5914_v17, %v5978_v44 }
 0x757   : > { %v6043_v4 = vpack.c.bf16 %v6012_v18, %v6011_v20 }
 0x758   : > { %v6042_v58 = vpack.c.bf16 %v6010_v37, %v6009_v41  ;;  %v13805_v37 = vpop.xlane.xlu0 %5254 }
 0x75a   : > { %9029 = vmatprep.mubr.msk.bf16.mxu0 %vm4594_vm12, %v6042_v58 }
 0x75b   : > { %9030 = vmatmul.mubr.msk.bf16.gmra.mrb[68].mxu0 %vm4594_vm12, %v6043_v4 }
 0x75c   : > { %v8995_v26 = vpop.f32.mrb[72].mxu1 }
 0x75d   : > { %v5935_v52 = vadd.f32 %v8995_v26, %v13639_v53  ;;  %v5926_v6 = vpop.f32.mrb[73].mxu1  ;;  %v16037_v26 = vld [vmem:[#allocation5_spill] sm:$0xff] }
 0x75e   : > { %v5927_v35 = vadd.f32 %v13639_v53, %v5926_v6  ;;  %v8996_v11 = vpop.f32.mrb[74].mxu1  ;;  %v13808_v6 = vpop.xlane.xlu1 %5257 }
 0x75f   : > { %v5983_v54 = vmul.f32 0.2, %v5935_v52  ;;  %v5938_v16 = vadd.f32 %v8996_v11, %v13639_v53  ;;  %v5929_v27 = vpop.f32.mrb[75].mxu1 }
 0x760   : > { %v5981_v59 = vmul.f32 0.2, %v5927_v35  ;;  %v5930_v24 = vadd.f32 %v13639_v53, %v5929_v27 }
 0x761   : > { %v5984_v8 = vmul.f32 0.2, %v5938_v16  ;;  %v6015_v34 = vmax.f32 %v5935_v52, %v5983_v54 }
 0x762   : > { %v5982_v57 = vmul.f32 0.2, %v5930_v24  ;;  %v6013_v30 = vmax.f32 %v5927_v35, %v5981_v59 }
 0x763   : > { %v6016_v36 = vmax.f32 %v5938_v16, %v5984_v8  ;;  %v16038_v16 = vld [vmem:[#allocation6_spill] sm:$0xff] }
 0x764   : > { %v6014_v47 = vmax.f32 %v5930_v24, %v5982_v57 }
 0x765   : > { %v6045_v38 = vpack.c.bf16 %v6016_v36, %v6015_v34 }
 0x766   : > { %v6044_v50 = vpack.c.bf16 %v6014_v47, %v6013_v30 }
 0x768   : > { %9033 = vmatprep.mubr.msk.bf16.mxu0 %vm4594_vm12, %v6044_v50 }
 0x769   : > { %9034 = vmatmul.mubr.msk.bf16.gmra.mrb[72].mxu0 %vm4594_vm12, %v6045_v38 }
 0x770   : > { %v8999_v42 = vpop.f32.mrb[76].mxu1 }
 0x771   : > { %v5951_v10 = vadd.f32 %v8999_v42, %v13639_v53  ;;  %v5942_v61 = vpop.f32.mrb[77].mxu1 }
 0x772   : > { %v5943_v32 = vadd.f32 %v13639_v53, %v5942_v61  ;;  %v9000_v56 = vpop.f32.mrb[78].mxu1 }
 0x773   : > { %v5987_v43 = vmul.f32 0.2, %v5951_v10  ;;  %v5954_v45 = vadd.f32 %v9000_v56, %v13639_v53  ;;  %v5945_v2 = vpop.f32.mrb[79].mxu1 }
 0x774   : > { %v5985_v13 = vmul.f32 0.2, %v5943_v32  ;;  %v5946_v49 = vadd.f32 %v13639_v53, %v5945_v2 }
 0x775   : > { %v5988_v40 = vmul.f32 0.2, %v5954_v45  ;;  %v6019_v21 = vmax.f32 %v5951_v10, %v5987_v43 }
 0x776   : > { %v5986_v14 = vmul.f32 0.2, %v5946_v49  ;;  %v6017_v51 = vmax.f32 %v5943_v32, %v5985_v13  ;;  %v13824_v32 = vpop.xlane.xlu0 %5418  ;;  %v16039_v13 = vld [vmem:[#allocation7_spill] sm:$0xff] }
 0x777   : > { %v6020_v25 = vmax.f32 %v5954_v45, %v5988_v40  ;;  %v13831_v40 = vpop.xlane.xlu1 %5421 }
 0x778   : > { %v6018_v19 = vmax.f32 %v5946_v49, %v5986_v14  ;;  %v9011_v55 = vpop.f32.mrb[48].mxu0 }
 0x779   : > { %v6047_v9 = vpack.c.bf16 %v6020_v25, %v6019_v21  ;;  %v6169_v53 = vadd.f32 %v9011_v55, %v13793_v12  ;;  %v6160_v46 = vpop.f32.mrb[49].mxu0 }
 0x77a   : > { %v6046_v23 = vpack.c.bf16 %v6018_v19, %v6017_v51  ;;  %v6161_v29 = vadd.f32 %v13793_v12, %v6160_v46  ;;  %v9012_v1 = vpop.f32.mrb[50].mxu0 }
 0x77b   : > { %v6289_v63 = vmul.f32 0.2, %v6169_v53  ;;  %v6172_v17 = vadd.f32 %v9012_v1, %v13793_v12  ;;  %v6163_v7 = vpop.f32.mrb[51].mxu0 }
 0x77c   : > { %9037 = vmatprep.mubr.msk.bf16.mxu0 %vm4594_vm12, %v6046_v23  ;;  %v6287_v44 = vmul.f32 0.2, %v6161_v29  ;;  %v6164_v20 = vadd.f32 %v13793_v12, %v6163_v7 }
 0x77d   : > { %9038 = vmatmul.mubr.msk.bf16.gmra.mrb[76].mxu0 %vm4594_vm12, %v6047_v9  ;;  %v6321_v18 = vmax.f32 %v6169_v53, %v6289_v63  ;;  %v6290_v41 = vmul.f32 0.2, %v6172_v17 }
 0x77e   : > { %v6288_v4 = vmul.f32 0.2, %v6164_v20  ;;  %v13810_v35 = vmax.f32 %v6161_v29, %v6287_v44 }
 0x77f   : > { %v6322_v58 = vmax.f32 %v6172_v17, %v6290_v41  ;;  %v6359_v52 = vmul.f32 %v16037_v26, %v6321_v18  ;;  %v6523_v27 = vmul.f32 %v16038_v16, %v6321_v18  ;;  %v6687_v49 = vmul.f32 %v16039_v13, %v6321_v18  ;;  %v13849_v17 = vpop.xlane.xlu0 %5582 }
 0x780   : > { %v13812_v11 = vmax.f32 %v6164_v20, %v6288_v4  ;;  %v9015_v54 = vpop.f32.mrb[52].mxu0  ;;  %v6357_v29 = vmul.f32 %v16037_v26, %v13810_v35 }
 0x781   : > { %v6857_v59 = vpack.c.bf16 %v6322_v58, %v6321_v18  ;;  %v6185_v24 = vadd.f32 %v9015_v54, %v13793_v12  ;;  %v6176_v8 = vpop.f32.mrb[53].mxu0  ;;  %v6395_v57 = vsel %vm4594_vm12, %v6359_v52, 0.0  ;;  %v6360_v34 = vmul.f32 %v16037_v26, %v6322_v58  ;;  %v13858_v54 = vpop.xlane.xlu1 %5585 }
 0x782   : > { %v6177_v36 = vadd.f32 %v13793_v12, %v6176_v8  ;;  %v9016_v30 = vpop.f32.mrb[54].mxu0  ;;  %6396 = vadd.xlane.f32.xlu0 %v6395_v57  ;;  %v6856_v47 = vpack.c.bf16 %v13812_v11, %v13810_v35  ;;  %v6524_v61 = vmul.f32 %v16038_v16, %v6322_v58  ;;  %v6559_v2 = vsel %vm4594_vm12, %v6523_v27, 0.0 }
 0x783   : > { %v6293_v38 = vmul.f32 0.2, %v6185_v24  ;;  %v6188_v50 = vadd.f32 %v9016_v30, %v13793_v12  ;;  %v6179_v42 = vpop.f32.mrb[55].mxu0  ;;  %v6398_v10 = vsel %vm4594_vm12, %v6360_v34, 0.0  ;;  %v6688_v19 = vmul.f32 %v16039_v13, %v6322_v58 }
 0x784   : > { %v6291_v56 = vmul.f32 0.2, %v6177_v36  ;;  %v6180_v43 = vadd.f32 %v13793_v12, %v6179_v42  ;;  %6399 = vadd.xlane.f32.xlu1 %v6398_v10  ;;  %9049 = vmatprep.mubr.msk.bf16.mxu1 %vm4594_vm12, %v6856_v47  ;;  %v6562_v51 = vsel %vm4594_vm12, %v6524_v61, 0.0  ;;  %v6723_v53 = vsel %vm4594_vm12, %v6687_v49, 0.0 }
 0x785   : > { %v6294_v45 = vmul.f32 0.2, %v6188_v50  ;;  %9050 = vmatmul.mubr.msk.bf16.vlgmr.msra.gmra.mrb[80].mxu1 %vm4594_vm12, %v6857_v59  ;;  %v13833_v21 = vmax.f32 %v6185_v24, %v6293_v38  ;;  %v6726_v18 = vsel %vm4594_vm12, %v6688_v19, 0.0  ;;  %v6358_v41 = vmul.f32 %v16037_v26, %v13812_v11 }
 0x786   : > { %v6292_v14 = vmul.f32 0.2, %v6180_v43  ;;  %6560 = vadd.xlane.f32.xlu0 %v6559_v2  ;;  %v13839_v9 = vmax.f32 %v6177_v36, %v6291_v56  ;;  %v6389_v24 = vsel %vm4594_vm12, %v6357_v29, 0.0  ;;  %v6521_v8 = vmul.f32 %v16038_v16, %v13810_v35 }
 0x787   : > { %v13835_v25 = vmax.f32 %v6188_v50, %v6294_v45  ;;  %v6392_v36 = vsel %vm4594_vm12, %v6358_v41, 0.0  ;;  %v6522_v38 = vmul.f32 %v16038_v16, %v13812_v11  ;;  %v13873_v50 = vpop.xlane.xlu0 %5248  ;;  %v6685_v56 = vmul.f32 %v16039_v13, %v13810_v35  ;;  %v13884_v45 = vpop.xlane.xlu1 %5251 }
 0x788   : > { %v13841_v23 = vmax.f32 %v6180_v43, %v6292_v14  ;;  %6563 = vadd.xlane.f32.xlu1 %v6562_v51  ;;  %v9019_v55 = vpop.f32.mrb[56].mxu0  ;;  %16040 = vst [vmem:[#allocation12_spill] sm:$0xff] %v13873_v50  ;;  %v6553_v61 = vsel %vm4594_vm12, %v6521_v8, 0.0  ;;  %16041 = vst [vmem:[#allocation36_spill] sm:$0xff] %v13884_v45  ;;  %v6686_v14 = vmul.f32 %v16039_v13, %v13812_v11 }
 0x789   : > { %v6859_v46 = vpack.c.bf16 %v13835_v25, %v13833_v21  ;;  %v6201_v1 = vadd.f32 %v9019_v55, %v13793_v12  ;;  %v6192_v63 = vpop.f32.mrb[57].mxu0  ;;  %v6556_v49 = vsel %vm4594_vm12, %v6522_v38, 0.0  ;;  %v6717_v51 = vsel %vm4594_vm12, %v6685_v56, 0.0 }
 0x78a   : > { %6724 = vadd.xlane.f32.xlu0 %v6723_v53  ;;  %v6858_v7 = vpack.c.bf16 %v13841_v23, %v13839_v9  ;;  %v6193_v44 = vadd.f32 %v13793_v12, %v6192_v63  ;;  %v9020_v20 = vpop.f32.mrb[58].mxu0  ;;  %v6363_v35 = vmul.f32 %v16037_v26, %v13833_v21  ;;  %v6720_v55 = vsel %vm4594_vm12, %v6686_v14, 0.0 }
 0x78b   : > { %v6297_v4 = vmul.f32 0.2, %v6201_v1  ;;  %v6204_v58 = vadd.f32 %v9020_v20, %v13793_v12  ;;  %v6195_v52 = vpop.f32.mrb[59].mxu0  ;;  %v13896_v19 = vpop.xlane.xlu0 %5412  ;;  %v6364_v53 = vmul.f32 %v16037_v26, %v13835_v25  ;;  %v6527_v29 = vmul.f32 %v16038_v16, %v13833_v21 }
 0x78c   : > { %6727 = vadd.xlane.f32.xlu1 %v6726_v18  ;;  %9053 = vmatprep.mubr.msk.bf16.mxu1 %vm4594_vm12, %v6858_v7  ;;  %v6295_v27 = vmul.f32 0.2, %v6193_v44  ;;  %v6196_v59 = vadd.f32 %v13793_v12, %v6195_v52  ;;  %16042 = vst [vmem:[#allocation27_spill] sm:$0xff] %v13896_v19  ;;  %v6407_v11 = vsel %vm4594_vm12, %v6363_v35, 0.0  ;;  %v6528_v63 = vmul.f32 %v16038_v16, %v13835_v25 }
 0x78d   : > { %9054 = vmatmul.mubr.msk.bf16.gmra.mrb[84].mxu1 %vm4594_vm12, %v6859_v46  ;;  %v6298_v57 = vmul.f32 0.2, %v6204_v58  ;;  %v13867_v30 = vmax.f32 %v6201_v1, %v6297_v4  ;;  %v13901_v46 = vpop.xlane.xlu1 %5415  ;;  %v6410_v1 = vsel %vm4594_vm12, %v6364_v53, 0.0  ;;  %v6691_v20 = vmul.f32 %v16039_v13, %v13833_v21 }
 0x78e   : > { %6390 = vadd.xlane.f32.xlu0 %v6389_v24  ;;  %v6296_v34 = vmul.f32 0.2, %v6196_v59  ;;  %v13875_v42 = vmax.f32 %v6193_v44, %v6295_v27  ;;  %16043 = vst [vmem:[#allocation47_spill] sm:$0xff] %v13901_v46  ;;  %v6571_v44 = vsel %vm4594_vm12, %v6527_v29, 0.0  ;;  %v6574_v41 = vsel %vm4594_vm12, %v6528_v63, 0.0 }
 0x78f   : > { %v13869_v47 = vmax.f32 %v6204_v58, %v6298_v57  ;;  %v13909_v7 = vpop.xlane.xlu0 %5576  ;;  %v6692_v4 = vmul.f32 %v16039_v13, %v13835_v25  ;;  %v6735_v58 = vsel %vm4594_vm12, %v6691_v20, 0.0  ;;  %v6361_v52 = vmul.f32 %v16037_v26, %v13839_v9 }
 0x790   : > { %6393 = vadd.xlane.f32.xlu1 %v6392_v36  ;;  %v13877_v10 = vmax.f32 %v6196_v59, %v6296_v34  ;;  %16044 = vst [vmem:[#allocation21_spill] sm:$0xff] %v13909_v7  ;;  %v6362_v21 = vmul.f32 %v16037_v26, %v13841_v23  ;;  %v6525_v25 = vmul.f32 %v16038_v16, %v13839_v9 }
 0x791   : > { %v6861_v43 = vpack.c.bf16 %v13869_v47, %v13867_v30  ;;  %v13914_v18 = vpop.xlane.xlu1 %5579  ;;  %v6738_v59 = vsel %vm4594_vm12, %v6692_v4, 0.0  ;;  %v6401_v8 = vsel %vm4594_vm12, %v6361_v52, 0.0  ;;  %v6526_v34 = vmul.f32 %v16038_v16, %v13841_v23 }
 0x792   : > { %6554 = vadd.xlane.f32.xlu0 %v6553_v61  ;;  %v6860_v2 = vpack.c.bf16 %v13877_v10, %v13875_v42  ;;  %16045 = vst [vmem:[#allocation28_spill] sm:$0xff] %v13914_v18  ;;  %v6404_v57 = vsel %vm4594_vm12, %v6362_v21, 0.0  ;;  %v6565_v38 = vsel %vm4594_vm12, %v6525_v25, 0.0  ;;  %v6689_v61 = vmul.f32 %v16039_v13, %v13839_v9 }
 0x793   : > { %v13922_v27 = vpop.xlane.xlu0 %5266  ;;  %v6367_v14 = vmul.f32 %v16037_v26, %v13867_v30  ;;  %v6368_v9 = vmul.f32 %v16037_v26, %v13869_v47  ;;  %v6532_v29 = vmul.f32 %v16038_v16, %v13869_v47  ;;  %v6696_v4 = vmul.f32 %v16039_v13, %v13869_v47 }
 0x794   : > { %6557 = vadd.xlane.f32.xlu1 %v6556_v49  ;;  %9057 = vmatprep.mubr.msk.bf16.mxu1 %vm4594_vm12, %v6860_v2  ;;  %16046 = vst [vmem:[#allocation49_spill] sm:$0xff] %v13922_v27  ;;  %v6690_v2 = vmul.f32 %v16039_v13, %v13841_v23  ;;  %v6729_v49 = vsel %vm4594_vm12, %v6689_v61, 0.0  ;;  %v6531_v23 = vmul.f32 %v16038_v16, %v13867_v30 }
 0x795   : > { %9058 = vmatmul.mubr.msk.bf16.gmra.mrb[88].mxu1 %vm4594_vm12, %v6861_v43  ;;  %v13927_v24 = vpop.xlane.xlu1 %5269  ;;  %v6568_v43 = vsel %vm4594_vm12, %v6526_v34, 0.0  ;;  %v6419_v53 = vsel %vm4594_vm12, %v6367_v14, 0.0  ;;  %v6365_v52 = vmul.f32 %v16037_v26, %v13875_v42  ;;  %v6750_v21 = vsel %vm4594_vm12, %v6696_v4, 0.0 }
 0x796   : > { %6718 = vadd.xlane.f32.xlu0 %v6717_v51  ;;  %16047 = vst [vmem:[#allocation57_spill] sm:$0xff] %v13927_v24  ;;  %v6732_v35 = vsel %vm4594_vm12, %v6690_v2, 0.0  ;;  %v6583_v63 = vsel %vm4594_vm12, %v6531_v23, 0.0  ;;  %v6529_v47 = vmul.f32 %v16038_v16, %v13875_v42  ;;  %v6694_v4 = vmul.f32 %v16039_v13, %v13877_v10 }
 0x797   : > { %v13935_v36 = vpop.xlane.xlu0 %5430  ;;  %v6413_v25 = vsel %vm4594_vm12, %v6365_v52, 0.0 }
 0x798   : > { %6721 = vadd.xlane.f32.xlu1 %v6720_v55  ;;  %16048 = vst [vmem:[#allocation14_spill] sm:$0xff] %v13935_v36 }
 0x799   : > { %v13940_v56 = vpop.xlane.xlu1 %5433 }
 0x79a   : > { %6408 = vadd.xlane.f32.xlu0 %v6407_v11  ;;  %16049 = vst [vmem:[#allocation26_spill] sm:$0xff] %v13940_v56  ;;  %v6422_v11 = vsel %vm4594_vm12, %v6368_v9, 0.0  ;;  %v6693_v9 = vmul.f32 %v16039_v13, %v13875_v42 }
 0x79b   : > { %v13948_v51 = vpop.xlane.xlu0 %5594 }
 0x79c   : > { %6411 = vadd.xlane.f32.xlu1 %v6410_v1  ;;  %16050 = vst [vmem:[#allocation46_spill] sm:$0xff] %v13948_v51  ;;  %v6741_v42 = vsel %vm4594_vm12, %v6693_v9, 0.0 }
 0x79d   : > { %v13953_v55 = vpop.xlane.xlu1 %5597 }
 0x79e   : > { %6572 = vadd.xlane.f32.xlu0 %v6571_v44  ;;  %16051 = vst [vmem:[#allocation37_spill] sm:$0xff] %v13953_v55  ;;  %v6695_v44 = vmul.f32 %v16039_v13, %v13867_v30  ;;  %v6366_v30 = vmul.f32 %v16037_v26, %v13877_v10 }
 0x79f   : > { %v13961_v1 = vpop.xlane.xlu0 %5260 }
 0x7a0   : > { %6575 = vadd.xlane.f32.xlu1 %v6574_v41  ;;  %16052 = vst [vmem:[#allocation25_spill] sm:$0xff] %v13961_v1  ;;  %v6586_v41 = vsel %vm4594_vm12, %v6532_v29, 0.0  ;;  %v6416_v34 = vsel %vm4594_vm12, %v6366_v30, 0.0 }
 0x7a1   : > { %v13966_v20 = vpop.xlane.xlu1 %5263 }
 0x7a2   : > { %6736 = vadd.xlane.f32.xlu0 %v6735_v58  ;;  %16053 = vst [vmem:[#allocation50_spill] sm:$0xff] %v13966_v20  ;;  %v6747_v58 = vsel %vm4594_vm12, %v6695_v44, 0.0 }
 0x7a4   : > { %6739 = vadd.xlane.f32.xlu1 %v6738_v59  ;;  %v13974_v59 = vpop.xlane.xlu0 %5424 }
 0x7a5   : > { %16054 = vst [vmem:[#allocation39_spill] sm:$0xff] %v13974_v59 }
 0x7a6   : > { %6402 = vadd.xlane.f32.xlu0 %v6401_v8  ;;  %v13979_v8 = vpop.xlane.xlu1 %5427 }
 0x7a7   : > { %16055 = vst [vmem:[#allocation29_spill] sm:$0xff] %v13979_v8 }
 0x7a8   : > { %6405 = vadd.xlane.f32.xlu1 %v6404_v57  ;;  %v13987_v61 = vpop.xlane.xlu0 %5588 }
 0x7a9   : > { %16056 = vst [vmem:[#allocation52_spill] sm:$0xff] %v13987_v61 }
 0x7aa   : > { %6566 = vadd.xlane.f32.xlu0 %v6565_v38  ;;  %v6530_v38 = vmul.f32 %v16038_v16, %v13877_v10 }
 0x7ac   : > { %6569 = vadd.xlane.f32.xlu1 %v6568_v43  ;;  %v14002_v30 = vpop.xlane.xlu0 %5278 }
 0x7ad   : > { %16058 = vst [vmem:[#allocation42_spill] sm:$0xff] %v14002_v30 }
 0x7ae   : > { %6730 = vadd.xlane.f32.xlu0 %v6729_v49 }
 0x7b0   : > { %6733 = vadd.xlane.f32.xlu1 %v6732_v35  ;;  %v6577_v35 = vsel %vm4594_vm12, %v6529_v47, 0.0 }
 0x7b2   : > { %6420 = vadd.xlane.f32.xlu0 %v6419_v53  ;;  %v13994_v53 = vpop.xlane.xlu1 %5591 }
 0x7b3   : > { %16057 = vst [vmem:[#allocation56_spill] sm:$0xff] %v13994_v53 }
 0x7b4   : > { %6423 = vadd.xlane.f32.xlu1 %v6422_v11 }
 0x7b5   : > { %v9023_v57 = vpop.f32.mrb[60].mxu0 }
 0x7b6   : > { %6584 = vadd.xlane.f32.xlu0 %v6583_v63  ;;  %v6217_v43 = vadd.f32 %v9023_v57, %v13793_v12  ;;  %v6208_v2 = vpop.f32.mrb[61].mxu0 }
 0x7b7   : > { %v6209_v49 = vadd.f32 %v13793_v12, %v6208_v2  ;;  %v9024_v14 = vpop.f32.mrb[62].mxu0  ;;  %v6744_v2 = vsel %vm4594_vm12, %v6694_v4, 0.0 }
 0x7b8   : > { %6587 = vadd.xlane.f32.xlu1 %v6586_v41  ;;  %v6301_v23 = vmul.f32 0.2, %v6217_v43  ;;  %v6220_v11 = vadd.f32 %v9024_v14, %v13793_v12  ;;  %v6211_v29 = vpop.f32.mrb[63].mxu0  ;;  %v6580_v41 = vsel %vm4594_vm12, %v6530_v38, 0.0  ;;  %v14006_v38 = vpop.xlane.xlu1 %5281 }
 0x7b9   : > { %v6299_v63 = vmul.f32 0.2, %v6209_v49  ;;  %v6212_v44 = vadd.f32 %v13793_v12, %v6211_v29  ;;  %16059 = vst [vmem:[#allocation32_spill] sm:$0xff] %v14006_v38 }
 0x7ba   : > { %6748 = vadd.xlane.f32.xlu0 %v6747_v58  ;;  %v6333_v58 = vmax.f32 %v6217_v43, %v6301_v23  ;;  %v6302_v52 = vmul.f32 0.2, %v6220_v11 }
 0x7bb   : > { %v6331_v57 = vmax.f32 %v6209_v49, %v6299_v63 }
 0x7bc   : > { %6751 = vadd.xlane.f32.xlu1 %v6750_v21  ;;  %v6300_v21 = vmul.f32 0.2, %v6212_v44  ;;  %v6371_v47 = vmul.f32 %v16037_v26, %v6333_v58  ;;  %v6535_v9 = vmul.f32 %v16038_v16, %v6333_v58  ;;  %v6699_v63 = vmul.f32 %v16039_v13, %v6333_v58 }
 0x7be   : > { %6414 = vadd.xlane.f32.xlu0 %v6413_v25  ;;  %v6334_v25 = vmax.f32 %v6220_v11, %v6302_v52  ;;  %v14014_v11 = vpop.xlane.xlu0 %5442  ;;  %v6595_v29 = vsel %vm4594_vm12, %v6535_v9, 0.0  ;;  %v6759_v52 = vsel %vm4594_vm12, %v6699_v63, 0.0 }
 0x7bf   : > { %16060 = vst [vmem:[#allocation54_spill] sm:$0xff] %v14014_v11 }
 0x7c0   : > { %6417 = vadd.xlane.f32.xlu1 %v6416_v34  ;;  %v6332_v34 = vmax.f32 %v6212_v44, %v6300_v21  ;;  %v6863_v14 = vpack.c.bf16 %v6334_v25, %v6333_v58  ;;  %v6372_v10 = vmul.f32 %v16037_v26, %v6334_v25  ;;  %v6536_v49 = vmul.f32 %v16038_v16, %v6334_v25  ;;  %v14019_v44 = vpop.xlane.xlu1 %5445 }
 0x7c1   : > { %16061 = vst [vmem:[#allocation45_spill] sm:$0xff] %v14019_v44  ;;  %v6700_v4 = vmul.f32 %v16039_v13, %v6334_v25  ;;  %v6369_v21 = vmul.f32 %v16037_v26, %v6331_v57 }
 0x7c2   : > { %6578 = vadd.xlane.f32.xlu0 %v6577_v35  ;;  %v6862_v43 = vpack.c.bf16 %v6332_v34, %v6331_v57  ;;  %v6431_v35 = vsel %vm4594_vm12, %v6371_v47, 0.0  ;;  %v6434_v23 = vsel %vm4594_vm12, %v6372_v10, 0.0  ;;  %v6533_v10 = vmul.f32 %v16038_v16, %v6331_v57 }
 0x7c3   : > { %v6762_v47 = vsel %vm4594_vm12, %v6700_v4, 0.0  ;;  %v6698_v63 = vmul.f32 %v16039_v13, %v6332_v34 }
 0x7c4   : > { %6581 = vadd.xlane.f32.xlu1 %v6580_v41  ;;  %9061 = vmatprep.mubr.msk.bf16.mxu1 %vm4594_vm12, %v6862_v43  ;;  %v6598_v41 = vsel %vm4594_vm12, %v6536_v49, 0.0  ;;  %v14029_v58 = vpop.xlane.xlu1 %5609  ;;  %v6534_v43 = vmul.f32 %v16038_v16, %v6332_v34  ;;  %v6589_v9 = vsel %vm4594_vm12, %v6533_v10, 0.0 }
 0x7c5   : > { %9062 = vmatmul.mubr.msk.bf16.gmra.mrb[92].mxu1 %vm4594_vm12, %v6863_v14  ;;  %16063 = vst [vmem:[#allocation67_spill] sm:$0xff] %v14029_v58  ;;  %v6425_v14 = vsel %vm4594_vm12, %v6369_v21, 0.0 }
 0x7c6   : > { %6742 = vadd.xlane.f32.xlu0 %v6741_v42  ;;  %v14025_v42 = vpop.xlane.xlu0 %5606 }
 0x7c7   : > { %16062 = vst [vmem:[#allocation22_spill] sm:$0xff] %v14025_v42 }
 0x7c8   : > { %6745 = vadd.xlane.f32.xlu1 %v6744_v2  ;;  %v6370_v2 = vmul.f32 %v16037_v26, %v6332_v34  ;;  %v14039_v49 = vpop.xlane.xlu1 %5275 }
 0x7c9   : > { %16065 = vst [vmem:[#allocation48_spill] sm:$0xff] %v14039_v49 }
 0x7ca   : > { %6432 = vadd.xlane.f32.xlu0 %v6431_v35  ;;  %v6428_v25 = vsel %vm4594_vm12, %v6370_v2, 0.0  ;;  %v14035_v35 = vpop.xlane.xlu0 %5272 }
 0x7cb   : > { %16064 = vst [vmem:[#allocation35_spill] sm:$0xff] %v14035_v35 }
 0x7cc   : > { %6435 = vadd.xlane.f32.xlu1 %v6434_v23  ;;  %v6697_v23 = vmul.f32 %v16039_v13, %v6331_v57  ;;  %v14047_v21 = vpop.xlane.xlu1 %5439  ;;  %v9343_v57 = vld [vmem:[%s9644_s24 + $0xa0] sm:$0xff]  }
 0x7cd   : > { %16067 = vst [vmem:[#allocation69_spill] sm:$0xff] %v14047_v21  ;;  %9081 = vmatprep.subr.bf16.mxu0 %v9343_v57 }
 0x7ce   : > { %6596 = vadd.xlane.f32.xlu0 %v6595_v29  ;;  %v6592_v29 = vsel %vm4594_vm12, %v6534_v43, 0.0  ;;  %v14044_v4 = vpop.xlane.xlu0 %5436  ;;  %9082 = vmatpush3.bf16.msra.mxu0 %v9343_v57  ;;  %v9345_v43 = vld [vmem:[%s9644_s24 + $0xb0] sm:$0xff]  }
 0x7cf   : > { %16066 = vst [vmem:[#allocation55_spill] sm:$0xff] %v14044_v4 }
 0x7d0   : > { %6599 = vadd.xlane.f32.xlu1 %v6598_v41  ;;  %v6753_v41 = vsel %vm4594_vm12, %v6697_v23, 0.0  ;;  %v14053_v34 = vpop.xlane.xlu1 %5603 }
 0x7d1   : > { %16069 = vst [vmem:[#allocation44_spill] sm:$0xff] %v14053_v34 }
 0x7d2   : > { %6760 = vadd.xlane.f32.xlu0 %v6759_v52  ;;  %v6756_v52 = vsel %vm4594_vm12, %v6698_v63, 0.0  ;;  %v14051_v2 = vpop.xlane.xlu0 %5600 }
 0x7d3   : > { %16068 = vst [vmem:[#allocation63_spill] sm:$0xff] %v14051_v2 }
 0x7d4   : > { %6763 = vadd.xlane.f32.xlu1 %v6762_v47  ;;  %v9344_v47 = vld [vmem:[%s9644_s24 + $0xa8] sm:$0xff]   ;;  %v14057_v10 = vpop.xlane.xlu1 %5293 }
 0x7d5   : > { %9083 = vmatprep.subr.bf16.mxu0 %v9344_v47  ;;  %16071 = vst [vmem:[#allocation41_spill] sm:$0xff] %v14057_v10 }
 0x7d6   : > { %6426 = vadd.xlane.f32.xlu0 %v6425_v14  ;;  %9084 = vmatpush3.bf16.msra.mxu0 %v9344_v47  ;;  %v14055_v14 = vpop.xlane.xlu0 %5290 }
 0x7d7   : > { %16070 = vst [vmem:[#allocation38_spill] sm:$0xff] %v14055_v14  ;;  %9085 = vmatprep.subr.bf16.mxu0 %v9345_v43 }
 0x7d8   : > { %6429 = vadd.xlane.f32.xlu1 %v6428_v25  ;;  %v14063_v23 = vpop.xlane.xlu1 %5457 }
 0x7d9   : > { %16073 = vst [vmem:[#allocation19_spill] sm:$0xff] %v14063_v23 }
 0x7da   : > { %6590 = vadd.xlane.f32.xlu0 %v6589_v9  ;;  %v14059_v25 = vpop.xlane.xlu0 %5454  ;;  %v9346_v9 = vld [vmem:[%s9644_s24 + $0xb8] sm:$0xff]   ;;  %9086 = vmatpush3.bf16.msra.mxu0 %v9345_v43 }
 0x7db   : > { %16072 = vst [vmem:[#allocation65_spill] sm:$0xff] %v14059_v25  ;;  %9087 = vmatprep.subr.bf16.mxu0 %v9346_v9 }
 0x7dc   : > { %6593 = vadd.xlane.f32.xlu1 %v6592_v29  ;;  %v14067_v63 = vpop.xlane.xlu1 %5621 }
 0x7dd   : > { %16075 = vst [vmem:[#allocation68_spill] sm:$0xff] %v14067_v63 }
 0x7de   : > { %6754 = vadd.xlane.f32.xlu0 %v6753_v41  ;;  %v14065_v29 = vpop.xlane.xlu0 %5618  ;;  %9088 = vmatpush3.bf16.msra.mxu0 %v9346_v9 }
 0x7df   : > { %16074 = vst [vmem:[#allocation60_spill] sm:$0xff] %v14065_v29 }
 0x7e0   : > { %6757 = vadd.xlane.f32.xlu1 %v6756_v52  ;;  %v14071_v52 = vpop.xlane.xlu1 %5287 }
 0x7e1   : > { %16077 = vst [vmem:[#allocation71_spill] sm:$0xff] %v14071_v52 }
 0x7e2   : > { %v14069_v41 = vpop.xlane.xlu0 %5284 }
 0x7e3   : > { %16076 = vst [vmem:[#allocation72_spill] sm:$0xff] %v14069_v41 }
 0x7e4   : > { %v14075_v47 = vpop.xlane.xlu1 %5451 }
 0x7e5   : > { %16079 = vst [vmem:[#allocation33_spill] sm:$0xff] %v14075_v47 }
 0x7e6   : > { %v14073_v57 = vpop.xlane.xlu0 %5448 }
 0x7e7   : > { %16078 = vst [vmem:[#allocation64_spill] sm:$0xff] %v14073_v57 }
 0x7e8   : > { %v14080_v14 = vpop.xlane.xlu1 %5615 }
 0x7e9   : > { %16081 = vst [vmem:[#allocation30_spill] sm:$0xff] %v14080_v14 }
 0x7ea   : > { %v14077_v10 = vpop.xlane.xlu0 %5612 }
 0x7eb   : > { %16080 = vst [vmem:[#allocation23_spill] sm:$0xff] %v14077_v10 }
 0x7ec   : > { %v14088_v4 = vpop.xlane.xlu1 %5305 }
 0x7ed   : > { %16083 = vst [vmem:[#allocation43_spill] sm:$0xff] %v14088_v4 }
 0x7ee   : > { %v14085_v21 = vpop.xlane.xlu0 %5302 }
 0x7ef   : > { %16082 = vst [vmem:[#allocation51_spill] sm:$0xff] %v14085_v21 }
 0x7f0   : > { %v14111_v11 = vpop.xlane.xlu1 %5469 }
 0x7f1   : > { %16085 = vst [vmem:[#allocation16_spill] sm:$0xff] %v14111_v11 }
 0x7f2   : > { %v14104_v42 = vpop.xlane.xlu0 %5466 }
 0x7f3   : > { %16084 = vst [vmem:[#allocation62_spill] sm:$0xff] %v14104_v42 }
 0x826   : > { %v9027_v25 = vpop.f32.mrb[64].mxu0 }
 0x827   : > { %v6233_v23 = vadd.f32 %v9027_v25, %v13793_v12  ;;  %v6224_v43 = vpop.f32.mrb[65].mxu0 }
 0x828   : > { %v6225_v9 = vadd.f32 %v13793_v12, %v6224_v43  ;;  %v9028_v29 = vpop.f32.mrb[66].mxu0 }
 0x829   : > { %v6305_v63 = vmul.f32 0.2, %v6233_v23  ;;  %v6236_v41 = vadd.f32 %v9028_v29, %v13793_v12  ;;  %v6227_v34 = vpop.f32.mrb[67].mxu0 }
 0x82a   : > { %v6303_v52 = vmul.f32 0.2, %v6225_v9  ;;  %v6228_v57 = vadd.f32 %v13793_v12, %v6227_v34 }
 0x82b   : > { %v6337_v2 = vmax.f32 %v6233_v23, %v6305_v63  ;;  %v6306_v47 = vmul.f32 0.2, %v6236_v41 }
 0x82c   : > { %v6304_v10 = vmul.f32 0.2, %v6228_v57  ;;  %v14090_v14 = vmax.f32 %v6225_v9, %v6303_v52 }
 0x82d   : > { %v6338_v49 = vmax.f32 %v6236_v41, %v6306_v47  ;;  %v6375_v25 = vmul.f32 %v16037_v26, %v6337_v2  ;;  %v6539_v29 = vmul.f32 %v16038_v16, %v6337_v2 }
 0x82e   : > { %v14092_v43 = vmax.f32 %v6228_v57, %v6304_v10  ;;  %v9031_v35 = vpop.f32.mrb[68].mxu0 }
 0x82f   : > { %v6865_v58 = vpack.c.bf16 %v6338_v49, %v6337_v2  ;;  %v6249_v34 = vadd.f32 %v9031_v35, %v13793_v12  ;;  %v6240_v23 = vpop.f32.mrb[69].mxu0  ;;  %v6443_v63 = vsel %vm4594_vm12, %v6375_v25, 0.0  ;;  %v6376_v21 = vmul.f32 %v16037_v26, %v6338_v49 }
 0x830   : > { %v6864_v41 = vpack.c.bf16 %v14092_v43, %v14090_v14  ;;  %v6241_v47 = vadd.f32 %v13793_v12, %v6240_v23  ;;  %v9032_v52 = vpop.f32.mrb[70].mxu0  ;;  %6444 = vadd.xlane.f32.xlu0 %v6443_v63  ;;  %v6540_v35 = vmul.f32 %v16038_v16, %v6338_v49  ;;  %v6607_v63 = vsel %vm4594_vm12, %v6539_v29, 0.0 }
 0x831   : > { %v6309_v10 = vmul.f32 0.2, %v6249_v34  ;;  %v6252_v57 = vadd.f32 %v9032_v52, %v13793_v12  ;;  %v6243_v9 = vpop.f32.mrb[71].mxu0  ;;  %v6446_v4 = vsel %vm4594_vm12, %v6376_v21, 0.0  ;;  %v6703_v52 = vmul.f32 %v16039_v13, %v6337_v2 }
 0x832   : > { %9065 = vmatprep.mubr.msk.bf16.mxu1 %vm4594_vm12, %v6864_v41  ;;  %v6307_v25 = vmul.f32 0.2, %v6241_v47  ;;  %v6244_v44 = vadd.f32 %v13793_v12, %v6243_v9  ;;  %6447 = vadd.xlane.f32.xlu1 %v6446_v4  ;;  %v6610_v41 = vsel %vm4594_vm12, %v6540_v35, 0.0  ;;  %v6704_v9 = vmul.f32 %v16039_v13, %v6338_v49 }
 0x833   : > { %9066 = vmatmul.mubr.msk.bf16.gmra.mrb[96].mxu1 %vm4594_vm12, %v6865_v58  ;;  %v6310_v23 = vmul.f32 0.2, %v6252_v57  ;;  %v14113_v38 = vmax.f32 %v6249_v34, %v6309_v10  ;;  %v6771_v29 = vsel %vm4594_vm12, %v6703_v52, 0.0  ;;  %v6373_v34 = vmul.f32 %v16037_v26, %v14090_v14  ;;  %v14128_v10 = vpop.xlane.xlu0 %5630 }
 0x834   : > { %v6308_v21 = vmul.f32 0.2, %v6244_v44  ;;  %6608 = vadd.xlane.f32.xlu0 %v6607_v63  ;;  %v14119_v4 = vmax.f32 %v6241_v47, %v6307_v25  ;;  %16086 = vst [vmem:[#allocation24_spill] sm:$0xff] %v14128_v10  ;;  %v6774_v49 = vsel %vm4594_vm12, %v6704_v9, 0.0  ;;  %v14135_v47 = vpop.xlane.xlu1 %5633  ;;  %v6537_v52 = vmul.f32 %v16038_v16, %v14090_v14 }
 0x835   : > { %v14115_v42 = vmax.f32 %v6252_v57, %v6310_v23  ;;  %16087 = vst [vmem:[#allocation31_spill] sm:$0xff] %v14135_v47  ;;  %v6437_v25 = vsel %vm4594_vm12, %v6373_v34, 0.0 }
 0x836   : > { %v14121_v58 = vmax.f32 %v6244_v44, %v6308_v21  ;;  %6611 = vadd.xlane.f32.xlu1 %v6610_v41  ;;  %v6374_v44 = vmul.f32 %v16037_v26, %v14092_v43 }
 0x837   : > { %v6867_v2 = vpack.c.bf16 %v14115_v42, %v14113_v38  ;;  %v14148_v34 = vpop.xlane.xlu0 %5296 }
 0x838   : > { %v6866_v57 = vpack.c.bf16 %v14121_v58, %v14119_v4  ;;  %6772 = vadd.xlane.f32.xlu0 %v6771_v29  ;;  %v6440_v9 = vsel %vm4594_vm12, %v6374_v44, 0.0  ;;  %16088 = vst [vmem:[#allocation58_spill] sm:$0xff] %v14148_v34  ;;  %v14154_v44 = vpop.xlane.xlu1 %5299 }
 0x839   : > { %16089 = vst [vmem:[#allocation20_spill] sm:$0xff] %v14154_v44 }
 0x83a   : > { %9069 = vmatprep.mubr.msk.bf16.mxu1 %vm4594_vm12, %v6866_v57  ;;  %6775 = vadd.xlane.f32.xlu1 %v6774_v49 }
 0x83b   : > { %9070 = vmatmul.mubr.msk.bf16.gmra.mrb[100].mxu1 %vm4594_vm12, %v6867_v2  ;;  %v6538_v2 = vmul.f32 %v16038_v16, %v14092_v43 }
 0x83c   : > { %v9035_v35 = vpop.f32.mrb[72].mxu0  ;;  %6438 = vadd.xlane.f32.xlu0 %v6437_v25  ;;  %v6601_v25 = vsel %vm4594_vm12, %v6537_v52, 0.0 }
 0x83d   : > { %v6265_v23 = vadd.f32 %v9035_v35, %v13793_v12  ;;  %v6256_v63 = vpop.f32.mrb[73].mxu0  ;;  %v6604_v34 = vsel %vm4594_vm12, %v6538_v2, 0.0  ;;  %v6543_v2 = vmul.f32 %v16038_v16, %v14113_v38 }
 0x83e   : > { %v6257_v21 = vadd.f32 %v13793_v12, %v6256_v63  ;;  %v9036_v41 = vpop.f32.mrb[74].mxu0  ;;  %6441 = vadd.xlane.f32.xlu1 %v6440_v9  ;;  %v6701_v63 = vmul.f32 %v16039_v13, %v14090_v14  ;;  %v6702_v9 = vmul.f32 %v16039_v13, %v14092_v43 }
 0x83f   : > { %v6313_v29 = vmul.f32 0.2, %v6265_v23  ;;  %v6268_v57 = vadd.f32 %v9036_v41, %v13793_v12  ;;  %v6259_v49 = vpop.f32.mrb[75].mxu0 }
 0x840   : > { %v6311_v35 = vmul.f32 0.2, %v6257_v21  ;;  %v6260_v47 = vadd.f32 %v13793_v12, %v6259_v49  ;;  %6602 = vadd.xlane.f32.xlu0 %v6601_v25  ;;  %v6765_v14 = vsel %vm4594_vm12, %v6701_v63, 0.0  ;;  %v6379_v25 = vmul.f32 %v16037_v26, %v14113_v38 }
 0x841   : > { %v6314_v10 = vmul.f32 0.2, %v6268_v57  ;;  %v14156_v11 = vmax.f32 %v6265_v23, %v6313_v29  ;;  %v6768_v43 = vsel %vm4594_vm12, %v6702_v9, 0.0  ;;  %v6707_v9 = vmul.f32 %v16039_v13, %v14113_v38 }
 0x842   : > { %v6312_v41 = vmul.f32 0.2, %v6260_v47  ;;  %v14163_v49 = vmax.f32 %v6257_v21, %v6311_v35  ;;  %6605 = vadd.xlane.f32.xlu1 %v6604_v34  ;;  %v14179_v21 = vpop.xlane.xlu1 %5463  ;;  %v6544_v35 = vmul.f32 %v16038_v16, %v14115_v42 }
 0x843   : > { %v14158_v30 = vmax.f32 %v6268_v57, %v6314_v10  ;;  %v14172_v10 = vpop.xlane.xlu0 %5460  ;;  %16091 = vst [vmem:[#allocation13_spill] sm:$0xff] %v14179_v21  ;;  %v6455_v57 = vsel %vm4594_vm12, %v6379_v25, 0.0 }
 0x844   : > { %v14165_v52 = vmax.f32 %v6260_v47, %v6312_v41  ;;  %16090 = vst [vmem:[#allocation70_spill] sm:$0xff] %v14172_v10  ;;  %6766 = vadd.xlane.f32.xlu0 %v6765_v14  ;;  %v6380_v47 = vmul.f32 %v16037_v26, %v14115_v42  ;;  %v6619_v41 = vsel %vm4594_vm12, %v6543_v2, 0.0  ;;  %v6622_v25 = vsel %vm4594_vm12, %v6544_v35, 0.0 }
 0x845   : > { %v6869_v23 = vpack.c.bf16 %v14158_v30, %v14156_v11  ;;  %v6377_v2 = vmul.f32 %v16037_v26, %v14119_v4 }
 0x846   : > { %v6868_v29 = vpack.c.bf16 %v14165_v52, %v14163_v49  ;;  %6769 = vadd.xlane.f32.xlu1 %v6768_v43  ;;  %v6458_v34 = vsel %vm4594_vm12, %v6380_v47, 0.0  ;;  %v14194_v14 = vpop.xlane.xlu1 %5627 }
 0x847   : > { %v14189_v63 = vpop.xlane.xlu0 %5624  ;;  %16093 = vst [vmem:[#allocation53_spill] sm:$0xff] %v14194_v14  ;;  %v6449_v44 = vsel %vm4594_vm12, %v6377_v2, 0.0 }
 0x848   : > { %9073 = vmatprep.mubr.msk.bf16.mxu1 %vm4594_vm12, %v6868_v29  ;;  %6456 = vadd.xlane.f32.xlu0 %v6455_v57  ;;  %16092 = vst [vmem:[#allocation59_spill] sm:$0xff] %v14189_v63  ;;  %v6783_v57 = vsel %vm4594_vm12, %v6707_v9, 0.0 }
 0x849   : > { %9074 = vmatmul.mubr.msk.bf16.gmra.mrb[104].mxu1 %vm4594_vm12, %v6869_v23  ;;  %v6708_v23 = vmul.f32 %v16039_v13, %v14115_v42 }
 0x84a   : > { %6459 = vadd.xlane.f32.xlu1 %v6458_v34  ;;  %v14211_v21 = vpop.xlane.xlu1 %5317 }
 0x84b   : > { %v14204_v14 = vpop.xlane.xlu0 %5314  ;;  %16095 = vst [vmem:[#allocation11_spill] sm:$0xff] %v14211_v21 }
 0x84c   : > { %6620 = vadd.xlane.f32.xlu0 %v6619_v41  ;;  %16094 = vst [vmem:[#allocation18_spill] sm:$0xff] %v14204_v14 }
 0x84e   : > { %6623 = vadd.xlane.f32.xlu1 %v6622_v25  ;;  %v6786_v25 = vsel %vm4594_vm12, %v6708_v23, 0.0 }
 0x850   : > { %v9039_v29 = vpop.f32.mrb[76].mxu0  ;;  %6784 = vadd.xlane.f32.xlu0 %v6783_v57  ;;  %v6541_v57 = vmul.f32 %v16038_v16, %v14119_v4 }
 0x851   : > { %v6281_v43 = vadd.f32 %v9039_v29, %v13793_v12  ;;  %v6272_v47 = vpop.f32.mrb[77].mxu0  ;;  %v6378_v29 = vmul.f32 %v16037_v26, %v14121_v58 }
 0x852   : > { %v6273_v38 = vadd.f32 %v13793_v12, %v6272_v47  ;;  %v9040_v34 = vpop.f32.mrb[78].mxu0  ;;  %6787 = vadd.xlane.f32.xlu1 %v6786_v25  ;;  %v14227_v25 = vpop.xlane.xlu0 %5478 }
 0x853   : > { %v6317_v35 = vmul.f32 0.2, %v6281_v43  ;;  %v6284_v41 = vadd.f32 %v9040_v34, %v13793_v12  ;;  %v6275_v42 = vpop.f32.mrb[79].mxu0  ;;  %v6452_v10 = vsel %vm4594_vm12, %v6378_v29, 0.0  ;;  %16096 = vst [vmem:[#allocation34_spill] sm:$0xff] %v14227_v25  ;;  %v6706_v29 = vmul.f32 %v16039_v13, %v14121_v58 }
 0x854   : > { %v6315_v63 = vmul.f32 0.2, %v6273_v38  ;;  %v6276_v9 = vadd.f32 %v13793_v12, %v6275_v42  ;;  %6450 = vadd.xlane.f32.xlu0 %v6449_v44  ;;  %v6542_v12 = vmul.f32 %v16038_v16, %v14121_v58  ;;  %v6613_v44 = vsel %vm4594_vm12, %v6541_v57, 0.0 }
 0x855   : > { %v6318_v47 = vmul.f32 0.2, %v6284_v41  ;;  %v14216_v34 = vmax.f32 %v6281_v43, %v6317_v35  ;;  %v6705_v43 = vmul.f32 %v16039_v13, %v14119_v4  ;;  %v14236_v35 = vpop.xlane.xlu1 %5481  ;;  %v6383_v57 = vmul.f32 %v16037_v26, %v14156_v11 }
 0x856   : > { %v6316_v14 = vmul.f32 0.2, %v6276_v9  ;;  %v14221_v53 = vmax.f32 %v6273_v38, %v6315_v63  ;;  %6453 = vadd.xlane.f32.xlu1 %v6452_v10  ;;  %16097 = vst [vmem:[#allocation15_spill] sm:$0xff] %v14236_v35 }
 0x857   : > { %v14218_v23 = vmax.f32 %v6284_v41, %v6318_v47  ;;  %v6616_v41 = vsel %vm4594_vm12, %v6542_v12, 0.0  ;;  %v6777_v47 = vsel %vm4594_vm12, %v6705_v43, 0.0  ;;  %v14253_v12 = vpop.xlane.xlu0 %5642 }
 0x858   : > { %v14225_v42 = vmax.f32 %v6276_v9, %v6316_v14  ;;  %v9051_v38 = vpop.f32.mrb[80].mxu1  ;;  %6614 = vadd.xlane.f32.xlu0 %v6613_v44  ;;  %v14241_v14 = vld [vmem:[%s15518_s6 + $0x4] ss:$0 sm:$0xff]  ;;  %16098 = vst [vmem:[#allocation66_spill] sm:$0xff] %v14253_v12 }
 0x859   : > { %v6871_v2 = vpack.c.bf16 %v14218_v23, %v14216_v34  ;;  %v6984_v10 = vpop.f32.mrb[81].mxu1  ;;  %v6993_v44 = vadd.f32 %v9051_v38, %v14241_v14  ;;  %v14260_v25 = vpop.xlane.xlu1 %5645 }
 0x85a   : > { %v6870_v63 = vpack.c.bf16 %v14225_v42, %v14221_v53  ;;  %v9052_v4 = vpop.f32.mrb[82].mxu1  ;;  %6617 = vadd.xlane.f32.xlu1 %v6616_v41  ;;  %v6985_v35 = vadd.f32 %v14241_v14, %v6984_v10  ;;  %v6780_v41 = vsel %vm4594_vm12, %v6706_v29, 0.0  ;;  %16099 = vst [vmem:[#allocation61_spill] sm:$0xff] %v14260_v25  ;;  %v6467_v10 = vsel %vm4594_vm12, %v6383_v57, 0.0 }
 0x85b   : > { %v6987_v9 = vpop.f32.mrb[83].mxu1  ;;  %v6996_v58 = vadd.f32 %v9052_v4, %v14241_v14  ;;  %v7113_v43 = vmul.f32 0.2, %v6993_v44  ;;  %v14270_v55 = vpop.xlane.xlu0 %5308 }
 0x85c   : > { %9077 = vmatprep.mubr.msk.bf16.mxu1 %vm4594_vm12, %v6870_v63  ;;  %6778 = vadd.xlane.f32.xlu0 %v6777_v47  ;;  %v6988_v63 = vadd.f32 %v14241_v14, %v6987_v9  ;;  %v7111_v21 = vmul.f32 0.2, %v6985_v35  ;;  %v6547_v47 = vmul.f32 %v16038_v16, %v14156_v11  ;;  %16100 = vst [vmem:[#allocation40_spill] sm:$0xff] %v14270_v55 }
 0x85d   : > { %9078 = vmatmul.mubr.msk.bf16.gmra.mrb[108].mxu1 %vm4594_vm12, %v6871_v2  ;;  %v6384_v2 = vmul.f32 %v16037_v26, %v14158_v30  ;;  %v7114_v38 = vmul.f32 0.2, %v6996_v58  ;;  %v7145_v4 = vmax.f32 %v6993_v44, %v7113_v43 }
 0x85e   : > { %6781 = vadd.xlane.f32.xlu1 %v6780_v41  ;;  %v7112_v61 = vmul.f32 0.2, %v6988_v63  ;;  %v7143_v9 = vmax.f32 %v6985_v35, %v7111_v21  ;;  %v6548_v41 = vmul.f32 %v16038_v16, %v14158_v30  ;;  %v6631_v35 = vsel %vm4594_vm12, %v6547_v47, 0.0 }
 0x85f   : > { %v7146_v29 = vmax.f32 %v6996_v58, %v7114_v38  ;;  %v6470_v1 = vsel %vm4594_vm12, %v6384_v2, 0.0  ;;  %v14277_v2 = vpop.xlane.xlu1 %5311 }
 0x860   : > { %v9055_v12 = vpop.f32.mrb[84].mxu1  ;;  %6468 = vadd.xlane.f32.xlu0 %v6467_v10  ;;  %v7144_v8 = vmax.f32 %v6988_v63, %v7112_v61  ;;  %16101 = vst [vmem:[#allocation17_spill] sm:$0xff] %v14277_v2 }
 0x861   : > { %v7009_v59 = vadd.f32 %v9055_v12, %v14241_v14  ;;  %v7000_v20 = vpop.f32.mrb[85].mxu1  ;;  %v7187_v44 = vpack.c.bf16 %v7146_v29, %v7145_v4  ;;  %v6711_v12 = vmul.f32 %v16039_v13, %v14156_v11 }
 0x862   : > { %v7001_v25 = vadd.f32 %v14241_v14, %v7000_v20  ;;  %v9056_v57 = vpop.f32.mrb[86].mxu1  ;;  %6471 = vadd.xlane.f32.xlu1 %v6470_v1  ;;  %v7186_v43 = vpack.c.bf16 %v7144_v8, %v7143_v9  ;;  %v6634_v1 = vsel %vm4594_vm12, %v6548_v41, 0.0  ;;  %v6712_v8 = vmul.f32 %v16039_v13, %v14158_v30 }
 0x863   : > { %v7117_v10 = vmul.f32 0.2, %v7009_v59  ;;  %v7012_v21 = vadd.f32 %v9056_v57, %v14241_v14  ;;  %v7003_v61 = vpop.f32.mrb[87].mxu1  ;;  %v6795_v4 = vsel %vm4594_vm12, %v6711_v12, 0.0  ;;  %v6381_v9 = vmul.f32 %v16037_v26, %v14163_v49 }
 0x864   : > { %v7115_v58 = vmul.f32 0.2, %v7001_v25  ;;  %v7004_v63 = vadd.f32 %v14241_v14, %v7003_v61  ;;  %6632 = vadd.xlane.f32.xlu0 %v6631_v35  ;;  %9089 = vmatprep.mubr.msk.bf16.mxu0 %vm4594_vm12, %v7186_v43  ;;  %v14287_v43 = vpop.xlane.xlu0 %5472 }
 0x865   : > { %v7118_v20 = vmul.f32 0.2, %v7012_v21  ;;  %9090 = vmatmul.mubr.msk.bf16.vlgmr.msra.gmra.mrb[80].mxu0 %vm4594_vm12, %v7187_v44  ;;  %v7149_v47 = vmax.f32 %v7009_v59, %v7117_v10  ;;  %16102 = vst [vmem:[#allocation2_spill] sm:$0xff] %v14287_v43  ;;  %v6798_v44 = vsel %vm4594_vm12, %v6712_v8, 0.0  ;;  %v6382_v59 = vmul.f32 %v16037_v26, %v14165_v52 }
 0x866   : > { %v7116_v38 = vmul.f32 0.2, %v7004_v63  ;;  %6635 = vadd.xlane.f32.xlu1 %v6634_v1  ;;  %v7147_v29 = vmax.f32 %v7001_v25, %v7115_v58  ;;  %v6461_v1 = vsel %vm4594_vm12, %v6381_v9, 0.0 }
 0x867   : > { %v7150_v11 = vmax.f32 %v7012_v21, %v7118_v20  ;;  %v14294_v20 = vpop.xlane.xlu1 %5475 }
 0x868   : > { %v7148_v57 = vmax.f32 %v7004_v63, %v7116_v38  ;;  %v9059_v61 = vpop.f32.mrb[88].mxu1  ;;  %6796 = vadd.xlane.f32.xlu0 %v6795_v4  ;;  %16103 = vst [vmem:[#allocation3_spill] sm:$0xff] %v14294_v20  ;;  %v6545_v38 = vmul.f32 %v16038_v16, %v14163_v49  ;;  %v6464_v4 = vsel %vm4594_vm12, %v6382_v59, 0.0 }
 0x869   : > { %v7189_v41 = vpack.c.bf16 %v7150_v11, %v7149_v47  ;;  %v7025_v30 = vadd.f32 %v9059_v61, %v14241_v14  ;;  %v7016_v35 = vpop.f32.mrb[89].mxu1  ;;  %v14306_v61 = vpop.xlane.xlu0 %5636 }
 0x86a   : > { %v7188_v10 = vpack.c.bf16 %v7148_v57, %v7147_v29  ;;  %v7017_v21 = vadd.f32 %v14241_v14, %v7016_v35  ;;  %v9060_v12 = vpop.f32.mrb[90].mxu1  ;;  %6799 = vadd.xlane.f32.xlu1 %v6798_v44  ;;  %v6546_v29 = vmul.f32 %v16038_v16, %v14165_v52  ;;  %16104 = vst [vmem:[#allocation4_spill] sm:$0xff] %v14306_v61  ;;  %v6625_v44 = vsel %vm4594_vm12, %v6545_v38, 0.0 }
 0x86b   : > { %v7121_v25 = vmul.f32 0.2, %v7025_v30  ;;  %v7028_v58 = vadd.f32 %v9060_v12, %v14241_v14  ;;  %v7019_v63 = vpop.f32.mrb[91].mxu1  ;;  %v6551_v38 = vmul.f32 %v16038_v16, %v14216_v34 }
 0x86c   : > { %9093 = vmatprep.mubr.msk.bf16.mxu0 %vm4594_vm12, %v7188_v10  ;;  %v7119_v8 = vmul.f32 0.2, %v7017_v21  ;;  %v7020_v47 = vadd.f32 %v14241_v14, %v7019_v63  ;;  %6462 = vadd.xlane.f32.xlu0 %v6461_v1  ;;  %v6709_v10 = vmul.f32 %v16039_v13, %v14163_v49  ;;  %v14311_v1 = vpop.xlane.xlu1 %5639  ;;  %v6628_v20 = vsel %vm4594_vm12, %v6546_v29, 0.0 }
 0x86d   : > { %v7122_v11 = vmul.f32 0.2, %v7028_v58  ;;  %9094 = vmatmul.mubr.msk.bf16.gmra.mrb[84].mxu0 %vm4594_vm12, %v7189_v41  ;;  %v7153_v9 = vmax.f32 %v7025_v30, %v7121_v25  ;;  %16105 = vst [vmem:[#allocation5_spill] sm:$0xff] %v14311_v1  ;;  %v6710_v41 = vmul.f32 %v16039_v13, %v14165_v52  ;;  %v6387_v25 = vmul.f32 %v16037_v26, %v14216_v34  ;;  %v14320_v49 = vpop.xlane.xlu0 %5326 }
 0x86e   : > { %v7120_v57 = vmul.f32 0.2, %v7020_v47  ;;  %6465 = vadd.xlane.f32.xlu1 %v6464_v4  ;;  %v7151_v12 = vmax.f32 %v7017_v21, %v7119_v8  ;;  %v6789_v30 = vsel %vm4594_vm12, %v6709_v10, 0.0  ;;  %16106 = vst [vmem:[#allocation6_spill] sm:$0xff] %v14320_v49  ;;  %v6643_v4 = vsel %vm4594_vm12, %v6551_v38, 0.0 }
 0x86f   : > { %v7154_v35 = vmax.f32 %v7028_v58, %v7122_v11  ;;  %v6792_v21 = vsel %vm4594_vm12, %v6710_v41, 0.0  ;;  %v6388_v58 = vmul.f32 %v16037_v26, %v14218_v23  ;;  %v6715_v29 = vmul.f32 %v16039_v13, %v14216_v34 }
 0x870   : > { %v7152_v63 = vmax.f32 %v7020_v47, %v7120_v57  ;;  %6626 = vadd.xlane.f32.xlu0 %v6625_v44  ;;  %v14326_v52 = vpop.xlane.xlu1 %5329  ;;  %v6552_v47 = vmul.f32 %v16038_v16, %v14218_v23  ;;  %v6385_v44 = vmul.f32 %v16037_v26, %v14221_v53  ;;  %v6386_v34 = vmul.f32 %v16037_v26, %v14225_v42 }
 0x871   : > { %v7191_v59 = vpack.c.bf16 %v7154_v35, %v7153_v9  ;;  %16107 = vst [vmem:[#allocation7_spill] sm:$0xff] %v14326_v52  ;;  %v6482_v8 = vsel %vm4594_vm12, %v6388_v58, 0.0  ;;  %v14334_v11 = vpop.xlane.xlu0 %5490  ;;  %v6716_v9 = vmul.f32 %v16039_v13, %v14218_v23  ;;  %v6807_v35 = vsel %vm4594_vm12, %v6715_v29, 0.0 }
 0x872   : > { %v7190_v61 = vpack.c.bf16 %v7152_v63, %v7151_v12  ;;  %6629 = vadd.xlane.f32.xlu1 %v6628_v20  ;;  %v6479_v20 = vsel %vm4594_vm12, %v6387_v25, 0.0  ;;  %16108 = vst [vmem:[#allocation73_spill] sm:$0xff] %v14334_v11  ;;  %v6549_v23 = vmul.f32 %v16038_v16, %v14221_v53  ;;  %v6476_v41 = vsel %vm4594_vm12, %v6386_v34, 0.0 }
 0x873   : > { %v6810_v12 = vsel %vm4594_vm12, %v6716_v9, 0.0  ;;  %v6713_v26 = vmul.f32 %v16039_v13, %v14221_v53  ;;  %v6714_v38 = vmul.f32 %v16039_v13, %v14225_v42 }
 0x874   : > { %9097 = vmatprep.mubr.msk.bf16.mxu0 %vm4594_vm12, %v7190_v61  ;;  %6790 = vadd.xlane.f32.xlu0 %v6789_v30  ;;  %v14339_v57 = vpop.xlane.xlu1 %5493  ;;  %v6646_v61 = vsel %vm4594_vm12, %v6552_v47, 0.0  ;;  %v6550_v30 = vmul.f32 %v16038_v16, %v14225_v42 }
 0x875   : > { %9098 = vmatmul.mubr.msk.bf16.gmra.mrb[88].mxu0 %vm4594_vm12, %v7191_v59  ;;  %16109 = vst [vmem:[#allocation74_spill] sm:$0xff] %v14339_v57  ;;  %v14347_v10 = vpop.xlane.xlu0 %5654  ;;  %v6473_v59 = vsel %vm4594_vm12, %v6385_v44, 0.0  ;;  %v6804_v47 = vsel %vm4594_vm12, %v6714_v38, 0.0 }
 0x876   : > { %6793 = vadd.xlane.f32.xlu1 %v6792_v21  ;;  %16110 = vst [vmem:[#allocation75_spill] sm:$0xff] %v14347_v10  ;;  %v6637_v21 = vsel %vm4594_vm12, %v6549_v23, 0.0 }
 0x878   : > { %6480 = vadd.xlane.f32.xlu0 %v6479_v20  ;;  %v14352_v63 = vpop.xlane.xlu1 %5657  ;;  %v6640_v20 = vsel %vm4594_vm12, %v6550_v30, 0.0 }
 0x879   : > { %16111 = vst [vmem:[#allocation76_spill] sm:$0xff] %v14352_v63  ;;  %v14360_v25 = vpop.xlane.xlu0 %5320 }
 0x87a   : > { %6483 = vadd.xlane.f32.xlu1 %v6482_v8  ;;  %16112 = vst [vmem:[#allocation77_spill] sm:$0xff] %v14360_v25  ;;  %v6801_v8 = vsel %vm4594_vm12, %v6713_v26, 0.0 }
 0x87c   : > { %6644 = vadd.xlane.f32.xlu0 %v6643_v4  ;;  %v14365_v58 = vpop.xlane.xlu1 %5323 }
 0x87d   : > { %16113 = vst [vmem:[#allocation78_spill] sm:$0xff] %v14365_v58  ;;  %v14371_v16 = vpop.xlane.xlu0 %5484 }
 0x87e   : > { %6647 = vadd.xlane.f32.xlu1 %v6646_v61  ;;  %16114 = vst [vmem:[#allocation79_spill] sm:$0xff] %v14371_v16 }
 0x880   : > { %6808 = vadd.xlane.f32.xlu0 %v6807_v35  ;;  %v14374_v4 = vpop.xlane.xlu1 %5487 }
 0x881   : > { %16115 = vst [vmem:[#allocation80_spill] sm:$0xff] %v14374_v4 }
 0x882   : > { %6811 = vadd.xlane.f32.xlu1 %v6810_v12 }
 0x884   : > { %6474 = vadd.xlane.f32.xlu0 %v6473_v59 }
 0x886   : > { %6477 = vadd.xlane.f32.xlu1 %v6476_v41 }
 0x888   : > { %6638 = vadd.xlane.f32.xlu0 %v6637_v21 }
 0x88a   : > { %6641 = vadd.xlane.f32.xlu1 %v6640_v20 }
 0x88c   : > { %6802 = vadd.xlane.f32.xlu0 %v6801_v8  ;;  %v14382_v8 = vpop.xlane.xlu0 %5648 }
 0x88d   : > { %16116 = vst [vmem:[#allocation81_spill] sm:$0xff] %v14382_v8 }
 0x88e   : > { %6805 = vadd.xlane.f32.xlu1 %v6804_v47  ;;  %v14384_v47 = vpop.xlane.xlu1 %5651 }
 0x88f   : > { %16117 = vst [vmem:[#allocation82_spill] sm:$0xff] %v14384_v47 }
 0x898   : > { %v9063_v53 = vpop.f32.mrb[92].mxu1 }
 0x899   : > { %v7041_v29 = vadd.f32 %v9063_v53, %v14241_v14  ;;  %v7032_v61 = vpop.f32.mrb[93].mxu1  ;;  %v14386_v53 = vpop.xlane.xlu0 %6396 }
 0x89a   : > { %v7033_v9 = vadd.f32 %v14241_v14, %v7032_v61  ;;  %v9064_v35 = vpop.f32.mrb[94].mxu1  ;;  %v14388_v61 = vpop.xlane.xlu1 %6399 }
 0x89b   : > { %v7125_v44 = vmul.f32 0.2, %v7041_v29  ;;  %v7044_v13 = vadd.f32 %v9064_v35, %v14241_v14  ;;  %v7035_v42 = vpop.f32.mrb[95].mxu1 }
 0x89c   : > { %v7123_v12 = vmul.f32 0.2, %v7033_v9  ;;  %v7036_v34 = vadd.f32 %v14241_v14, %v7035_v42 }
 0x89d   : > { %v7126_v59 = vmul.f32 0.2, %v7044_v13  ;;  %v7157_v41 = vmax.f32 %v7041_v29, %v7125_v44  ;;  %v14390_v35 = vpop.xlane.xlu0 %6560 }
 0x89e   : > { %v7124_v23 = vmul.f32 0.2, %v7036_v34  ;;  %v7155_v21 = vmax.f32 %v7033_v9, %v7123_v12  ;;  %v14392_v29 = vpop.xlane.xlu1 %6563 }
 0x89f   : > { %v7158_v30 = vmax.f32 %v7044_v13, %v7126_v59 }
 0x8a0   : > { %v7156_v26 = vmax.f32 %v7036_v34, %v7124_v23 }
 0x8a1   : > { %v7193_v20 = vpack.c.bf16 %v7158_v30, %v7157_v41  ;;  %v14394_v9 = vpop.xlane.xlu0 %6724 }
 0x8a2   : > { %v7192_v38 = vpack.c.bf16 %v7156_v26, %v7155_v21  ;;  %v14396_v44 = vpop.xlane.xlu1 %6727 }
 0x8a4   : > { %9101 = vmatprep.mubr.msk.bf16.mxu0 %vm4594_vm12, %v7192_v38 }
 0x8a5   : > { %9102 = vmatmul.mubr.msk.bf16.gmra.mrb[92].mxu0 %vm4594_vm12, %v7193_v20  ;;  %v14398_v13 = vpop.xlane.xlu0 %6390 }
 0x8a6   : > { %v14400_v42 = vpop.xlane.xlu1 %6393 }
 0x8a9   : > { %v14402_v12 = vpop.xlane.xlu0 %6554 }
 0x8aa   : > { %v14404_v34 = vpop.xlane.xlu1 %6557 }
 0x8ad   : > { %v14406_v59 = vpop.xlane.xlu0 %6718 }
 0x8ae   : > { %v14408_v23 = vpop.xlane.xlu1 %6721 }
 0x8b1   : > { %v14410_v41 = vpop.xlane.xlu0 %6408 }
 0x8b2   : > { %v14412_v30 = vpop.xlane.xlu1 %6411 }
 0x8b5   : > { %v14414_v21 = vpop.xlane.xlu0 %6572 }
 0x8b6   : > { %v14416_v26 = vpop.xlane.xlu1 %6575 }
 0x8b9   : > { %v14418_v20 = vpop.xlane.xlu0 %6736 }
 0x8ba   : > { %v14420_v38 = vpop.xlane.xlu1 %6739 }
 0x8bd   : > { %v14422_v63 = vpop.xlane.xlu0 %6402 }
 0x8be   : > { %16118 = vst [vmem:[#allocation83_spill] sm:$0xff] %v14422_v63  ;;  %v14424_v10 = vpop.xlane.xlu1 %6405 }
 0x8bf   : > { %16119 = vst [vmem:[#allocation84_spill] sm:$0xff] %v14424_v10 }
 0x8c1   : > { %v14426_v47 = vpop.xlane.xlu0 %6566 }
 0x8c2   : > { %16120 = vst [vmem:[#allocation85_spill] sm:$0xff] %v14426_v47  ;;  %v14428_v52 = vpop.xlane.xlu1 %6569 }
 0x8c3   : > { %16121 = vst [vmem:[#allocation86_spill] sm:$0xff] %v14428_v52 }
 0x8c5   : > { %v14430_v8 = vpop.xlane.xlu0 %6730 }
 0x8c6   : > { %16122 = vst [vmem:[#allocation87_spill] sm:$0xff] %v14430_v8  ;;  %v14432_v57 = vpop.xlane.xlu1 %6733 }
 0x8c7   : > { %16123 = vst [vmem:[#allocation88_spill] sm:$0xff] %v14432_v57 }
 0x8c9   : > { %v14434_v49 = vpop.xlane.xlu0 %6420 }
 0x8ca   : > { %16124 = vst [vmem:[#allocation89_spill] sm:$0xff] %v14434_v49  ;;  %v14436_v4 = vpop.xlane.xlu1 %6423 }
 0x8cb   : > { %16125 = vst [vmem:[#allocation90_spill] sm:$0xff] %v14436_v4 }
 0x8cd   : > { %v14438_v58 = vpop.xlane.xlu0 %6584 }
 0x8ce   : > { %16126 = vst [vmem:[#allocation91_spill] sm:$0xff] %v14438_v58  ;;  %v14440_v11 = vpop.xlane.xlu1 %6587 }
 0x8cf   : > { %16127 = vst [vmem:[#allocation92_spill] sm:$0xff] %v14440_v11 }
 0x8d1   : > { %v14442_v16 = vpop.xlane.xlu0 %6748 }
 0x8d2   : > { %16128 = vst [vmem:[#allocation93_spill] sm:$0xff] %v14442_v16  ;;  %v14444_v1 = vpop.xlane.xlu1 %6751 }
 0x8d3   : > { %16129 = vst [vmem:[#allocation94_spill] sm:$0xff] %v14444_v1 }
 0x8d5   : > { %v14450_v49 = vpop.xlane.xlu0 %6414 }
 0x8d6   : > { %16130 = vst [vmem:[#allocation95_spill] sm:$0xff] %v14450_v49  ;;  %v14452_v27 = vpop.xlane.xlu1 %6417 }
 0x8d7   : > { %16131 = vst [vmem:[#allocation96_spill] sm:$0xff] %v14452_v27 }
 0x906   : > { %v9067_v25 = vpop.f32.mrb[96].mxu1 }
 0x907   : > { %v7057_v2 = vadd.f32 %v9067_v25, %v14241_v14  ;;  %v7048_v43 = vpop.f32.mrb[97].mxu1 }
 0x908   : > { %v7049_v55 = vadd.f32 %v14241_v14, %v7048_v43  ;;  %v9068_v51 = vpop.f32.mrb[98].mxu1 }
 0x909   : > { %v7129_v56 = vmul.f32 0.2, %v7057_v2  ;;  %v7060_v36 = vadd.f32 %v9068_v51, %v14241_v14  ;;  %v7051_v24 = vpop.f32.mrb[99].mxu1 }
 0x90a   : > { %v7127_v4 = vmul.f32 0.2, %v7049_v55  ;;  %v7052_v58 = vadd.f32 %v14241_v14, %v7051_v24  ;;  %v14456_v24 = vpop.xlane.xlu0 %6578 }
 0x90b   : > { %v7130_v11 = vmul.f32 0.2, %v7060_v36  ;;  %v7161_v1 = vmax.f32 %v7057_v2, %v7129_v56  ;;  %16132 = vst [vmem:[#allocation97_spill] sm:$0xff] %v14456_v24 }
 0x90c   : > { %v7128_v16 = vmul.f32 0.2, %v7052_v58  ;;  %v7159_v25 = vmax.f32 %v7049_v55, %v7127_v4  ;;  %v14461_v55 = vpop.xlane.xlu1 %6581 }
 0x90d   : > { %v7162_v57 = vmax.f32 %v7060_v36, %v7130_v11  ;;  %16133 = vst [vmem:[#allocation98_spill] sm:$0xff] %v14461_v55  ;;  %v16152_v55 = vld [vmem:[#allocation10_spill] sm:$0xff] }
 0x90e   : > { %v7160_v18 = vmax.f32 %v7052_v58, %v7128_v16  ;;  %v9071_v8 = vpop.f32.mrb[100].mxu1  ;;  %v14464_v58 = vpop.xlane.xlu0 %6742 }
 0x90f   : > { %v7195_v43 = vpack.c.bf16 %v7162_v57, %v7161_v1  ;;  %v7073_v7 = vadd.f32 %v9071_v8, %v14241_v14  ;;  %v7064_v52 = vpop.f32.mrb[101].mxu1  ;;  %16134 = vst [vmem:[#allocation99_spill] sm:$0xff] %v14464_v58 }
 0x910   : > { %v7194_v51 = vpack.c.bf16 %v7160_v18, %v7159_v25  ;;  %v7065_v46 = vadd.f32 %v14241_v14, %v7064_v52  ;;  %v9072_v47 = vpop.f32.mrb[102].mxu1  ;;  %v14466_v8 = vpop.xlane.xlu1 %6745 }
 0x911   : > { %v7133_v49 = vmul.f32 0.2, %v7073_v7  ;;  %v7076_v19 = vadd.f32 %v9072_v47, %v14241_v14  ;;  %v7067_v10 = vpop.f32.mrb[103].mxu1  ;;  %16135 = vst [vmem:[#allocation100_spill] sm:$0xff] %v14466_v8  ;;  %v16150_v8 = vld [vmem:[#allocation9_spill] sm:$0xff] }
 0x912   : > { %9105 = vmatprep.mubr.msk.bf16.mxu0 %vm4594_vm12, %v7194_v51  ;;  %v7131_v36 = vmul.f32 0.2, %v7065_v46  ;;  %v7068_v56 = vadd.f32 %v14241_v14, %v7067_v10 }
 0x913   : > { %9106 = vmatmul.mubr.msk.bf16.gmra.mrb[96].mxu0 %vm4594_vm12, %v7195_v43  ;;  %v7134_v2 = vmul.f32 0.2, %v7076_v19  ;;  %v7165_v1 = vmax.f32 %v7073_v7, %v7133_v49 }
 0x914   : > { %v7132_v18 = vmul.f32 0.2, %v7068_v56  ;;  %v7163_v11 = vmax.f32 %v7065_v46, %v7131_v36 }
 0x915   : > { %v7166_v52 = vmax.f32 %v7076_v19, %v7134_v2  ;;  %v14472_v19 = vpop.xlane.xlu0 %6432  ;;  %v14476_v2 = vpop.xlane.xlu1 %6435 }
 0x916   : > { %v7164_v57 = vmax.f32 %v7068_v56, %v7132_v18  ;;  %16136 = vst [vmem:[#allocation101_spill] sm:$0xff] %v14472_v19  ;;  %16137 = vst [vmem:[#allocation102_spill] sm:$0xff] %v14476_v2 }
 0x917   : > { %v7197_v16 = vpack.c.bf16 %v7166_v52, %v7165_v1 }
 0x918   : > { %v7196_v4 = vpack.c.bf16 %v7164_v57, %v7163_v11 }
 0x919   : > { %v14480_v19 = vpop.xlane.xlu1 %6599 }
 0x91a   : > { %9109 = vmatprep.mubr.msk.bf16.mxu0 %vm4594_vm12, %v7196_v4  ;;  %v14478_v4 = vpop.xlane.xlu0 %6596  ;;  %16139 = vst [vmem:[#allocation104_spill] sm:$0xff] %v14480_v19 }
 0x91b   : > { %9110 = vmatmul.mubr.msk.bf16.gmra.mrb[100].mxu0 %vm4594_vm12, %v7197_v16  ;;  %16138 = vst [vmem:[#allocation103_spill] sm:$0xff] %v14478_v4 }
 0x91c   : > { %v9075_v47 = vpop.f32.mrb[104].mxu1 }
 0x91d   : > { %v7089_v10 = vadd.f32 %v9075_v47, %v14241_v14  ;;  %v7080_v25 = vpop.f32.mrb[105].mxu1 }
 0x91e   : > { %v7081_v43 = vadd.f32 %v14241_v14, %v7080_v25  ;;  %v9076_v7 = vpop.f32.mrb[106].mxu1 }
 0x91f   : > { %v7137_v46 = vmul.f32 0.2, %v7089_v10  ;;  %v7092_v49 = vadd.f32 %v9076_v7, %v14241_v14  ;;  %v7083_v51 = vpop.f32.mrb[107].mxu1  ;;  %v14484_v7 = vpop.xlane.xlu0 %6760 }
 0x920   : > { %v7135_v36 = vmul.f32 0.2, %v7081_v43  ;;  %v7084_v56 = vadd.f32 %v14241_v14, %v7083_v51  ;;  %16140 = vst [vmem:[#allocation105_spill] sm:$0xff] %v14484_v7  ;;  %v14486_v51 = vpop.xlane.xlu1 %6763 }
 0x921   : > { %v7138_v18 = vmul.f32 0.2, %v7092_v49  ;;  %v7169_v52 = vmax.f32 %v7089_v10, %v7137_v46  ;;  %16141 = vst [vmem:[#allocation106_spill] sm:$0xff] %v14486_v51 }
 0x922   : > { %v7136_v1 = vmul.f32 0.2, %v7084_v56  ;;  %v7167_v57 = vmax.f32 %v7081_v43, %v7135_v36 }
 0x923   : > { %v7170_v11 = vmax.f32 %v7092_v49, %v7138_v18  ;;  %v14489_v43 = vpop.xlane.xlu0 %6426 }
 0x924   : > { %v7168_v16 = vmax.f32 %v7084_v56, %v7136_v1  ;;  %16142 = vst [vmem:[#allocation107_spill] sm:$0xff] %v14489_v43 }
 0x925   : > { %v7199_v47 = vpack.c.bf16 %v7170_v11, %v7169_v52  ;;  %v14493_v52 = vpop.xlane.xlu1 %6429 }
 0x926   : > { %v7198_v25 = vpack.c.bf16 %v7168_v16, %v7167_v57  ;;  %16143 = vst [vmem:[#allocation108_spill] sm:$0xff] %v14493_v52 }
 0x928   : > { %9113 = vmatprep.mubr.msk.bf16.mxu0 %vm4594_vm12, %v7198_v25 }
 0x929   : > { %9114 = vmatmul.mubr.msk.bf16.gmra.mrb[104].mxu0 %vm4594_vm12, %v7199_v47 }
 0x930   : > { %v9079_v2 = vpop.f32.mrb[108].mxu1 }
 0x931   : > { %v7105_v10 = vadd.f32 %v9079_v2, %v14241_v14  ;;  %v7096_v46 = vpop.f32.mrb[109].mxu1  ;;  %v14496_v2 = vpop.xlane.xlu0 %6590 }
 0x932   : > { %v7097_v49 = vadd.f32 %v14241_v14, %v7096_v46  ;;  %v9080_v36 = vpop.f32.mrb[110].mxu1  ;;  %16144 = vst [vmem:[#allocation109_spill] sm:$0xff] %v14496_v2  ;;  %v14501_v46 = vld [vmem:[%s15518_s6 + $0x5] ss:$0 sm:$0xff] }
 0x933   : > { %v7141_v56 = vmul.f32 0.2, %v7105_v10  ;;  %v7108_v18 = vadd.f32 %v9080_v36, %v14241_v14  ;;  %v7099_v1 = vpop.f32.mrb[111].mxu1  ;;  %v14503_v36 = vpop.xlane.xlu1 %6593 }
 0x934   : > { %v7139_v11 = vmul.f32 0.2, %v7097_v49  ;;  %v7100_v57 = vadd.f32 %v14241_v14, %v7099_v1  ;;  %16145 = vst [vmem:[#allocation110_spill] sm:$0xff] %v14503_v36 }
 0x935   : > { %v7142_v16 = vmul.f32 0.2, %v7108_v18  ;;  %v7173_v25 = vmax.f32 %v7105_v10, %v7141_v56 }
 0x936   : > { %v7140_v47 = vmul.f32 0.2, %v7100_v57  ;;  %v7171_v7 = vmax.f32 %v7097_v49, %v7139_v11  ;;  %v14508_v49 = vpop.xlane.xlu0 %6754 }
 0x937   : > { %v7174_v51 = vmax.f32 %v7108_v18, %v7142_v16  ;;  %16146 = vst [vmem:[#allocation111_spill] sm:$0xff] %v14508_v49  ;;  %v14511_v11 = vpop.xlane.xlu1 %6757 }
 0x938   : > { %v7172_v43 = vmax.f32 %v7100_v57, %v7140_v47  ;;  %v9091_v4 = vpop.f32.mrb[80].mxu0  ;;  %16147 = vst [vmem:[#allocation112_spill] sm:$0xff] %v14511_v11 }
 0x939   : > { %v7201_v19 = vpack.c.bf16 %v7174_v51, %v7173_v25  ;;  %v7323_v14 = vadd.f32 %v9091_v4, %v14501_v46  ;;  %v7314_v10 = vpop.f32.mrb[81].mxu0  ;;  %v16148_v4 = vld [vmem:[#allocation8_spill] sm:$0xff] }
 0x93a   : > { %v7200_v52 = vpack.c.bf16 %v7172_v43, %v7171_v7  ;;  %v9092_v56 = vpop.f32.mrb[82].mxu0  ;;  %v7315_v7 = vadd.f32 %v14501_v46, %v7314_v10 }
 0x93b   : > { %v7443_v51 = vmul.f32 0.2, %v7323_v14  ;;  %v7326_v18 = vadd.f32 %v9092_v56, %v14501_v46  ;;  %v7317_v1 = vpop.f32.mrb[83].mxu0  ;;  %v14521_v10 = vpop.xlane.xlu1 %6447 }
 0x93c   : > { %9117 = vmatprep.mubr.msk.bf16.mxu0 %vm4594_vm12, %v7200_v52  ;;  %v7318_v52 = vadd.f32 %v14501_v46, %v7317_v1  ;;  %v7441_v36 = vmul.f32 0.2, %v7315_v7  ;;  %16151 = vst [vmem:[#allocation9_spill] sm:$0xff] %v14521_v10 }
 0x93d   : > { %9118 = vmatmul.mubr.msk.bf16.gmra.mrb[108].mxu0 %vm4594_vm12, %v7201_v19  ;;  %v7475_v57 = vmax.f32 %v7323_v14, %v7443_v51  ;;  %v7444_v43 = vmul.f32 0.2, %v7326_v18  ;;  %v14516_v19 = vpop.xlane.xlu0 %6444 }
 0x93e   : > { %16149 = vst [vmem:[#allocation8_spill] sm:$0xff] %v14516_v19  ;;  %v7442_v51 = vmul.f32 0.2, %v7318_v52  ;;  %v7473_v19 = vmax.f32 %v7315_v7, %v7441_v36 }
 0x93f   : > { %v7476_v16 = vmax.f32 %v7326_v18, %v7444_v43  ;;  %v7513_v47 = vmul.f32 %v16148_v4, %v7475_v57  ;;  %v7677_v11 = vmul.f32 %v16150_v8, %v7475_v57  ;;  %v14531_v63 = vpop.xlane.xlu1 %6611 }
 0x940   : > { %v9095_v25 = vpop.f32.mrb[84].mxu0  ;;  %v7474_v27 = vmax.f32 %v7318_v52, %v7442_v51  ;;  %16154 = vst [vmem:[#allocation113_spill] sm:$0xff] %v14531_v63 }
 0x941   : > { %v7330_v49 = vpop.f32.mrb[85].mxu0  ;;  %v7549_v2 = vsel %vm4594_vm12, %v7513_v47, 0.0  ;;  %v7514_v56 = vmul.f32 %v16148_v4, %v7476_v16  ;;  %v7678_v43 = vmul.f32 %v16150_v8, %v7476_v16  ;;  %v7713_v58 = vsel %vm4594_vm12, %v7677_v11, 0.0  ;;  %v14527_v24 = vpop.xlane.xlu0 %6608 }
 0x942   : > { %v9096_v14 = vpop.f32.mrb[86].mxu0  ;;  %7550 = vadd.xlane.f32.xlu0 %v7549_v2  ;;  %v7841_v47 = vmul.f32 %v16152_v55, %v7475_v57  ;;  %16153 = vst [vmem:[#allocation10_spill] sm:$0xff] %v14527_v24  ;;  %v7842_v10 = vmul.f32 %v16152_v55, %v7476_v16  ;;  %v7511_v11 = vmul.f32 %v16148_v4, %v7473_v19 }
 0x943   : > { %v7333_v18 = vpop.f32.mrb[87].mxu0  ;;  %v7552_v1 = vsel %vm4594_vm12, %v7514_v56, 0.0  ;;  %v7716_v2 = vsel %vm4594_vm12, %v7678_v43, 0.0  ;;  %v7339_v56 = vadd.f32 %v9095_v25, %v14501_v46  ;;  %v7342_v57 = vadd.f32 %v9096_v14, %v14501_v46 }
 0x944   : > { %7553 = vadd.xlane.f32.xlu1 %v7552_v1  ;;  %v7877_v36 = vsel %vm4594_vm12, %v7841_v47, 0.0  ;;  %v7880_v52 = vsel %vm4594_vm12, %v7842_v10, 0.0  ;;  %v7512_v16 = vmul.f32 %v16148_v4, %v7474_v27  ;;  %v7543_v43 = vsel %vm4594_vm12, %v7511_v11, 0.0 }
 0x945   : > { %v14543_v1 = vpop.xlane.xlu0 %6772  ;;  %v7447_v25 = vmul.f32 0.2, %v7339_v56  ;;  %v7675_v47 = vmul.f32 %v16150_v8, %v7473_v19  ;;  %v7676_v10 = vmul.f32 %v16150_v8, %v7474_v27 }
 0x946   : > { %7714 = vadd.xlane.f32.xlu0 %v7713_v58  ;;  %16155 = vst [vmem:[#allocation114_spill] sm:$0xff] %v14543_v1  ;;  %v7546_v14 = vsel %vm4594_vm12, %v7512_v16, 0.0  ;;  %v7331_v16 = vadd.f32 %v14501_v46, %v7330_v49 }
 0x947   : > { %v7479_v63 = vmax.f32 %v7339_v56, %v7447_v25  ;;  %v7707_v24 = vsel %vm4594_vm12, %v7675_v47, 0.0  ;;  %v7710_v50 = vsel %vm4594_vm12, %v7676_v10, 0.0 }
 0x948   : > { %7717 = vadd.xlane.f32.xlu1 %v7716_v2  ;;  %v9099_v45 = vpop.f32.mrb[88].mxu0  ;;  %v14547_v2 = vpop.xlane.xlu1 %6775 }
 0x949   : > { %v14536_v7 = vpop.f32.mrb[89].mxu0  ;;  %16156 = vst [vmem:[#allocation115_spill] sm:$0xff] %v14547_v2  ;;  %v14553_v1 = vpop.xlane.xlu0 %6438  ;;  %v7517_v56 = vmul.f32 %v16148_v4, %v7479_v63  ;;  %v7681_v47 = vmul.f32 %v16150_v8, %v7479_v63 }
 0x94a   : > { %7878 = vadd.xlane.f32.xlu0 %v7877_v36  ;;  %v9100_v58 = vpop.f32.mrb[90].mxu0  ;;  %v7448_v36 = vmul.f32 0.2, %v7342_v57  ;;  %16157 = vst [vmem:[#allocation116_spill] sm:$0xff] %v14553_v1 }
 0x94b   : > { %v14541_v51 = vpop.f32.mrb[91].mxu0 }
 0x94c   : > { %7881 = vadd.xlane.f32.xlu1 %v7880_v52  ;;  %v7839_v52 = vmul.f32 %v16152_v55, %v7473_v19  ;;  %v7480_v11 = vmax.f32 %v7342_v57, %v7448_v36  ;;  %v14557_v2 = vpop.xlane.xlu1 %6441  ;;  %v7334_v19 = vadd.f32 %v14501_v46, %v7333_v18 }
 0x94d   : > { %16158 = vst [vmem:[#allocation117_spill] sm:$0xff] %v14557_v2  ;;  %v14565_v25 = vpop.xlane.xlu0 %6602 }
 0x94e   : > { %7544 = vadd.xlane.f32.xlu0 %v7543_v43  ;;  %v7840_v43 = vmul.f32 %v16152_v55, %v7474_v27  ;;  %v7518_v57 = vmul.f32 %v16148_v4, %v7480_v11  ;;  %16159 = vst [vmem:[#allocation118_spill] sm:$0xff] %v14565_v25  ;;  %v7445_v27 = vmul.f32 0.2, %v7331_v16  ;;  %v7446_v36 = vmul.f32 0.2, %v7334_v19 }
 0x94f   : > { %v7682_v18 = vmul.f32 %v16150_v8, %v7480_v11 }
 0x950   : > { %7547 = vadd.xlane.f32.xlu1 %v7546_v14  ;;  %v7871_v14 = vsel %vm4594_vm12, %v7839_v52, 0.0  ;;  %v14569_v49 = vpop.xlane.xlu1 %6605  ;;  %v7564_v10 = vsel %vm4594_vm12, %v7518_v57, 0.0  ;;  %v7477_v52 = vmax.f32 %v7331_v16, %v7445_v27  ;;  %v7355_v57 = vadd.f32 %v9099_v45, %v14501_v46 }
 0x951   : > { %16160 = vst [vmem:[#allocation119_spill] sm:$0xff] %v14569_v49  ;;  %v7728_v2 = vsel %vm4594_vm12, %v7682_v18, 0.0 }
 0x952   : > { %7708 = vadd.xlane.f32.xlu0 %v7707_v24  ;;  %v7874_v24 = vsel %vm4594_vm12, %v7840_v43, 0.0  ;;  %v7725_v43 = vsel %vm4594_vm12, %v7681_v47, 0.0  ;;  %v7515_v16 = vmul.f32 %v16148_v4, %v7477_v52 }
 0x954   : > { %7711 = vadd.xlane.f32.xlu1 %v7710_v50  ;;  %v7561_v50 = vsel %vm4594_vm12, %v7517_v56, 0.0  ;;  %v7478_v56 = vmax.f32 %v7334_v19, %v7446_v36  ;;  %v14579_v49 = vpop.xlane.xlu1 %6769  ;;  %v7679_v36 = vmul.f32 %v16150_v8, %v7477_v52 }
 0x955   : > { %16162 = vst [vmem:[#allocation121_spill] sm:$0xff] %v14579_v49 }
 0x956   : > { %7872 = vadd.xlane.f32.xlu0 %v7871_v14  ;;  %v7845_v14 = vmul.f32 %v16152_v55, %v7479_v63  ;;  %v7358_v63 = vadd.f32 %v9100_v58, %v14501_v46  ;;  %v7516_v19 = vmul.f32 %v16148_v4, %v7478_v56  ;;  %v7680_v58 = vmul.f32 %v16150_v8, %v7478_v56 }
 0x958   : > { %7875 = vadd.xlane.f32.xlu1 %v7874_v24  ;;  %v14575_v24 = vpop.xlane.xlu0 %6766  ;;  %v14591_v45 = vpop.xlane.xlu1 %6459  ;;  %v7452_v18 = vmul.f32 0.2, %v7358_v63 }
 0x959   : > { %16161 = vst [vmem:[#allocation120_spill] sm:$0xff] %v14575_v24  ;;  %16164 = vst [vmem:[#allocation123_spill] sm:$0xff] %v14591_v45 }
 0x95a   : > { %7562 = vadd.xlane.f32.xlu0 %v7561_v50  ;;  %v7846_v50 = vmul.f32 %v16152_v55, %v7480_v11  ;;  %v7451_v11 = vmul.f32 0.2, %v7355_v57 }
 0x95c   : > { %7565 = vadd.xlane.f32.xlu1 %v7564_v10  ;;  %v7889_v10 = vsel %vm4594_vm12, %v7845_v14, 0.0  ;;  %v7892_v27 = vsel %vm4594_vm12, %v7846_v50, 0.0  ;;  %v14587_v47 = vpop.xlane.xlu0 %6456  ;;  %v7483_v14 = vmax.f32 %v7355_v57, %v7451_v11  ;;  %v7719_v50 = vsel %vm4594_vm12, %v7679_v36, 0.0  ;;  %v14601_v45 = vpop.xlane.xlu1 %6623 }
 0x95d   : > { %16163 = vst [vmem:[#allocation122_spill] sm:$0xff] %v14587_v47  ;;  %v7722_v47 = vsel %vm4594_vm12, %v7680_v58, 0.0  ;;  %16166 = vst [vmem:[#allocation125_spill] sm:$0xff] %v14601_v45 }
 0x95e   : > { %7726 = vadd.xlane.f32.xlu0 %v7725_v43  ;;  %v7558_v43 = vsel %vm4594_vm12, %v7516_v19, 0.0  ;;  %v7347_v19 = vadd.f32 %v14501_v46, %v14536_v7  ;;  %v7521_v11 = vmul.f32 %v16148_v4, %v7483_v14  ;;  %v7685_v7 = vmul.f32 %v16150_v8, %v7483_v14 }
 0x960   : > { %7729 = vadd.xlane.f32.xlu1 %v7728_v2  ;;  %v7555_v2 = vsel %vm4594_vm12, %v7515_v16, 0.0  ;;  %v7484_v16 = vmax.f32 %v7358_v63, %v7452_v18  ;;  %v7573_v18 = vsel %vm4594_vm12, %v7521_v11, 0.0 }
 0x962   : > { %7890 = vadd.xlane.f32.xlu0 %v7889_v10  ;;  %v7843_v10 = vmul.f32 %v16152_v55, %v7477_v52  ;;  %v7350_v52 = vadd.f32 %v14501_v46, %v14541_v51  ;;  %v7522_v36 = vmul.f32 %v16148_v4, %v7484_v16  ;;  %v7686_v51 = vmul.f32 %v16150_v8, %v7484_v16 }
 0x964   : > { %7893 = vadd.xlane.f32.xlu1 %v7892_v27  ;;  %v14597_v27 = vpop.xlane.xlu0 %6620  ;;  %v7883_v57 = vsel %vm4594_vm12, %v7843_v10, 0.0  ;;  %v7450_v58 = vmul.f32 0.2, %v7350_v52 }
 0x965   : > { %16165 = vst [vmem:[#allocation124_spill] sm:$0xff] %v14597_v27 }
 0x966   : > { %7556 = vadd.xlane.f32.xlu0 %v7555_v2  ;;  %v7844_v2 = vmul.f32 %v16152_v55, %v7478_v56  ;;  %v7482_v11 = vmax.f32 %v7350_v52, %v7450_v58 }
 0x968   : > { %7559 = vadd.xlane.f32.xlu1 %v7558_v43  ;;  %v7886_v63 = vsel %vm4594_vm12, %v7844_v2, 0.0  ;;  %v14611_v56 = vpop.xlane.xlu0 %6784  ;;  %v14615_v43 = vpop.xlane.xlu1 %6787  ;;  %v7737_v2 = vsel %vm4594_vm12, %v7685_v7, 0.0 }
 0x969   : > { %16167 = vst [vmem:[#allocation126_spill] sm:$0xff] %v14611_v56  ;;  %16168 = vst [vmem:[#allocation127_spill] sm:$0xff] %v14615_v43  ;;  %v7740_v56 = vsel %vm4594_vm12, %v7686_v51, 0.0 }
 0x96a   : > { %7720 = vadd.xlane.f32.xlu0 %v7719_v50  ;;  %v7576_v50 = vsel %vm4594_vm12, %v7522_v36, 0.0 }
 0x96c   : > { %7723 = vadd.xlane.f32.xlu1 %v7722_v47  ;;  %v7449_v47 = vmul.f32 0.2, %v7347_v19  ;;  %v14625_v43 = vpop.xlane.xlu1 %6453 }
 0x96d   : > { %16170 = vst [vmem:[#allocation129_spill] sm:$0xff] %v14625_v43 }
 0x96e   : > { %7884 = vadd.xlane.f32.xlu0 %v7883_v57  ;;  %v7481_v10 = vmax.f32 %v7347_v19, %v7449_v47  ;;  %v7849_v57 = vmul.f32 %v16152_v55, %v7483_v14  ;;  %v7520_v14 = vmul.f32 %v16148_v4, %v7482_v11 }
 0x970   : > { %7887 = vadd.xlane.f32.xlu1 %v7886_v63  ;;  %v14621_v63 = vpop.xlane.xlu0 %6450  ;;  %v7901_v36 = vsel %vm4594_vm12, %v7849_v57, 0.0  ;;  %v7683_v7 = vmul.f32 %v16150_v8, %v7481_v10  ;;  %v7684_v57 = vmul.f32 %v16150_v8, %v7482_v11 }
 0x971   : > { %16169 = vst [vmem:[#allocation128_spill] sm:$0xff] %v14621_v63 }
 0x972   : > { %7574 = vadd.xlane.f32.xlu0 %v7573_v18  ;;  %v7850_v18 = vmul.f32 %v16152_v55, %v7484_v16  ;;  %v7734_v63 = vsel %vm4594_vm12, %v7684_v57, 0.0 }
 0x974   : > { %7577 = vadd.xlane.f32.xlu1 %v7576_v50  ;;  %v7519_v50 = vmul.f32 %v16148_v4, %v7481_v10  ;;  %v7904_v19 = vsel %vm4594_vm12, %v7850_v18, 0.0  ;;  %v14631_v47 = vpop.xlane.xlu0 %6614 }
 0x975   : > { %16171 = vst [vmem:[#allocation130_spill] sm:$0xff] %v14631_v47  ;;  %v7847_v47 = vmul.f32 %v16152_v55, %v7481_v10 }
 0x976   : > { %7738 = vadd.xlane.f32.xlu0 %v7737_v2  ;;  %v7567_v52 = vsel %vm4594_vm12, %v7519_v50, 0.0  ;;  %v7570_v2 = vsel %vm4594_vm12, %v7520_v14, 0.0  ;;  %v7731_v50 = vsel %vm4594_vm12, %v7683_v7, 0.0  ;;  %v7848_v14 = vmul.f32 %v16152_v55, %v7482_v11 }
 0x977   : > { %v7895_v27 = vsel %vm4594_vm12, %v7847_v47, 0.0 }
 0x978   : > { %7741 = vadd.xlane.f32.xlu1 %v7740_v56  ;;  %v9103_v16 = vpop.f32.mrb[92].mxu0  ;;  %v14635_v56 = vpop.xlane.xlu1 %6617 }
 0x979   : > { %16172 = vst [vmem:[#allocation131_spill] sm:$0xff] %v14635_v56  ;;  %v7371_v58 = vadd.f32 %v9103_v16, %v14501_v46  ;;  %v7362_v51 = vpop.f32.mrb[93].mxu0 }
 0x97a   : > { %7902 = vadd.xlane.f32.xlu0 %v7901_v36  ;;  %v9104_v18 = vpop.f32.mrb[94].mxu0 }
 0x97b   : > { %v7455_v36 = vmul.f32 0.2, %v7371_v58  ;;  %v7365_v43 = vpop.f32.mrb[95].mxu0 }
 0x97c   : > { %7905 = vadd.xlane.f32.xlu1 %v7904_v19  ;;  %v7374_v19 = vadd.f32 %v9104_v18, %v14501_v46  ;;  %v14647_v45 = vpop.xlane.xlu1 %6781  ;;  %v7366_v10 = vadd.f32 %v14501_v46, %v7365_v43 }
 0x97d   : > { %v7487_v56 = vmax.f32 %v7371_v58, %v7455_v36  ;;  %16174 = vst [vmem:[#allocation133_spill] sm:$0xff] %v14647_v45  ;;  %v7898_v58 = vsel %vm4594_vm12, %v7848_v14, 0.0 }
 0x97e   : > { %7568 = vadd.xlane.f32.xlu0 %v7567_v52  ;;  %v14643_v52 = vpop.xlane.xlu0 %6778  ;;  %v7456_v16 = vmul.f32 0.2, %v7374_v19  ;;  %v7454_v47 = vmul.f32 0.2, %v7366_v10 }
 0x97f   : > { %16173 = vst [vmem:[#allocation132_spill] sm:$0xff] %v14643_v52  ;;  %v7525_v7 = vmul.f32 %v16148_v4, %v7487_v56  ;;  %v7853_v14 = vmul.f32 %v16152_v55, %v7487_v56 }
 0x980   : > { %7571 = vadd.xlane.f32.xlu1 %v7570_v2  ;;  %v7363_v2 = vadd.f32 %v14501_v46, %v7362_v51  ;;  %v7488_v18 = vmax.f32 %v7374_v19, %v7456_v16  ;;  %v7689_v51 = vmul.f32 %v16150_v8, %v7487_v56  ;;  %v14659_v19 = vpop.xlane.xlu1 %6471 }
 0x981   : > { %v7585_v11 = vsel %vm4594_vm12, %v7525_v7, 0.0  ;;  %16176 = vst [vmem:[#allocation135_spill] sm:$0xff] %v14659_v19  ;;  %v7486_v7 = vmax.f32 %v7366_v10, %v7454_v47 }
 0x982   : > { %7732 = vadd.xlane.f32.xlu0 %v7731_v50  ;;  %v7526_v36 = vmul.f32 %v16148_v4, %v7488_v18  ;;  %v14655_v57 = vpop.xlane.xlu0 %6468  ;;  %v7690_v43 = vmul.f32 %v16150_v8, %v7488_v18  ;;  %v7749_v16 = vsel %vm4594_vm12, %v7689_v51, 0.0 }
 0x983   : > { %16175 = vst [vmem:[#allocation134_spill] sm:$0xff] %v14655_v57  ;;  %v7524_v56 = vmul.f32 %v16148_v4, %v7486_v7  ;;  %v7688_v47 = vmul.f32 %v16150_v8, %v7486_v7 }
 0x984   : > { %7735 = vadd.xlane.f32.xlu1 %v7734_v63  ;;  %v7453_v63 = vmul.f32 0.2, %v7363_v2  ;;  %v7752_v57 = vsel %vm4594_vm12, %v7690_v43, 0.0  ;;  %v14669_v19 = vpop.xlane.xlu1 %6635 }
 0x985   : > { %16178 = vst [vmem:[#allocation137_spill] sm:$0xff] %v14669_v19  ;;  %v16225_v19 = vld [vmem:[#allocation95_spill] sm:$0xff] }
 0x986   : > { %7896 = vadd.xlane.f32.xlu0 %v7895_v27  ;;  %v7588_v27 = vsel %vm4594_vm12, %v7526_v36, 0.0  ;;  %v7485_v50 = vmax.f32 %v7363_v2, %v7453_v63  ;;  %v7913_v36 = vsel %vm4594_vm12, %v7853_v14, 0.0 }
 0x988   : > { %7899 = vadd.xlane.f32.xlu1 %v7898_v58  ;;  %v14665_v58 = vpop.xlane.xlu0 %6632  ;;  %v7687_v51 = vmul.f32 %v16150_v8, %v7485_v50 }
 0x989   : > { %16177 = vst [vmem:[#allocation136_spill] sm:$0xff] %v14665_v58 }
 0x98a   : > { %7586 = vadd.xlane.f32.xlu0 %v7585_v11  ;;  %v7854_v11 = vmul.f32 %v16152_v55, %v7488_v18  ;;  %v14679_v18 = vpop.xlane.xlu1 %6799  ;;  %v7743_v43 = vsel %vm4594_vm12, %v7687_v51, 0.0 }
 0x98b   : > { %16180 = vst [vmem:[#allocation139_spill] sm:$0xff] %v14679_v18  ;;  %v16223_v18 = vld [vmem:[#allocation94_spill] sm:$0xff] }
 0x98c   : > { %7589 = vadd.xlane.f32.xlu1 %v7588_v27  ;;  %v7523_v27 = vmul.f32 %v16148_v4, %v7485_v50  ;;  %v7916_v2 = vsel %vm4594_vm12, %v7854_v11, 0.0  ;;  %v14675_v63 = vpop.xlane.xlu0 %6796  ;;  %v7746_v11 = vsel %vm4594_vm12, %v7688_v47, 0.0 }
 0x98d   : > { %16179 = vst [vmem:[#allocation138_spill] sm:$0xff] %v14675_v63  ;;  %v16224_v63 = vld [vmem:[#allocation25_spill] sm:$0xff] }
 0x98e   : > { %7750 = vadd.xlane.f32.xlu0 %v7749_v16  ;;  %v7579_v10 = vsel %vm4594_vm12, %v7523_v27, 0.0  ;;  %v7851_v16 = vmul.f32 %v16152_v55, %v7485_v50  ;;  %v14689_v27 = vpop.xlane.xlu1 %6465  ;;  %v14918_v58 = vadd.f32 %v16225_v19, %v16224_v63  ;;  %v16229_v63 = vld [vmem:[#allocation39_spill] sm:$0xff] }
 0x98f   : > { %16182 = vst [vmem:[#allocation141_spill] sm:$0xff] %v14689_v27 }
 0x990   : > { %7753 = vadd.xlane.f32.xlu1 %v7752_v57  ;;  %v7582_v57 = vsel %vm4594_vm12, %v7524_v56, 0.0  ;;  %v14685_v14 = vpop.xlane.xlu0 %6462 }
 0x991   : > { %16181 = vst [vmem:[#allocation140_spill] sm:$0xff] %v14685_v14  ;;  %v16221_v14 = vld [vmem:[#allocation93_spill] sm:$0xff] }
 0x992   : > { %7914 = vadd.xlane.f32.xlu0 %v7913_v36  ;;  %v7852_v36 = vmul.f32 %v16152_v55, %v7486_v7  ;;  %v14695_v51 = vpop.xlane.xlu1 %6629 }
 0x993   : > { %16184 = vst [vmem:[#allocation143_spill] sm:$0xff] %v14695_v51 }
 0x994   : > { %7917 = vadd.xlane.f32.xlu1 %v7916_v2  ;;  %v7907_v2 = vsel %vm4594_vm12, %v7851_v16, 0.0  ;;  %v7910_v56 = vsel %vm4594_vm12, %v7852_v36, 0.0 }
 0x996   : > { %7580 = vadd.xlane.f32.xlu0 %v7579_v10  ;;  %v14693_v10 = vpop.xlane.xlu0 %6626 }
 0x997   : > { %16183 = vst [vmem:[#allocation142_spill] sm:$0xff] %v14693_v10  ;;  %v16220_v10 = vld [vmem:[#allocation46_spill] sm:$0xff] }
 0x998   : > { %7583 = vadd.xlane.f32.xlu1 %v7582_v57  ;;  %v14699_v57 = vpop.xlane.xlu1 %6793 }
 0x999   : > { %16186 = vst [vmem:[#allocation145_spill] sm:$0xff] %v14699_v57 }
 0x99a   : > { %7744 = vadd.xlane.f32.xlu0 %v7743_v43  ;;  %v14697_v50 = vpop.xlane.xlu0 %6790 }
 0x99b   : > { %16185 = vst [vmem:[#allocation144_spill] sm:$0xff] %v14697_v50 }
 0x99c   : > { %7747 = vadd.xlane.f32.xlu1 %v7746_v11  ;;  %v14703_v7 = vpop.xlane.xlu1 %6483 }
 0x99d   : > { %16188 = vst [vmem:[#allocation147_spill] sm:$0xff] %v14703_v7 }
 0x99e   : > { %7908 = vadd.xlane.f32.xlu0 %v7907_v2  ;;  %v14701_v47 = vpop.xlane.xlu0 %6480 }
 0x99f   : > { %16187 = vst [vmem:[#allocation146_spill] sm:$0xff] %v14701_v47 }
 0x9a0   : > { %7911 = vadd.xlane.f32.xlu1 %v7910_v56  ;;  %v14707_v11 = vpop.xlane.xlu1 %6647 }
 0x9a1   : > { %16190 = vst [vmem:[#allocation149_spill] sm:$0xff] %v14707_v11 }
 0x9a2   : > { %v14705_v43 = vpop.xlane.xlu0 %6644 }
 0x9a3   : > { %16189 = vst [vmem:[#allocation148_spill] sm:$0xff] %v14705_v43  ;;  %v16199_v43 = vlaneseq }
 0x9a4   : > { %v14711_v36 = vpop.xlane.xlu1 %6811 }
 0x9a5   : > { %16192 = vst [vmem:[#allocation151_spill] sm:$0xff] %v14711_v36  ;;  %v14726_v27 = vand.u32 127, %v16199_v43  ;;  %v6487_v36 = vadd.f32 %v14386_v53, %v13758_v31  ;;  %v6815_v31 = vadd.f32 %v14394_v9, %v13772_v0 }
 0x9a6   : > { %v14709_v16 = vpop.xlane.xlu0 %6808 }
 0x9a7   : > { %16191 = vst [vmem:[#allocation150_spill] sm:$0xff] %v14709_v16  ;;  %v6651_v16 = vadd.f32 %v14390_v35, %v13768_v28  ;;  %vm8036_vm15 = vcmp.eq.s32.totalorder %v14726_v27, 1  ;;  %vm8001_vm11 = vcmp.eq.s32.totalorder %v14726_v27, 0  ;;  %vm8103_vm13 = vcmp.eq.s32.totalorder %v14726_v27, 2 }
 0x9a8   : > { %v14715_v56 = vpop.xlane.xlu1 %6477 }
 0x9a9   : > { %16194 = vst [vmem:[#allocation153_spill] sm:$0xff] %v14715_v56 }
 0x9aa   : > { %v14713_v2 = vpop.xlane.xlu0 %6474 }
 0x9ab   : > { %16193 = vst [vmem:[#allocation152_spill] sm:$0xff] %v14713_v2 }
 0x9ac   : > { %v14719_v50 = vpop.xlane.xlu1 %6641 }
 0x9ad   : > { %16196 = vst [vmem:[#allocation155_spill] sm:$0xff] %v14719_v50  ;;  %v6488_v50 = vadd.f32 %v14388_v61, %v13770_v39 }
 0x9ae   : > { %v14717_v51 = vpop.xlane.xlu0 %6638 }
 0x9af   : > { %16195 = vst [vmem:[#allocation154_spill] sm:$0xff] %v14717_v51 }
 0x9b0   : > { %v14723_v47 = vpop.xlane.xlu1 %6805 }
 0x9b1   : > { %16198 = vst [vmem:[#allocation157_spill] sm:$0xff] %v14723_v47  ;;  %v6652_v47 = vadd.f32 %v14392_v29, %v13775_v3  ;;  %v6816_v3 = vadd.f32 %v14396_v44, %v13780_v62 }
 0x9b2   : > { %v14721_v57 = vpop.xlane.xlu0 %6802 }
 0x9b3   : > { %16197 = vst [vmem:[#allocation156_spill] sm:$0xff] %v14721_v57 }
 0x9cf   : > { %v7551_v7 = vpop.xlane.xlu0 %7550 }
 0x9d0   : > { %v7641_v57 = vadd.f32 %v7551_v7, %v6487_v36 }
 0x9d1   : > { %v7554_v11 = vpop.xlane.xlu1 %7553 }
 0x9d2   : > { %v7642_v53 = vadd.f32 %v7554_v11, %v6488_v50  ;;  %v8006_v61 = vsel %vm8001_vm11, %v7641_v57, 0.0  ;;  %v14754_v50 = vld [vmem:[%s15520_s8] ss:$0 sm:$0xff] }
 0x9d3   : > { %v7715_v56 = vpop.xlane.xlu0 %7714 }
 0x9d4   : > { %v7805_v51 = vadd.f32 %v7715_v56, %v6651_v16 }
 0x9d5   : > { %v7718_v43 = vpop.xlane.xlu1 %7717 }
 0x9d6   : > { %v8041_v28 = vsel %vm8036_vm15, %v7805_v51, 0.0  ;;  %v7806_v35 = vadd.f32 %v7718_v43, %v6652_v47  ;;  %v8007_v51 = vsel %vm8001_vm11, %v7642_v53, 0.0  ;;  %v6649_v53 = vadd.f32 %v14402_v12, %v13778_v15 }
 0x9d7   : > { %v7879_v39 = vpop.xlane.xlu0 %7878  ;;  %v8073_v0 = vadd.f32 %v8041_v28, %v8006_v61 }
 0x9d8   : > { %v8042_v29 = vsel %vm8036_vm15, %v7806_v35, 0.0  ;;  %v7969_v7 = vadd.f32 %v7879_v39, %v6815_v31  ;;  %v6485_v31 = vadd.f32 %v14398_v13, %v13761_v48  ;;  %v6486_v39 = vadd.f32 %v14400_v42, %v13795_v60 }
 0x9d9   : > { %v7882_v9 = vpop.xlane.xlu1 %7881  ;;  %v8074_v47 = vadd.f32 %v8042_v29, %v8007_v51  ;;  %v6813_v48 = vadd.f32 %v14406_v59, %v13785_v5  ;;  %v6814_v60 = vadd.f32 %v14408_v23, %v13798_v22 }
 0x9da   : > { %v8108_v62 = vsel %vm8103_vm13, %v7969_v7, 0.0  ;;  %v7970_v44 = vadd.f32 %v7882_v9, %v6816_v3  ;;  %v6650_v3 = vadd.f32 %v14404_v34, %v13788_v33 }
 0x9db   : > { %v8140_v57 = vadd.f32 %v8108_v62, %v8073_v0  ;;  %v7545_v11 = vpop.xlane.xlu0 %7544 }
 0x9dc   : > { %v8109_v16 = vsel %vm8103_vm13, %v7970_v44, 0.0  ;;  %v7639_v61 = vadd.f32 %v7545_v11, %v6485_v31 }
 0x9dd   : > { %v8179_v36 = vadd.f32 %v14754_v50, %v8140_v57  ;;  %v8141_v56 = vadd.f32 %v8109_v16, %v8074_v47  ;;  %v7548_v43 = vpop.xlane.xlu1 %7547 }
 0x9de   : > { %v7640_v15 = vadd.f32 %v7548_v43, %v6486_v39  ;;  %v8004_v33 = vsel %vm8001_vm11, %v7639_v61, 0.0 }
 0x9df   : > { %8212 = vst.msk [vmem:[%s14763_s17 + $0x10] sm:$0xff] %vm8209_vm5, %v8179_v36  ;;  %v8180_v28 = vadd.f32 %v14754_v50, %v8141_v56  ;;  %v7709_v35 = vpop.xlane.xlu0 %7708 }
 0x9e0   : > { %v7803_v29 = vadd.f32 %v7709_v35, %v6649_v53  ;;  %v8005_v5 = vsel %vm8001_vm11, %v7640_v15, 0.0 }
 0x9e1   : > { %8213 = vst.msk [vmem:[%s14763_s17 + $0x18] sm:$0xff] %vm8209_vm5, %v8180_v28  ;;  %v7712_v7 = vpop.xlane.xlu1 %7711 }
 0x9e2   : > { %v8039_v13 = vsel %vm8036_vm15, %v7803_v29, 0.0  ;;  %v7804_v12 = vadd.f32 %v7712_v7, %v6650_v3 }
 0x9e3   : > { %v7873_v0 = vpop.xlane.xlu0 %7872  ;;  %v8071_v9 = vadd.f32 %v8039_v13, %v8004_v33 }
 0x9e4   : > { %v8040_v42 = vsel %vm8036_vm15, %v7804_v12, 0.0  ;;  %v7967_v34 = vadd.f32 %v7873_v0, %v6813_v48 }
 0x9e5   : > { %v7876_v51 = vpop.xlane.xlu1 %7875  ;;  %v8072_v23 = vadd.f32 %v8040_v42, %v8005_v5 }
 0x9e6   : > { %v9107_v62 = vpop.f32.mrb[96].mxu0  ;;  %v8106_v59 = vsel %vm8103_vm13, %v7967_v34, 0.0  ;;  %v7968_v44 = vadd.f32 %v7876_v51, %v6814_v60 }
 0x9e7   : > { %v7387_v47 = vadd.f32 %v9107_v62, %v14501_v46  ;;  %v7378_v22 = vpop.f32.mrb[97].mxu0  ;;  %v8138_v57 = vadd.f32 %v8106_v59, %v8071_v9  ;;  %v14796_v11 = vpop.xlane.xlu0 %7562 }
 0x9e8   : > { %v9108_v16 = vpop.f32.mrb[98].mxu0  ;;  %v8107_v36 = vsel %vm8103_vm13, %v7968_v44, 0.0  ;;  %v7379_v3 = vadd.f32 %v14501_v46, %v7378_v22 }
 0x9e9   : > { %v7459_v56 = vmul.f32 0.2, %v7387_v47  ;;  %v7390_v43 = vadd.f32 %v9108_v16, %v14501_v46  ;;  %v7381_v31 = vpop.f32.mrb[99].mxu0  ;;  %v8177_v53 = vadd.f32 %v14754_v50, %v8138_v57  ;;  %v8139_v28 = vadd.f32 %v8107_v36, %v8072_v23  ;;  %v14802_v35 = vpop.xlane.xlu1 %7565 }
 0x9ea   : > { %v7382_v15 = vadd.f32 %v14501_v46, %v7381_v31  ;;  %v7457_v60 = vmul.f32 0.2, %v7379_v3 }
 0x9eb   : > { %v7491_v39 = vmax.f32 %v7387_v47, %v7459_v56  ;;  %v7460_v61 = vmul.f32 0.2, %v7390_v43  ;;  %8210 = vst.msk [vmem:[%s14763_s17] sm:$0xff] %vm8209_vm5, %v8177_v53  ;;  %v8178_v29 = vadd.f32 %v14754_v50, %v8139_v28  ;;  %v14808_v7 = vpop.xlane.xlu0 %7726  ;;  %v6491_v28 = vadd.f32 %v14410_v41, %v13805_v37  ;;  %v16200_v41 = vld [vmem:[#allocation12_spill] sm:$0xff] }
 0x9ec   : > { %v7458_v5 = vmul.f32 0.2, %v7382_v15  ;;  %v7489_v23 = vmax.f32 %v7379_v3, %v7457_v60  ;;  %v6492_v3 = vadd.f32 %v14412_v30, %v13808_v6  ;;  %v6820_v6 = vadd.f32 %v14420_v38, %v13858_v54  ;;  %16226 = vst [vmem:[#allocation12_spill] sm:$0xff] %v14918_v58 }
 0x9ed   : > { %v7492_v48 = vmax.f32 %v7390_v43, %v7460_v61  ;;  %v7529_v13 = vmul.f32 %v16148_v4, %v7491_v39  ;;  %8211 = vst.msk [vmem:[%s14763_s17 + $0x8] sm:$0xff] %vm8209_vm5, %v8178_v29  ;;  %v14814_v12 = vpop.xlane.xlu1 %7729  ;;  %v7693_v9 = vmul.f32 %v16150_v8, %v7491_v39  ;;  %v7857_v16 = vmul.f32 %v16152_v55, %v7491_v39 }
 0x9ee   : > { %v9111_v0 = vpop.f32.mrb[100].mxu0  ;;  %v14829_v56 = vmax.f32 %v7382_v15, %v7458_v5  ;;  %v6655_v39 = vadd.f32 %v14414_v21, %v13824_v32  ;;  %v6656_v29 = vadd.f32 %v14416_v26, %v13831_v40  ;;  %v16201_v32 = vld [vmem:[#allocation83_spill] sm:$0xff]  ;;  %v16202_v21 = vld [vmem:[#allocation36_spill] sm:$0xff]  ;;  %v16205_v26 = vld [vmem:[#allocation85_spill] sm:$0xff]  ;;  %v7855_v25 = vmul.f32 %v16152_v55, %v7489_v23 }
 0x9ef   : > { %v7394_v33 = vpop.f32.mrb[101].mxu0  ;;  %v7597_v42 = vsel %vm4594_vm12, %v7529_v13, 0.0  ;;  %v7530_v34 = vmul.f32 %v16148_v4, %v7492_v48  ;;  %v14819_v51 = vpop.xlane.xlu0 %7890  ;;  %v7694_v47 = vmul.f32 %v16150_v8, %v7492_v48  ;;  %v7761_v57 = vsel %vm4594_vm12, %v7693_v9, 0.0 }
 0x9f0   : > { %v9112_v62 = vpop.f32.mrb[102].mxu0  ;;  %7598 = vadd.xlane.f32.xlu0 %v7597_v42  ;;  %v7858_v31 = vmul.f32 %v16152_v55, %v7492_v48  ;;  %v7403_v61 = vadd.f32 %v9111_v0, %v14501_v46  ;;  %v6819_v48 = vadd.f32 %v14418_v20, %v13849_v17  ;;  %v7925_v15 = vsel %vm4594_vm12, %v7857_v16, 0.0  ;;  %v16203_v0 = vld [vmem:[#allocation84_spill] sm:$0xff]  ;;  %v16204_v17 = vld [vmem:[#allocation27_spill] sm:$0xff] }
 0x9f1   : > { %v7397_v59 = vpop.f32.mrb[103].mxu0  ;;  %v7600_v44 = vsel %vm4594_vm12, %v7530_v34, 0.0  ;;  %v14823_v22 = vpop.xlane.xlu1 %7893  ;;  %v7764_v43 = vsel %vm4594_vm12, %v7694_v47, 0.0  ;;  %v7527_v13 = vmul.f32 %v16148_v4, %v7489_v23  ;;  %v14854_v30 = vadd.f32 %v16201_v32, %v16200_v41  ;;  %v16206_v42 = vld [vmem:[#allocation47_spill] sm:$0xff]  ;;  %v16207_v34 = vld [vmem:[#allocation86_spill] sm:$0xff]  ;;  %v16211_v16 = vld [vmem:[#allocation88_spill] sm:$0xff] }
 0x9f2   : > { %7601 = vadd.xlane.f32.xlu1 %v7600_v44  ;;  %v14858_v60 = vadd.f32 %v16203_v0, %v16202_v21  ;;  %v7406_v40 = vadd.f32 %v9112_v62, %v14501_v46  ;;  %v14863_v20 = vadd.f32 %v16205_v26, %v16204_v17  ;;  %v14867_v9 = vadd.f32 %v16207_v34, %v16206_v42  ;;  %v16208_v44 = vld [vmem:[#allocation21_spill] sm:$0xff]  ;;  %v16209_v47 = vld [vmem:[#allocation87_spill] sm:$0xff]  ;;  %v16210_v62 = vld [vmem:[#allocation28_spill] sm:$0xff] }
 0x9f3   : > { %v14827_v36 = vpop.xlane.xlu0 %7556  ;;  %v7928_v54 = vsel %vm4594_vm12, %v7858_v31, 0.0  ;;  %v7528_v38 = vmul.f32 %v16148_v4, %v14829_v56  ;;  %v16213_v41 = vld [vmem:[#allocation89_spill] sm:$0xff]  ;;  %v7463_v21 = vmul.f32 0.2, %v7403_v61  ;;  %v16215_v17 = vld [vmem:[#allocation90_spill] sm:$0xff]  ;;  %v16217_v34 = vld [vmem:[#allocation91_spill] sm:$0xff]  ;;  %v7395_v45 = vadd.f32 %v14501_v46, %v7394_v33 }
 0x9f4   : > { %7762 = vadd.xlane.f32.xlu0 %v7761_v57  ;;  %v14876_v57 = vadd.f32 %v16209_v47, %v16208_v44  ;;  %v16214_v0 = vld [vmem:[#allocation57_spill] sm:$0xff]  ;;  %v16216_v42 = vld [vmem:[#allocation14_spill] sm:$0xff]  ;;  %v7591_v47 = vsel %vm4594_vm12, %v7527_v13, 0.0  ;;  %v7398_v49 = vadd.f32 %v14501_v46, %v7397_v59  ;;  %v7809_v19 = vadd.f32 %v14808_v7, %v6655_v39 }
 0x9f5   : > { %v14833_v53 = vpop.xlane.xlu1 %7559  ;;  %v14890_v26 = vadd.f32 %v16215_v17, %v16214_v0  ;;  %v14894_v44 = vadd.f32 %v16217_v34, %v16216_v42  ;;  %v14908_v0 = vadd.f32 %v16221_v14, %v16220_v10  ;;  %v16222_v17 = vld [vmem:[#allocation37_spill] sm:$0xff]  ;;  %v7464_v34 = vmul.f32 0.2, %v7406_v40 }
 0x9f6   : > { %7765 = vadd.xlane.f32.xlu1 %v7764_v43  ;;  %v14880_v43 = vadd.f32 %v16211_v16, %v16210_v62  ;;  %v7691_v16 = vmul.f32 %v16150_v8, %v7489_v23  ;;  %v14912_v42 = vadd.f32 %v16223_v18, %v16222_v17  ;;  %v7692_v14 = vmul.f32 %v16150_v8, %v14829_v56  ;;  %v16227_v18 = vld [vmem:[#allocation50_spill] sm:$0xff]  ;;  %v16228_v17 = vld [vmem:[#allocation96_spill] sm:$0xff]  ;;  %v16230_v33 = vld [vmem:[#allocation97_spill] sm:$0xff] }
 0x9f7   : > { %v14848_v37 = vpop.xlane.xlu0 %7720  ;;  %v7495_v52 = vmax.f32 %v7403_v61, %v7463_v21  ;;  %v7645_v1 = vadd.f32 %v14796_v11, %v6491_v28  ;;  %v7496_v59 = vmax.f32 %v7406_v40, %v7464_v34  ;;  %v7810_v7 = vadd.f32 %v14814_v12, %v6656_v29 }
 0x9f8   : > { %7926 = vadd.xlane.f32.xlu0 %v7925_v15  ;;  %v16212_v15 = vld [vmem:[#allocation49_spill] sm:$0xff]  ;;  %v7755_v24 = vsel %vm4594_vm12, %v7691_v16, 0.0  ;;  %v7973_v39 = vadd.f32 %v14819_v51, %v6819_v48  ;;  %v7461_v21 = vmul.f32 0.2, %v7395_v45  ;;  %v7856_v23 = vmul.f32 %v16152_v55, %v14829_v56  ;;  %v16233_v16 = vld [vmem:[#allocation52_spill] sm:$0xff] }
 0x9f9   : > { %v14872_v5 = vpop.xlane.xlu1 %7723  ;;  %v14884_v32 = vadd.f32 %v16213_v41, %v16212_v15  ;;  %v16218_v41 = vld [vmem:[#allocation26_spill] sm:$0xff]  ;;  %v7646_v11 = vadd.f32 %v14802_v35, %v6492_v3  ;;  %v7462_v40 = vmul.f32 0.2, %v7398_v49  ;;  %v8045_v12 = vsel %vm8036_vm15, %v7809_v19, 0.0 }
 0x9fa   : > { %7929 = vadd.xlane.f32.xlu1 %v7928_v54  ;;  %v16219_v54 = vld [vmem:[#allocation92_spill] sm:$0xff]  ;;  %v7919_v51 = vsel %vm4594_vm12, %v7855_v25, 0.0  ;;  %v7697_v29 = vmul.f32 %v16150_v8, %v7495_v52  ;;  %v8010_v35 = vsel %vm8001_vm11, %v7645_v1, 0.0  ;;  %v7974_v56 = vadd.f32 %v14823_v22, %v6820_v6 }
 0x9fb   : > { %v14900_v15 = vpop.xlane.xlu0 %7884  ;;  %v14904_v2 = vadd.f32 %v16219_v54, %v16218_v41  ;;  %v7594_v41 = vsel %vm4594_vm12, %v7528_v38, 0.0  ;;  %v14936_v38 = vadd.f32 %v16230_v33, %v16229_v63  ;;  %v16234_v63 = vld [vmem:[#allocation99_spill] sm:$0xff]  ;;  %v7534_v48 = vmul.f32 %v16148_v4, %v7496_v59 }
 0x9fc   : > { %v14886_v31 = vpop.f32.mrb[104].mxu0  ;;  %7592 = vadd.xlane.f32.xlu0 %v7591_v47  ;;  %v14930_v47 = vadd.f32 %v16228_v17, %v16227_v18  ;;  %v16231_v18 = vld [vmem:[#allocation29_spill] sm:$0xff]  ;;  %v16232_v17 = vld [vmem:[#allocation98_spill] sm:$0xff]  ;;  %v14957_v33 = vadd.f32 %v16234_v63, %v16233_v16  ;;  %v7861_v34 = vmul.f32 %v16152_v55, %v7495_v52  ;;  %v8112_v19 = vsel %vm8103_vm13, %v7973_v39, 0.0 }
 0x9fd   : > { %v14897_v62 = vpop.f32.mrb[105].mxu0  ;;  %v14926_v10 = vpop.xlane.xlu1 %7887  ;;  %v14945_v61 = vadd.f32 %v16232_v17, %v16231_v18  ;;  %v14973_v25 = vmax.f32 %v7395_v45, %v7461_v21  ;;  %v7922_v18 = vsel %vm4594_vm12, %v7856_v23, 0.0  ;;  %v8011_v1 = vsel %vm8001_vm11, %v7646_v11, 0.0 }
 0x9fe   : > { %v14914_v13 = vpop.f32.mrb[106].mxu0  ;;  %7595 = vadd.xlane.f32.xlu1 %v7594_v41  ;;  %v7758_v41 = vsel %vm4594_vm12, %v7692_v14, 0.0  ;;  %v8046_v14 = vsel %vm8036_vm15, %v7810_v7, 0.0  ;;  %v8077_v22 = vadd.f32 %v8045_v12, %v8010_v35  ;;  %v14978_v17 = vmax.f32 %v7398_v49, %v7462_v40 }
 0x9ff   : > { %v14922_v54 = vpop.f32.mrb[107].mxu0  ;;  %v14941_v58 = vpop.xlane.xlu0 %7574  ;;  %v7643_v7 = vadd.f32 %v14827_v36, %v14854_v30  ;;  %v7773_v45 = vsel %vm4594_vm12, %v7697_v29, 0.0  ;;  %v8078_v39 = vadd.f32 %v8046_v14, %v8011_v1  ;;  %v8113_v23 = vsel %vm8103_vm13, %v7974_v56, 0.0 }
 0xa00   : > { %7756 = vadd.xlane.f32.xlu0 %v7755_v24  ;;  %v7533_v24 = vmul.f32 %v16148_v4, %v7495_v52  ;;  %v8144_v21 = vadd.f32 %v8112_v19, %v8077_v22  ;;  %v7612_v49 = vsel %vm4594_vm12, %v7534_v48, 0.0  ;;  %v7937_v16 = vsel %vm4594_vm12, %v7861_v34, 0.0 }
 0xa01   : > { %v14953_v28 = vpop.xlane.xlu1 %7577  ;;  %v7644_v63 = vadd.f32 %v14833_v53, %v14858_v60  ;;  %v7807_v36 = vadd.f32 %v14848_v37, %v14863_v20  ;;  %v8145_v40 = vadd.f32 %v8113_v23, %v8078_v39  ;;  %v7971_v12 = vadd.f32 %v14900_v15, %v14876_v57  ;;  %v16238_v23 = vld [vmem:[#allocation101_spill] sm:$0xff] }
 0xa02   : > { %7759 = vadd.xlane.f32.xlu1 %v7758_v41  ;;  %v7609_v52 = vsel %vm4594_vm12, %v7533_v24, 0.0  ;;  %v7698_v41 = vmul.f32 %v16150_v8, %v7496_v59  ;;  %v8183_v30 = vadd.f32 %v14754_v50, %v8144_v21  ;;  %v7808_v24 = vadd.f32 %v14872_v5, %v14867_v9  ;;  %v16237_v21 = vld [vmem:[#allocation42_spill] sm:$0xff] }
 0xa03   : > { %v7739_v3 = vpop.xlane.xlu0 %7738  ;;  %v8008_v29 = vsel %vm8001_vm11, %v7643_v7, 0.0  ;;  %v8009_v53 = vsel %vm8001_vm11, %v7644_v63, 0.0  ;;  %v8043_v37 = vsel %vm8036_vm15, %v7807_v36, 0.0  ;;  %v7972_v60 = vadd.f32 %v14926_v10, %v14880_v43 }
 0xa04   : > { %7920 = vadd.xlane.f32.xlu0 %v7919_v51  ;;  %8216 = vst.msk [vmem:[%s14763_s17 + $0x30] sm:$0xff] %vm8209_vm5, %v8183_v30  ;;  %v8184_v20 = vadd.f32 %v14754_v50, %v8145_v40  ;;  %v8075_v9 = vadd.f32 %v8043_v37, %v8008_v29  ;;  %v8044_v5 = vsel %vm8036_vm15, %v7808_v24, 0.0  ;;  %v8110_v57 = vsel %vm8103_vm13, %v7971_v12, 0.0 }
 0xa05   : > { %v7742_v6 = vpop.xlane.xlu1 %7741  ;;  %v7862_v35 = vmul.f32 %v16152_v55, %v7496_v59  ;;  %v7531_v56 = vmul.f32 %v16148_v4, %v14973_v25  ;;  %v8076_v43 = vadd.f32 %v8044_v5, %v8009_v53  ;;  %v8111_v10 = vsel %vm8103_vm13, %v7972_v60, 0.0 }
 0xa06   : > { %7923 = vadd.xlane.f32.xlu1 %v7922_v18  ;;  %v7776_v48 = vsel %vm4594_vm12, %v7698_v41, 0.0  ;;  %8217 = vst.msk [vmem:[%s14763_s17 + $0x38] sm:$0xff] %vm8209_vm5, %v8184_v20  ;;  %v8142_v14 = vadd.f32 %v8110_v57, %v8075_v9  ;;  %v7813_v19 = vadd.f32 %v7739_v3, %v14894_v44  ;;  %v7814_v18 = vadd.f32 %v7742_v6, %v14904_v2  ;;  %v16236_v6 = vld [vmem:[#allocation100_spill] sm:$0xff] }
 0xa07   : > { %v7903_v11 = vpop.xlane.xlu0 %7902  ;;  %v7419_v59 = vadd.f32 %v14886_v31, %v14501_v46  ;;  %v7422_v22 = vadd.f32 %v14914_v13, %v14501_v46  ;;  %v8143_v41 = vadd.f32 %v8111_v10, %v8076_v43  ;;  %v7649_v7 = vadd.f32 %v14941_v58, %v14884_v32  ;;  %v16235_v13 = vld [vmem:[#allocation56_spill] sm:$0xff] }
 0xa08   : > { %7610 = vadd.xlane.f32.xlu0 %v7609_v52  ;;  %v8181_v2 = vadd.f32 %v14754_v50, %v8142_v14  ;;  %v7650_v44 = vadd.f32 %v14953_v28, %v14890_v26  ;;  %v7977_v31 = vadd.f32 %v7903_v11, %v14908_v0  ;;  %v15046_v39 = vadd.f32 %v16236_v6, %v16235_v13  ;;  %v15060_v0 = vld [vmem:[%s15518_s6 + $0x5] ss:$0 sm:$0xff]  ;;  %v16239_v10 = vld [vmem:[#allocation32_spill] sm:$0xff] }
 0xa09   : > { %v7906_v51 = vpop.xlane.xlu1 %7905  ;;  %v15050_v58 = vadd.f32 %v16238_v23, %v16237_v21  ;;  %v7532_v32 = vmul.f32 %v16148_v4, %v14978_v17  ;;  %v8182_v26 = vadd.f32 %v14754_v50, %v8143_v41  ;;  %v7940_v28 = vsel %vm4594_vm12, %v7862_v35, 0.0  ;;  %v16241_v41 = vld [vmem:[#allocation54_spill] sm:$0xff]  ;;  %v16246_v21 = vld [vmem:[#allocation105_spill] sm:$0xff] }
 0xa0a   : > { %7613 = vadd.xlane.f32.xlu1 %v7612_v49  ;;  %v7978_v3 = vadd.f32 %v7906_v51, %v14912_v42  ;;  %v7411_v42 = vadd.f32 %v15060_v0, %v14897_v62  ;;  %8214 = vst.msk [vmem:[%s14763_s17 + $0x20] sm:$0xff] %vm8209_vm5, %v8181_v2  ;;  %v8049_v11 = vsel %vm8036_vm15, %v7813_v19, 0.0  ;;  %v7467_v36 = vmul.f32 0.2, %v7419_v59 }
 0xa0b   : > { %v15013_v15 = vpop.xlane.xlu0 %7568  ;;  %v7468_v30 = vmul.f32 0.2, %v7422_v22  ;;  %v7603_v40 = vsel %vm4594_vm12, %v7531_v56, 0.0  ;;  %v7695_v24 = vmul.f32 %v16150_v8, %v14973_v25  ;;  %8215 = vst.msk [vmem:[%s14763_s17 + $0x28] sm:$0xff] %vm8209_vm5, %v8182_v26  ;;  %v8014_v62 = vsel %vm8001_vm11, %v7649_v7, 0.0  ;;  %v16242_v7 = vld [vmem:[#allocation103_spill] sm:$0xff] }
 0xa0c   : > { %7774 = vadd.xlane.f32.xlu0 %v7773_v45  ;;  %v8015_v12 = vsel %vm8001_vm11, %v7650_v44, 0.0  ;;  %v8116_v51 = vsel %vm8103_vm13, %v7977_v31, 0.0  ;;  %v8117_v29 = vsel %vm8103_vm13, %v7978_v3, 0.0  ;;  %v7696_v37 = vmul.f32 %v16150_v8, %v14978_v17  ;;  %v16243_v44 = vld [vmem:[#allocation45_spill] sm:$0xff]  ;;  %v16244_v31 = vld [vmem:[#allocation104_spill] sm:$0xff]  ;;  %v16248_v26 = vld [vmem:[#allocation106_spill] sm:$0xff] }
 0xa0d   : > { %v15027_v1 = vpop.xlane.xlu1 %7571  ;;  %v7859_v60 = vmul.f32 %v16152_v55, %v14973_v25  ;;  %v8081_v20 = vadd.f32 %v8049_v11, %v8014_v62  ;;  %v7465_v5 = vmul.f32 0.2, %v7411_v42  ;;  %v15090_v57 = vadd.f32 %v15060_v0, %v14922_v54  ;;  %v16249_v11 = vld [vmem:[#allocation12_spill] sm:$0xff] }
 0xa0e   : > { %7777 = vadd.xlane.f32.xlu1 %v7776_v48  ;;  %v7606_v35 = vsel %vm4594_vm12, %v7532_v32, 0.0  ;;  %v7860_v56 = vmul.f32 %v16152_v55, %v14978_v17  ;;  %v16240_v48 = vld [vmem:[#allocation102_spill] sm:$0xff]  ;;  %v7499_v19 = vmax.f32 %v7419_v59, %v7467_v36  ;;  %v6663_v2 = vadd.f32 %v16242_v7, %v16241_v41  ;;  %v16247_v32 = vld [vmem:[#allocation67_spill] sm:$0xff] }
 0xa0f   : > { %v7733_v46 = vpop.xlane.xlu0 %7732  ;;  %v6500_v14 = vadd.f32 %v16240_v48, %v16239_v10  ;;  %v6664_v54 = vadd.f32 %v16244_v31, %v16243_v44  ;;  %v15101_v3 = vmax.f32 %v7422_v22, %v7468_v30  ;;  %v7767_v13 = vsel %vm4594_vm12, %v7695_v24, 0.0  ;;  %v16245_v17 = vld [vmem:[#allocation22_spill] sm:$0xff] }
 0xa10   : > { %v15021_v34 = vpop.f32.mrb[108].mxu0  ;;  %7938 = vadd.xlane.f32.xlu0 %v7937_v16  ;;  %v8050_v16 = vsel %vm8036_vm15, %v7814_v18, 0.0  ;;  %v8148_v18 = vadd.f32 %v8116_v51, %v8081_v20  ;;  %v6827_v23 = vadd.f32 %v16246_v21, %v16245_v17  ;;  %v6828_v59 = vadd.f32 %v16248_v26, %v16247_v32 }
 0xa11   : > { %v15033_v52 = vpop.f32.mrb[109].mxu0  ;;  %v7736_v63 = vpop.xlane.xlu1 %7735  ;;  %v8082_v9 = vadd.f32 %v8050_v16, %v8015_v12  ;;  %v7647_v16 = vadd.f32 %v15013_v15, %v16249_v11  ;;  %v15111_v36 = vmax.f32 %v7411_v42, %v7465_v5  ;;  %v7466_v22 = vmul.f32 0.2, %v15090_v57 }
 0xa12   : > { %v15037_v45 = vpop.f32.mrb[110].mxu0  ;;  %7941 = vadd.xlane.f32.xlu1 %v7940_v28  ;;  %v7770_v28 = vsel %vm4594_vm12, %v7696_v37, 0.0  ;;  %v7931_v30 = vsel %vm4594_vm12, %v7859_v60, 0.0  ;;  %v7537_v62 = vmul.f32 %v16148_v4, %v7499_v19  ;;  %v7701_v12 = vmul.f32 %v16150_v8, %v7499_v19 }
 0xa13   : > { %v15054_v49 = vpop.f32.mrb[111].mxu0  ;;  %v7897_v53 = vpop.xlane.xlu0 %7896  ;;  %v8149_v25 = vadd.f32 %v8117_v29, %v8082_v9  ;;  %v8187_v51 = vadd.f32 %v14754_v50, %v8148_v18  ;;  %v7538_v42 = vmul.f32 %v16148_v4, %v15101_v3  ;;  %v7648_v29 = vadd.f32 %v15027_v1, %v14930_v47 }
 0xa14   : > { %7604 = vadd.xlane.f32.xlu0 %v7603_v40  ;;  %v7934_v40 = vsel %vm4594_vm12, %v7860_v56, 0.0  ;;  %v7811_v37 = vadd.f32 %v7733_v46, %v14936_v38  ;;  %v7812_v60 = vadd.f32 %v7736_v63, %v14945_v61  ;;  %v8012_v9 = vsel %vm8001_vm11, %v7647_v16, 0.0 }
 0xa15   : > { %v7900_v43 = vpop.xlane.xlu1 %7899  ;;  %v8188_v15 = vadd.f32 %v14754_v50, %v8149_v25  ;;  %8220 = vst.msk [vmem:[%s14763_s17 + $0x50] sm:$0xff] %vm8209_vm5, %v8187_v51  ;;  %v7975_v5 = vadd.f32 %v7897_v53, %v14957_v33  ;;  %v8013_v47 = vsel %vm8001_vm11, %v7648_v29, 0.0  ;;  %v7624_v44 = vsel %vm4594_vm12, %v7538_v42, 0.0  ;;  %v16250_v51 = vld [vmem:[#allocation35_spill] sm:$0xff]  ;;  %v16253_v42 = vld [vmem:[#allocation109_spill] sm:$0xff] }
 0xa16   : > { %7607 = vadd.xlane.f32.xlu1 %v7606_v35  ;;  %v7976_v35 = vadd.f32 %v7900_v43, %v15046_v39  ;;  %v8047_v38 = vsel %vm8036_vm15, %v7811_v37, 0.0  ;;  %v8048_v61 = vsel %vm8036_vm15, %v7812_v60, 0.0  ;;  %v7702_v31 = vmul.f32 %v16150_v8, %v15101_v3  ;;  %v16254_v60 = vld [vmem:[#allocation48_spill] sm:$0xff] }
 0xa17   : > { %v7587_v6 = vpop.xlane.xlu0 %7586  ;;  %8221 = vst.msk [vmem:[%s14763_s17 + $0x58] sm:$0xff] %vm8209_vm5, %v8188_v15  ;;  %v8079_v63 = vadd.f32 %v8047_v38, %v8012_v9  ;;  %v8080_v10 = vadd.f32 %v8048_v61, %v8013_v47  ;;  %v8114_v33 = vsel %vm8103_vm13, %v7975_v5, 0.0  ;;  %v7785_v32 = vsel %vm4594_vm12, %v7701_v12, 0.0  ;;  %v16252_v15 = vld [vmem:[#allocation55_spill] sm:$0xff]  ;;  %v16256_v47 = vld [vmem:[#allocation69_spill] sm:$0xff]  ;;  %v16257_v38 = vld [vmem:[#allocation110_spill] sm:$0xff] }
 0xa18   : > { %7768 = vadd.xlane.f32.xlu0 %v7767_v13  ;;  %v7653_v56 = vadd.f32 %v7587_v6, %v15050_v58  ;;  %v8115_v39 = vsel %vm8103_vm13, %v7976_v35, 0.0  ;;  %v7621_v58 = vsel %vm4594_vm12, %v7537_v62, 0.0  ;;  %v7865_v6 = vmul.f32 %v16152_v55, %v7499_v19 }
 0xa19   : > { %v7590_v24 = vpop.xlane.xlu1 %7589  ;;  %v8146_v25 = vadd.f32 %v8114_v33, %v8079_v63  ;;  %v8147_v41 = vadd.f32 %v8115_v39, %v8080_v10  ;;  %v6661_v29 = vadd.f32 %v16253_v42, %v16252_v15  ;;  %v7535_v35 = vmul.f32 %v16148_v4, %v15111_v36  ;;  %v16258_v10 = vld [vmem:[#allocation63_spill] sm:$0xff] }
 0xa1a   : > { %7771 = vadd.xlane.f32.xlu1 %v7770_v28  ;;  %v7654_v53 = vadd.f32 %v7590_v24, %v6500_v14  ;;  %v8018_v7 = vsel %vm8001_vm11, %v7653_v56, 0.0  ;;  %v7866_v24 = vmul.f32 %v16152_v55, %v15101_v3  ;;  %v7435_v3 = vadd.f32 %v15060_v0, %v15021_v34  ;;  %v16259_v33 = vld [vmem:[#allocation111_spill] sm:$0xff] }
 0xa1b   : > { %v7751_v20 = vpop.xlane.xlu0 %7750  ;;  %v8185_v17 = vadd.f32 %v14754_v50, %v8146_v25  ;;  %v8186_v21 = vadd.f32 %v14754_v50, %v8147_v41  ;;  %v7949_v5 = vsel %vm4594_vm12, %v7865_v6, 0.0  ;;  %v6662_v61 = vadd.f32 %v16257_v38, %v16256_v47 }
 0xa1c   : > { %7932 = vadd.xlane.f32.xlu0 %v7931_v30  ;;  %v7817_v1 = vadd.f32 %v7751_v20, %v6663_v2  ;;  %v8019_v26 = vsel %vm8001_vm11, %v7654_v53, 0.0  ;;  %v7498_v30 = vmax.f32 %v15090_v57, %v7466_v22  ;;  %v16251_v57 = vld [vmem:[#allocation107_spill] sm:$0xff]  ;;  %v16255_v20 = vld [vmem:[#allocation108_spill] sm:$0xff]  ;;  %v6825_v34 = vadd.f32 %v16259_v33, %v16258_v10 }
 0xa1d   : > { %v7754_v46 = vpop.xlane.xlu1 %7753  ;;  %8218 = vst.msk [vmem:[%s14763_s17 + $0x40] sm:$0xff] %vm8209_vm5, %v8185_v17  ;;  %8219 = vst.msk [vmem:[%s14763_s17 + $0x48] sm:$0xff] %vm8209_vm5, %v8186_v21  ;;  %v6497_v22 = vadd.f32 %v16251_v57, %v16250_v51  ;;  %v6498_v9 = vadd.f32 %v16255_v20, %v16254_v60  ;;  %v7438_v39 = vadd.f32 %v15060_v0, %v15037_v45  ;;  %v7471_v45 = vmul.f32 0.2, %v7435_v3 }
 0xa1e   : > { %7935 = vadd.xlane.f32.xlu1 %v7934_v40  ;;  %v8053_v43 = vsel %vm8036_vm15, %v7817_v1, 0.0  ;;  %v7818_v48 = vadd.f32 %v7754_v46, %v6664_v54  ;;  %v7788_v40 = vsel %vm4594_vm12, %v7702_v31, 0.0  ;;  %v7536_v53 = vmul.f32 %v16148_v4, %v7498_v30 }
 0xa1f   : > { %v7915_v18 = vpop.xlane.xlu0 %7914  ;;  %v8085_v13 = vadd.f32 %v8053_v43, %v8018_v7  ;;  %v16260_v7 = vld [vmem:[#allocation44_spill] sm:$0xff]  ;;  %v7615_v31 = vsel %vm4594_vm12, %v7535_v35, 0.0  ;;  %v7472_v21 = vmul.f32 0.2, %v7438_v39  ;;  %v7864_v51 = vmul.f32 %v16152_v55, %v7498_v30 }
 0xa20   : > { %7622 = vadd.xlane.f32.xlu0 %v7621_v58  ;;  %v7981_v2 = vadd.f32 %v7915_v18, %v6827_v23  ;;  %v8054_v14 = vsel %vm8036_vm15, %v7818_v48, 0.0  ;;  %v7952_v58 = vsel %vm4594_vm12, %v7866_v24, 0.0  ;;  %v7699_v48 = vmul.f32 %v16150_v8, %v15111_v36 }
 0xa21   : > { %v7918_v54 = vpop.xlane.xlu1 %7917  ;;  %v8086_v19 = vadd.f32 %v8054_v14, %v8019_v26  ;;  %v7700_v14 = vmul.f32 %v16150_v8, %v7498_v30  ;;  %v7503_v24 = vmax.f32 %v7435_v3, %v7471_v45  ;;  %v7430_v15 = vadd.f32 %v15060_v0, %v15054_v49  ;;  %v16263_v45 = vld [vmem:[#allocation8_spill] sm:$0xff] }
 0xa22   : > { %7625 = vadd.xlane.f32.xlu1 %v7624_v44  ;;  %v8120_v23 = vsel %vm8103_vm13, %v7981_v2, 0.0  ;;  %v7982_v11 = vadd.f32 %v7918_v54, %v6828_v59  ;;  %v16261_v2 = vld [vmem:[#allocation112_spill] sm:$0xff] }
 0xa23   : > { %v8152_v28 = vadd.f32 %v8120_v23, %v8085_v13  ;;  %v7581_v16 = vpop.xlane.xlu0 %7580  ;;  %v6826_v44 = vadd.f32 %v16261_v2, %v16260_v7  ;;  %v7618_v23 = vsel %vm4594_vm12, %v7536_v53, 0.0  ;;  %v7541_v60 = vmul.f32 %v16148_v4, %v7503_v24 }
 0xa24   : > { %7786 = vadd.xlane.f32.xlu0 %v7785_v32  ;;  %v8121_v59 = vsel %vm8103_vm13, %v7982_v11, 0.0  ;;  %v7651_v46 = vadd.f32 %v7581_v16, %v6497_v22  ;;  %v7863_v32 = vmul.f32 %v16152_v55, %v15111_v36  ;;  %v7779_v11 = vsel %vm4594_vm12, %v7699_v48, 0.0 }
 0xa25   : > { %v8191_v62 = vadd.f32 %v14754_v50, %v8152_v28  ;;  %v7584_v12 = vpop.xlane.xlu1 %7583  ;;  %v8153_v37 = vadd.f32 %v8121_v59, %v8086_v19  ;;  %v7782_v36 = vsel %vm4594_vm12, %v7700_v14, 0.0  ;;  %v7504_v22 = vmax.f32 %v7438_v39, %v7472_v21  ;;  %v16265_v14 = vld [vmem:[#allocation10_spill] sm:$0xff]  ;;  %v16267_v21 = vld [vmem:[#allocation9_spill] sm:$0xff] }
 0xa26   : > { %7789 = vadd.xlane.f32.xlu1 %v7788_v40  ;;  %v7652_v18 = vadd.f32 %v7584_v12, %v6498_v9  ;;  %v8016_v54 = vsel %vm8001_vm11, %v7651_v46, 0.0  ;;  %v7470_v20 = vmul.f32 0.2, %v7430_v15  ;;  %v7946_v9 = vsel %vm4594_vm12, %v7864_v51, 0.0  ;;  %v16272_v51 = vld [vmem:[#allocation68_spill] sm:$0xff] }
 0xa27   : > { %8224 = vst.msk [vmem:[%s14763_s17 + $0x70] sm:$0xff] %vm8209_vm5, %v8191_v62  ;;  %v7745_v56 = vpop.xlane.xlu0 %7744  ;;  %v8192_v1 = vadd.f32 %v14754_v50, %v8153_v37  ;;  %v7427_v62 = vadd.f32 %v15060_v0, %v15033_v52  ;;  %v7943_v37 = vsel %vm4594_vm12, %v7863_v32, 0.0  ;;  %v7542_v3 = vmul.f32 %v16148_v4, %v7504_v22  ;;  %v16269_v32 = vld [vmem:[#allocation113_spill] sm:$0xff] }
 0xa28   : > { %7950 = vadd.xlane.f32.xlu0 %v7949_v5  ;;  %v7815_v63 = vadd.f32 %v7745_v56, %v6661_v29  ;;  %v8017_v16 = vsel %vm8001_vm11, %v7652_v18, 0.0  ;;  %v7633_v0 = vsel %vm4594_vm12, %v7541_v60, 0.0  ;;  %v7705_v5 = vmul.f32 %v16150_v8, %v7503_v24 }
 0xa29   : > { %v7748_v43 = vpop.xlane.xlu1 %7747  ;;  %8225 = vst.msk [vmem:[%s14763_s17 + $0x78] sm:$0xff] %vm8209_vm5, %v8192_v1  ;;  %v7469_v52 = vmul.f32 0.2, %v7427_v62  ;;  %v7502_v35 = vmax.f32 %v7430_v15, %v7470_v20  ;;  %v7636_v56 = vsel %vm4594_vm12, %v7542_v3, 0.0  ;;  %v7706_v47 = vmul.f32 %v16150_v8, %v7504_v22 }
 0xa2a   : > { %7953 = vadd.xlane.f32.xlu1 %v7952_v58  ;;  %v8051_v25 = vsel %vm8036_vm15, %v7815_v63, 0.0  ;;  %v7816_v41 = vadd.f32 %v7748_v43, %v6662_v61  ;;  %v7797_v38 = vsel %vm4594_vm12, %v7705_v5, 0.0  ;;  %v7869_v48 = vmul.f32 %v16152_v55, %v7503_v24 }
 0xa2b   : > { %v7909_v13 = vpop.xlane.xlu0 %7908  ;;  %v8083_v26 = vadd.f32 %v8051_v25, %v8016_v54  ;;  %v7501_v49 = vmax.f32 %v7427_v62, %v7469_v52  ;;  %v7800_v1 = vsel %vm4594_vm12, %v7706_v47, 0.0  ;;  %v7540_v46 = vmul.f32 %v16148_v4, %v7502_v35  ;;  %v16274_v47 = vld [vmem:[#allocation72_spill] sm:$0xff] }
 0xa2c   : > { %7616 = vadd.xlane.f32.xlu0 %v7615_v31  ;;  %v8052_v6 = vsel %vm8036_vm15, %v7816_v41, 0.0  ;;  %v7979_v17 = vadd.f32 %v7909_v13, %v6825_v34  ;;  %v7704_v34 = vmul.f32 %v16150_v8, %v7502_v35  ;;  %v7961_v25 = vsel %vm4594_vm12, %v7869_v48, 0.0  ;;  %v16264_v13 = vld [vmem:[#allocation65_spill] sm:$0xff] }
 0xa2d   : > { %v7912_v28 = vpop.xlane.xlu1 %7911  ;;  %v8084_v59 = vadd.f32 %v8052_v6, %v8017_v16  ;;  %v7539_v61 = vmul.f32 %v16148_v4, %v7501_v49  ;;  %v7703_v10 = vmul.f32 %v16150_v8, %v7501_v49  ;;  %v7630_v33 = vsel %vm4594_vm12, %v7540_v46, 0.0  ;;  %v16277_v46 = vld [vmem:[#allocation118_spill] sm:$0xff] }
 0xa2e   : > { %7619 = vadd.xlane.f32.xlu1 %v7618_v23  ;;  %v8118_v19 = vsel %vm8103_vm13, %v7979_v17, 0.0  ;;  %v7980_v40 = vadd.f32 %v7912_v28, %v6826_v44  ;;  %v7867_v58 = vmul.f32 %v16152_v55, %v7501_v49  ;;  %v7794_v53 = vsel %vm4594_vm12, %v7704_v34, 0.0  ;;  %v16262_v44 = vld [vmem:[#allocation38_spill] sm:$0xff]  ;;  %v16266_v17 = vld [vmem:[#allocation41_spill] sm:$0xff]  ;;  %v16278_v34 = vld [vmem:[#allocation71_spill] sm:$0xff] }
 0xa2f   : > { %v8150_v12 = vadd.f32 %v8118_v19, %v8083_v26  ;;  %v7627_v63 = vsel %vm4594_vm12, %v7539_v61, 0.0  ;;  %v7791_v39 = vsel %vm4594_vm12, %v7703_v10, 0.0  ;;  %v7868_v4 = vmul.f32 %v16152_v55, %v7502_v35  ;;  %v16270_v19 = vld [vmem:[#allocation60_spill] sm:$0xff] }
 0xa30   : > { %7780 = vadd.xlane.f32.xlu0 %v7779_v11  ;;  %v8119_v57 = vsel %vm8103_vm13, %v7980_v40, 0.0  ;;  %v7955_v43 = vsel %vm4594_vm12, %v7867_v58, 0.0  ;;  %v7870_v8 = vmul.f32 %v16152_v55, %v7504_v22  ;;  %v6503_v31 = vadd.f32 %v16263_v45, %v16262_v44  ;;  %v16268_v55 = vld [vmem:[#allocation19_spill] sm:$0xff]  ;;  %v16271_v40 = vld [vmem:[#allocation114_spill] sm:$0xff] }
 0xa31   : > { %v8189_v42 = vadd.f32 %v14754_v50, %v8150_v12  ;;  %v8151_v29 = vadd.f32 %v8119_v57, %v8084_v59  ;;  %v7958_v18 = vsel %vm4594_vm12, %v7868_v4, 0.0  ;;  %v6667_v54 = vadd.f32 %v16265_v14, %v16264_v13  ;;  %v16273_v57 = vld [vmem:[#allocation115_spill] sm:$0xff]  ;;  %v16284_v13 = vld [vmem:[#allocation30_spill] sm:$0xff]  ;;  %v16285_v14 = vld [vmem:[#allocation121_spill] sm:$0xff] }
 0xa32   : > { %7783 = vadd.xlane.f32.xlu1 %v7782_v36  ;;  %v7964_v41 = vsel %vm4594_vm12, %v7870_v8, 0.0  ;;  %v6504_v23 = vadd.f32 %v16267_v21, %v16266_v17  ;;  %v6668_v26 = vadd.f32 %v16269_v32, %v16268_v55  ;;  %v6831_v24 = vadd.f32 %v16271_v40, %v16270_v19  ;;  %v16281_v4 = vld [vmem:[#allocation119_spill] sm:$0xff] }
 0xa33   : > { %8222 = vst.msk [vmem:[%s14763_s17 + $0x60] sm:$0xff] %vm8209_vm5, %v8189_v42  ;;  %v8190_v30 = vadd.f32 %v14754_v50, %v8151_v29  ;;  %v6832_v22 = vadd.f32 %v16273_v57, %v16272_v51  ;;  %v16288_v57 = vld [vmem:[#allocation62_spill] sm:$0xff] }
 0xa34   : > { %7944 = vadd.xlane.f32.xlu0 %v7943_v37 }
 0xa35   : > { %8223 = vst.msk [vmem:[%s14763_s17 + $0x68] sm:$0xff] %vm8209_vm5, %v8190_v30 }
 0xa36   : > { %7947 = vadd.xlane.f32.xlu1 %v7946_v9 }
 0xa38   : > { %7634 = vadd.xlane.f32.xlu0 %v7633_v0 }
 0xa3a   : > { %7637 = vadd.xlane.f32.xlu1 %v7636_v56 }
 0xa3c   : > { %7798 = vadd.xlane.f32.xlu0 %v7797_v38  ;;  %v16275_v38 = vld [vmem:[#allocation116_spill] sm:$0xff] }
 0xa3d   : > { %v6501_v61 = vadd.f32 %v16275_v38, %v16274_v47 }
 0xa3e   : > { %7801 = vadd.xlane.f32.xlu1 %v7800_v1  ;;  %v16276_v1 = vld [vmem:[#allocation64_spill] sm:$0xff] }
 0xa40   : > { %7628 = vadd.xlane.f32.xlu0 %v7627_v63  ;;  %v6665_v63 = vadd.f32 %v16277_v46, %v16276_v1  ;;  %v16296_v1 = vld [vmem:[#allocation31_spill] sm:$0xff] }
 0xa41   : > { %v16297_v46 = vld [vmem:[#allocation127_spill] sm:$0xff] }
 0xa42   : > { %7631 = vadd.xlane.f32.xlu1 %v7630_v33 }
 0xa44   : > { %7792 = vadd.xlane.f32.xlu0 %v7791_v39  ;;  %v16279_v39 = vld [vmem:[#allocation117_spill] sm:$0xff] }
 0xa45   : > { %v6502_v58 = vadd.f32 %v16279_v39, %v16278_v34 }
 0xa46   : > { %7795 = vadd.xlane.f32.xlu1 %v7794_v53  ;;  %v16280_v53 = vld [vmem:[#allocation33_spill] sm:$0xff] }
 0xa48   : > { %7956 = vadd.xlane.f32.xlu0 %v7955_v43  ;;  %v6666_v43 = vadd.f32 %v16281_v4, %v16280_v53 }
 0xa4a   : > { %7959 = vadd.xlane.f32.xlu1 %v7958_v18 }
 0xa4c   : > { %7962 = vadd.xlane.f32.xlu0 %v7961_v25  ;;  %v16282_v25 = vld [vmem:[#allocation23_spill] sm:$0xff] }
 0xa4e   : > { %7965 = vadd.xlane.f32.xlu1 %v7964_v41  ;;  %v16283_v41 = vld [vmem:[#allocation120_spill] sm:$0xff] }
 0xa7d   : > { %v7599_v7 = vpop.xlane.xlu0 %7598 }
 0xa7e   : > { %v7657_v28 = vadd.f32 %v7599_v7, %v6503_v31  ;;  %v6829_v7 = vadd.f32 %v16283_v41, %v16282_v25  ;;  %v15345_v41 = vld [vmem:[%s15520_s8] ss:$0 sm:$0xff] }
 0xa7f   : > { %v7602_v2 = vpop.xlane.xlu1 %7601 }
 0xa80   : > { %v7658_v62 = vadd.f32 %v7602_v2, %v6504_v23  ;;  %v8022_v15 = vsel %vm8001_vm11, %v7657_v28, 0.0 }
 0xa81   : > { %v7763_v6 = vpop.xlane.xlu0 %7762 }
 0xa82   : > { %v7821_v11 = vadd.f32 %v7763_v6, %v6667_v54  ;;  %v8023_v60 = vsel %vm8001_vm11, %v7658_v62, 0.0  ;;  %v6830_v54 = vadd.f32 %v16285_v14, %v16284_v13  ;;  %v16300_v14 = vld [vmem:[#allocation70_spill] sm:$0xff] }
 0xa83   : > { %v7766_v16 = vpop.xlane.xlu1 %7765 }
 0xa84   : > { %v8057_v59 = vsel %vm8036_vm15, %v7821_v11, 0.0  ;;  %v7822_v12 = vadd.f32 %v7766_v16, %v6668_v26 }
 0xa85   : > { %v7927_v36 = vpop.xlane.xlu0 %7926  ;;  %v8089_v52 = vadd.f32 %v8057_v59, %v8022_v15 }
 0xa86   : > { %v8058_v42 = vsel %vm8036_vm15, %v7822_v12, 0.0  ;;  %v7985_v29 = vadd.f32 %v7927_v36, %v6831_v24  ;;  %v16286_v12 = vld [vmem:[#allocation51_spill] sm:$0xff]  ;;  %v16287_v36 = vld [vmem:[#allocation122_spill] sm:$0xff] }
 0xa87   : > { %v7930_v37 = vpop.xlane.xlu1 %7929  ;;  %v8090_v9 = vadd.f32 %v8058_v42, %v8023_v60  ;;  %v6507_v51 = vadd.f32 %v16287_v36, %v16286_v12 }
 0xa88   : > { %v8124_v30 = vsel %vm8103_vm13, %v7985_v29, 0.0  ;;  %v7986_v20 = vadd.f32 %v7930_v37, %v6832_v22  ;;  %v16289_v22 = vld [vmem:[#allocation124_spill] sm:$0xff]  ;;  %v16291_v37 = vld [vmem:[#allocation123_spill] sm:$0xff] }
 0xa89   : > { %v8156_v3 = vadd.f32 %v8124_v30, %v8089_v52  ;;  %v7593_v49 = vpop.xlane.xlu0 %7592  ;;  %v6671_v15 = vadd.f32 %v16289_v22, %v16288_v57  ;;  %v16290_v52 = vld [vmem:[#allocation43_spill] sm:$0xff]  ;;  %v16292_v30 = vld [vmem:[#allocation16_spill] sm:$0xff]  ;;  %v16308_v22 = vld [vmem:[#allocation53_spill] sm:$0xff] }
 0xa8a   : > { %v8125_v0 = vsel %vm8103_vm13, %v7986_v20, 0.0  ;;  %v7655_v48 = vadd.f32 %v7593_v49, %v6501_v61  ;;  %v6508_v60 = vadd.f32 %v16291_v37, %v16290_v52  ;;  %v16293_v20 = vld [vmem:[#allocation125_spill] sm:$0xff] }
 0xa8b   : > { %v8195_v5 = vadd.f32 %v14754_v50, %v8156_v3  ;;  %v8157_v35 = vadd.f32 %v8125_v0, %v8090_v9  ;;  %v7596_v56 = vpop.xlane.xlu1 %7595  ;;  %v6672_v9 = vadd.f32 %v16293_v20, %v16292_v30 }
 0xa8c   : > { %v7656_v2 = vadd.f32 %v7596_v56, %v6502_v58  ;;  %v8020_v6 = vsel %vm8001_vm11, %v7655_v48, 0.0 }
 0xa8d   : > { %8228 = vst.msk [vmem:[%s14763_s17 + $0x90] sm:$0xff] %vm8209_vm5, %v8195_v5  ;;  %v8196_v10 = vadd.f32 %v14754_v50, %v8157_v35  ;;  %v7757_v33 = vpop.xlane.xlu0 %7756  ;;  %v16294_v5 = vld [vmem:[#allocation24_spill] sm:$0xff]  ;;  %v16295_v35 = vld [vmem:[#allocation126_spill] sm:$0xff] }
 0xa8e   : > { %v7819_v18 = vadd.f32 %v7757_v33, %v6665_v63  ;;  %v8021_v32 = vsel %vm8001_vm11, %v7656_v2, 0.0  ;;  %v6835_v56 = vadd.f32 %v16295_v35, %v16294_v5  ;;  %v6836_v63 = vadd.f32 %v16297_v46, %v16296_v1  ;;  %v16312_v46 = vld [vmem:[#allocation34_spill] sm:$0xff] }
 0xa8f   : > { %8229 = vst.msk [vmem:[%s14763_s17 + $0x98] sm:$0xff] %vm8209_vm5, %v8196_v10  ;;  %v7760_v8 = vpop.xlane.xlu1 %7759 }
 0xa90   : > { %v8055_v44 = vsel %vm8036_vm15, %v7819_v18, 0.0  ;;  %v7820_v45 = vadd.f32 %v7760_v8, %v6666_v43 }
 0xa91   : > { %v7921_v31 = vpop.xlane.xlu0 %7920  ;;  %v8087_v23 = vadd.f32 %v8055_v44, %v8020_v6 }
 0xa92   : > { %v8056_v17 = vsel %vm8036_vm15, %v7820_v45, 0.0  ;;  %v7983_v21 = vadd.f32 %v7921_v31, %v6829_v7  ;;  %v16298_v45 = vld [vmem:[#allocation58_spill] sm:$0xff]  ;;  %v16299_v31 = vld [vmem:[#allocation128_spill] sm:$0xff] }
 0xa93   : > { %v7924_v55 = vpop.xlane.xlu1 %7923  ;;  %v8088_v11 = vadd.f32 %v8056_v17, %v8021_v32  ;;  %v6505_v13 = vadd.f32 %v16299_v31, %v16298_v45 }
 0xa94   : > { %v8122_v26 = vsel %vm8103_vm13, %v7983_v21, 0.0  ;;  %v7984_v28 = vadd.f32 %v7924_v55, %v6830_v54  ;;  %v16301_v54 = vld [vmem:[#allocation130_spill] sm:$0xff]  ;;  %v16303_v55 = vld [vmem:[#allocation129_spill] sm:$0xff] }
 0xa95   : > { %v8154_v16 = vadd.f32 %v8122_v26, %v8087_v23  ;;  %v7611_v19 = vpop.xlane.xlu0 %7610  ;;  %v6669_v6 = vadd.f32 %v16301_v54, %v16300_v14  ;;  %v16302_v23 = vld [vmem:[#allocation20_spill] sm:$0xff]  ;;  %v16304_v26 = vld [vmem:[#allocation13_spill] sm:$0xff] }
 0xa96   : > { %v8123_v40 = vsel %vm8103_vm13, %v7984_v28, 0.0  ;;  %v7661_v3 = vadd.f32 %v7611_v19, %v6507_v51  ;;  %v6506_v32 = vadd.f32 %v16303_v55, %v16302_v23  ;;  %v16305_v28 = vld [vmem:[#allocation131_spill] sm:$0xff]  ;;  %v16320_v54 = vld [vmem:[#allocation61_spill] sm:$0xff] }
 0xa97   : > { %v8193_v24 = vadd.f32 %v14754_v50, %v8154_v16  ;;  %v8155_v62 = vadd.f32 %v8123_v40, %v8088_v11  ;;  %v7614_v59 = vpop.xlane.xlu1 %7613  ;;  %v6670_v11 = vadd.f32 %v16305_v28, %v16304_v26 }
 0xa98   : > { %v7662_v47 = vadd.f32 %v7614_v59, %v6508_v60  ;;  %v8026_v10 = vsel %vm8001_vm11, %v7661_v3, 0.0 }
 0xa99   : > { %8226 = vst.msk [vmem:[%s14763_s17 + $0x80] sm:$0xff] %vm8209_vm5, %v8193_v24  ;;  %v8194_v42 = vadd.f32 %v14754_v50, %v8155_v62  ;;  %v7775_v29 = vpop.xlane.xlu0 %7774  ;;  %v16306_v24 = vld [vmem:[#allocation59_spill] sm:$0xff]  ;;  %v16307_v62 = vld [vmem:[#allocation132_spill] sm:$0xff] }
 0xa9a   : > { %v7825_v49 = vadd.f32 %v7775_v29, %v6671_v15  ;;  %v8027_v53 = vsel %vm8001_vm11, %v7662_v47, 0.0  ;;  %v6833_v59 = vadd.f32 %v16307_v62, %v16306_v24  ;;  %v16309_v15 = vld [vmem:[#allocation133_spill] sm:$0xff] }
 0xa9b   : > { %8227 = vst.msk [vmem:[%s14763_s17 + $0x88] sm:$0xff] %vm8209_vm5, %v8194_v42  ;;  %v7778_v0 = vpop.xlane.xlu1 %7777  ;;  %v6834_v42 = vadd.f32 %v16309_v15, %v16308_v22  ;;  %v16324_v15 = vld [vmem:[#allocation2_spill] sm:$0xff] }
 0xa9c   : > { %v8061_v38 = vsel %vm8036_vm15, %v7825_v49, 0.0  ;;  %v7826_v50 = vadd.f32 %v7778_v0, %v6672_v9 }
 0xa9d   : > { %v7939_v61 = vpop.xlane.xlu0 %7938  ;;  %v8093_v39 = vadd.f32 %v8061_v38, %v8026_v10 }
 0xa9e   : > { %v8062_v33 = vsel %vm8036_vm15, %v7826_v50, 0.0  ;;  %v7989_v34 = vadd.f32 %v7939_v61, %v6835_v56  ;;  %v16310_v50 = vld [vmem:[#allocation18_spill] sm:$0xff] }
 0xa9f   : > { %v7942_v58 = vpop.xlane.xlu1 %7941  ;;  %v8094_v48 = vadd.f32 %v8062_v33, %v8027_v53  ;;  %v16311_v61 = vld [vmem:[#allocation134_spill] sm:$0xff] }
 0xaa0   : > { %v8128_v4 = vsel %vm8103_vm13, %v7989_v34, 0.0  ;;  %v7990_v43 = vadd.f32 %v7942_v58, %v6836_v63  ;;  %v6511_v1 = vadd.f32 %v16311_v61, %v16310_v50  ;;  %v16313_v63 = vld [vmem:[#allocation136_spill] sm:$0xff]  ;;  %v16315_v58 = vld [vmem:[#allocation135_spill] sm:$0xff] }
 0xaa1   : > { %v8160_v18 = vadd.f32 %v8128_v4, %v8093_v39  ;;  %v7605_v8 = vpop.xlane.xlu0 %7604  ;;  %v6675_v10 = vadd.f32 %v16313_v63, %v16312_v46  ;;  %v16314_v39 = vld [vmem:[#allocation11_spill] sm:$0xff]  ;;  %v16332_v63 = vld [vmem:[#allocation5_spill] sm:$0xff] }
 0xaa2   : > { %v8129_v25 = vsel %vm8103_vm13, %v7990_v43, 0.0  ;;  %v7659_v16 = vadd.f32 %v7605_v8, %v6505_v13  ;;  %v6512_v53 = vadd.f32 %v16315_v58, %v16314_v39  ;;  %v16316_v4 = vld [vmem:[#allocation15_spill] sm:$0xff]  ;;  %v16317_v43 = vld [vmem:[#allocation137_spill] sm:$0xff] }
 0xaa3   : > { %v8199_v7 = vadd.f32 %v15345_v41, %v8160_v18  ;;  %v8161_v2 = vadd.f32 %v8129_v25, %v8094_v48  ;;  %v7608_v44 = vpop.xlane.xlu1 %7607  ;;  %v6676_v48 = vadd.f32 %v16317_v43, %v16316_v4 }
 0xaa4   : > { %v7660_v12 = vadd.f32 %v7608_v44, %v6506_v32  ;;  %v8024_v29 = vsel %vm8001_vm11, %v7659_v16, 0.0 }
 0xaa5   : > { %8232 = vst.msk [vmem:[%s14763_s17 + $0xb0] sm:$0xff] %vm8209_vm5, %v8199_v7  ;;  %v8200_v17 = vadd.f32 %v15345_v41, %v8161_v2  ;;  %v7769_v21 = vpop.xlane.xlu0 %7768  ;;  %v16318_v7 = vld [vmem:[#allocation66_spill] sm:$0xff] }
 0xaa6   : > { %v7823_v19 = vadd.f32 %v7769_v21, %v6669_v6  ;;  %v8025_v20 = vsel %vm8001_vm11, %v7660_v12, 0.0  ;;  %v16319_v2 = vld [vmem:[#allocation138_spill] sm:$0xff]  ;;  %v16321_v6 = vld [vmem:[#allocation139_spill] sm:$0xff] }
 0xaa7   : > { %8233 = vst.msk [vmem:[%s14763_s17 + $0xb8] sm:$0xff] %vm8209_vm5, %v8200_v17  ;;  %v7772_v40 = vpop.xlane.xlu1 %7771  ;;  %v6839_v44 = vadd.f32 %v16319_v2, %v16318_v7  ;;  %v6840_v17 = vadd.f32 %v16321_v6, %v16320_v54 }
 0xaa8   : > { %v8059_v36 = vsel %vm8036_vm15, %v7823_v19, 0.0  ;;  %v7824_v51 = vadd.f32 %v7772_v40, %v6670_v11 }
 0xaa9   : > { %v7933_v57 = vpop.xlane.xlu0 %7932  ;;  %v8091_v60 = vadd.f32 %v8059_v36, %v8024_v29 }
 0xaaa   : > { %v8060_v52 = vsel %vm8036_vm15, %v7824_v51, 0.0  ;;  %v7987_v37 = vadd.f32 %v7933_v57, %v6833_v59  ;;  %v16322_v51 = vld [vmem:[#allocation40_spill] sm:$0xff] }
 0xaab   : > { %v7936_v30 = vpop.xlane.xlu1 %7935  ;;  %v8092_v49 = vadd.f32 %v8060_v52, %v8025_v20  ;;  %v16323_v57 = vld [vmem:[#allocation140_spill] sm:$0xff] }
 0xaac   : > { %v8126_v9 = vsel %vm8103_vm13, %v7987_v37, 0.0  ;;  %v7988_v3 = vadd.f32 %v7936_v30, %v6834_v42  ;;  %v6509_v22 = vadd.f32 %v16323_v57, %v16322_v51  ;;  %v16325_v42 = vld [vmem:[#allocation142_spill] sm:$0xff]  ;;  %v16327_v30 = vld [vmem:[#allocation141_spill] sm:$0xff] }
 0xaad   : > { %v8158_v0 = vadd.f32 %v8126_v9, %v8091_v60  ;;  %v7623_v5 = vpop.xlane.xlu0 %7622  ;;  %v6673_v29 = vadd.f32 %v16325_v42, %v16324_v15  ;;  %v16326_v60 = vld [vmem:[#allocation17_spill] sm:$0xff]  ;;  %v16328_v9 = vld [vmem:[#allocation3_spill] sm:$0xff]  ;;  %v16344_v15 = vld [vmem:[#allocation6_spill] sm:$0xff] }
 0xaae   : > { %v8127_v35 = vsel %vm8103_vm13, %v7988_v3, 0.0  ;;  %v7665_v18 = vadd.f32 %v7623_v5, %v6511_v1  ;;  %v6510_v20 = vadd.f32 %v16327_v30, %v16326_v60  ;;  %v16329_v3 = vld [vmem:[#allocation143_spill] sm:$0xff]  ;;  %v16345_v42 = vld [vmem:[#allocation146_spill] sm:$0xff]  ;;  %v16348_v30 = vld [vmem:[#allocation81_spill] sm:$0xff] }
 0xaaf   : > { %v8197_v56 = vadd.f32 %v15345_v41, %v8158_v0  ;;  %v8159_v47 = vadd.f32 %v8127_v35, %v8092_v49  ;;  %v7626_v38 = vpop.xlane.xlu1 %7625  ;;  %v6674_v49 = vadd.f32 %v16329_v3, %v16328_v9 }
 0xab0   : > { %v7666_v45 = vadd.f32 %v7626_v38, %v6512_v53  ;;  %v8030_v21 = vsel %vm8001_vm11, %v7665_v18, 0.0 }
 0xab1   : > { %8230 = vst.msk [vmem:[%s14763_s17 + $0xa0] sm:$0xff] %vm8209_vm5, %v8197_v56  ;;  %v8198_v33 = vadd.f32 %v15345_v41, %v8159_v47  ;;  %v7787_v34 = vpop.xlane.xlu0 %7786  ;;  %v16330_v56 = vld [vmem:[#allocation4_spill] sm:$0xff] }
 0xab2   : > { %v7829_v8 = vadd.f32 %v7787_v34, %v6675_v10  ;;  %v8031_v28 = vsel %vm8001_vm11, %v7666_v45, 0.0  ;;  %v16331_v47 = vld [vmem:[#allocation144_spill] sm:$0xff]  ;;  %v16333_v10 = vld [vmem:[#allocation145_spill] sm:$0xff] }
 0xab3   : > { %8231 = vst.msk [vmem:[%s14763_s17 + $0xa8] sm:$0xff] %vm8209_vm5, %v8198_v33  ;;  %v7790_v25 = vpop.xlane.xlu1 %7789  ;;  %v6837_v38 = vadd.f32 %v16331_v47, %v16330_v56  ;;  %v6838_v33 = vadd.f32 %v16333_v10, %v16332_v63  ;;  %v16350_v56 = vld [vmem:[#allocation7_spill] sm:$0xff] }
 0xab4   : > { %v8065_v31 = vsel %vm8036_vm15, %v7829_v8, 0.0  ;;  %v7830_v13 = vadd.f32 %v7790_v25, %v6676_v48  ;;  %v16351_v47 = vld [vmem:[#allocation147_spill] sm:$0xff] }
 0xab5   : > { %v7951_v14 = vpop.xlane.xlu0 %7950  ;;  %v8097_v32 = vadd.f32 %v8065_v31, %v8030_v21  ;;  %v16334_v21 = vld [vmem:[#allocation77_spill] sm:$0xff] }
 0xab6   : > { %v8066_v23 = vsel %vm8036_vm15, %v7830_v13, 0.0  ;;  %v7993_v55 = vadd.f32 %v7951_v14, %v6839_v44 }
 0xab7   : > { %v7954_v26 = vpop.xlane.xlu1 %7953  ;;  %v8098_v19 = vadd.f32 %v8066_v23, %v8031_v28  ;;  %v16335_v23 = vld [vmem:[#allocation152_spill] sm:$0xff] }
 0xab8   : > { %v8132_v11 = vsel %vm8103_vm13, %v7993_v55, 0.0  ;;  %v7994_v16 = vadd.f32 %v7954_v26, %v6840_v17  ;;  %v6513_v55 = vadd.f32 %v16335_v23, %v16334_v21  ;;  %v16337_v26 = vld [vmem:[#allocation154_spill] sm:$0xff] }
 0xab9   : > { %v8164_v40 = vadd.f32 %v8132_v11, %v8097_v32  ;;  %v7617_v24 = vpop.xlane.xlu0 %7616  ;;  %v16336_v32 = vld [vmem:[#allocation79_spill] sm:$0xff]  ;;  %v16338_v11 = vld [vmem:[#allocation73_spill] sm:$0xff] }
 0xaba   : > { %v8133_v62 = vsel %vm8103_vm13, %v7994_v16, 0.0  ;;  %v7663_v0 = vadd.f32 %v7617_v24, %v6509_v22  ;;  %v6677_v28 = vadd.f32 %v16337_v26, %v16336_v32  ;;  %v16339_v16 = vld [vmem:[#allocation148_spill] sm:$0xff]  ;;  %v16340_v24 = vld [vmem:[#allocation78_spill] sm:$0xff] }
 0xabb   : > { %v8203_v59 = vadd.f32 %v15345_v41, %v8164_v40  ;;  %v8165_v12 = vadd.f32 %v8133_v62, %v8098_v19  ;;  %v7620_v36 = vpop.xlane.xlu1 %7619  ;;  %v6679_v19 = vadd.f32 %v16339_v16, %v16338_v11  ;;  %v16341_v62 = vld [vmem:[#allocation153_spill] sm:$0xff] }
 0xabc   : > { %v7664_v50 = vadd.f32 %v7620_v36, %v6510_v20  ;;  %v8028_v34 = vsel %vm8001_vm11, %v7663_v0, 0.0  ;;  %v16343_v36 = vld [vmem:[#allocation155_spill] sm:$0xff]  ;;  %v16349_v20 = vld [vmem:[#allocation156_spill] sm:$0xff] }
 0xabd   : > { %8236 = vst.msk [vmem:[%s14763_s17 + $0xd0] sm:$0xff] %vm8209_vm5, %v8203_v59  ;;  %v8204_v52 = vadd.f32 %v15345_v41, %v8165_v12  ;;  %v7781_v37 = vpop.xlane.xlu0 %7780  ;;  %v6514_v59 = vadd.f32 %v16341_v62, %v16340_v24  ;;  %v16342_v12 = vld [vmem:[#allocation80_spill] sm:$0xff]  ;;  %v6841_v9 = vadd.f32 %v16349_v20, %v16348_v30 }
 0xabe   : > { %v7827_v5 = vadd.f32 %v7781_v37, %v6673_v29  ;;  %v8029_v43 = vsel %vm8001_vm11, %v7664_v50, 0.0  ;;  %v6678_v51 = vadd.f32 %v16343_v36, %v16342_v12  ;;  %v6515_v29 = vadd.f32 %v16345_v42, %v16344_v15  ;;  %v16347_v37 = vld [vmem:[#allocation149_spill] sm:$0xff]  ;;  %v16352_v50 = vld [vmem:[#allocation82_spill] sm:$0xff] }
 0xabf   : > { %8237 = vst.msk [vmem:[%s14763_s17 + $0xd8] sm:$0xff] %vm8209_vm5, %v8204_v52  ;;  %v7784_v35 = vpop.xlane.xlu1 %7783  ;;  %v16346_v52 = vld [vmem:[#allocation74_spill] sm:$0xff] }
 0xac0   : > { %v8063_v61 = vsel %vm8036_vm15, %v7827_v5, 0.0  ;;  %v7828_v1 = vadd.f32 %v7784_v35, %v6674_v49  ;;  %v6680_v60 = vadd.f32 %v16347_v37, %v16346_v52 }
 0xac1   : > { %v7945_v46 = vpop.xlane.xlu0 %7944  ;;  %v8095_v53 = vadd.f32 %v8063_v61, %v8028_v34  ;;  %v16353_v61 = vld [vmem:[#allocation157_spill] sm:$0xff] }
 0xac2   : > { %v8064_v39 = vsel %vm8036_vm15, %v7828_v1, 0.0  ;;  %v7991_v58 = vadd.f32 %v7945_v46, %v6837_v38  ;;  %v6516_v38 = vadd.f32 %v16351_v47, %v16350_v56  ;;  %v6842_v1 = vadd.f32 %v16353_v61, %v16352_v50 }
 0xac3   : > { %v7948_v4 = vpop.xlane.xlu1 %7947  ;;  %v8096_v8 = vadd.f32 %v8064_v39, %v8029_v43 }
 0xac4   : > { %v8130_v48 = vsel %vm8103_vm13, %v7991_v58, 0.0  ;;  %v7992_v18 = vadd.f32 %v7948_v4, %v6838_v33  ;;  %v16354_v58 = vld [vmem:[#allocation75_spill] sm:$0xff] }
 0xac5   : > { %v8162_v25 = vadd.f32 %v8130_v48, %v8095_v53  ;;  %v7635_v7 = vpop.xlane.xlu0 %7634  ;;  %v16355_v53 = vld [vmem:[#allocation150_spill] sm:$0xff] }
 0xac6   : > { %v8131_v2 = vsel %vm8103_vm13, %v7992_v18, 0.0  ;;  %v7669_v46 = vadd.f32 %v7635_v7, %v6515_v29  ;;  %v6843_v4 = vadd.f32 %v16355_v53, %v16354_v58 }
 0xac7   : > { %v8201_v44 = vadd.f32 %v15345_v41, %v8162_v25  ;;  %v8163_v45 = vadd.f32 %v8131_v2, %v8096_v8  ;;  %v7638_v31 = vpop.xlane.xlu1 %7637 }
 0xac8   : > { %v7670_v43 = vadd.f32 %v7638_v31, %v6516_v38  ;;  %v8034_v31 = vsel %vm8001_vm11, %v7669_v46, 0.0 }
 0xac9   : > { %8234 = vst.msk [vmem:[%s14763_s17 + $0xc0] sm:$0xff] %vm8209_vm5, %v8201_v44  ;;  %v8202_v13 = vadd.f32 %v15345_v41, %v8163_v45  ;;  %v7799_v14 = vpop.xlane.xlu0 %7798  ;;  %v16356_v44 = vld [vmem:[#allocation76_spill] sm:$0xff]  ;;  %v16357_v45 = vld [vmem:[#allocation151_spill] sm:$0xff] }
 0xaca   : > { %v7833_v49 = vadd.f32 %v7799_v14, %v6679_v19  ;;  %v8035_v11 = vsel %vm8001_vm11, %v7670_v43, 0.0 }
 0xacb   : > { %8235 = vst.msk [vmem:[%s14763_s17 + $0xc8] sm:$0xff] %vm8209_vm5, %v8202_v13  ;;  %v7802_v54 = vpop.xlane.xlu1 %7801  ;;  %v6844_v13 = vadd.f32 %v16357_v45, %v16356_v44 }
 0xacc   : > { %v7834_v10 = vadd.f32 %v7802_v54, %v6680_v60  ;;  %v8069_v8 = vsel %vm8036_vm15, %v7833_v49, 0.0 }
 0xacd   : > { %v7629_v6 = vpop.xlane.xlu0 %7628 }
 0xace   : > { %v7667_v57 = vadd.f32 %v7629_v6, %v6513_v55  ;;  %v8101_v55 = vadd.f32 %v8069_v8, %v8034_v31 }
 0xacf   : > { %v7632_v17 = vpop.xlane.xlu1 %7631 }
 0xad0   : > { %v7668_v0 = vadd.f32 %v7632_v17, %v6514_v59  ;;  %v8032_v33 = vsel %vm8001_vm11, %v7667_v57, 0.0  ;;  %v8070_v17 = vsel %vm8036_vm15, %v7834_v10, 0.0 }
 0xad1   : > { %v7793_v40 = vpop.xlane.xlu0 %7792 }
 0xad2   : > { %v7831_v22 = vadd.f32 %v7793_v40, %v6677_v28  ;;  %v8033_v25 = vsel %vm8001_vm11, %v7668_v0, 0.0  ;;  %v8102_v40 = vadd.f32 %v8070_v17, %v8035_v11 }
 0xad3   : > { %v7796_v3 = vpop.xlane.xlu1 %7795 }
 0xad4   : > { %v8067_v5 = vsel %vm8036_vm15, %v7831_v22, 0.0  ;;  %v7832_v35 = vadd.f32 %v7796_v3, %v6678_v51 }
 0xad5   : > { %v7957_v63 = vpop.xlane.xlu0 %7956  ;;  %v8099_v48 = vadd.f32 %v8067_v5, %v8032_v33 }
 0xad6   : > { %v8068_v34 = vsel %vm8036_vm15, %v7832_v35, 0.0  ;;  %v7995_v39 = vadd.f32 %v7957_v63, %v6841_v9 }
 0xad7   : > { %v7960_v18 = vpop.xlane.xlu1 %7959  ;;  %v8100_v14 = vadd.f32 %v8068_v34, %v8033_v25 }
 0xad8   : > { %v8134_v7 = vsel %vm8103_vm13, %v7995_v39, 0.0  ;;  %v7996_v2 = vadd.f32 %v7960_v18, %v6842_v1 }
 0xad9   : > { %v8166_v54 = vadd.f32 %v8134_v7, %v8099_v48  ;;  %v7963_v6 = vpop.xlane.xlu0 %7962 }
 0xada   : > { %v8135_v21 = vsel %vm8103_vm13, %v7996_v2, 0.0  ;;  %v7997_v23 = vadd.f32 %v7963_v6, %v6843_v4 }
 0xadb   : > { %v8205_v32 = vadd.f32 %v15345_v41, %v8166_v54  ;;  %v8167_v26 = vadd.f32 %v8135_v21, %v8100_v14  ;;  %v7966_v28 = vpop.xlane.xlu1 %7965 }
 0xadc   : > { %v8136_v16 = vsel %vm8103_vm13, %v7997_v23, 0.0  ;;  %v7998_v19 = vadd.f32 %v7966_v28, %v6844_v13 }
 0xadd   : > { %8238 = vst.msk [vmem:[%s14763_s17 + $0xe0] sm:$0xff] %vm8209_vm5, %v8205_v32  ;;  %v8206_v24 = vadd.f32 %v15345_v41, %v8167_v26  ;;  %v8168_v62 = vadd.f32 %v8136_v16, %v8101_v55 }
 0xade   : > { %v8137_v59 = vsel %vm8103_vm13, %v7998_v19, 0.0 }
 0xadf   : > { %8239 = vst.msk [vmem:[%s14763_s17 + $0xe8] sm:$0xff] %vm8209_vm5, %v8206_v24  ;;  %v8207_v12 = vadd.f32 %v15345_v41, %v8168_v62  ;;  %v8169_v36 = vadd.f32 %v8137_v59, %v8102_v40 }
 0xae1   : > { %8240 = vst.msk [vmem:[%s14763_s17 + $0xf0] sm:$0xff] %vm8209_vm5, %v8207_v12  ;;  %v8208_v51 = vadd.f32 %v15345_v41, %v8169_v36 }
 0xae3   : > { %8241 = vst.msk [vmem:[%s14763_s17 + $0xf8] sm:$0xff] %vm8209_vm5, %v8208_v51 }
 0xae4 PF: > { %s19_s11 = sadd.s32 1, %s9511_s11   ;;  %s16358_s30 = smov %s9507_s10 }
 0xae5   : > { %p16_p5 = scmp.ge.s32.totalorder %s19_s11, 4   ;;  %s16359_s10 = smov %s16361_s12 }
 0xae7   :  { %18 = sbr.rel (!%p16_p5) target bundleno = 2 (0x2), region = 107 }

</bundles_post_ra>
